<compile_context>
chip_gen: v7x
topology: tpu7x:2x2x1
jax: 0.10.0
libtpu: 0.0.40
codegen_flags: <defaults>
</compile_context>

<pallas_src>
import functools

import jax
import jax.numpy as jnp
from jax.experimental import pallas as pl
from jax.experimental.pallas import tpu as pltpu


def _tcn_block_kernel(gamma_ref,                         # SMEM (1,) scalar gamma
                      x_ref, w_ref, b_ref,               # VMEM inputs (NCW)
                      lnw_ref, lnb_ref,
                      o_ref,                             # VMEM output tile (NCW)
                      xpad_ref,                          # VMEM scratch: padded f32 copy
                      *, tile_l, seq_len, x_off, tap_off, win_load,
                      dilation, kernel_size, eps, neg_slope):
    # grid = (batch tiles, time tiles).  The x block's index_map is constant
    # over the time axis, so it is DMA'd once per batch tile; the padded f32
    # copy below is therefore built once per batch tile (time-tile 0) and
    # reused by every later time tile (time axis is "arbitrary" => sequential
    # on one core).
    j = pl.program_id(1)
    t0 = pl.multiple_of(j * tile_l, tile_l)

    @pl.when(j == 0)
    def _():
        # Zero the whole scratch (covers both pad regions), then place the
        # activation at the 128-aligned lane offset x_off.  Both stores are
        # lane-aligned.
        xpad_ref[...] = jnp.zeros(xpad_ref.shape, xpad_ref.dtype)
        xpad_ref[:, :, x_off:x_off + seq_len] = x_ref[...].astype(jnp.float32)

    # Parameter casts hoisted out of the unrolled tap loop (no CSE inside it).
    w = w_ref[...].astype(jnp.float32)            # (C, K)
    bias = b_ref[...].astype(jnp.float32)         # (C, 1)
    lnw = lnw_ref[...].astype(jnp.float32)        # (C, 1)
    lnb = lnb_ref[...].astype(jnp.float32)        # (C, 1)

    # Depthwise (groups == channels) dilated conv along time.  One aligned
    # window load; taps are static in-register lane slices of the window
    # (padded coordinate p maps to scratch index p + tap_off).
    xw = xpad_ref[:, :, pl.ds(t0, win_load)]      # (tb, C, win_load), already f32
    acc = xw[:, :, tap_off:tap_off + tile_l] * w[:, 0:1]
    for k in range(1, kernel_size):               # static unrolled tap loop
        off = tap_off + k * dilation
        acc = acc + xw[:, :, off:off + tile_l] * w[:, k:k + 1]
    acc = acc + bias

    # LayerNorm over channels (= sublane axis in NCW layout).
    mean = jnp.mean(acc, axis=1, keepdims=True)
    cent = acc - mean
    var = jnp.mean(cent * cent, axis=1, keepdims=True)
    y = cent * jax.lax.rsqrt(var + eps)
    y = y * lnw + lnb

    # LeakyReLU (negative_slope = 0.01): single VALU max.
    y = jnp.maximum(y, neg_slope * y)

    # Dropout is identity in eval mode.

    # Residual: aligned lane slice straight from the unpadded input block.
    res = x_ref[:, :, pl.ds(t0, tile_l)].astype(jnp.float32)
    o_ref[...] = (res + gamma_ref[0] * y).astype(o_ref.dtype)


def _round_up(x, m):
    return ((x + m - 1) // m) * m


def _largest_divisor(n, target, multiple=1):
    """Largest divisor of n that is <= target and a multiple of `multiple`;
    falls back to n itself (full extent is always a legal block dim)."""
    for cand in range(min(n, target), 0, -1):
        if n % cand == 0 and cand % multiple == 0:
            return cand
    return n


def _vmem_capacity_bytes():
    try:
        info = pltpu.get_tpu_info()
        cap = getattr(info, "vmem_capacity_bytes", None)
        if cap:
            return int(cap)
    except Exception:
        pass
    return 64 * 1024 * 1024        # conservative fallback (v7x physical VMEM)


def tcn_block_forward(x_ncl, seq_len, params, *, kernel_size, padding, dilation,
                      time_tile=512, batch_tile=2):
    """x_ncl: (B, C, L) like PyTorch Conv1d input.  Returns (B, C, seq_len)."""
    B, C, L = x_ncl.shape
    # Residual add requires the sliced conv output length to equal L.
    assert seq_len == L, "residual add requires seq_len == input length"
    assert 2 * padding >= dilation * (kernel_size - 1), "conv output shorter than seq_len"

    itemsize = jnp.dtype(x_ncl.dtype).itemsize

    # Parameters, shaped for NCW broadcasting (per-channel column vectors).
    w_ck = params["conv_w"].reshape(C, kernel_size)     # depthwise taps (C, K)
    bias = params["conv_b"].reshape(C, 1)
    lnw = params["ln_w"].reshape(C, 1)
    lnb = params["ln_b"].reshape(C, 1)
    gamma = params["gamma"].reshape(1).astype(jnp.float32)

    # Time tile sits on the LANE axis -> multiple of 128 (dtype independent);
    # the sublane axis is the full channel extent so no per-dtype multiple is
    # needed.  Falls back to the full length (always a legal block dim).
    tl = _largest_divisor(L, time_tile, multiple=128)
    tb = _largest_divisor(B, batch_tile, multiple=1)

    # Padded-scratch geometry: activation placed at a 128-aligned lane offset
    # so the copy store and the per-tile window loads are all lane-aligned.
    x_off = _round_up(padding, 128) if padding > 0 else 0
    tap_off = x_off - padding                       # extra left margin in [0, 127]

    def geometry(tl_):
        win_load_ = _round_up(tap_off + tl_ + dilation * (kernel_size - 1), 128)
        ls_ = max(x_off + L, (L - tl_) + win_load_)
        return win_load_, ls_

    # VMEM budget: ~25% headroom below physical capacity (~48 MiB on v7x,
    # ~96 MiB on v6e/v5e); shrink tiles if the estimate does not fit.
    cap = (_vmem_capacity_bytes() * 3) // 4

    def vmem_need(tb_, tl_):
        _, ls_ = geometry(tl_)
        return (2 * tb_ * C * L * itemsize          # double-buffered x block
                + tb_ * C * ls_ * 4                 # padded f32 scratch
                + 2 * tb_ * C * tl_ * itemsize      # double-buffered output block
                + 6 * tb_ * C * tl_ * 4             # f32 intermediates (acc/cent/y/res/window)
                + 2 * (kernel_size + 3) * C * 4     # parameters
                + (2 << 20))                        # mosaic internal slack

    while vmem_need(tb, tl) > cap and tb > 1:
        tb = _largest_divisor(B, max(tb // 2, 1), multiple=1)
    while vmem_need(tb, tl) > cap and tl > 128:
        new_tl = _largest_divisor(L, max(tl // 2, 128), multiple=128)
        if new_tl >= tl:
            break
        tl = new_tl

    win_load, Ls = geometry(tl)
    grid = (B // tb, L // tl)
    vmem_limit = int(min(max(vmem_need(tb, tl), 32 * 1024 * 1024), cap))

    flops = (2 * kernel_size + 12) * B * C * L
    bytes_accessed = 2 * B * C * L * itemsize + (kernel_size + 3) * C * 4
    transcendentals = B * L                          # one rsqrt per time position

    kernel = functools.partial(
        _tcn_block_kernel,
        tile_l=tl, seq_len=L, x_off=x_off, tap_off=tap_off, win_load=win_load,
        dilation=dilation, kernel_size=kernel_size, eps=1e-5, neg_slope=0.01)

    out = pl.pallas_call(
        kernel,
        out_shape=jax.ShapeDtypeStruct((B, C, L), x_ncl.dtype),
        grid=grid,
        in_specs=[
            pl.BlockSpec(memory_space=pltpu.MemorySpace.SMEM),       # gamma (scalar)
            # Full-time NCW input block; index constant over the time axis so
            # it is DMA'd once per batch tile and reused across time tiles.
            pl.BlockSpec((tb, C, L), lambda b, j: (b, 0, 0)),
            pl.BlockSpec((C, kernel_size), lambda b, j: (0, 0)),     # depthwise weight
            pl.BlockSpec((C, 1), lambda b, j: (0, 0)),               # conv bias
            pl.BlockSpec((C, 1), lambda b, j: (0, 0)),               # LN weight
            pl.BlockSpec((C, 1), lambda b, j: (0, 0)),               # LN bias
        ],
        out_specs=pl.BlockSpec((tb, C, tl), lambda b, j: (b, 0, j)),
        scratch_shapes=[pltpu.VMEM((tb, C, Ls), jnp.float32)],       # padded f32 copy
        compiler_params=pltpu.CompilerParams(
            # Megacore shards the batch axis; the time axis stays sequential
            # (required: the padded scratch built at time-tile 0 is reused by
            # later time tiles, and it avoids re-DMA of the resident block).
            dimension_semantics=("parallel", "arbitrary"),
            vmem_limit_bytes=vmem_limit),
        cost_estimate=pl.CostEstimate(
            flops=flops, transcendentals=transcendentals,
            bytes_accessed=bytes_accessed),
    )(gamma, x_ncl, w_ck, bias, lnw, lnb)

    return out                                        # already NCW (B, C, L)


def tcn_block_reference(x_ncl, seq_len, params, *, kernel_size, padding, dilation):
    """Pure-JAX reference mirroring the PyTorch forward (eval mode)."""
    B, C, L = x_ncl.shape
    xp = jnp.pad(x_ncl, ((0, 0), (0, 0), (padding, padding)))
    Lout = L + 2 * padding - dilation * (kernel_size - 1)
    w = params["conv_w"].reshape(C, kernel_size)
    y = jnp.zeros((B, C, Lout), jnp.float32)
    for k in range(kernel_size):
        y = y + xp[:, :, k * dilation:k * dilation + Lout] * w[:, k][None, :, None]
    y = y + params["conv_b"][None, :, None]
    yt = jnp.transpose(y, (0, 2, 1))                                 # (B, Lout, C)
    mean = yt.mean(-1, keepdims=True)
    var = ((yt - mean) ** 2).mean(-1, keepdims=True)
    yn = (yt - mean) / jnp.sqrt(var + 1e-5) * params["ln_w"] + params["ln_b"]
    ya = jnp.where(yn >= 0, yn, 0.01 * yn)
    yb = jnp.transpose(ya, (0, 2, 1))[:, :, :seq_len]
    return x_ncl + params["gamma"] * yb


if __name__ == "__main__":
    B, C, L = 4, 128, 512        # batch, hidden_size, time (f32, ~1 MiB total)
    K, DIL = 3, 2
    PAD = DIL * (K - 1)          # = 4, typical TCN "same-ish" padding
    seq_len = L

    key = jax.random.PRNGKey(0)
    kx, kw, kb, kg, kh = jax.random.split(key, 5)
    x = jax.random.normal(kx, (B, C, L), dtype=jnp.float32)

    bound = 1.0 / (K ** 0.5)     # nn.Conv1d default init range (k = groups/(C_in*K) = 1/K)
    params = {
        "conv_w": jax.random.uniform(kw, (C, 1, K), jnp.float32, -bound, bound),
        "conv_b": jax.random.uniform(kb, (C,), jnp.float32, -bound, bound),
        # slightly perturbed LN/gamma so the correctness check exercises them
        "ln_w": 1.0 + 0.1 * jax.random.normal(kg, (C,), jnp.float32),
        "ln_b": 0.1 * jax.random.normal(kh, (C,), jnp.float32),
        "gamma": jnp.full((1,), 0.8, jnp.float32),
    }

    ref = tcn_block_reference(x, seq_len, params,
                              kernel_size=K, padding=PAD, dilation=DIL)

    # Primary config: large tiles (grid (2, 1) -> batch-axis megacore sharding,
    # lane-dense 512-wide output stores).
    out = tcn_block_forward(x, seq_len, params,
                            kernel_size=K, padding=PAD, dilation=DIL,
                            time_tile=512, batch_tile=2)
    out = jax.block_until_ready(out)
    assert out.shape == (B, C, seq_len)
    assert jnp.allclose(out, ref, atol=1e-4, rtol=1e-4), "mismatch vs reference"

    # Secondary config exercising the multi-time-tile path (padded scratch
    # built at time-tile 0 and reused by time tiles 1..3).
    out2 = tcn_block_forward(x, seq_len, params,
                             kernel_size=K, padding=PAD, dilation=DIL,
                             time_tile=128, batch_tile=1)
    out2 = jax.block_until_ready(out2)
    assert jnp.allclose(out2, ref, atol=1e-4, rtol=1e-4), "mismatch vs reference (tiled)"

    print("KERNEL_OK")
</pallas_src>

<mosaic_0001>
module attributes {stable_mosaic.version = 11 : i64} {
  func.func @_tcn_block_kernel(%arg0: i32, %arg1: i32, %arg2: memref<1xf32, #tpu.memory_space<smem>>, %arg3: memref<2x128x512xf32, #tpu.memory_space<vmem>>, %arg4: memref<128x3xf32, #tpu.memory_space<vmem>>, %arg5: memref<128x1xf32, #tpu.memory_space<vmem>>, %arg6: memref<128x1xf32, #tpu.memory_space<vmem>>, %arg7: memref<128x1xf32, #tpu.memory_space<vmem>>, %arg8: memref<2x128x512xf32, #tpu.memory_space<vmem>>, %arg9: memref<2x128x640xf32, #tpu.memory_space<vmem>>) attributes {dimension_semantics = [#tpu.dimension_semantics<parallel>, #tpu.dimension_semantics<arbitrary>], iteration_bounds = array<i64: 2, 1>, scalar_prefetch = 0 : i64, scratch_operands = 1 : i64, tpu.core_type = #tpu.core_type<tc>, window_params = [{transform_indices = @transform_0, window_bounds = array<i64: 1>}, {transform_indices = @transform_1, window_bounds = array<i64: 2, 128, 512>}, {pipeline_mode = #tpu.pipeline_mode<synchronous>, transform_indices = @transform_2, window_bounds = array<i64: 128, 3>}, {pipeline_mode = #tpu.pipeline_mode<synchronous>, transform_indices = @transform_3, window_bounds = array<i64: 128, 1>}, {pipeline_mode = #tpu.pipeline_mode<synchronous>, transform_indices = @transform_4, window_bounds = array<i64: 128, 1>}, {pipeline_mode = #tpu.pipeline_mode<synchronous>, transform_indices = @transform_5, window_bounds = array<i64: 128, 1>}, {transform_indices = @transform_6, window_bounds = array<i64: 2, 128, 512>}]} {
    %c512_i32 = arith.constant 512 : i32
    %0 = arith.muli %arg1, %c512_i32 : i32
    %1 = tpu.assume_multiple %0, 512 : i32
    %c0_i32 = arith.constant 0 : i32
    %2 = arith.cmpi eq, %arg1, %c0_i32 : i32
    %3 = arith.extui %2 : i1 to i32
    %c0_i32_0 = arith.constant 0 : i32
    %4 = arith.cmpi ne, %3, %c0_i32_0 : i32
    scf.if %4 {
      %cst_21 = arith.constant 0.000000e+00 : f32
      %63 = vector.broadcast %cst_21 : f32 to vector<2x128x640xf32>
      %c0_22 = arith.constant 0 : index
      %c0_23 = arith.constant 0 : index
      %c0_24 = arith.constant 0 : index
      %64 = vector.load %arg9[%c0_22, %c0_23, %c0_24] : memref<2x128x640xf32, #tpu.memory_space<vmem>>, vector<2x128x640xf32>
      tpu.vector_store %arg9[%c0_22, %c0_23, %c0_24], %63 {strides = array<i32>} : memref<2x128x640xf32, #tpu.memory_space<vmem>>, vector<2x128x640xf32>,
      %c0_25 = arith.constant 0 : index
      %c0_26 = arith.constant 0 : index
      %c0_27 = arith.constant 0 : index
      %65 = vector.load %arg3[%c0_25, %c0_26, %c0_27] : memref<2x128x512xf32, #tpu.memory_space<vmem>>, vector<2x128x512xf32>
      %c0_28 = arith.constant 0 : index
      %c0_29 = arith.constant 0 : index
      %c128 = arith.constant 128 : index
      %66 = vector.load %arg9[%c0_28, %c0_29, %c128] : memref<2x128x640xf32, #tpu.memory_space<vmem>>, vector<2x128x512xf32>
      tpu.vector_store %arg9[%c0_28, %c0_29, %c128], %65 {strides = array<i32>} : memref<2x128x640xf32, #tpu.memory_space<vmem>>, vector<2x128x512xf32>,
    } else {
    }
    %c0 = arith.constant 0 : index
    %c0_1 = arith.constant 0 : index
    %5 = vector.load %arg4[%c0, %c0_1] : memref<128x3xf32, #tpu.memory_space<vmem>>, vector<128x3xf32>
    %c0_2 = arith.constant 0 : index
    %c0_3 = arith.constant 0 : index
    %6 = vector.load %arg5[%c0_2, %c0_3] : memref<128x1xf32, #tpu.memory_space<vmem>>, vector<128x1xf32>
    %c0_4 = arith.constant 0 : index
    %c0_5 = arith.constant 0 : index
    %7 = vector.load %arg6[%c0_4, %c0_5] : memref<128x1xf32, #tpu.memory_space<vmem>>, vector<128x1xf32>
    %c0_6 = arith.constant 0 : index
    %c0_7 = arith.constant 0 : index
    %8 = vector.load %arg7[%c0_6, %c0_7] : memref<128x1xf32, #tpu.memory_space<vmem>>, vector<128x1xf32>
    %c0_8 = arith.constant 0 : index
    %c0_9 = arith.constant 0 : index
    %9 = arith.index_cast %1 : i32 to index
    %10 = vector.load %arg9[%c0_8, %c0_9, %9] : memref<2x128x640xf32, #tpu.memory_space<vmem>>, vector<2x128x640xf32>
    %11 = vector.extract_strided_slice %10 {offsets = [0, 0, 124], sizes = [2, 128, 512], strides = [1, 1, 1]} : vector<2x128x640xf32> to vector<2x128x512xf32>
    %12 = vector.extract_strided_slice %5 {offsets = [0, 0], sizes = [128, 1], strides = [1, 1]} : vector<128x3xf32> to vector<128x1xf32>
    %13 = vector.shape_cast %12 : vector<128x1xf32> to vector<1x128x1xf32>
    %14 = vector.broadcast %13 : vector<1x128x1xf32> to vector<2x128x512xf32>
    %15 = arith.mulf %11, %14 : vector<2x128x512xf32>
    %16 = vector.extract_strided_slice %10 {offsets = [0, 0, 126], sizes = [2, 128, 512], strides = [1, 1, 1]} : vector<2x128x640xf32> to vector<2x128x512xf32>
    %17 = vector.extract_strided_slice %5 {offsets = [0, 1], sizes = [128, 1], strides = [1, 1]} : vector<128x3xf32> to vector<128x1xf32>
    %18 = vector.shape_cast %17 : vector<128x1xf32> to vector<1x128x1xf32>
    %19 = vector.broadcast %18 : vector<1x128x1xf32> to vector<2x128x512xf32>
    %20 = arith.mulf %16, %19 : vector<2x128x512xf32>
    %21 = arith.addf %15, %20 : vector<2x128x512xf32>
    %22 = vector.extract_strided_slice %10 {offsets = [0, 0, 128], sizes = [2, 128, 512], strides = [1, 1, 1]} : vector<2x128x640xf32> to vector<2x128x512xf32>
    %23 = vector.extract_strided_slice %5 {offsets = [0, 2], sizes = [128, 1], strides = [1, 1]} : vector<128x3xf32> to vector<128x1xf32>
    %24 = vector.shape_cast %23 : vector<128x1xf32> to vector<1x128x1xf32>
    %25 = vector.broadcast %24 : vector<1x128x1xf32> to vector<2x128x512xf32>
    %26 = arith.mulf %22, %25 : vector<2x128x512xf32>
    %27 = arith.addf %21, %26 : vector<2x128x512xf32>
    %28 = vector.shape_cast %6 : vector<128x1xf32> to vector<1x128x1xf32>
    %29 = vector.broadcast %28 : vector<1x128x1xf32> to vector<2x128x512xf32>
    %30 = arith.addf %27, %29 : vector<2x128x512xf32>
    %cst = arith.constant dense<0.000000e+00> : vector<2x512xf32>
    %31 = vector.multi_reduction <add>, %30, %cst [1] : vector<2x128x512xf32> to vector<2x512xf32>
    %32 = vector.shape_cast %31 : vector<2x512xf32> to vector<2x1x512xf32>
    %cst_10 = arith.constant 1.280000e+02 : f32
    %33 = vector.broadcast %cst_10 : f32 to vector<2x1x512xf32>
    %34 = arith.divf %32, %33 : vector<2x1x512xf32>
    %35 = vector.broadcast %34 : vector<2x1x512xf32> to vector<2x128x512xf32>
    %36 = arith.subf %30, %35 : vector<2x128x512xf32>
    %37 = arith.mulf %36, %36 : vector<2x128x512xf32>
    %cst_11 = arith.constant dense<0.000000e+00> : vector<2x512xf32>
    %38 = vector.multi_reduction <add>, %37, %cst_11 [1] : vector<2x128x512xf32> to vector<2x512xf32>
    %39 = vector.shape_cast %38 : vector<2x512xf32> to vector<2x1x512xf32>
    %cst_12 = arith.constant 1.280000e+02 : f32
    %40 = vector.broadcast %cst_12 : f32 to vector<2x1x512xf32>
    %41 = arith.divf %39, %40 : vector<2x1x512xf32>
    %cst_13 = arith.constant 9.99999974E-6 : f32
    %42 = vector.broadcast %cst_13 : f32 to vector<2x1x512xf32>
    %43 = arith.addf %41, %42 : vector<2x1x512xf32>
    %44 = math.rsqrt %43 : vector<2x1x512xf32>
    %45 = vector.broadcast %44 : vector<2x1x512xf32> to vector<2x128x512xf32>
    %46 = arith.mulf %36, %45 : vector<2x128x512xf32>
    %47 = vector.shape_cast %7 : vector<128x1xf32> to vector<1x128x1xf32>
    %48 = vector.broadcast %47 : vector<1x128x1xf32> to vector<2x128x512xf32>
    %49 = arith.mulf %46, %48 : vector<2x128x512xf32>
    %50 = vector.shape_cast %8 : vector<128x1xf32> to vector<1x128x1xf32>
    %51 = vector.broadcast %50 : vector<1x128x1xf32> to vector<2x128x512xf32>
    %52 = arith.addf %49, %51 : vector<2x128x512xf32>
    %cst_14 = arith.constant 0.00999999977 : f32
    %53 = vector.broadcast %cst_14 : f32 to vector<2x128x512xf32>
    %54 = arith.mulf %53, %52 : vector<2x128x512xf32>
    %55 = arith.maximumf %52, %54 : vector<2x128x512xf32>
    %c0_15 = arith.constant 0 : index
    %c0_16 = arith.constant 0 : index
    %56 = arith.index_cast %1 : i32 to index
    %57 = vector.load %arg3[%c0_15, %c0_16, %56] : memref<2x128x512xf32, #tpu.memory_space<vmem>>, vector<2x128x512xf32>
    %c0_17 = arith.constant 0 : index
    %58 = memref.load %arg2[%c0_17] : memref<1xf32, #tpu.memory_space<smem>>
    %59 = vector.broadcast %58 : f32 to vector<2x128x512xf32>
    %60 = arith.mulf %59, %55 : vector<2x128x512xf32>
    %61 = arith.addf %57, %60 : vector<2x128x512xf32>
    %c0_18 = arith.constant 0 : index
    %c0_19 = arith.constant 0 : index
    %c0_20 = arith.constant 0 : index
    %62 = vector.load %arg8[%c0_18, %c0_19, %c0_20] : memref<2x128x512xf32, #tpu.memory_space<vmem>>, vector<2x128x512xf32>
    tpu.vector_store %arg8[%c0_18, %c0_19, %c0_20], %61 {strides = array<i32>} : memref<2x128x512xf32, #tpu.memory_space<vmem>>, vector<2x128x512xf32>,
    return
  }
  func.func @transform_0(%arg0: i32, %arg1: i32) -> i32 {
    %c0_i32 = arith.constant 0 : i32
    %c0_i32_0 = arith.constant 0 : i32
    return %c0_i32 : i32
  }
  func.func @transform_1(%arg0: i32, %arg1: i32) -> (i32, i32, i32) {
    %c0_i32 = arith.constant 0 : i32
    %c0_i32_0 = arith.constant 0 : i32
    %c0_i32_1 = arith.constant 0 : i32
    return %arg0, %c0_i32, %c0_i32_0 : i32, i32, i32
  }
  func.func @transform_2(%arg0: i32, %arg1: i32) -> (i32, i32) {
    %c0_i32 = arith.constant 0 : i32
    %c0_i32_0 = arith.constant 0 : i32
    %c0_i32_1 = arith.constant 0 : i32
    return %c0_i32, %c0_i32_0 : i32, i32
  }
  func.func @transform_3(%arg0: i32, %arg1: i32) -> (i32, i32) {
    %c0_i32 = arith.constant 0 : i32
    %c0_i32_0 = arith.constant 0 : i32
    %c0_i32_1 = arith.constant 0 : i32
    return %c0_i32, %c0_i32_0 : i32, i32
  }
  func.func @transform_4(%arg0: i32, %arg1: i32) -> (i32, i32) {
    %c0_i32 = arith.constant 0 : i32
    %c0_i32_0 = arith.constant 0 : i32
    %c0_i32_1 = arith.constant 0 : i32
    return %c0_i32, %c0_i32_0 : i32, i32
  }
  func.func @transform_5(%arg0: i32, %arg1: i32) -> (i32, i32) {
    %c0_i32 = arith.constant 0 : i32
    %c0_i32_0 = arith.constant 0 : i32
    %c0_i32_1 = arith.constant 0 : i32
    return %c0_i32, %c0_i32_0 : i32, i32
  }
  func.func @transform_6(%arg0: i32, %arg1: i32) -> (i32, i32, i32) {
    %c0_i32 = arith.constant 0 : i32
    %c0_i32_0 = arith.constant 0 : i32
    return %arg0, %c0_i32, %arg1 : i32, i32, i32
  }
}

</mosaic_0001>

<bundles_post_ra>
// kernel: tpu_custom_call.1
= control target key start
LH: loop header
LB: loop body
LE: loop exit
PB: predicated region body
PF: predicated region fallthrough
CT: control target
= control target key end

     0   :  { %s15818_s0 = inlined_call_operand.<no memory space> [shape: f32[1], index: 0, kind: input, shape index: {}]   ;;  %s15819_s1 = inlined_call_operand.hbm [shape: f32[4,128,512], index: 1, kind: input, shape index: {}]   ;;  %s15820_s2 = inlined_call_operand.vmem [shape: f32[128,3], index: 2, kind: input, shape index: {}]   ;;  %s15821_s3 = inlined_call_operand.vmem [shape: f32[128,1], index: 3, kind: input, shape index: {}]   ;;  %s15822_s4 = inlined_call_operand.vmem [shape: f32[128,1], index: 4, kind: input, shape index: {}]   ;;  %s15823_s5 = inlined_call_operand.vmem [shape: f32[128,1], index: 5, kind: input, shape index: {}]   ;;  %s15824_s6 = inlined_call_operand.hbm [shape: f32[4,128,512], index: 6, kind: output, shape index: {}]  }
   0x1   :  { %11 = sst [smem:[#allocation3]] %s15818_s0 }
   0x2   :  { %12 = vsyncpa [#allocation5], 0 }
   0x3   :  { %14 = vsyncpa [#allocation5 + $0x1], 0 }
   0x4   :  { %15 = vsyncpa [#allocation6], 0 }
   0x5   :  { %17 = vsyncpa [#allocation6 + $0x1], 0  ;;  %s7291_s23 = smov 0   ;;  %s7293_s24 = smov 0  }
   0x6   :  { %s7295_s25 = smov 0   ;;  %s7297_s26 = smov 0  }
   0x7   :  { %s7299_s27 = smov 0   ;;  %s7301_s28 = smov 0  }
   0x8 LB: > { %s6824_s0 = sadd.s32 4294967295, %s7239_s28   ;;  %s6825_s29 = sadd.s32 4294967294, %s7239_s28   ;;  %s7239_s28 = sphi %s7301_s28, %s23_s28   ;;  %s7235_s27 = sphi %s7299_s27, %s18407_s27   ;;  %s7231_s26 = sphi %s7297_s26, %s18406_s26   ;;  %s7227_s25 = sphi %s7295_s25, %s18405_s25   ;;  %s7223_s24 = sphi %s7293_s24, %s18404_s24   ;;  %s7219_s23 = sphi %s7291_s23, %s18403_s23  }
   0x9   : > { %s35_s30 = sadd.s32 1, %s7235_s27  ;;  %s63_s7 = sadd.s32 1, %s7227_s25 }
   0xa   : > { %p37_p0 = scmp.ge.s32.totalorder %s35_s30, 2  ;;  %p70_p1 = scmp.ne.s32.totalorder %s7227_s25, %s7223_s24 }
   0xb   : > { %p71_p2 = scmp.eq.s32.totalorder %s7239_s28, 0  ;;  %p76_p3 = scmp.ne.s32.totalorder %s7223_s24, %s7219_s23 }
   0xc   : > { %s18409_s30 = smov (%p37_p0, %s35_s30), 0  ;;  %p77_p5 = scmp.eq.s32.totalorder %s6824_s0, 0 }
   0xd   : > { %p7332_p4 = por %p71_p2, %p70_p1  ;;  %s60_s9 = ssub.s32 %s7235_s27, %s18409_s30 }
   0xe   : > { %p186_p6 = scmp.eq.s32.totalorder %s6824_s0, 1  ;;  %p61_p7 = scmp.eq.s32.totalorder %s60_s9, 0 }
   0xf   : > { %p7338_p8 = por %p77_p5, %p76_p3  ;;  %p192_p10 = scmp.eq.s32.totalorder %s6825_s29, 1 }
  0x10   : > { %p7342_p9 = por %p186_p6, %p70_p1  ;;  %p6857_p13 = scmp.lt.s32.totalorder %s7239_s28, 2 }
  0x11   : > { %s7347_s12 = scalar_select %p61_p7, %s7227_s25, %s63_s7  }
  0x12   : > { %s16454_s11 = scalar_select %p7342_p9, 1, 0 }
  0x13   : > { %p7349_p11 = por %p192_p10, %p76_p3  ;;  %s227_s14 = sand.u32 1, %s7227_s25  }
  0x14   : > { %s6828_s15 = sshll.u32 %s227_s14, 10  ;;  %s6842_s16 = sshll.u32 %s7235_s27, 14 }
  0x15   : > { %s16455_s13 = scalar_select %p7349_p11, 1, 0 }
  0x16   : > { %s7360_s19 = scalar_lea.hbm %s15819_s1, %s6842_s16  ;;  %s231_s20 = scalar_lea.vmem [#allocation4], %s6828_s15 }
  0x17   : > { %s239_s21 = sshll.u32 %s231_s20, 4  ;;  %p7366_p0 = pnand %p6857_p13, %p7332_p4  ;;  %s7362_s21 = int_to_ptr.vmem [resolvable:$true] %s239_s21 }
  0x18   : > { %s7371_s0 = scalar_lea.sflag [#allocation5], %s227_s14  ;;  %s7127_s29 = scalar_lea.hbm %s7360_s19, 16384 }
  0x19   : > { %p7128_p2 = scmp.ne.s32.totalorder %s7360_s19, %s7127_s29  ;;  %p7129_p3 = pneg %p7366_p0 }
  0x1a   : > { %s7132_s8 = scalar_lea.hbm %s15819_s1, 32768  ;;  %p7133_p4 = scmp.lt.u32.totalorder %s7360_s19, %s15819_s1 }
  0x1b   : > { %p7130_p5 = pnand %p7129_p3, %p7128_p2  ;;  %p7134_p7 = scmp.lt.u32.totalorder %s7132_s8, %s7127_s29 }
  0x1c   : > { %p7136_p13 = scmp.lt.u32.totalorder %s7127_s29, %s7360_s19 }
  0x1d   : > { %p7131_p6 = pneg %p7130_p5  ;;  %p7135_p10 = por %p7134_p7, %p7133_p4 }
  0x1f   : > { %p7137_p12 = por %p7136_p13, %p7135_p10 }
  0x21   : > { %p7138_p1 = pnand %p7137_p12, %p7131_p6 }
  0x23   : > { %7141 = shalt.err (!%p7138_p1)
}
  0x24   : > { %s7142_s14 = scalar_lea.vmem %s7362_s21, 16384  ;;  %s7241_s17 = smov [#allocation4]  }
  0x25   : > { %p7143_p2 = scmp.ne.s32.totalorder %s7362_s21, %s7142_s14  ;;  %s7147_s18 = sshll.u32 %s7241_s17, 4  ;;  %s7148_s18 = int_to_ptr.vmem [resolvable:$false] %s7147_s18 }
  0x26   : > { %s7149_s20 = scalar_lea.vmem %s7148_s18, 32768  ;;  %p7150_p9 = scmp.lt.s32.totalorder %s7362_s21, %s7148_s18 }
  0x27   : > { %p7145_p5 = pnand %p7143_p2, %p7129_p3  ;;  %p7151_p4 = scmp.lt.s32.totalorder %s7149_s20, %s7142_s14 }
  0x29   : > { %p7146_p11 = pneg %p7145_p5  ;;  %p7152_p7 = por %p7151_p4, %p7150_p9 }
  0x2b   : > { %p7153_p10 = pnand %p7152_p7, %p7146_p11 }
  0x2d   : > { %7156 = shalt.err (!%p7153_p10)
}
  0x2e   : > { %s7242_s29 = smov 512   ;;  %s7243_s7 = smov 32  }
  0x2f   : > { %6852 = dma.hbm_to_vmem [thread:$0]  (!%p7366_p0), %s7360_s19, 16384, %s7362_s21, %s7371_s0, %s7242_s29, %s7242_s29, %s7243_s7  }
  0x30   : > { %p247_p12 = scmp.lt.s32.totalorder %s7239_s28, 3  ;;  %p16457_p1 = scmp.ge.s32.totalorder %s7239_s28, 1 }
  0x32   : > { %p248_p3 = pnand %p16457_p1, %p247_p12 }
  0x34   : > { %251 = sbr.rel (%p248_p3) target bundleno = 1905 (0x771), region = 44 }
  0x3b   : > { %s7403_s9 = sand.u32 1, %s7223_s24  }
  0x3c   : > { %s6833_s8 = sshll.u32 %s7403_s9, 10  ;;  %s254_s15 = scalar_lea.sflag [#allocation5], %s7403_s9 }
  0x3d   : > { %s7409_s16 = scalar_lea.vmem [#allocation4], %s6833_s8 }
  0x3e   : > { %7210 = dma.done.wait (%p7338_p8), %s254_s15, 16384  }
  0x3f   : > { %7212 = vsyncadd (%p7338_p8), %s254_s15, 4294950912  ;;  %v7244_v0 = vmov 1   ;;  %v15826_v1 = vmov 0   ;;  %v712_v2 = vld [vmem:[%s15820_s2 + $0x10] sm:$0xff]  ;;  %v710_v3 = vld [vmem:[%s15820_s2] sm:$0xff]  ;;  %s7246_s20 = smov 126  }
  0x40   : > { %6918 = vset.pattern.permute.xlu0 %v7244_v0  ;;  %6917 = vset.pattern.permute.xlu1 %v15826_v1  ;;  %v713_v4 = vld [vmem:[%s15820_s2 + $0x18] sm:$0xff]  ;;  %v715_v5 = vld [vmem:[%s15820_s2 + $0x28] sm:$0xff]  ;;  %v714_v12 = vld [vmem:[%s15820_s2 + $0x20] sm:$0xff]  ;;  %s7248_s17 = smov 124   ;;  %vm1882_vm0 = vcmask 1031168   ;;  %vm2907_vm1 = vcmask 1014784  }
  0x41   : > { %950 = vperm.xlu1 %6917, %v712_v2   ;;  %1179 = vperm.xlu0 %6918, %v710_v3   ;;  %v717_v6 = vld [vmem:[%s15820_s2 + $0x38] sm:$0xff]  ;;  %v719_v7 = vld [vmem:[%s15820_s2 + $0x48] sm:$0xff]  ;;  %v716_v13 = vld [vmem:[%s15820_s2 + $0x30] sm:$0xff]  ;;  %vm3564_vm2 = vcmask 1048544   ;;  %s12790_s10 = sld [smem:[#allocation3]]  ;;  %s7249_s18 = smov 4  }
  0x42   : > { %v721_v8 = vld [vmem:[%s15820_s2 + $0x58] sm:$0xff]  ;;  %v723_v9 = vld [vmem:[%s15820_s2 + $0x68] sm:$0xff]  ;;  %v718_v14 = vld [vmem:[%s15820_s2 + $0x40] sm:$0xff]  ;;  %vm6206_vm3 = vcmask 31744   ;;  %p18400_p9 = scmp.ne.s32.totalorder %s16454_s11, 0  ;;  %s7250_s21 = smov [#allocation7]  }
  0x43   : > { %v725_v10 = vld [vmem:[%s15820_s2 + $0x78] sm:$0xff]  ;;  %v711_v11 = vld [vmem:[%s15820_s2 + $0x8] sm:$0xff]  ;;  %v720_v15 = vld [vmem:[%s15820_s2 + $0x50] sm:$0xff]  ;;  %s7161_s22 = sshll.u32 %s7250_s21, 4  ;;  %s7162_s22 = int_to_ptr.vmem [resolvable:$false] %s7161_s22 }
  0x44   : > { %v722_v16 = vld [vmem:[%s15820_s2 + $0x60] sm:$0xff]  ;;  %v724_v17 = vld [vmem:[%s15820_s2 + $0x70] sm:$0xff]  ;;  %v455_v21 = vld [vmem:[%s7409_s16 + $0x8] sm:$0xff]  ;;  %s7163_s0 = scalar_lea.vmem %s7162_s22, 32768 }
  0x45   : > { %955 = vperm.xlu1 %6917, %v713_v4   ;;  %1191 = vperm.xlu0 %6918, %v713_v4   ;;  %v454_v18 = vld [vmem:[%s7409_s16] sm:$0xff]  ;;  %v456_v22 = vld [vmem:[%s7409_s16 + $0x10] sm:$0xff]  ;;  %v457_v28 = vld [vmem:[%s7409_s16 + $0x18] sm:$0xff] }
  0x46   : > { %v458_v36 = vld [vmem:[%s7409_s16 + $0x20] sm:$0xff]  ;;  %v460_v40 = vld [vmem:[%s7409_s16 + $0x30] sm:$0xff]  ;;  %v459_v41 = vld [vmem:[%s7409_s16 + $0x28] sm:$0xff] }
  0x47   : > { %v461_v45 = vld [vmem:[%s7409_s16 + $0x38] sm:$0xff]  ;;  %v463_v48 = vld [vmem:[%s7409_s16 + $0x48] sm:$0xff]  ;;  %v462_v49 = vld [vmem:[%s7409_s16 + $0x40] sm:$0xff] }
  0x48   : > { %v465_v52 = vld [vmem:[%s7409_s16 + $0x58] sm:$0xff]  ;;  %v464_v53 = vld [vmem:[%s7409_s16 + $0x50] sm:$0xff]  ;;  %v466_v57 = vld [vmem:[%s7409_s16 + $0x60] sm:$0xff] }
  0x49   : > { %965 = vperm.xlu1 %6917, %v715_v5   ;;  %1199 = vperm.xlu0 %6918, %v715_v5   ;;  %v468_v60 = vld [vmem:[%s7409_s16 + $0x70] sm:$0xff]  ;;  %v467_v61 = vld [vmem:[%s7409_s16 + $0x68] sm:$0xff] }
  0x4a   : > { %v471_v5 = vld [vmem:[%s7409_s16 + $0x88] sm:$0xff] }
  0x4d   : > { %975 = vperm.xlu1 %6917, %v717_v6   ;;  %1207 = vperm.xlu0 %6918, %v717_v6   ;;  %v470_v6 = vld [vmem:[%s7409_s16 + $0x80] sm:$0xff] }
  0x51   : > { %985 = vperm.xlu1 %6917, %v719_v7   ;;  %1215 = vperm.xlu0 %6918, %v719_v7  }
  0x55   : > { %995 = vperm.xlu1 %6917, %v721_v8   ;;  %1223 = vperm.xlu0 %6918, %v721_v8  }
  0x59   : > { %1005 = vperm.xlu1 %6917, %v723_v9   ;;  %1231 = vperm.xlu0 %6918, %v723_v9   ;;  %v473_v9 = vld [vmem:[%s7409_s16 + $0x98] sm:$0xff] }
  0x5d   : > { %1015 = vperm.xlu1 %6917, %v725_v10   ;;  %1239 = vperm.xlu0 %6918, %v725_v10   ;;  %v472_v10 = vld [vmem:[%s7409_s16 + $0x90] sm:$0xff] }
  0x61   : > { %6919 = vset.pattern.permute.xlu1 %v7244_v0 }
  0x62   : > { %1183 = vperm.xlu1 %6919, %v711_v11  }
  0x66   : > { %1187 = vperm.xlu1 %6919, %v712_v2   ;;  %v469_v2 = vld [vmem:[%s7409_s16 + $0x78] sm:$0xff] }
  0x6a   : > { %1195 = vperm.xlu1 %6919, %v714_v12  }
  0x6e   : > { %1203 = vperm.xlu1 %6919, %v716_v13  }
  0x72   : > { %1211 = vperm.xlu1 %6919, %v718_v14   ;;  %v474_v14 = vld [vmem:[%s7409_s16 + $0xa0] sm:$0xff] }
  0x76   : > { %1219 = vperm.xlu1 %6919, %v720_v15  }
  0x7a   : > { %1227 = vperm.xlu1 %6919, %v722_v16  }
  0x7e   : > { %1235 = vperm.xlu1 %6919, %v724_v17   ;;  %v476_v17 = vld [vmem:[%s7409_s16 + $0xb0] sm:$0xff] }
  0xc0   : > { %v7465_v19 = vpop.permute.xlu1 %950  ;;  %v7467_v20 = vpop.permute.xlu0 %1179 }
  0xc1   : > { %v7472_v23 = vmul.f32 0.0, %v7467_v20  ;;  %v1243_v24 = vmul.f32 %v7467_v20, %v454_v18  ;;  %v1244_v25 = vmul.f32 %v7467_v20, %v455_v21  ;;  %v1245_v26 = vmul.f32 %v7467_v20, %v456_v22  ;;  %v475_v18 = vld [vmem:[%s7409_s16 + $0xa8] sm:$0xff] }
  0xc2   : > { %v1246_v29 = vmul.f32 %v7467_v20, %v457_v28 }
  0xc3   : > { %1562 = vrot.lane.b32.xlu1 %v7472_v23, %s7246_s20  ;;  %1564 = vrot.lane.b32.xlu0 %v1243_v24, %s7246_s20 }
  0xc4   : > { %v7480_v27 = vpop.permute.xlu1 %955  ;;  %v7537_v56 = vpop.permute.xlu0 %1191 }
  0xc5   : > { %16458 = vst [vmem:[#allocation10_spill] sm:$0xff] %v7480_v27  ;;  %v1258_v58 = vmul.f32 %v7537_v56, %v466_v57  ;;  %v7542_v59 = vmul.f32 0.0, %v7537_v56  ;;  %v1260_v62 = vmul.f32 %v7537_v56, %v468_v60  ;;  %v1259_v63 = vmul.f32 %v7537_v56, %v467_v61  ;;  %v485_v57 = vld [vmem:[%s7409_s16 + $0xf8] sm:$0xff]  ;;  %v487_v61 = vld [vmem:[%s7409_s16 + $0x108] sm:$0xff] }
  0xc6   : > { %v1261_v4 = vmul.f32 %v7537_v56, %v469_v2 }
  0xc7   : > { %1566 = vrot.lane.b32.xlu1 %v1244_v25, %s7246_s20  ;;  %1568 = vrot.lane.b32.xlu0 %v1245_v26, %s7246_s20  ;;  %v477_v25 = vld [vmem:[%s7409_s16 + $0xb8] sm:$0xff] }
  0xc8   : > { %v7486_v30 = vpop.permute.xlu1 %965  ;;  %v7575_v13 = vpop.permute.xlu0 %1199 }
  0xc9   : > { %16459 = vst [vmem:[#allocation11_spill] sm:$0xff] %v7486_v30  ;;  %v1268_v15 = vmul.f32 %v7575_v13, %v474_v14  ;;  %v7580_v16 = vmul.f32 0.0, %v7575_v13  ;;  %v1270_v21 = vmul.f32 %v7575_v13, %v476_v17  ;;  %v1269_v22 = vmul.f32 %v7575_v13, %v475_v18  ;;  %v491_v14 = vld [vmem:[%s7409_s16 + $0x128] sm:$0xff] }
  0xca   : > { %v1271_v28 = vmul.f32 %v7575_v13, %v477_v25 }
  0xcb   : > { %1570 = vrot.lane.b32.xlu1 %v1246_v29, %s7246_s20  ;;  %v479_v29 = vld [vmem:[%s7409_s16 + $0xc8] sm:$0xff] }
  0xcc   : > { %v7489_v31 = vpop.permute.xlu1 %975 }
  0xcd   : > { %16460 = vst [vmem:[#allocation12_spill] sm:$0xff] %v7489_v31 }
  0xd0   : > { %v7491_v32 = vpop.permute.xlu1 %985 }
  0xd1   : > { %16461 = vst [vmem:[#allocation13_spill] sm:$0xff] %v7491_v32  ;;  %v6978_v32 = vld [vmem:[%s7409_s16 + $0x98] sm:$0xff] }
  0xd4   : > { %v7493_v33 = vpop.permute.xlu1 %995 }
  0xd5   : > { %16462 = vst [vmem:[#allocation14_spill] sm:$0xff] %v7493_v33 }
  0xd8   : > { %v7495_v34 = vpop.permute.xlu1 %1005 }
  0xd9   : > { %16463 = vst [vmem:[#allocation15_spill] sm:$0xff] %v7495_v34 }
  0xdc   : > { %v7497_v35 = vpop.permute.xlu1 %1015 }
  0xdd   : > { %16464 = vst [vmem:[#allocation16_spill] sm:$0xff] %v7497_v35 }
  0xe1   : > { %v7500_v37 = vpop.permute.xlu1 %1183 }
  0xe2   : > { %v1248_v38 = vmul.f32 %v7500_v37, %v458_v36  ;;  %v7504_v39 = vmul.f32 0.0, %v7500_v37  ;;  %v1250_v42 = vmul.f32 %v7500_v37, %v460_v40  ;;  %v1249_v43 = vmul.f32 %v7500_v37, %v459_v41  ;;  %v478_v36 = vld [vmem:[%s7409_s16 + $0xc0] sm:$0xff]  ;;  %v481_v41 = vld [vmem:[%s7409_s16 + $0xd8] sm:$0xff] }
  0xe3   : > { %v1251_v47 = vmul.f32 %v7500_v37, %v461_v45 }
  0xe4   : > { %1574 = vrot.lane.b32.xlu1 %v1248_v38, %s7246_s20  ;;  %1572 = vrot.lane.b32.xlu0 %v7504_v39, %s7246_s20 }
  0xe5   : > { %v7513_v44 = vpop.permute.xlu1 %1187 }
  0xe6   : > { %v7519_v46 = vmul.f32 0.0, %v7513_v44  ;;  %v1254_v50 = vmul.f32 %v7513_v44, %v463_v48  ;;  %v1253_v51 = vmul.f32 %v7513_v44, %v462_v49  ;;  %v1256_v54 = vmul.f32 %v7513_v44, %v465_v52  ;;  %v482_v48 = vld [vmem:[%s7409_s16 + $0xe0] sm:$0xff]  ;;  %v483_v52 = vld [vmem:[%s7409_s16 + $0xe8] sm:$0xff] }
  0xe7   : > { %v1255_v55 = vmul.f32 %v7513_v44, %v464_v53 }
  0xe8   : > { %1578 = vrot.lane.b32.xlu1 %v1250_v42, %s7246_s20  ;;  %1576 = vrot.lane.b32.xlu0 %v1249_v43, %s7246_s20  ;;  %v480_v42 = vld [vmem:[%s7409_s16 + $0xd0] sm:$0xff] }
  0xe9   : > { %v7551_v0 = vpop.permute.xlu1 %1195 }
  0xea   : > { %v7557_v3 = vmul.f32 0.0, %v7551_v0  ;;  %v1264_v7 = vmul.f32 %v7551_v0, %v471_v5  ;;  %v1263_v8 = vmul.f32 %v7551_v0, %v470_v6  ;;  %v1266_v11 = vmul.f32 %v7551_v0, %v473_v9  ;;  %v488_v5 = vld [vmem:[%s7409_s16 + $0x110] sm:$0xff]  ;;  %v490_v9 = vld [vmem:[%s7409_s16 + $0x120] sm:$0xff] }
  0xeb   : > { %v1265_v12 = vmul.f32 %v7551_v0, %v472_v10 }
  0xec   : > { %1582 = vrot.lane.b32.xlu1 %v7519_v46, %s7246_s20  ;;  %1580 = vrot.lane.b32.xlu0 %v1251_v47, %s7246_s20  ;;  %v7613_v47 = vpop.permute.xlu0 %1207 }
  0xed   : > { %v7589_v24 = vpop.permute.xlu1 %1203  ;;  %v1278_v49 = vmul.f32 %v7613_v47, %v482_v48  ;;  %v1281_v60 = vmul.f32 %v7613_v47, %v485_v57 }
  0xee   : > { %v7595_v26 = vmul.f32 0.0, %v7589_v24  ;;  %v1274_v38 = vmul.f32 %v7589_v24, %v479_v29  ;;  %v1273_v40 = vmul.f32 %v7589_v24, %v478_v36  ;;  %v1276_v43 = vmul.f32 %v7589_v24, %v481_v41  ;;  %v494_v29 = vld [vmem:[%s7409_s16 + $0x140] sm:$0xff] }
  0xef   : > { %v1275_v45 = vmul.f32 %v7589_v24, %v480_v42  ;;  %v497_v42 = vld [vmem:[%s7409_s16 + $0x158] sm:$0xff] }
  0xf0   : > { %1586 = vrot.lane.b32.xlu1 %v1254_v50, %s7246_s20  ;;  %1584 = vrot.lane.b32.xlu0 %v1253_v51, %s7246_s20  ;;  %v7618_v50 = vmul.f32 0.0, %v7613_v47  ;;  %v484_v51 = vld [vmem:[%s7409_s16 + $0xf0] sm:$0xff] }
  0xf1   : > { %v1280_v53 = vmul.f32 %v7613_v47, %v484_v51 }
  0xf4   : > { %1590 = vrot.lane.b32.xlu1 %v1256_v54, %s7246_s20  ;;  %1588 = vrot.lane.b32.xlu0 %v1255_v55, %s7246_s20  ;;  %v1279_v54 = vmul.f32 %v7613_v47, %v483_v52  ;;  %v7627_v55 = vpop.permute.xlu1 %1211  ;;  %v498_v52 = vld [vmem:[%s7409_s16 + $0x160] sm:$0xff] }
  0xf8   : > { %1594 = vrot.lane.b32.xlu1 %v1258_v58, %s7246_s20  ;;  %1592 = vrot.lane.b32.xlu0 %v7542_v59, %s7246_s20  ;;  %v7633_v58 = vmul.f32 0.0, %v7627_v55 }
  0xfc   : > { %1598 = vrot.lane.b32.xlu1 %v1260_v62, %s7246_s20  ;;  %1596 = vrot.lane.b32.xlu0 %v1259_v63, %s7246_s20  ;;  %v486_v62 = vld [vmem:[%s7409_s16 + $0x100] sm:$0xff]  ;;  %v1284_v63 = vmul.f32 %v7627_v55, %v487_v61  ;;  %v499_v61 = vld [vmem:[%s7409_s16 + $0x168] sm:$0xff] }
  0xfd   : > { %v1283_v2 = vmul.f32 %v7627_v55, %v486_v62 }
 0x100   : > { %1602 = vrot.lane.b32.xlu1 %v7557_v3, %s7246_s20  ;;  %1600 = vrot.lane.b32.xlu0 %v1261_v4, %s7246_s20  ;;  %v489_v4 = vld [vmem:[%s7409_s16 + $0x118] sm:$0xff] }
 0x101   : > { %v1286_v6 = vmul.f32 %v7627_v55, %v489_v4  ;;  %v501_v4 = vld [vmem:[%s7409_s16 + $0x178] sm:$0xff] }
 0x104   : > { %1606 = vrot.lane.b32.xlu1 %v1264_v7, %s7246_s20  ;;  %1604 = vrot.lane.b32.xlu0 %v1263_v8, %s7246_s20  ;;  %v1285_v7 = vmul.f32 %v7627_v55, %v488_v5  ;;  %v7651_v8 = vpop.permute.xlu0 %1215 }
 0x105   : > { %v1288_v10 = vmul.f32 %v7651_v8, %v490_v9  ;;  %v1289_v18 = vmul.f32 %v7651_v8, %v491_v14 }
 0x108   : > { %1610 = vrot.lane.b32.xlu1 %v1266_v11, %s7246_s20  ;;  %1608 = vrot.lane.b32.xlu0 %v1265_v12, %s7246_s20  ;;  %v7656_v11 = vmul.f32 0.0, %v7651_v8  ;;  %v492_v12 = vld [vmem:[%s7409_s16 + $0x130] sm:$0xff]  ;;  %v7676_v36 = vpop.permute.xlu0 %1223 }
 0x109   : > { %v1290_v17 = vmul.f32 %v7651_v8, %v492_v12  ;;  %v7702_v57 = vmul.f32 0.0, %v7676_v36  ;;  %v1301_v9 = vmul.f32 %v7676_v36, %v501_v4  ;;  %v502_v12 = vld [vmem:[%s7409_s16 + $0x180] sm:$0xff] }
 0x10c   : > { %1614 = vrot.lane.b32.xlu1 %v1268_v15, %s7246_s20  ;;  %1612 = vrot.lane.b32.xlu0 %v7580_v16, %s7246_s20  ;;  %v7663_v15 = vpop.permute.xlu1 %1219 }
 0x10d   : > { %v1293_v41 = vmul.f32 %v7663_v15, %v494_v29 }
 0x110   : > { %1618 = vrot.lane.b32.xlu1 %v1270_v21, %s7246_s20  ;;  %1616 = vrot.lane.b32.xlu0 %v1269_v22, %s7246_s20  ;;  %v493_v21 = vld [vmem:[%s7409_s16 + $0x138] sm:$0xff]  ;;  %v7671_v22 = vmul.f32 0.0, %v7663_v15 }
 0x111   : > { %v1291_v25 = vmul.f32 %v7651_v8, %v493_v21 }
 0x114   : > { %1622 = vrot.lane.b32.xlu1 %v7595_v26, %s7246_s20  ;;  %1620 = vrot.lane.b32.xlu0 %v1271_v28, %s7246_s20  ;;  %v495_v28 = vld [vmem:[%s7409_s16 + $0x148] sm:$0xff] }
 0x118   : > { %1626 = vrot.lane.b32.xlu1 %v1274_v38, %s7246_s20  ;;  %1624 = vrot.lane.b32.xlu0 %v1273_v40, %s7246_s20  ;;  %v7678_v38 = vpop.permute.xlu1 %1227  ;;  %v1294_v40 = vmul.f32 %v7663_v15, %v495_v28  ;;  %v504_v28 = vld [vmem:[%s7409_s16 + $0x190] sm:$0xff] }
 0x119   : > { %v1303_v21 = vmul.f32 %v7678_v38, %v502_v12 }
 0x11c   : > { %1630 = vrot.lane.b32.xlu1 %v1276_v43, %s7246_s20  ;;  %1628 = vrot.lane.b32.xlu0 %v1275_v45, %s7246_s20  ;;  %v496_v43 = vld [vmem:[%s7409_s16 + $0x150] sm:$0xff]  ;;  %v7689_v45 = vpop.permute.xlu0 %1231  ;;  %v7691_v48 = vpop.permute.xlu1 %1235 }
 0x11d   : > { %v1295_v51 = vmul.f32 %v7663_v15, %v496_v43  ;;  %v506_v43 = vld [vmem:[%s7409_s16 + $0x1a0] sm:$0xff] }
 0x120   : > { %1634 = vrot.lane.b32.xlu1 %v1278_v49, %s7246_s20  ;;  %1632 = vrot.lane.b32.xlu0 %v7618_v50, %s7246_s20  ;;  %v1296_v49 = vmul.f32 %v7663_v15, %v497_v42  ;;  %v7706_v62 = vpop.permute.xlu0 %1239  ;;  %v1305_v42 = vmul.f32 %v7678_v38, %v504_v28  ;;  %v511_v28 = vld [vmem:[%s7409_s16 + $0x1c8] sm:$0xff] }
 0x124   : > { %1638 = vrot.lane.b32.xlu1 %v1280_v53, %s7246_s20  ;;  %1636 = vrot.lane.b32.xlu0 %v1279_v54, %s7246_s20  ;;  %v1298_v54 = vmul.f32 %v7676_v36, %v498_v52  ;;  %v1308_v52 = vmul.f32 %v7689_v45, %v506_v43 }
 0x128   : > { %1642 = vrot.lane.b32.xlu1 %v7633_v58, %s7246_s20  ;;  %1640 = vrot.lane.b32.xlu0 %v1281_v60, %s7246_s20  ;;  %v500_v60 = vld [vmem:[%s7409_s16 + $0x170] sm:$0xff] }
 0x12c   : > { %1646 = vrot.lane.b32.xlu1 %v1284_v63, %s7246_s20  ;;  %1644 = vrot.lane.b32.xlu0 %v1283_v2, %s7246_s20  ;;  %v1300_v63 = vmul.f32 %v7676_v36, %v500_v60  ;;  %v1299_v2 = vmul.f32 %v7676_v36, %v499_v61  ;;  %v508_v60 = vld [vmem:[%s7409_s16 + $0x1b0] sm:$0xff]  ;;  %v507_v61 = vld [vmem:[%s7409_s16 + $0x1a8] sm:$0xff] }
 0x12d   : > { %v1310_v4 = vmul.f32 %v7689_v45, %v508_v60 }
 0x130   : > { %1650 = vrot.lane.b32.xlu1 %v1286_v6, %s7246_s20  ;;  %1648 = vrot.lane.b32.xlu0 %v1285_v7, %s7246_s20  ;;  %v7721_v7 = vmul.f32 0.0, %v7678_v38 }
 0x134   : > { %1654 = vrot.lane.b32.xlu1 %v1288_v10, %s7246_s20  ;;  %1652 = vrot.lane.b32.xlu0 %v7656_v11, %s7246_s20  ;;  %v503_v10 = vld [vmem:[%s7409_s16 + $0x188] sm:$0xff] }
 0x135   : > { %v7698_v53 = vpop.permute.xlu1 %1562  ;;  %v7716_v6 = vpop.permute.xlu0 %1564 }
 0x136   : > { %16465 = vst [vmem:[#allocation17_spill] sm:$0xff] %v7698_v53  ;;  %16467 = vst [vmem:[#allocation19_spill] sm:$0xff] %v7716_v6  ;;  %v8312_v53 = vld [vmem:[%s7409_s16 + $0x3d0] sm:$0xff]  ;;  %v8325_v6 = vld [vmem:[%s7409_s16 + $0x3e0] sm:$0xff] }
 0x137   : > { %16569 = vst [vmem:[#allocation121_spill] sm:$0xff] %v8312_v53  ;;  %16572 = vst [vmem:[#allocation124_spill] sm:$0xff] %v8325_v6 }
 0x138   : > { %1658 = vrot.lane.b32.xlu1 %v1290_v17, %s7246_s20  ;;  %1656 = vrot.lane.b32.xlu0 %v1289_v18, %s7246_s20  ;;  %v1304_v18 = vmul.f32 %v7678_v38, %v503_v10  ;;  %v509_v10 = vld [vmem:[%s7409_s16 + $0x1b8] sm:$0xff] }
 0x139   : > { %v7714_v5 = vpop.permute.xlu1 %1566  ;;  %v7731_v17 = vpop.permute.xlu0 %1568 }
 0x13a   : > { %16466 = vst [vmem:[#allocation18_spill] sm:$0xff] %v7714_v5  ;;  %16469 = vst [vmem:[#allocation21_spill] sm:$0xff] %v7731_v17  ;;  %v8267_v17 = vld [vmem:[%s7409_s16 + $0x3a8] sm:$0xff]  ;;  %v8295_v5 = vld [vmem:[%s7409_s16 + $0x3c0] sm:$0xff] }
 0x13b   : > { %16558 = vst [vmem:[#allocation110_spill] sm:$0xff] %v8267_v17  ;;  %16565 = vst [vmem:[#allocation117_spill] sm:$0xff] %v8295_v5 }
 0x13c   : > { %1662 = vrot.lane.b32.xlu1 %v7671_v22, %s7246_s20  ;;  %1660 = vrot.lane.b32.xlu0 %v1291_v25, %s7246_s20  ;;  %v505_v25 = vld [vmem:[%s7409_s16 + $0x198] sm:$0xff] }
 0x13d   : > { %v7729_v14 = vpop.permute.xlu1 %1570 }
 0x13e   : > { %16468 = vst [vmem:[#allocation20_spill] sm:$0xff] %v7729_v14  ;;  %v8195_v14 = vld [vmem:[%s7409_s16 + $0x368] sm:$0xff] }
 0x140   : > { %1666 = vrot.lane.b32.xlu1 %v1294_v40, %s7246_s20  ;;  %1664 = vrot.lane.b32.xlu0 %v1293_v41, %s7246_s20  ;;  %v1306_v41 = vmul.f32 %v7678_v38, %v505_v25  ;;  %v1311_v25 = vmul.f32 %v7689_v45, %v509_v10 }
 0x144   : > { %1670 = vrot.lane.b32.xlu1 %v1296_v49, %s7246_s20  ;;  %1668 = vrot.lane.b32.xlu0 %v1295_v51, %s7246_s20 }
 0x148   : > { %1674 = vrot.lane.b32.xlu1 %v1298_v54, %s7246_s20  ;;  %1672 = vrot.lane.b32.xlu0 %v7702_v57, %s7246_s20  ;;  %v7754_v54 = vmul.f32 0.0, %v7689_v45 }
 0x14c   : > { %1678 = vrot.lane.b32.xlu1 %v1300_v63, %s7246_s20  ;;  %1676 = vrot.lane.b32.xlu0 %v1299_v2, %s7246_s20 }
 0x150   : > { %1682 = vrot.lane.b32.xlu1 %v7721_v7, %s7246_s20  ;;  %1680 = vrot.lane.b32.xlu0 %v1301_v9, %s7246_s20  ;;  %v1309_v9 = vmul.f32 %v7689_v45, %v507_v61  ;;  %v513_v61 = vld [vmem:[%s7409_s16 + $0x1d8] sm:$0xff] }
 0x154   : > { %1686 = vrot.lane.b32.xlu1 %v1304_v18, %s7246_s20  ;;  %1684 = vrot.lane.b32.xlu0 %v1303_v21, %s7246_s20  ;;  %v7775_v21 = vmul.f32 0.0, %v7691_v48 }
 0x156   : > { %v7739_v29 = vpop.permute.xlu1 %1574  ;;  %v7741_v40 = vpop.permute.xlu0 %1572 }
 0x157   : > { %16470 = vst [vmem:[#allocation22_spill] sm:$0xff] %v7739_v29  ;;  %16471 = vst [vmem:[#allocation23_spill] sm:$0xff] %v7741_v40  ;;  %v8168_v40 = vld [vmem:[%s7409_s16 + $0x350] sm:$0xff]  ;;  %v8181_v29 = vld [vmem:[%s7409_s16 + $0x360] sm:$0xff] }
 0x158   : > { %1690 = vrot.lane.b32.xlu1 %v1306_v41, %s7246_s20  ;;  %1688 = vrot.lane.b32.xlu0 %v1305_v42, %s7246_s20  ;;  %v510_v41 = vld [vmem:[%s7409_s16 + $0x1c0] sm:$0xff] }
 0x159   : > { %v1313_v60 = vmul.f32 %v7691_v48, %v510_v41 }
 0x15a   : > { %v7748_v49 = vpop.permute.xlu1 %1578  ;;  %v7750_v51 = vpop.permute.xlu0 %1576 }
 0x15b   : > { %16472 = vst [vmem:[#allocation24_spill] sm:$0xff] %v7748_v49  ;;  %16473 = vst [vmem:[#allocation25_spill] sm:$0xff] %v7750_v51  ;;  %v8151_v51 = vld [vmem:[%s7409_s16 + $0x340] sm:$0xff] }
 0x15c   : > { %1694 = vrot.lane.b32.xlu1 %v1308_v52, %s7246_s20  ;;  %1692 = vrot.lane.b32.xlu0 %v7754_v54, %s7246_s20  ;;  %v1314_v52 = vmul.f32 %v7691_v48, %v511_v28  ;;  %v514_v28 = vld [vmem:[%s7409_s16 + $0x1e0] sm:$0xff] }
 0x15e   : > { %v7761_v63 = vpop.permute.xlu1 %1582  ;;  %v7763_v2 = vpop.permute.xlu0 %1580 }
 0x15f   : > { %16474 = vst [vmem:[#allocation26_spill] sm:$0xff] %v7761_v63  ;;  %16475 = vst [vmem:[#allocation27_spill] sm:$0xff] %v7763_v2  ;;  %v8240_v63 = vld [vmem:[%s7409_s16 + $0x390] sm:$0xff] }
 0x160   : > { %1698 = vrot.lane.b32.xlu1 %v1310_v4, %s7246_s20  ;;  %1696 = vrot.lane.b32.xlu0 %v1309_v9, %s7246_s20  ;;  %v512_v4 = vld [vmem:[%s7409_s16 + $0x1d0] sm:$0xff]  ;;  %16551 = vst [vmem:[#allocation103_spill] sm:$0xff] %v8240_v63 }
 0x161   : > { %v1315_v1 = vmul.f32 %v7691_v48, %v512_v4 }
 0x162   : > { %v7770_v12 = vpop.permute.xlu1 %1586  ;;  %v7772_v18 = vpop.permute.xlu0 %1584 }
 0x163   : > { %16476 = vst [vmem:[#allocation28_spill] sm:$0xff] %v7770_v12  ;;  %16477 = vst [vmem:[#allocation29_spill] sm:$0xff] %v7772_v18  ;;  %v8223_v12 = vld [vmem:[%s7409_s16 + $0x380] sm:$0xff] }
 0x164   : > { %1702 = vrot.lane.b32.xlu1 %v7775_v21, %s7246_s20  ;;  %1700 = vrot.lane.b32.xlu0 %v1311_v25, %s7246_s20  ;;  %v1316_v25 = vmul.f32 %v7691_v48, %v513_v61  ;;  %v516_v61 = vld [vmem:[%s7409_s16 + $0x1f0] sm:$0xff]  ;;  %v8253_v18 = vld [vmem:[%s7409_s16 + $0x3a0] sm:$0xff] }
 0x165   : > { %16554 = vst [vmem:[#allocation106_spill] sm:$0xff] %v8253_v18 }
 0x166   : > { %v7783_v42 = vpop.permute.xlu1 %1590  ;;  %v7785_v43 = vpop.permute.xlu0 %1588 }
 0x167   : > { %16478 = vst [vmem:[#allocation30_spill] sm:$0xff] %v7783_v42  ;;  %16479 = vst [vmem:[#allocation31_spill] sm:$0xff] %v7785_v43  ;;  %v8096_v42 = vld [vmem:[%s7409_s16 + $0x310] sm:$0xff]  ;;  %v8111_v43 = vld [vmem:[%s7409_s16 + $0x320] sm:$0xff] }
 0x168   : > { %1706 = vrot.lane.b32.xlu1 %v1314_v52, %s7246_s20  ;;  %1704 = vrot.lane.b32.xlu0 %v1313_v60, %s7246_s20  ;;  %v1318_v52 = vmul.f32 %v7706_v62, %v514_v28  ;;  %v7808_v60 = vmul.f32 0.0, %v7706_v62 }
 0x16a   : > { %v7793_v9 = vpop.permute.xlu1 %1594  ;;  %v7795_v10 = vpop.permute.xlu0 %1592 }
 0x16b   : > { %16480 = vst [vmem:[#allocation32_spill] sm:$0xff] %v7793_v9  ;;  %16481 = vst [vmem:[#allocation33_spill] sm:$0xff] %v7795_v10  ;;  %v515_v10 = vld [vmem:[%s7409_s16 + $0x1e8] sm:$0xff] }
 0x16c   : > { %1710 = vrot.lane.b32.xlu1 %v1316_v25, %s7246_s20  ;;  %1708 = vrot.lane.b32.xlu0 %v1315_v1, %s7246_s20  ;;  %v1320_v25 = vmul.f32 %v7706_v62, %v516_v61  ;;  %v1319_v28 = vmul.f32 %v7706_v62, %v515_v10 }
 0x16e   : > { %v7802_v41 = vpop.permute.xlu1 %1598  ;;  %v7804_v2 = vpop.permute.xlu0 %1596 }
 0x16f   : > { %16482 = vst [vmem:[#allocation34_spill] sm:$0xff] %v7802_v41  ;;  %16483 = vst [vmem:[#allocation35_spill] sm:$0xff] %v7804_v2  ;;  %v517_v41 = vld [vmem:[%s7409_s16 + $0x1f8] sm:$0xff] }
 0x170   : > { %1714 = vrot.lane.b32.xlu1 %v1318_v52, %s7246_s20  ;;  %1712 = vrot.lane.b32.xlu0 %v7808_v60, %s7246_s20  ;;  %v1321_v9 = vmul.f32 %v7706_v62, %v517_v41  ;;  %v520_v41 = vld [vmem:[%s7409_s16 + $0x210] sm:$0xff] }
 0x172   : > { %v7815_v4 = vpop.permute.xlu1 %1602  ;;  %v7817_v1 = vpop.permute.xlu0 %1600 }
 0x173   : > { %16484 = vst [vmem:[#allocation36_spill] sm:$0xff] %v7815_v4  ;;  %16485 = vst [vmem:[#allocation37_spill] sm:$0xff] %v7817_v1  ;;  %v519_v4 = vld [vmem:[%s7409_s16 + $0x208] sm:$0xff]  ;;  %v518_v1 = vld [vmem:[%s7409_s16 + $0x200] sm:$0xff] }
 0x174   : > { %1718 = vrot.lane.b32.xlu1 %v1320_v25, %s7246_s20  ;;  %1716 = vrot.lane.b32.xlu0 %v1319_v28, %s7246_s20  ;;  %v1324_v25 = vmul.f32 %v7467_v20, %v519_v4  ;;  %v1323_v28 = vmul.f32 %v7467_v20, %v518_v1  ;;  %v522_v4 = vld [vmem:[%s7409_s16 + $0x220] sm:$0xff] }
 0x176   : > { %v7824_v2 = vpop.permute.xlu1 %1606  ;;  %v7826_v52 = vpop.permute.xlu0 %1604 }
 0x177   : > { %16486 = vst [vmem:[#allocation38_spill] sm:$0xff] %v7824_v2  ;;  %16487 = vst [vmem:[#allocation39_spill] sm:$0xff] %v7826_v52  ;;  %v521_v2 = vld [vmem:[%s7409_s16 + $0x218] sm:$0xff] }
 0x178   : > { %1722 = vrot.lane.b32.xlu1 %v7472_v23, %s7246_s20  ;;  %1720 = vrot.lane.b32.xlu0 %v1321_v9, %s7246_s20  ;;  %v1326_v9 = vmul.f32 %v7467_v20, %v521_v2 }
 0x17a   : > { %v7834_v10 = vpop.permute.xlu1 %1610  ;;  %v7836_v61 = vpop.permute.xlu0 %1608 }
 0x17b   : > { %16488 = vst [vmem:[#allocation40_spill] sm:$0xff] %v7834_v10  ;;  %16489 = vst [vmem:[#allocation41_spill] sm:$0xff] %v7836_v61  ;;  %v1325_v10 = vmul.f32 %v7467_v20, %v520_v41 }
 0x17c   : > { %1726 = vrot.lane.b32.xlu1 %v1324_v25, %s7246_s20  ;;  %1724 = vrot.lane.b32.xlu0 %v1323_v28, %s7246_s20  ;;  %v1328_v25 = vmul.f32 %v7500_v37, %v522_v4  ;;  %v524_v28 = vld [vmem:[%s7409_s16 + $0x230] sm:$0xff] }
 0x17e   : > { %v7844_v52 = vpop.permute.xlu1 %1614  ;;  %v7846_v23 = vpop.permute.xlu0 %1612 }
 0x17f   : > { %16490 = vst [vmem:[#allocation42_spill] sm:$0xff] %v7844_v52  ;;  %16491 = vst [vmem:[#allocation43_spill] sm:$0xff] %v7846_v23  ;;  %v523_v52 = vld [vmem:[%s7409_s16 + $0x228] sm:$0xff]  ;;  %v8079_v23 = vld [vmem:[%s7409_s16 + $0x300] sm:$0xff] }
 0x180   : > { %1730 = vrot.lane.b32.xlu1 %v1326_v9, %s7246_s20  ;;  %1728 = vrot.lane.b32.xlu0 %v1325_v10, %s7246_s20  ;;  %v1330_v10 = vmul.f32 %v7500_v37, %v524_v28  ;;  %v1329_v41 = vmul.f32 %v7500_v37, %v523_v52  ;;  %v525_v9 = vld [vmem:[%s7409_s16 + $0x238] sm:$0xff]  ;;  %v527_v28 = vld [vmem:[%s7409_s16 + $0x248] sm:$0xff] }
 0x181   : > { %v526_v52 = vld [vmem:[%s7409_s16 + $0x240] sm:$0xff] }
 0x182   : > { %v7853_v1 = vpop.permute.xlu1 %1618  ;;  %v7855_v61 = vpop.permute.xlu0 %1616 }
 0x183   : > { %16492 = vst [vmem:[#allocation44_spill] sm:$0xff] %v7853_v1  ;;  %16493 = vst [vmem:[#allocation45_spill] sm:$0xff] %v7855_v61  ;;  %v8039_v1 = vld [vmem:[%s7409_s16 + $0x2e0] sm:$0xff] }
 0x184   : > { %1734 = vrot.lane.b32.xlu1 %v1328_v25, %s7246_s20  ;;  %1732 = vrot.lane.b32.xlu0 %v7504_v39, %s7246_s20  ;;  %v1331_v39 = vmul.f32 %v7500_v37, %v525_v9  ;;  %v529_v37 = vld [vmem:[%s7409_s16 + $0x258] sm:$0xff] }
 0x186   : > { %v7863_v20 = vpop.permute.xlu1 %1622  ;;  %v7865_v2 = vpop.permute.xlu0 %1620 }
 0x187   : > { %16494 = vst [vmem:[#allocation46_spill] sm:$0xff] %v7863_v20  ;;  %16495 = vst [vmem:[#allocation47_spill] sm:$0xff] %v7865_v2  ;;  %v8024_v2 = vld [vmem:[%s7409_s16 + $0x2d0] sm:$0xff] }
 0x188   : > { %1738 = vrot.lane.b32.xlu1 %v1330_v10, %s7246_s20  ;;  %1736 = vrot.lane.b32.xlu0 %v1329_v41, %s7246_s20  ;;  %v1334_v41 = vmul.f32 %v7513_v44, %v527_v28  ;;  %v530_v28 = vld [vmem:[%s7409_s16 + $0x260] sm:$0xff] }
 0x18a   : > { %v7872_v4 = vpop.permute.xlu1 %1626  ;;  %v7874_v25 = vpop.permute.xlu0 %1624 }
 0x18b   : > { %16496 = vst [vmem:[#allocation48_spill] sm:$0xff] %v7872_v4  ;;  %16497 = vst [vmem:[#allocation49_spill] sm:$0xff] %v7874_v25  ;;  %v1333_v4 = vmul.f32 %v7513_v44, %v526_v52 }
 0x18c   : > { %1742 = vrot.lane.b32.xlu1 %v7519_v46, %s7246_s20  ;;  %1740 = vrot.lane.b32.xlu0 %v1331_v39, %s7246_s20  ;;  %v528_v46 = vld [vmem:[%s7409_s16 + $0x250] sm:$0xff] }
 0x18e   : > { %v7882_v20 = vpop.permute.xlu1 %1630  ;;  %v7884_v10 = vpop.permute.xlu0 %1628 }
 0x18f   : > { %16498 = vst [vmem:[#allocation50_spill] sm:$0xff] %v7882_v20  ;;  %16499 = vst [vmem:[#allocation51_spill] sm:$0xff] %v7884_v10  ;;  %v1336_v20 = vmul.f32 %v7513_v44, %v529_v37  ;;  %v1335_v10 = vmul.f32 %v7513_v44, %v528_v46  ;;  %v532_v37 = vld [vmem:[%s7409_s16 + $0x270] sm:$0xff]  ;;  %v7911_v44 = vld [vmem:[%s7409_s16 + $0x268] sm:$0xff] }
 0x190   : > { %1746 = vrot.lane.b32.xlu1 %v1334_v41, %s7246_s20  ;;  %1744 = vrot.lane.b32.xlu0 %v1333_v4, %s7246_s20  ;;  %v1338_v41 = vmul.f32 %v7537_v56, %v530_v28  ;;  %v1340_v25 = vmul.f32 %v7537_v56, %v532_v37  ;;  %v1339_v28 = vmul.f32 %v7537_v56, %v7911_v44  ;;  %v7935_v37 = vld [vmem:[%s7409_s16 + $0x280] sm:$0xff] }
 0x192   : > { %v7892_v9 = vpop.permute.xlu1 %1634  ;;  %v7894_v39 = vpop.permute.xlu0 %1632 }
 0x193   : > { %16500 = vst [vmem:[#allocation52_spill] sm:$0xff] %v7892_v9  ;;  %16501 = vst [vmem:[#allocation53_spill] sm:$0xff] %v7894_v39  ;;  %v8007_v9 = vld [vmem:[%s7409_s16 + $0x2c0] sm:$0xff] }
 0x194   : > { %1750 = vrot.lane.b32.xlu1 %v1336_v20, %s7246_s20  ;;  %1748 = vrot.lane.b32.xlu0 %v1335_v10, %s7246_s20  ;;  %v7247_v20 = vmov 2  }
 0x195   : > { %6920 = vset.pattern.permute.xlu1 %v7247_v20  ;;  %6921 = vset.pattern.permute.xlu0 %v7247_v20 }
 0x196   : > { %v7901_v52 = vpop.permute.xlu1 %1638  ;;  %v7903_v4 = vpop.permute.xlu0 %1636 }
 0x197   : > { %16502 = vst [vmem:[#allocation54_spill] sm:$0xff] %v7901_v52  ;;  %16503 = vst [vmem:[#allocation55_spill] sm:$0xff] %v7903_v4  ;;  %v7952_v52 = vld [vmem:[%s7409_s16 + $0x290] sm:$0xff]  ;;  %v7967_v4 = vld [vmem:[%s7409_s16 + $0x2a0] sm:$0xff] }
 0x198   : > { %1754 = vrot.lane.b32.xlu1 %v1338_v41, %s7246_s20  ;;  %1752 = vrot.lane.b32.xlu0 %v7542_v59, %s7246_s20  ;;  %v7923_v59 = vld [vmem:[%s7409_s16 + $0x278] sm:$0xff] }
 0x19a   : > { %v7913_v10 = vpop.permute.xlu1 %1642  ;;  %v7915_v46 = vpop.permute.xlu0 %1640 }
 0x19b   : > { %16504 = vst [vmem:[#allocation56_spill] sm:$0xff] %v7913_v10  ;;  %16505 = vst [vmem:[#allocation57_spill] sm:$0xff] %v7915_v46  ;;  %v1341_v10 = vmul.f32 %v7537_v56, %v7923_v59  ;;  %v7932_v46 = vld [vmem:[%s7409_s16 + $0x288] sm:$0xff]  ;;  %v1343_v56 = vmul.f32 %v7551_v0, %v7935_v37 }
 0x19c   : > { %1758 = vrot.lane.b32.xlu1 %v1340_v25, %s7246_s20  ;;  %1756 = vrot.lane.b32.xlu0 %v1339_v28, %s7246_s20 }
 0x19e   : > { %v7925_v41 = vpop.permute.xlu1 %1646  ;;  %v7927_v20 = vpop.permute.xlu0 %1644 }
 0x19f   : > { %16506 = vst [vmem:[#allocation58_spill] sm:$0xff] %v7925_v41  ;;  %16507 = vst [vmem:[#allocation59_spill] sm:$0xff] %v7927_v20  ;;  %v1344_v41 = vmul.f32 %v7551_v0, %v7932_v46  ;;  %v7949_v20 = vld [vmem:[%s7409_s16 + $0x298] sm:$0xff] }
 0x1a0   : > { %1762 = vrot.lane.b32.xlu1 %v7557_v3, %s7246_s20  ;;  %1760 = vrot.lane.b32.xlu0 %v1341_v10, %s7246_s20 }
 0x1a2   : > { %v7940_v25 = vpop.permute.xlu1 %1650  ;;  %v7942_v28 = vpop.permute.xlu0 %1648 }
 0x1a3   : > { %16508 = vst [vmem:[#allocation60_spill] sm:$0xff] %v7940_v25  ;;  %16509 = vst [vmem:[#allocation61_spill] sm:$0xff] %v7942_v28  ;;  %v1346_v25 = vmul.f32 %v7551_v0, %v7949_v20  ;;  %v1345_v28 = vmul.f32 %v7551_v0, %v7952_v52  ;;  %v7979_v0 = vld [vmem:[%s7409_s16 + $0x2b0] sm:$0xff] }
 0x1a4   : > { %1766 = vrot.lane.b32.xlu1 %v1344_v41, %s7246_s20  ;;  %1764 = vrot.lane.b32.xlu0 %v1343_v56, %s7246_s20 }
 0x1a6   : > { %v7956_v3 = vpop.permute.xlu1 %1654  ;;  %v7958_v10 = vpop.permute.xlu0 %1652 }
 0x1a7   : > { %16510 = vst [vmem:[#allocation62_spill] sm:$0xff] %v7956_v3  ;;  %16511 = vst [vmem:[#allocation63_spill] sm:$0xff] %v7958_v10  ;;  %v1348_v10 = vmul.f32 %v7575_v13, %v7967_v4 }
 0x1a8   : > { %1770 = vrot.lane.b32.xlu1 %v1346_v25, %s7246_s20  ;;  %1768 = vrot.lane.b32.xlu0 %v1345_v28, %s7246_s20  ;;  %v7982_v25 = vld [vmem:[%s7409_s16 + $0x2a8] sm:$0xff] }
 0x1aa   : > { %v7969_v41 = vpop.permute.xlu1 %1658  ;;  %v7971_v56 = vpop.permute.xlu0 %1656 }
 0x1ab   : > { %16512 = vst [vmem:[#allocation64_spill] sm:$0xff] %v7969_v41  ;;  %16513 = vst [vmem:[#allocation65_spill] sm:$0xff] %v7971_v56  ;;  %v1350_v41 = vmul.f32 %v7575_v13, %v7979_v0  ;;  %v1349_v56 = vmul.f32 %v7575_v13, %v7982_v25 }
 0x1ac   : > { %1774 = vrot.lane.b32.xlu1 %v1348_v10, %s7246_s20  ;;  %1772 = vrot.lane.b32.xlu0 %v7580_v16, %s7246_s20  ;;  %v7995_v16 = vld [vmem:[%s7409_s16 + $0x2b8] sm:$0xff] }
 0x1ae   : > { %v7984_v28 = vpop.permute.xlu1 %1662  ;;  %v7986_v3 = vpop.permute.xlu0 %1660 }
 0x1af   : > { %16514 = vst [vmem:[#allocation66_spill] sm:$0xff] %v7984_v28  ;;  %16515 = vst [vmem:[#allocation67_spill] sm:$0xff] %v7986_v3  ;;  %v1351_v28 = vmul.f32 %v7575_v13, %v7995_v16  ;;  %v8004_v3 = vld [vmem:[%s7409_s16 + $0x2c8] sm:$0xff]  ;;  %v1353_v13 = vmul.f32 %v7589_v24, %v8007_v9 }
 0x1b0   : > { %1778 = vrot.lane.b32.xlu1 %v1350_v41, %s7246_s20  ;;  %1776 = vrot.lane.b32.xlu0 %v1349_v56, %s7246_s20 }
 0x1b2   : > { %v7997_v10 = vpop.permute.xlu1 %1666  ;;  %v7999_v39 = vpop.permute.xlu0 %1664 }
 0x1b3   : > { %16516 = vst [vmem:[#allocation68_spill] sm:$0xff] %v7997_v10  ;;  %16517 = vst [vmem:[#allocation69_spill] sm:$0xff] %v7999_v39  ;;  %v1354_v10 = vmul.f32 %v7589_v24, %v8004_v3  ;;  %v8021_v39 = vld [vmem:[%s7409_s16 + $0x2d8] sm:$0xff] }
 0x1b4   : > { %1782 = vrot.lane.b32.xlu1 %v7595_v26, %s7246_s20  ;;  %1780 = vrot.lane.b32.xlu0 %v1351_v28, %s7246_s20 }
 0x1b6   : > { %v8012_v41 = vpop.permute.xlu1 %1670  ;;  %v8014_v56 = vpop.permute.xlu0 %1668 }
 0x1b7   : > { %16518 = vst [vmem:[#allocation70_spill] sm:$0xff] %v8012_v41  ;;  %16519 = vst [vmem:[#allocation71_spill] sm:$0xff] %v8014_v56  ;;  %v1356_v41 = vmul.f32 %v7589_v24, %v8021_v39  ;;  %v1355_v56 = vmul.f32 %v7589_v24, %v8024_v2  ;;  %v8051_v24 = vld [vmem:[%s7409_s16 + $0x2f0] sm:$0xff] }
 0x1b8   : > { %1786 = vrot.lane.b32.xlu1 %v1354_v10, %s7246_s20  ;;  %1784 = vrot.lane.b32.xlu0 %v1353_v13, %s7246_s20 }
 0x1ba   : > { %v8028_v26 = vpop.permute.xlu1 %1674  ;;  %v8030_v28 = vpop.permute.xlu0 %1672 }
 0x1bb   : > { %16520 = vst [vmem:[#allocation72_spill] sm:$0xff] %v8028_v26  ;;  %16521 = vst [vmem:[#allocation73_spill] sm:$0xff] %v8030_v28  ;;  %v1358_v28 = vmul.f32 %v7613_v47, %v8039_v1 }
 0x1bc   : > { %1790 = vrot.lane.b32.xlu1 %v1356_v41, %s7246_s20  ;;  %1788 = vrot.lane.b32.xlu0 %v1355_v56, %s7246_s20  ;;  %v8054_v41 = vld [vmem:[%s7409_s16 + $0x2e8] sm:$0xff] }
 0x1be   : > { %v8041_v10 = vpop.permute.xlu1 %1678  ;;  %v8043_v13 = vpop.permute.xlu0 %1676 }
 0x1bf   : > { %16522 = vst [vmem:[#allocation74_spill] sm:$0xff] %v8041_v10  ;;  %16523 = vst [vmem:[#allocation75_spill] sm:$0xff] %v8043_v13  ;;  %v1360_v10 = vmul.f32 %v7613_v47, %v8051_v24  ;;  %v1359_v13 = vmul.f32 %v7613_v47, %v8054_v41 }
 0x1c0   : > { %1794 = vrot.lane.b32.xlu1 %v1358_v28, %s7246_s20  ;;  %1792 = vrot.lane.b32.xlu0 %v7618_v50, %s7246_s20  ;;  %v8067_v50 = vld [vmem:[%s7409_s16 + $0x2f8] sm:$0xff] }
 0x1c2   : > { %v8056_v56 = vpop.permute.xlu1 %1682  ;;  %v8058_v26 = vpop.permute.xlu0 %1680 }
 0x1c3   : > { %16524 = vst [vmem:[#allocation76_spill] sm:$0xff] %v8056_v56  ;;  %16525 = vst [vmem:[#allocation77_spill] sm:$0xff] %v8058_v26  ;;  %v1361_v56 = vmul.f32 %v7613_v47, %v8067_v50  ;;  %v8076_v26 = vld [vmem:[%s7409_s16 + $0x308] sm:$0xff]  ;;  %v1363_v47 = vmul.f32 %v7627_v55, %v8079_v23 }
 0x1c4   : > { %1798 = vrot.lane.b32.xlu1 %v1360_v10, %s7246_s20  ;;  %1796 = vrot.lane.b32.xlu0 %v1359_v13, %s7246_s20 }
 0x1c6   : > { %v8069_v28 = vpop.permute.xlu1 %1686  ;;  %v8071_v61 = vpop.permute.xlu0 %1684 }
 0x1c7   : > { %16526 = vst [vmem:[#allocation78_spill] sm:$0xff] %v8069_v28  ;;  %16527 = vst [vmem:[#allocation79_spill] sm:$0xff] %v8071_v61  ;;  %v1364_v28 = vmul.f32 %v7627_v55, %v8076_v26  ;;  %v8093_v61 = vld [vmem:[%s7409_s16 + $0x318] sm:$0xff] }
 0x1c8   : > { %1802 = vrot.lane.b32.xlu1 %v7633_v58, %s7246_s20  ;;  %1800 = vrot.lane.b32.xlu0 %v1361_v56, %s7246_s20 }
 0x1ca   : > { %v8084_v10 = vpop.permute.xlu1 %1690  ;;  %v8086_v13 = vpop.permute.xlu0 %1688 }
 0x1cb   : > { %16528 = vst [vmem:[#allocation80_spill] sm:$0xff] %v8084_v10  ;;  %16529 = vst [vmem:[#allocation81_spill] sm:$0xff] %v8086_v13  ;;  %v1366_v10 = vmul.f32 %v7627_v55, %v8093_v61  ;;  %v1365_v13 = vmul.f32 %v7627_v55, %v8096_v42  ;;  %v8123_v55 = vld [vmem:[%s7409_s16 + $0x330] sm:$0xff] }
 0x1cc   : > { %1806 = vrot.lane.b32.xlu1 %v1364_v28, %s7246_s20  ;;  %1804 = vrot.lane.b32.xlu0 %v1363_v47, %s7246_s20 }
 0x1ce   : > { %v8100_v58 = vpop.permute.xlu1 %1694  ;;  %v8102_v56 = vpop.permute.xlu0 %1692 }
 0x1cf   : > { %16530 = vst [vmem:[#allocation82_spill] sm:$0xff] %v8100_v58  ;;  %16531 = vst [vmem:[#allocation83_spill] sm:$0xff] %v8102_v56  ;;  %v1368_v56 = vmul.f32 %v7651_v8, %v8111_v43 }
 0x1d0   : > { %1810 = vrot.lane.b32.xlu1 %v1366_v10, %s7246_s20  ;;  %1808 = vrot.lane.b32.xlu0 %v1365_v13, %s7246_s20  ;;  %v8126_v10 = vld [vmem:[%s7409_s16 + $0x328] sm:$0xff] }
 0x1d2   : > { %v8113_v28 = vpop.permute.xlu1 %1698  ;;  %v8115_v47 = vpop.permute.xlu0 %1696 }
 0x1d3   : > { %16532 = vst [vmem:[#allocation84_spill] sm:$0xff] %v8113_v28  ;;  %16533 = vst [vmem:[#allocation85_spill] sm:$0xff] %v8115_v47  ;;  %v1370_v28 = vmul.f32 %v7651_v8, %v8123_v55  ;;  %v1369_v47 = vmul.f32 %v7651_v8, %v8126_v10 }
 0x1d4   : > { %1814 = vrot.lane.b32.xlu1 %v1368_v56, %s7246_s20  ;;  %1812 = vrot.lane.b32.xlu0 %v7656_v11, %s7246_s20  ;;  %v8139_v11 = vld [vmem:[%s7409_s16 + $0x338] sm:$0xff] }
 0x1d6   : > { %v8128_v13 = vpop.permute.xlu1 %1702  ;;  %v8130_v58 = vpop.permute.xlu0 %1700 }
 0x1d7   : > { %16534 = vst [vmem:[#allocation86_spill] sm:$0xff] %v8128_v13  ;;  %16535 = vst [vmem:[#allocation87_spill] sm:$0xff] %v8130_v58  ;;  %v1371_v13 = vmul.f32 %v7651_v8, %v8139_v11  ;;  %v8148_v58 = vld [vmem:[%s7409_s16 + $0x348] sm:$0xff]  ;;  %v1373_v8 = vmul.f32 %v7663_v15, %v8151_v51 }
 0x1d8   : > { %1818 = vrot.lane.b32.xlu1 %v1370_v28, %s7246_s20  ;;  %1816 = vrot.lane.b32.xlu0 %v1369_v47, %s7246_s20 }
 0x1da   : > { %v8141_v56 = vpop.permute.xlu1 %1706  ;;  %v8143_v49 = vpop.permute.xlu0 %1704 }
 0x1db   : > { %16536 = vst [vmem:[#allocation88_spill] sm:$0xff] %v8141_v56  ;;  %16537 = vst [vmem:[#allocation89_spill] sm:$0xff] %v8143_v49  ;;  %v1374_v56 = vmul.f32 %v7663_v15, %v8148_v58  ;;  %v8165_v49 = vld [vmem:[%s7409_s16 + $0x358] sm:$0xff] }
 0x1dc   : > { %1822 = vrot.lane.b32.xlu1 %v7671_v22, %s7246_s20  ;;  %1820 = vrot.lane.b32.xlu0 %v1371_v13, %s7246_s20 }
 0x1de   : > { %v8156_v28 = vpop.permute.xlu1 %1710  ;;  %v8158_v47 = vpop.permute.xlu0 %1708 }
 0x1df   : > { %16538 = vst [vmem:[#allocation90_spill] sm:$0xff] %v8156_v28  ;;  %16539 = vst [vmem:[#allocation91_spill] sm:$0xff] %v8158_v47  ;;  %v1376_v28 = vmul.f32 %v7663_v15, %v8165_v49  ;;  %v1375_v47 = vmul.f32 %v7663_v15, %v8168_v40 }
 0x1e0   : > { %1826 = vrot.lane.b32.xlu1 %v1374_v56, %s7246_s20  ;;  %1824 = vrot.lane.b32.xlu0 %v1373_v8, %s7246_s20 }
 0x1e2   : > { %v8172_v22 = vpop.permute.xlu1 %1714  ;;  %v8174_v13 = vpop.permute.xlu0 %1712 }
 0x1e3   : > { %16540 = vst [vmem:[#allocation92_spill] sm:$0xff] %v8172_v22  ;;  %16541 = vst [vmem:[#allocation93_spill] sm:$0xff] %v8174_v13  ;;  %v1378_v13 = vmul.f32 %v7676_v36, %v8181_v29  ;;  %v8192_v22 = vld [vmem:[%s7409_s16 + $0x370] sm:$0xff] }
 0x1e4   : > { %1830 = vrot.lane.b32.xlu1 %v1376_v28, %s7246_s20  ;;  %1828 = vrot.lane.b32.xlu0 %v1375_v47, %s7246_s20  ;;  %v1380_v47 = vmul.f32 %v7676_v36, %v8192_v22 }
 0x1e6   : > { %v8185_v56 = vpop.permute.xlu1 %1718  ;;  %v8187_v8 = vpop.permute.xlu0 %1716 }
 0x1e7   : > { %16542 = vst [vmem:[#allocation94_spill] sm:$0xff] %v8185_v56  ;;  %16543 = vst [vmem:[#allocation95_spill] sm:$0xff] %v8187_v8  ;;  %v1379_v56 = vmul.f32 %v7676_v36, %v8195_v14  ;;  %v8209_v8 = vld [vmem:[%s7409_s16 + $0x378] sm:$0xff] }
 0x1e8   : > { %1834 = vrot.lane.b32.xlu1 %v1378_v13, %s7246_s20  ;;  %1832 = vrot.lane.b32.xlu0 %v7702_v57, %s7246_s20 }
 0x1ea   : > { %v8200_v15 = vpop.permute.xlu1 %1722  ;;  %v8202_v28 = vpop.permute.xlu0 %1720 }
 0x1eb   : > { %16544 = vst [vmem:[#allocation96_spill] sm:$0xff] %v8200_v15  ;;  %16545 = vst [vmem:[#allocation97_spill] sm:$0xff] %v8202_v28  ;;  %v1381_v15 = vmul.f32 %v7676_v36, %v8209_v8  ;;  %v8220_v28 = vld [vmem:[%s7409_s16 + $0x388] sm:$0xff]  ;;  %v1383_v36 = vmul.f32 %v7678_v38, %v8223_v12 }
 0x1ec   : > { %1838 = vrot.lane.b32.xlu1 %v1380_v47, %s7246_s20  ;;  %1836 = vrot.lane.b32.xlu0 %v1379_v56, %s7246_s20 }
 0x1ee   : > { %v8213_v13 = vpop.permute.xlu1 %1726  ;;  %v8215_v57 = vpop.permute.xlu0 %1724 }
 0x1ef   : > { %16546 = vst [vmem:[#allocation98_spill] sm:$0xff] %v8213_v13  ;;  %16547 = vst [vmem:[#allocation99_spill] sm:$0xff] %v8215_v57  ;;  %v1384_v13 = vmul.f32 %v7678_v38, %v8220_v28  ;;  %v8237_v57 = vld [vmem:[%s7409_s16 + $0x398] sm:$0xff] }
 0x1f0   : > { %1842 = vrot.lane.b32.xlu1 %v7721_v7, %s7246_s20  ;;  %1840 = vrot.lane.b32.xlu0 %v1381_v15, %s7246_s20  ;;  %16550 = vst [vmem:[#allocation102_spill] sm:$0xff] %v8237_v57 }
 0x1f2   : > { %v8228_v47 = vpop.permute.xlu1 %1730  ;;  %v8230_v56 = vpop.permute.xlu0 %1728 }
 0x1f3   : > { %16548 = vst [vmem:[#allocation100_spill] sm:$0xff] %v8228_v47  ;;  %16549 = vst [vmem:[#allocation101_spill] sm:$0xff] %v8230_v56  ;;  %v1386_v47 = vmul.f32 %v7678_v38, %v8237_v57  ;;  %v1385_v56 = vmul.f32 %v7678_v38, %v8240_v63 }
 0x1f4   : > { %1846 = vrot.lane.b32.xlu1 %v1384_v13, %s7246_s20  ;;  %1844 = vrot.lane.b32.xlu0 %v1383_v36, %s7246_s20 }
 0x1f6   : > { %v8244_v7 = vpop.permute.xlu1 %1734  ;;  %v8246_v15 = vpop.permute.xlu0 %1732 }
 0x1f7   : > { %16552 = vst [vmem:[#allocation104_spill] sm:$0xff] %v8244_v7  ;;  %16553 = vst [vmem:[#allocation105_spill] sm:$0xff] %v8246_v15  ;;  %v1388_v15 = vmul.f32 %v7689_v45, %v8253_v18  ;;  %v8264_v7 = vld [vmem:[%s7409_s16 + $0x3b0] sm:$0xff] }
 0x1f8   : > { %1850 = vrot.lane.b32.xlu1 %v1386_v47, %s7246_s20  ;;  %1848 = vrot.lane.b32.xlu0 %v1385_v56, %s7246_s20  ;;  %16557 = vst [vmem:[#allocation109_spill] sm:$0xff] %v8264_v7  ;;  %v1390_v56 = vmul.f32 %v7689_v45, %v8264_v7 }
 0x1fa   : > { %v8257_v13 = vpop.permute.xlu1 %1738  ;;  %v8259_v36 = vpop.permute.xlu0 %1736 }
 0x1fb   : > { %16555 = vst [vmem:[#allocation107_spill] sm:$0xff] %v8257_v13  ;;  %16556 = vst [vmem:[#allocation108_spill] sm:$0xff] %v8259_v36  ;;  %v1389_v13 = vmul.f32 %v7689_v45, %v8267_v17  ;;  %v8281_v36 = vld [vmem:[%s7409_s16 + $0x3b8] sm:$0xff] }
 0x1fc   : > { %1854 = vrot.lane.b32.xlu1 %v1388_v15, %s7246_s20  ;;  %1852 = vrot.lane.b32.xlu0 %v7754_v54, %s7246_s20  ;;  %16561 = vst [vmem:[#allocation113_spill] sm:$0xff] %v8281_v36 }
 0x1fe   : > { %v8272_v38 = vpop.permute.xlu1 %1742  ;;  %v8274_v47 = vpop.permute.xlu0 %1740 }
 0x1ff   : > { %16559 = vst [vmem:[#allocation111_spill] sm:$0xff] %v8272_v38  ;;  %16560 = vst [vmem:[#allocation112_spill] sm:$0xff] %v8274_v47  ;;  %v1391_v47 = vmul.f32 %v7689_v45, %v8281_v36  ;;  %v8292_v38 = vld [vmem:[%s7409_s16 + $0x3c8] sm:$0xff]  ;;  %v1393_v45 = vmul.f32 %v7691_v48, %v8295_v5  ;;  %v6977_v36 = vld [vmem:[%s7409_s16 + $0x80] sm:$0xff] }
 0x200   : > { %1858 = vrot.lane.b32.xlu1 %v1390_v56, %s7246_s20  ;;  %1856 = vrot.lane.b32.xlu0 %v1389_v13, %s7246_s20  ;;  %16564 = vst [vmem:[#allocation116_spill] sm:$0xff] %v8292_v38 }
 0x202   : > { %v8285_v15 = vpop.permute.xlu1 %1746  ;;  %v8287_v54 = vpop.permute.xlu0 %1744 }
 0x203   : > { %16562 = vst [vmem:[#allocation114_spill] sm:$0xff] %v8285_v15  ;;  %16563 = vst [vmem:[#allocation115_spill] sm:$0xff] %v8287_v54  ;;  %v1394_v15 = vmul.f32 %v7691_v48, %v8292_v38  ;;  %v8309_v54 = vld [vmem:[%s7409_s16 + $0x3d8] sm:$0xff] }
 0x204   : > { %1862 = vrot.lane.b32.xlu1 %v7775_v21, %s7246_s20  ;;  %1860 = vrot.lane.b32.xlu0 %v1391_v47, %s7246_s20  ;;  %16568 = vst [vmem:[#allocation120_spill] sm:$0xff] %v8309_v54 }
 0x206   : > { %v8300_v56 = vpop.permute.xlu1 %1750  ;;  %v8302_v13 = vpop.permute.xlu0 %1748 }
 0x207   : > { %16566 = vst [vmem:[#allocation118_spill] sm:$0xff] %v8300_v56  ;;  %16567 = vst [vmem:[#allocation119_spill] sm:$0xff] %v8302_v13  ;;  %v1396_v56 = vmul.f32 %v7691_v48, %v8309_v54  ;;  %v1395_v13 = vmul.f32 %v7691_v48, %v8312_v53  ;;  %v8339_v54 = vld [vmem:[%s7409_s16 + $0x3e8] sm:$0xff] }
 0x208   : > { %1866 = vrot.lane.b32.xlu1 %v1394_v15, %s7246_s20  ;;  %1864 = vrot.lane.b32.xlu0 %v1393_v45, %s7246_s20  ;;  %16576 = vst [vmem:[#allocation128_spill] sm:$0xff] %v8339_v54 }
 0x20a   : > { %v8316_v21 = vpop.permute.xlu1 %1754  ;;  %v8318_v47 = vpop.permute.xlu0 %1752 }
 0x20b   : > { %16570 = vst [vmem:[#allocation122_spill] sm:$0xff] %v8316_v21  ;;  %16571 = vst [vmem:[#allocation123_spill] sm:$0xff] %v8318_v47  ;;  %v1398_v47 = vmul.f32 %v7706_v62, %v8325_v6  ;;  %v8336_v21 = vld [vmem:[%s7409_s16 + $0x3f0] sm:$0xff] }
 0x20c   : > { %1870 = vrot.lane.b32.xlu1 %v1396_v56, %s7246_s20  ;;  %1868 = vrot.lane.b32.xlu0 %v1395_v13, %s7246_s20  ;;  %16575 = vst [vmem:[#allocation127_spill] sm:$0xff] %v8336_v21  ;;  %v1400_v13 = vmul.f32 %v7706_v62, %v8336_v21 }
 0x20e   : > { %v8329_v15 = vpop.permute.xlu1 %1758  ;;  %v8331_v45 = vpop.permute.xlu0 %1756 }
 0x20f   : > { %16573 = vst [vmem:[#allocation125_spill] sm:$0xff] %v8329_v15  ;;  %16574 = vst [vmem:[#allocation126_spill] sm:$0xff] %v8331_v45  ;;  %v1399_v15 = vmul.f32 %v7706_v62, %v8339_v54  ;;  %v8353_v45 = vld [vmem:[%s7409_s16 + $0x3f8] sm:$0xff] }
 0x210   : > { %1874 = vrot.lane.b32.xlu1 %v1398_v47, %s7246_s20  ;;  %1872 = vrot.lane.b32.xlu0 %v7808_v60, %s7246_s20  ;;  %16579 = vst [vmem:[#allocation131_spill] sm:$0xff] %v8353_v45  ;;  %v1401_v60 = vmul.f32 %v7706_v62, %v8353_v45  ;;  %v6946_v62 = vld [vmem:[%s15820_s2 + $0x8] sm:$0xff] }
 0x212   : > { %v8344_v48 = vpop.permute.xlu1 %1762  ;;  %v8346_v56 = vpop.permute.xlu0 %1760 }
 0x213   : > { %16577 = vst [vmem:[#allocation129_spill] sm:$0xff] %v8344_v48  ;;  %16578 = vst [vmem:[#allocation130_spill] sm:$0xff] %v8346_v56  ;;  %v6944_v48 = vld [vmem:[%s15820_s2] sm:$0xff] }
 0x214   : > { %1878 = vrot.lane.b32.xlu1 %v1400_v13, %s7246_s20  ;;  %1876 = vrot.lane.b32.xlu0 %v1399_v15, %s7246_s20  ;;  %v6945_v15 = vld [vmem:[%s15820_s2 + $0x10] sm:$0xff] }
 0x216   : > { %v8357_v47 = vpop.permute.xlu1 %1766  ;;  %v8359_v6 = vpop.permute.xlu0 %1764 }
 0x217   : > { %16580 = vst [vmem:[#allocation132_spill] sm:$0xff] %v8357_v47  ;;  %16581 = vst [vmem:[#allocation133_spill] sm:$0xff] %v8359_v6  ;;  %v6949_v6 = vld [vmem:[%s15820_s2 + $0x28] sm:$0xff] }
 0x218   : > { %2332 = vperm.xlu1 %6920, %v6944_v48   ;;  %1880 = vrot.lane.b32.xlu0 %v1401_v60, %s7246_s20  ;;  %v6947_v60 = vld [vmem:[%s15820_s2 + $0x18] sm:$0xff]  ;;  %s13693_s20 = scalar_lea.vmem [#allocation7], %s6833_s8  ;;  %s6844_s8 = sshll.u32 %s7231_s26, 14 }
 0x219   : > { %s6736_s29 = sshll.u32 %s13693_s20, 4  ;;  %s15765_s19 = scalar_lea.hbm %s15824_s6, %s6844_s8  ;;  %s15767_s29 = int_to_ptr.vmem [resolvable:$true] %s6736_s29 }
 0x21a   : > { %v8367_v56 = vpop.permute.xlu1 %1770  ;;  %v8369_v21 = vpop.permute.xlu0 %1768  ;;  %s6720_s26 = scalar_lea.sflag [#allocation6], %s7403_s9  ;;  %p7164_p6 = scmp.lt.s32.totalorder %s15767_s29, %s7162_s22 }
 0x21b   : > { %16582 = vst [vmem:[#allocation134_spill] sm:$0xff] %v8367_v56  ;;  %16583 = vst [vmem:[#allocation135_spill] sm:$0xff] %v8369_v21  ;;  %v6948_v56 = vld [vmem:[%s15820_s2 + $0x20] sm:$0xff] }
 0x21c   : > { %2340 = vperm.xlu1 %6920, %v6945_v15   ;;  %2336 = vperm.xlu0 %6921, %v6946_v62  }
 0x21e   : > { %v8377_v13 = vpop.permute.xlu1 %1774  ;;  %v8379_v47 = vpop.permute.xlu0 %1772 }
 0x21f   : > { %16584 = vst [vmem:[#allocation136_spill] sm:$0xff] %v8377_v13  ;;  %16585 = vst [vmem:[#allocation137_spill] sm:$0xff] %v8379_v47  ;;  %v6950_v47 = vld [vmem:[%s15820_s2 + $0x30] sm:$0xff] }
 0x220   : > { %2344 = vperm.xlu1 %6920, %v6947_v60   ;;  %2348 = vperm.xlu0 %6921, %v6948_v56  }
 0x222   : > { %v8387_v15 = vpop.permute.xlu1 %1778  ;;  %v8389_v21 = vpop.permute.xlu0 %1776 }
 0x223   : > { %16586 = vst [vmem:[#allocation138_spill] sm:$0xff] %v8387_v15  ;;  %16587 = vst [vmem:[#allocation139_spill] sm:$0xff] %v8389_v21  ;;  %v6951_v15 = vld [vmem:[%s15820_s2 + $0x38] sm:$0xff]  ;;  %v6952_v21 = vld [vmem:[%s15820_s2 + $0x40] sm:$0xff] }
 0x224   : > { %2352 = vperm.xlu1 %6920, %v6949_v6   ;;  %2356 = vperm.xlu0 %6921, %v6950_v47  }
 0x226   : > { %v8397_v60 = vpop.permute.xlu1 %1782  ;;  %v8399_v13 = vpop.permute.xlu0 %1780 }
 0x227   : > { %16588 = vst [vmem:[#allocation140_spill] sm:$0xff] %v8397_v60  ;;  %16589 = vst [vmem:[#allocation141_spill] sm:$0xff] %v8399_v13  ;;  %v6953_v60 = vld [vmem:[%s15820_s2 + $0x48] sm:$0xff]  ;;  %v6954_v13 = vld [vmem:[%s15820_s2 + $0x50] sm:$0xff] }
 0x228   : > { %2360 = vperm.xlu1 %6920, %v6951_v15   ;;  %2364 = vperm.xlu0 %6921, %v6952_v21  }
 0x22a   : > { %v8407_v6 = vpop.permute.xlu1 %1786  ;;  %v8409_v45 = vpop.permute.xlu0 %1784 }
 0x22b   : > { %16590 = vst [vmem:[#allocation142_spill] sm:$0xff] %v8407_v6  ;;  %16591 = vst [vmem:[#allocation143_spill] sm:$0xff] %v8409_v45  ;;  %v6955_v6 = vld [vmem:[%s15820_s2 + $0x58] sm:$0xff]  ;;  %v6956_v45 = vld [vmem:[%s15820_s2 + $0x60] sm:$0xff] }
 0x22c   : > { %2368 = vperm.xlu1 %6920, %v6953_v60   ;;  %2372 = vperm.xlu0 %6921, %v6954_v13  }
 0x22e   : > { %v8417_v15 = vpop.permute.xlu1 %1790  ;;  %v8419_v54 = vpop.permute.xlu0 %1788 }
 0x22f   : > { %16592 = vst [vmem:[#allocation144_spill] sm:$0xff] %v8417_v15  ;;  %16593 = vst [vmem:[#allocation145_spill] sm:$0xff] %v8419_v54  ;;  %v6957_v15 = vld [vmem:[%s15820_s2 + $0x68] sm:$0xff]  ;;  %v6958_v54 = vld [vmem:[%s15820_s2 + $0x70] sm:$0xff] }
 0x230   : > { %2376 = vperm.xlu1 %6920, %v6955_v6   ;;  %2380 = vperm.xlu0 %6921, %v6956_v45  }
 0x232   : > { %v8427_v60 = vpop.permute.xlu1 %1794  ;;  %v8429_v53 = vpop.permute.xlu0 %1792 }
 0x233   : > { %16594 = vst [vmem:[#allocation146_spill] sm:$0xff] %v8427_v60  ;;  %16595 = vst [vmem:[#allocation147_spill] sm:$0xff] %v8429_v53  ;;  %v6959_v60 = vld [vmem:[%s15820_s2 + $0x78] sm:$0xff]  ;;  %v16598_v53 = vmov 0  }
 0x234   : > { %2384 = vperm.xlu1 %6920, %v6957_v15   ;;  %2388 = vperm.xlu0 %6921, %v6958_v54  }
 0x236   : > { %v8437_v6 = vpop.permute.xlu1 %1798  ;;  %v8439_v5 = vpop.permute.xlu0 %1796 }
 0x237   : > { %16596 = vst [vmem:[#allocation148_spill] sm:$0xff] %v8437_v6  ;;  %16597 = vst [vmem:[#allocation149_spill] sm:$0xff] %v8439_v5 }
 0x238   : > { %2392 = vperm.xlu1 %6920, %v6959_v60   ;;  %6922 = vset.pattern.permute.xlu0 %v16598_v53 }
 0x239   : > { %940 = vperm.xlu0 %6922, %v6944_v48  }
 0x23a   : > { %v8445_v38 = vpop.permute.xlu1 %1802  ;;  %v8447_v15 = vpop.permute.xlu0 %1800 }
 0x23b   : > { %16599 = vst [vmem:[#allocation150_spill] sm:$0xff] %v8445_v38  ;;  %16600 = vst [vmem:[#allocation151_spill] sm:$0xff] %v8447_v15 }
 0x23c   : > { %6923 = vset.pattern.permute.xlu1 %v16598_v53 }
 0x23d   : > { %945 = vperm.xlu0 %6922, %v6946_v62  }
 0x23e   : > { %v8450_v35 = vpop.permute.xlu1 %1806  ;;  %v8452_v6 = vpop.permute.xlu0 %1804 }
 0x23f   : > { %16601 = vst [vmem:[#allocation152_spill] sm:$0xff] %v8450_v35  ;;  %16602 = vst [vmem:[#allocation153_spill] sm:$0xff] %v8452_v6 }
 0x241   : > { %960 = vperm.xlu0 %6922, %v6948_v56  }
 0x242   : > { %v8454_v5 = vpop.permute.xlu1 %1810  ;;  %v8456_v34 = vpop.permute.xlu0 %1808 }
 0x243   : > { %16603 = vst [vmem:[#allocation154_spill] sm:$0xff] %v8454_v5  ;;  %16604 = vst [vmem:[#allocation155_spill] sm:$0xff] %v8456_v34 }
 0x245   : > { %970 = vperm.xlu0 %6922, %v6950_v47  }
 0x246   : > { %v8458_v60 = vpop.permute.xlu1 %1814  ;;  %v8460_v48 = vpop.permute.xlu0 %1812 }
 0x247   : > { %16605 = vst [vmem:[#allocation156_spill] sm:$0xff] %v8458_v60  ;;  %16606 = vst [vmem:[#allocation157_spill] sm:$0xff] %v8460_v48  ;;  %v8602_v48 = vld [vmem:[%s7409_s16 + $0x70] sm:$0xff] }
 0x248   : > { %16644 = vst [vmem:[#allocation195_spill] sm:$0xff] %v8602_v48 }
 0x249   : > { %980 = vperm.xlu0 %6922, %v6952_v21  }
 0x24a   : > { %v8462_v38 = vpop.permute.xlu1 %1818  ;;  %v8464_v15 = vpop.permute.xlu0 %1816 }
 0x24b   : > { %16607 = vst [vmem:[#allocation158_spill] sm:$0xff] %v8462_v38  ;;  %16608 = vst [vmem:[#allocation159_spill] sm:$0xff] %v8464_v15  ;;  %v8590_v38 = vld [vmem:[%s7409_s16 + $0x60] sm:$0xff] }
 0x24c   : > { %16642 = vst [vmem:[#allocation193_spill] sm:$0xff] %v8590_v38 }
 0x24d   : > { %990 = vperm.xlu0 %6922, %v6954_v13  }
 0x24e   : > { %v8466_v53 = vpop.permute.xlu1 %1822  ;;  %v8468_v62 = vpop.permute.xlu0 %1820 }
 0x24f   : > { %16609 = vst [vmem:[#allocation160_spill] sm:$0xff] %v8466_v53  ;;  %16610 = vst [vmem:[#allocation161_spill] sm:$0xff] %v8468_v62 }
 0x251   : > { %1000 = vperm.xlu0 %6922, %v6956_v45  }
 0x252   : > { %v8470_v56 = vpop.permute.xlu1 %1826  ;;  %v8472_v5 = vpop.permute.xlu0 %1824 }
 0x253   : > { %16611 = vst [vmem:[#allocation162_spill] sm:$0xff] %v8470_v56  ;;  %16612 = vst [vmem:[#allocation163_spill] sm:$0xff] %v8472_v5 }
 0x255   : > { %1010 = vperm.xlu0 %6922, %v6958_v54  }
 0x256   : > { %v8474_v47 = vpop.permute.xlu1 %1830  ;;  %v8476_v34 = vpop.permute.xlu0 %1828 }
 0x257   : > { %16613 = vst [vmem:[#allocation164_spill] sm:$0xff] %v8474_v47  ;;  %16614 = vst [vmem:[#allocation165_spill] sm:$0xff] %v8476_v34 }
 0x25a   : > { %v8478_v21 = vpop.permute.xlu1 %1834  ;;  %v8480_v35 = vpop.permute.xlu0 %1832 }
 0x25b   : > { %16615 = vst [vmem:[#allocation166_spill] sm:$0xff] %v8478_v21  ;;  %16616 = vst [vmem:[#allocation167_spill] sm:$0xff] %v8480_v35  ;;  %v6967_v21 = vld [vmem:[%s7409_s16 + $0x30] sm:$0xff] }
 0x25e   : > { %v8482_v6 = vpop.permute.xlu1 %1838  ;;  %v8484_v13 = vpop.permute.xlu0 %1836 }
 0x25f   : > { %16617 = vst [vmem:[#allocation168_spill] sm:$0xff] %v8482_v6  ;;  %16618 = vst [vmem:[#allocation169_spill] sm:$0xff] %v8484_v13 }
 0x262   : > { %v8486_v53 = vpop.permute.xlu1 %1842  ;;  %v8488_v45 = vpop.permute.xlu0 %1840 }
 0x263   : > { %16619 = vst [vmem:[#allocation170_spill] sm:$0xff] %v8486_v53  ;;  %16620 = vst [vmem:[#allocation171_spill] sm:$0xff] %v8488_v45 }
 0x266   : > { %v8490_v56 = vpop.permute.xlu1 %1846  ;;  %v8492_v5 = vpop.permute.xlu0 %1844 }
 0x267   : > { %16621 = vst [vmem:[#allocation172_spill] sm:$0xff] %v8490_v56  ;;  %16622 = vst [vmem:[#allocation173_spill] sm:$0xff] %v8492_v5 }
 0x26a   : > { %v8494_v54 = vpop.permute.xlu1 %1850  ;;  %v8496_v47 = vpop.permute.xlu0 %1848 }
 0x26b   : > { %16623 = vst [vmem:[#allocation174_spill] sm:$0xff] %v8494_v54  ;;  %16624 = vst [vmem:[#allocation175_spill] sm:$0xff] %v8496_v47 }
 0x26e   : > { %v8498_v34 = vpop.permute.xlu1 %1854  ;;  %v8500_v35 = vpop.permute.xlu0 %1852 }
 0x26f   : > { %16625 = vst [vmem:[#allocation176_spill] sm:$0xff] %v8498_v34  ;;  %16626 = vst [vmem:[#allocation177_spill] sm:$0xff] %v8500_v35 }
 0x272   : > { %v8502_v6 = vpop.permute.xlu1 %1858  ;;  %v8504_v13 = vpop.permute.xlu0 %1856 }
 0x273   : > { %16627 = vst [vmem:[#allocation178_spill] sm:$0xff] %v8502_v6  ;;  %16628 = vst [vmem:[#allocation179_spill] sm:$0xff] %v8504_v13 }
 0x276   : > { %v8506_v53 = vpop.permute.xlu1 %1862  ;;  %v8508_v45 = vpop.permute.xlu0 %1860 }
 0x277   : > { %16629 = vst [vmem:[#allocation180_spill] sm:$0xff] %v8506_v53  ;;  %16630 = vst [vmem:[#allocation181_spill] sm:$0xff] %v8508_v45  ;;  %v6961_v45 = vld [vmem:[%s7409_s16] sm:$0xff] }
 0x27a   : > { %v8510_v56 = vpop.permute.xlu1 %1866  ;;  %v8512_v5 = vpop.permute.xlu0 %1864 }
 0x27b   : > { %16631 = vst [vmem:[#allocation182_spill] sm:$0xff] %v8510_v56  ;;  %16632 = vst [vmem:[#allocation183_spill] sm:$0xff] %v8512_v5  ;;  %v6960_v56 = vld [vmem:[%s7409_s16 + $0x8] sm:$0xff] }
 0x27e   : > { %v8514_v54 = vpop.permute.xlu1 %1870  ;;  %v8516_v47 = vpop.permute.xlu0 %1868 }
 0x27f   : > { %16633 = vst [vmem:[#allocation184_spill] sm:$0xff] %v8514_v54  ;;  %16634 = vst [vmem:[#allocation185_spill] sm:$0xff] %v8516_v47 }
 0x282   : > { %v8518_v35 = vpop.permute.xlu1 %1874  ;;  %v8520_v34 = vpop.permute.xlu0 %1872 }
 0x283   : > { %16635 = vst [vmem:[#allocation186_spill] sm:$0xff] %v8518_v35  ;;  %16636 = vst [vmem:[#allocation187_spill] sm:$0xff] %v8520_v34  ;;  %v6963_v34 = vld [vmem:[%s7409_s16 + $0x10] sm:$0xff] }
 0x286   : > { %v8522_v6 = vpop.permute.xlu1 %1878  ;;  %v8524_v13 = vpop.permute.xlu0 %1876 }
 0x287   : > { %16637 = vst [vmem:[#allocation188_spill] sm:$0xff] %v8522_v6  ;;  %16638 = vst [vmem:[#allocation189_spill] sm:$0xff] %v8524_v13  ;;  %v6962_v6 = vld [vmem:[%s7409_s16 + $0x18] sm:$0xff] }
 0x28a   : > { %v8532_v47 = vpop.permute.xlu0 %1880 }
 0x28b   : > { %16639 = vst [vmem:[#allocation190_spill] sm:$0xff] %v8532_v47  ;;  %v6965_v47 = vld [vmem:[%s7409_s16 + $0x20] sm:$0xff] }
 0x297   : > { %v8526_v53 = vpop.permute.xlu1 %2332 }
 0x298   : > { %v2396_v5 = vmul.f32 %v6960_v56, %v8526_v53  ;;  %v2395_v54 = vmul.f32 %v6961_v45, %v8526_v53  ;;  %v2398_v13 = vmul.f32 %v6962_v6, %v8526_v53  ;;  %v2397_v35 = vmul.f32 %v6963_v34, %v8526_v53  ;;  %v6964_v45 = vld [vmem:[%s7409_s16 + $0x28] sm:$0xff]  ;;  %v6966_v34 = vld [vmem:[%s7409_s16 + $0x38] sm:$0xff] }
 0x29a   : > { %2653 = vrot.lane.b32.xlu1 %v2396_v5, %s7248_s17  ;;  %2651 = vrot.lane.b32.xlu0 %v2395_v54, %s7248_s17 }
 0x29b   : > { %v8540_v56 = vpop.permute.xlu0 %2336 }
 0x29c   : > { %v2400_v5 = vmul.f32 %v6964_v45, %v8540_v56  ;;  %v2399_v54 = vmul.f32 %v6965_v47, %v8540_v56  ;;  %v2402_v6 = vmul.f32 %v6966_v34, %v8540_v56  ;;  %v8559_v47 = vld [vmem:[%s7409_s16 + $0x48] sm:$0xff] }
 0x29e   : > { %2657 = vrot.lane.b32.xlu1 %v2398_v13, %s7248_s17  ;;  %2655 = vrot.lane.b32.xlu0 %v2397_v35, %s7248_s17  ;;  %v2401_v13 = vmul.f32 %v6967_v21, %v8540_v56  ;;  %v8554_v35 = vpop.permute.xlu1 %2340  ;;  %v8571_v21 = vld [vmem:[%s7409_s16 + $0x58] sm:$0xff] }
 0x29f   : > { %v2404_v45 = vmul.f32 %v8559_v47, %v8554_v35  ;;  %v2406_v34 = vmul.f32 %v8571_v21, %v8554_v35  ;;  %v8606_v7 = vpop.permute.xlu0 %2348 }
 0x2a0   : > { %v2411_v33 = vmul.f32 %v6977_v36, %v8606_v7  ;;  %v2414_v18 = vmul.f32 %v6978_v32, %v8606_v7 }
 0x2a2   : > { %2661 = vrot.lane.b32.xlu1 %v2400_v5, %s7248_s17  ;;  %2659 = vrot.lane.b32.xlu0 %v2399_v54, %s7248_s17  ;;  %v8564_v5 = vld [vmem:[%s7409_s16 + $0x40] sm:$0xff]  ;;  %v8580_v62 = vpop.permute.xlu1 %2344 }
 0x2a3   : > { %v2403_v54 = vmul.f32 %v8564_v5, %v8554_v35  ;;  %v2407_v15 = vmul.f32 %v8590_v38, %v8580_v62  ;;  %v2409_v60 = vmul.f32 %v8602_v48, %v8580_v62  ;;  %v8624_v36 = vpop.permute.xlu0 %2356 }
 0x2a6   : > { %2665 = vrot.lane.b32.xlu1 %v2402_v6, %s7248_s17  ;;  %2663 = vrot.lane.b32.xlu0 %v2401_v13, %s7248_s17  ;;  %v8576_v6 = vld [vmem:[%s7409_s16 + $0x50] sm:$0xff] }
 0x2a7   : > { %16640 = vst [vmem:[#allocation191_spill] sm:$0xff] %v8576_v6  ;;  %v2405_v13 = vmul.f32 %v8576_v6, %v8554_v35 }
 0x2aa   : > { %2669 = vrot.lane.b32.xlu1 %v2404_v45, %s7248_s17  ;;  %2667 = vrot.lane.b32.xlu0 %v2403_v54, %s7248_s17  ;;  %v8585_v45 = vld [vmem:[%s7409_s16 + $0x68] sm:$0xff] }
 0x2ab   : > { %16641 = vst [vmem:[#allocation192_spill] sm:$0xff] %v8585_v45  ;;  %v2408_v54 = vmul.f32 %v8585_v45, %v8580_v62  ;;  %v6993_v45 = vld [vmem:[%s7409_s16 + $0x100] sm:$0xff] }
 0x2ae   : > { %2673 = vrot.lane.b32.xlu1 %v2406_v34, %s7248_s17  ;;  %2671 = vrot.lane.b32.xlu0 %v2405_v13, %s7248_s17  ;;  %v8597_v34 = vld [vmem:[%s7409_s16 + $0x78] sm:$0xff] }
 0x2af   : > { %16643 = vst [vmem:[#allocation194_spill] sm:$0xff] %v8597_v34  ;;  %v2410_v13 = vmul.f32 %v8597_v34, %v8580_v62  ;;  %v6987_v34 = vld [vmem:[%s7409_s16 + $0xd0] sm:$0xff] }
 0x2b2   : > { %2677 = vrot.lane.b32.xlu1 %v2408_v54, %s7248_s17  ;;  %2675 = vrot.lane.b32.xlu0 %v2407_v15, %s7248_s17  ;;  %v6976_v54 = vld [vmem:[%s7409_s16 + $0x88] sm:$0xff] }
 0x2b3   : > { %v2412_v15 = vmul.f32 %v6976_v54, %v8606_v7  ;;  %v8627_v54 = vld [vmem:[%s7409_s16 + $0xa8] sm:$0xff] }
 0x2b4   : > { %16645 = vst [vmem:[#allocation196_spill] sm:$0xff] %v8627_v54 }
 0x2b6   : > { %2681 = vrot.lane.b32.xlu1 %v2410_v13, %s7248_s17  ;;  %2679 = vrot.lane.b32.xlu0 %v2409_v60, %s7248_s17  ;;  %v6979_v13 = vld [vmem:[%s7409_s16 + $0x90] sm:$0xff]  ;;  %v8620_v60 = vpop.permute.xlu1 %2352 }
 0x2b7   : > { %v2413_v17 = vmul.f32 %v6979_v13, %v8606_v7  ;;  %v8644_v13 = vld [vmem:[%s7409_s16 + $0xb0] sm:$0xff] }
 0x2b8   : > { %16648 = vst [vmem:[#allocation199_spill] sm:$0xff] %v8644_v13  ;;  %v2417_v31 = vmul.f32 %v8644_v13, %v8620_v60  ;;  %v6986_v13 = vld [vmem:[%s7409_s16 + $0xd8] sm:$0xff] }
 0x2ba   : > { %2685 = vrot.lane.b32.xlu1 %v2412_v15, %s7248_s17  ;;  %2683 = vrot.lane.b32.xlu0 %v2411_v33, %s7248_s17  ;;  %v2416_v33 = vmul.f32 %v8627_v54, %v8620_v60  ;;  %v8632_v15 = vld [vmem:[%s7409_s16 + $0xa0] sm:$0xff]  ;;  %v8648_v54 = vpop.permute.xlu0 %2364  ;;  %v8664_v48 = vpop.permute.xlu1 %2360 }
 0x2bb   : > { %16646 = vst [vmem:[#allocation197_spill] sm:$0xff] %v8632_v15  ;;  %v2415_v32 = vmul.f32 %v8632_v15, %v8620_v60  ;;  %v6985_v15 = vld [vmem:[%s7409_s16 + $0xc0] sm:$0xff]  ;;  %v2427_v38 = vmul.f32 %v6993_v45, %v8648_v54  ;;  %v8713_v45 = vld [vmem:[%s7409_s16 + $0x128] sm:$0xff] }
 0x2bc   : > { %v2419_v30 = vmul.f32 %v6985_v15, %v8624_v36  ;;  %v8669_v15 = vld [vmem:[%s7409_s16 + $0xe8] sm:$0xff]  ;;  %16655 = vst [vmem:[#allocation206_spill] sm:$0xff] %v8713_v45 }
 0x2bd   : > { %16649 = vst [vmem:[#allocation200_spill] sm:$0xff] %v8669_v15 }
 0x2be   : > { %2689 = vrot.lane.b32.xlu1 %v2414_v18, %s7248_s17  ;;  %2687 = vrot.lane.b32.xlu0 %v2413_v17, %s7248_s17  ;;  %v8639_v18 = vld [vmem:[%s7409_s16 + $0xb8] sm:$0xff]  ;;  %v8706_v27 = vpop.permute.xlu1 %2368 }
 0x2bf   : > { %16647 = vst [vmem:[#allocation198_spill] sm:$0xff] %v8639_v18  ;;  %v2418_v17 = vmul.f32 %v8639_v18, %v8620_v60  ;;  %v8658_v18 = vpop.permute.xlu0 %2372 }
 0x2c2   : > { %2693 = vrot.lane.b32.xlu1 %v2416_v33, %s7248_s17  ;;  %2691 = vrot.lane.b32.xlu0 %v2415_v32, %s7248_s17  ;;  %v6984_v33 = vld [vmem:[%s7409_s16 + $0xc8] sm:$0xff]  ;;  %v8750_v57 = vpop.permute.xlu1 %2376 }
 0x2c3   : > { %v2420_v32 = vmul.f32 %v6984_v33, %v8624_v36  ;;  %v8674_v33 = vld [vmem:[%s7409_s16 + $0xe0] sm:$0xff] }
 0x2c4   : > { %16650 = vst [vmem:[#allocation201_spill] sm:$0xff] %v8674_v33 }
 0x2c6   : > { %2697 = vrot.lane.b32.xlu1 %v2418_v17, %s7248_s17  ;;  %2695 = vrot.lane.b32.xlu0 %v2417_v31, %s7248_s17  ;;  %v2422_v17 = vmul.f32 %v6986_v13, %v8624_v36  ;;  %v2421_v31 = vmul.f32 %v6987_v34, %v8624_v36  ;;  %v2423_v13 = vmul.f32 %v8674_v33, %v8664_v48  ;;  %v8683_v34 = vld [vmem:[%s7409_s16 + $0xf8] sm:$0xff]  ;;  %v8794_v6 = vpop.permute.xlu1 %2384 }
 0x2c7   : > { %16651 = vst [vmem:[#allocation202_spill] sm:$0xff] %v8683_v34  ;;  %16668 = vst [vmem:[#allocation219_spill] sm:$0xff] %v8794_v6 }
 0x2ca   : > { %2701 = vrot.lane.b32.xlu1 %v2420_v32, %s7248_s17  ;;  %2699 = vrot.lane.b32.xlu0 %v2419_v30, %s7248_s17  ;;  %v2424_v30 = vmul.f32 %v8669_v15, %v8664_v48  ;;  %v8678_v32 = vpop.permute.xlu0 %2380 }
 0x2ce   : > { %2705 = vrot.lane.b32.xlu1 %v2422_v17, %s7248_s17  ;;  %2703 = vrot.lane.b32.xlu0 %v2421_v31, %s7248_s17  ;;  %v2426_v17 = vmul.f32 %v8683_v34, %v8664_v48  ;;  %v8688_v31 = vld [vmem:[%s7409_s16 + $0xf0] sm:$0xff]  ;;  %v8694_v33 = vpop.permute.xlu0 %2388  ;;  %v6994_v34 = vld [vmem:[%s7409_s16 + $0x118] sm:$0xff] }
 0x2cf   : > { %16652 = vst [vmem:[#allocation203_spill] sm:$0xff] %v8688_v31  ;;  %v2425_v15 = vmul.f32 %v8688_v31, %v8664_v48  ;;  %16653 = vst [vmem:[#allocation204_spill] sm:$0xff] %v8694_v33 }
 0x2d2   : > { %2709 = vrot.lane.b32.xlu1 %v2424_v30, %s7248_s17  ;;  %2707 = vrot.lane.b32.xlu0 %v2423_v13, %s7248_s17  ;;  %v6992_v30 = vld [vmem:[%s7409_s16 + $0x108] sm:$0xff]  ;;  %v8708_v63 = vpop.permute.xlu0 %940 }
 0x2d3   : > { %v2428_v13 = vmul.f32 %v6992_v30, %v8648_v54  ;;  %16654 = vst [vmem:[#allocation205_spill] sm:$0xff] %v8708_v63 }
 0x2d6   : > { %2713 = vrot.lane.b32.xlu1 %v2426_v17, %s7248_s17  ;;  %2711 = vrot.lane.b32.xlu0 %v2425_v15, %s7248_s17  ;;  %v2430_v17 = vmul.f32 %v6994_v34, %v8648_v54  ;;  %v6995_v15 = vld [vmem:[%s7409_s16 + $0x110] sm:$0xff]  ;;  %v8718_v34 = vld [vmem:[%s7409_s16 + $0x120] sm:$0xff] }
 0x2d7   : > { %v2429_v31 = vmul.f32 %v6995_v15, %v8648_v54  ;;  %16656 = vst [vmem:[#allocation207_spill] sm:$0xff] %v8718_v34  ;;  %v2431_v30 = vmul.f32 %v8718_v34, %v8706_v27  ;;  %v8732_v15 = vld [vmem:[%s7409_s16 + $0x130] sm:$0xff] }
 0x2d8   : > { %16659 = vst [vmem:[#allocation210_spill] sm:$0xff] %v8732_v15  ;;  %v2433_v63 = vmul.f32 %v8732_v15, %v8706_v27 }
 0x2da   : > { %2717 = vrot.lane.b32.xlu1 %v2428_v13, %s7248_s17  ;;  %2715 = vrot.lane.b32.xlu0 %v2427_v38, %s7248_s17  ;;  %v2432_v38 = vmul.f32 %v8713_v45, %v8706_v27  ;;  %v8724_v13 = vpop.permute.xlu0 %945 }
 0x2db   : > { %16657 = vst [vmem:[#allocation208_spill] sm:$0xff] %v8724_v13  ;;  %v7001_v13 = vld [vmem:[%s7409_s16 + $0x140] sm:$0xff] }
 0x2dc   : > { %v2435_v45 = vmul.f32 %v7001_v13, %v8658_v18 }
 0x2de   : > { %2721 = vrot.lane.b32.xlu1 %v2430_v17, %s7248_s17  ;;  %2719 = vrot.lane.b32.xlu0 %v2429_v31, %s7248_s17  ;;  %v8727_v31 = vld [vmem:[%s7409_s16 + $0x138] sm:$0xff]  ;;  %v8742_v34 = vpop.permute.xlu0 %960 }
 0x2df   : > { %16658 = vst [vmem:[#allocation209_spill] sm:$0xff] %v8727_v31  ;;  %v2434_v17 = vmul.f32 %v8727_v31, %v8706_v27  ;;  %16660 = vst [vmem:[#allocation211_spill] sm:$0xff] %v8742_v34  ;;  %v7002_v31 = vld [vmem:[%s7409_s16 + $0x158] sm:$0xff] }
 0x2e2   : > { %2725 = vrot.lane.b32.xlu1 %v2432_v38, %s7248_s17  ;;  %2723 = vrot.lane.b32.xlu0 %v2431_v30, %s7248_s17  ;;  %v7000_v38 = vld [vmem:[%s7409_s16 + $0x148] sm:$0xff]  ;;  %v8754_v13 = vpop.permute.xlu0 %970 }
 0x2e3   : > { %v2436_v30 = vmul.f32 %v7000_v38, %v8658_v18  ;;  %16661 = vst [vmem:[#allocation212_spill] sm:$0xff] %v8754_v13  ;;  %v8757_v38 = vld [vmem:[%s7409_s16 + $0x168] sm:$0xff] }
 0x2e4   : > { %16662 = vst [vmem:[#allocation213_spill] sm:$0xff] %v8757_v38 }
 0x2e6   : > { %2729 = vrot.lane.b32.xlu1 %v2434_v17, %s7248_s17  ;;  %2727 = vrot.lane.b32.xlu0 %v2433_v63, %s7248_s17  ;;  %v2438_v17 = vmul.f32 %v7002_v31, %v8658_v18  ;;  %v7003_v63 = vld [vmem:[%s7409_s16 + $0x150] sm:$0xff]  ;;  %v8778_v34 = vpop.permute.xlu0 %980 }
 0x2e7   : > { %v2437_v15 = vmul.f32 %v7003_v63, %v8658_v18  ;;  %v8774_v63 = vld [vmem:[%s7409_s16 + $0x170] sm:$0xff]  ;;  %16666 = vst [vmem:[#allocation217_spill] sm:$0xff] %v8778_v34  ;;  %v7010_v34 = vld [vmem:[%s7409_s16 + $0x198] sm:$0xff] }
 0x2e8   : > { %16665 = vst [vmem:[#allocation216_spill] sm:$0xff] %v8774_v63  ;;  %v2441_v13 = vmul.f32 %v8774_v63, %v8750_v57  ;;  %v7011_v63 = vld [vmem:[%s7409_s16 + $0x190] sm:$0xff] }
 0x2ea   : > { %2733 = vrot.lane.b32.xlu1 %v2436_v30, %s7248_s17  ;;  %2731 = vrot.lane.b32.xlu0 %v2435_v45, %s7248_s17  ;;  %v2440_v45 = vmul.f32 %v8757_v38, %v8750_v57  ;;  %v8762_v30 = vld [vmem:[%s7409_s16 + $0x160] sm:$0xff] }
 0x2eb   : > { %16663 = vst [vmem:[#allocation214_spill] sm:$0xff] %v8762_v30  ;;  %v2439_v31 = vmul.f32 %v8762_v30, %v8750_v57  ;;  %v7009_v38 = vld [vmem:[%s7409_s16 + $0x180] sm:$0xff] }
 0x2ec   : > { %v2443_v30 = vmul.f32 %v7009_v38, %v8678_v32  ;;  %v8799_v38 = vld [vmem:[%s7409_s16 + $0x1a8] sm:$0xff] }
 0x2ed   : > { %16669 = vst [vmem:[#allocation220_spill] sm:$0xff] %v8799_v38 }
 0x2ee   : > { %2737 = vrot.lane.b32.xlu1 %v2438_v17, %s7248_s17  ;;  %2735 = vrot.lane.b32.xlu0 %v2437_v15, %s7248_s17  ;;  %v8769_v17 = vld [vmem:[%s7409_s16 + $0x178] sm:$0xff] }
 0x2ef   : > { %16664 = vst [vmem:[#allocation215_spill] sm:$0xff] %v8769_v17  ;;  %v2442_v15 = vmul.f32 %v8769_v17, %v8750_v57  ;;  %v8788_v17 = vpop.permute.xlu0 %990 }
 0x2f0   : > { %16667 = vst [vmem:[#allocation218_spill] sm:$0xff] %v8788_v17 }
 0x2f2   : > { %2741 = vrot.lane.b32.xlu1 %v2440_v45, %s7248_s17  ;;  %2739 = vrot.lane.b32.xlu0 %v2439_v31, %s7248_s17  ;;  %v7008_v45 = vld [vmem:[%s7409_s16 + $0x188] sm:$0xff] }
 0x2f3   : > { %v2444_v31 = vmul.f32 %v7008_v45, %v8678_v32  ;;  %v8804_v45 = vld [vmem:[%s7409_s16 + $0x1a0] sm:$0xff] }
 0x2f4   : > { %16670 = vst [vmem:[#allocation221_spill] sm:$0xff] %v8804_v45 }
 0x2f6   : > { %2745 = vrot.lane.b32.xlu1 %v2442_v15, %s7248_s17  ;;  %2743 = vrot.lane.b32.xlu0 %v2441_v13, %s7248_s17  ;;  %v2446_v15 = vmul.f32 %v7010_v34, %v8678_v32  ;;  %v2445_v13 = vmul.f32 %v7011_v63, %v8678_v32  ;;  %v2447_v34 = vmul.f32 %v8804_v45, %v8794_v6  ;;  %v8813_v63 = vld [vmem:[%s7409_s16 + $0x1b8] sm:$0xff]  ;;  %v7017_v45 = vld [vmem:[%s7409_s16 + $0x1c0] sm:$0xff] }
 0x2f7   : > { %16672 = vst [vmem:[#allocation223_spill] sm:$0xff] %v8813_v63 }
 0x2fa   : > { %2749 = vrot.lane.b32.xlu1 %v2444_v31, %s7248_s17  ;;  %2747 = vrot.lane.b32.xlu0 %v2443_v30, %s7248_s17  ;;  %v2448_v30 = vmul.f32 %v8799_v38, %v8794_v6  ;;  %v8808_v31 = vpop.permute.xlu0 %1000 }
 0x2fb   : > { %16671 = vst [vmem:[#allocation222_spill] sm:$0xff] %v8808_v31  ;;  %v8824_v31 = vpop.permute.xlu1 %2392 }
 0x2fc   : > { %16674 = vst [vmem:[#allocation225_spill] sm:$0xff] %v8824_v31 }
 0x2fe   : > { %2753 = vrot.lane.b32.xlu1 %v2446_v15, %s7248_s17  ;;  %2751 = vrot.lane.b32.xlu0 %v2445_v13, %s7248_s17  ;;  %v2450_v15 = vmul.f32 %v8813_v63, %v8794_v6  ;;  %v8818_v13 = vld [vmem:[%s7409_s16 + $0x1b0] sm:$0xff]  ;;  %v2451_v63 = vmul.f32 %v7017_v45, %v8694_v33 }
 0x2ff   : > { %16673 = vst [vmem:[#allocation224_spill] sm:$0xff] %v8818_v13  ;;  %v2449_v17 = vmul.f32 %v8818_v13, %v8794_v6  ;;  %v7019_v6 = vld [vmem:[%s7409_s16 + $0x1d0] sm:$0xff] }
 0x302   : > { %2757 = vrot.lane.b32.xlu1 %v2448_v30, %s7248_s17  ;;  %2755 = vrot.lane.b32.xlu0 %v2447_v34, %s7248_s17  ;;  %v8826_v30 = vpop.permute.xlu0 %1010  ;;  %v7016_v34 = vld [vmem:[%s7409_s16 + $0x1c8] sm:$0xff] }
 0x303   : > { %16675 = vst [vmem:[#allocation226_spill] sm:$0xff] %v8826_v30  ;;  %v2452_v38 = vmul.f32 %v7016_v34, %v8694_v33  ;;  %v2453_v34 = vmul.f32 %v7019_v6, %v8694_v33 }
 0x306   : > { %2761 = vrot.lane.b32.xlu1 %v2450_v15, %s7248_s17  ;;  %2759 = vrot.lane.b32.xlu0 %v2449_v17, %s7248_s17  ;;  %v7018_v17 = vld [vmem:[%s7409_s16 + $0x1d8] sm:$0xff] }
 0x307   : > { %v2454_v30 = vmul.f32 %v7018_v17, %v8694_v33 }
 0x30a   : > { %2765 = vrot.lane.b32.xlu1 %v2452_v38, %s7248_s17  ;;  %2763 = vrot.lane.b32.xlu0 %v2451_v63, %s7248_s17  ;;  %v8849_v63 = vld [vmem:[%s7409_s16 + $0x1e8] sm:$0xff] }
 0x30b   : > { %16680 = vst [vmem:[#allocation231_spill] sm:$0xff] %v8849_v63 }
 0x30c   : > { %v8834_v13 = vpop.permute.xlu1 %2653  ;;  %v8836_v15 = vpop.permute.xlu0 %2651 }
 0x30d   : > { %16676 = vst [vmem:[#allocation227_spill] sm:$0xff] %v8834_v13  ;;  %16677 = vst [vmem:[#allocation228_spill] sm:$0xff] %v8836_v15  ;;  %v2456_v15 = vmul.f32 %v8849_v63, %v8824_v31  ;;  %v8854_v13 = vld [vmem:[%s7409_s16 + $0x1e0] sm:$0xff] }
 0x30e   : > { %2769 = vrot.lane.b32.xlu1 %v2454_v30, %s7248_s17  ;;  %2767 = vrot.lane.b32.xlu0 %v2453_v34, %s7248_s17  ;;  %v2455_v6 = vmul.f32 %v8854_v13, %v8824_v31  ;;  %v8865_v34 = vld [vmem:[%s7409_s16 + $0x1f8] sm:$0xff]  ;;  %v7025_v63 = vld [vmem:[%s7409_s16 + $0x200] sm:$0xff] }
 0x30f   : > { %16683 = vst [vmem:[#allocation234_spill] sm:$0xff] %v8865_v34 }
 0x310   : > { %v8844_v45 = vpop.permute.xlu1 %2657  ;;  %v8846_v38 = vpop.permute.xlu0 %2655 }
 0x311   : > { %16678 = vst [vmem:[#allocation229_spill] sm:$0xff] %v8844_v45  ;;  %16679 = vst [vmem:[#allocation230_spill] sm:$0xff] %v8846_v38  ;;  %v2458_v45 = vmul.f32 %v8865_v34, %v8824_v31  ;;  %v8870_v38 = vld [vmem:[%s7409_s16 + $0x1f0] sm:$0xff]  ;;  %v2459_v34 = vmul.f32 %v7025_v63, %v8526_v53 }
 0x312   : > { %2773 = vrot.lane.b32.xlu1 %v2456_v15, %s7248_s17  ;;  %2771 = vrot.lane.b32.xlu0 %v2455_v6, %s7248_s17  ;;  %v2457_v33 = vmul.f32 %v8870_v38, %v8824_v31 }
 0x314   : > { %v8860_v30 = vpop.permute.xlu1 %2661  ;;  %v8862_v17 = vpop.permute.xlu0 %2659 }
 0x315   : > { %16681 = vst [vmem:[#allocation232_spill] sm:$0xff] %v8860_v30  ;;  %16682 = vst [vmem:[#allocation233_spill] sm:$0xff] %v8862_v17  ;;  %v7024_v17 = vld [vmem:[%s7409_s16 + $0x208] sm:$0xff] }
 0x316   : > { %2777 = vrot.lane.b32.xlu1 %v2458_v45, %s7248_s17  ;;  %2775 = vrot.lane.b32.xlu0 %v2457_v33, %s7248_s17  ;;  %v2460_v30 = vmul.f32 %v7024_v17, %v8526_v53  ;;  %v7026_v33 = vld [vmem:[%s7409_s16 + $0x218] sm:$0xff] }
 0x318   : > { %v8876_v15 = vpop.permute.xlu1 %2665  ;;  %v8878_v6 = vpop.permute.xlu0 %2663 }
 0x319   : > { %16684 = vst [vmem:[#allocation235_spill] sm:$0xff] %v8876_v15  ;;  %16685 = vst [vmem:[#allocation236_spill] sm:$0xff] %v8878_v6  ;;  %v2462_v15 = vmul.f32 %v7026_v33, %v8526_v53  ;;  %v7027_v6 = vld [vmem:[%s7409_s16 + $0x210] sm:$0xff] }
 0x31a   : > { %2781 = vrot.lane.b32.xlu1 %v2460_v30, %s7248_s17  ;;  %2779 = vrot.lane.b32.xlu0 %v2459_v34, %s7248_s17  ;;  %v2461_v17 = vmul.f32 %v7027_v6, %v8526_v53  ;;  %v7028_v34 = vld [vmem:[%s7409_s16 + $0x228] sm:$0xff]  ;;  %v7030_v6 = vld [vmem:[%s7409_s16 + $0x238] sm:$0xff] }
 0x31c   : > { %v8886_v31 = vpop.permute.xlu1 %2669  ;;  %v8888_v45 = vpop.permute.xlu0 %2667 }
 0x31d   : > { %16686 = vst [vmem:[#allocation237_spill] sm:$0xff] %v8886_v31  ;;  %16687 = vst [vmem:[#allocation238_spill] sm:$0xff] %v8888_v45  ;;  %v2464_v45 = vmul.f32 %v7028_v34, %v8540_v56  ;;  %v7029_v31 = vld [vmem:[%s7409_s16 + $0x220] sm:$0xff] }
 0x31e   : > { %2785 = vrot.lane.b32.xlu1 %v2462_v15, %s7248_s17  ;;  %2783 = vrot.lane.b32.xlu0 %v2461_v17, %s7248_s17  ;;  %v2463_v33 = vmul.f32 %v7029_v31, %v8540_v56  ;;  %v2466_v17 = vmul.f32 %v7030_v6, %v8540_v56 }
 0x320   : > { %v8896_v63 = vpop.permute.xlu1 %2673  ;;  %v8898_v30 = vpop.permute.xlu0 %2671 }
 0x321   : > { %16688 = vst [vmem:[#allocation239_spill] sm:$0xff] %v8896_v63  ;;  %16689 = vst [vmem:[#allocation240_spill] sm:$0xff] %v8898_v30  ;;  %v7031_v63 = vld [vmem:[%s7409_s16 + $0x230] sm:$0xff] }
 0x322   : > { %2789 = vrot.lane.b32.xlu1 %v2464_v45, %s7248_s17  ;;  %2787 = vrot.lane.b32.xlu0 %v2463_v33, %s7248_s17  ;;  %v2465_v34 = vmul.f32 %v7031_v63, %v8540_v56  ;;  %v8921_v33 = vld [vmem:[%s7409_s16 + $0x248] sm:$0xff] }
 0x324   : > { %v8906_v53 = vpop.permute.xlu1 %2677  ;;  %v8908_v15 = vpop.permute.xlu0 %2675 }
 0x325   : > { %16690 = vst [vmem:[#allocation241_spill] sm:$0xff] %v8906_v53  ;;  %16691 = vst [vmem:[#allocation242_spill] sm:$0xff] %v8908_v15  ;;  %v2468_v15 = vmul.f32 %v8921_v33, %v8554_v35  ;;  %v8926_v53 = vld [vmem:[%s7409_s16 + $0x240] sm:$0xff] }
 0x326   : > { %2793 = vrot.lane.b32.xlu1 %v2466_v17, %s7248_s17  ;;  %2791 = vrot.lane.b32.xlu0 %v2465_v34, %s7248_s17  ;;  %v2467_v6 = vmul.f32 %v8926_v53, %v8554_v35  ;;  %v8937_v17 = vld [vmem:[%s7409_s16 + $0x258] sm:$0xff] }
 0x327   : > { %v2470_v34 = vmul.f32 %v8937_v17, %v8554_v35 }
 0x328   : > { %v8916_v31 = vpop.permute.xlu1 %2681  ;;  %v8918_v45 = vpop.permute.xlu0 %2679 }
 0x329   : > { %16692 = vst [vmem:[#allocation243_spill] sm:$0xff] %v8916_v31  ;;  %16693 = vst [vmem:[#allocation244_spill] sm:$0xff] %v8918_v45  ;;  %v8942_v31 = vld [vmem:[%s7409_s16 + $0x250] sm:$0xff] }
 0x32a   : > { %2797 = vrot.lane.b32.xlu1 %v2468_v15, %s7248_s17  ;;  %2795 = vrot.lane.b32.xlu0 %v2467_v6, %s7248_s17  ;;  %v2469_v45 = vmul.f32 %v8942_v31, %v8554_v35 }
 0x32c   : > { %v8932_v56 = vpop.permute.xlu1 %2685  ;;  %v8934_v63 = vpop.permute.xlu0 %2683 }
 0x32d   : > { %16694 = vst [vmem:[#allocation245_spill] sm:$0xff] %v8932_v56  ;;  %16695 = vst [vmem:[#allocation246_spill] sm:$0xff] %v8934_v63  ;;  %v2472_v63 = vmul.f32 %v8580_v62, %v7911_v44  ;;  %v8955_v56 = vld [vmem:[%s7409_s16 + $0x260] sm:$0xff] }
 0x32e   : > { %2801 = vrot.lane.b32.xlu1 %v2470_v34, %s7248_s17  ;;  %2799 = vrot.lane.b32.xlu0 %v2469_v45, %s7248_s17  ;;  %v2471_v30 = vmul.f32 %v8955_v56, %v8580_v62  ;;  %v2474_v45 = vmul.f32 %v8580_v62, %v7923_v59 }
 0x330   : > { %v8948_v15 = vpop.permute.xlu1 %2689  ;;  %v8950_v6 = vpop.permute.xlu0 %2687 }
 0x331   : > { %16696 = vst [vmem:[#allocation247_spill] sm:$0xff] %v8948_v15  ;;  %16697 = vst [vmem:[#allocation248_spill] sm:$0xff] %v8950_v6  ;;  %v8968_v15 = vld [vmem:[%s7409_s16 + $0x270] sm:$0xff] }
 0x332   : > { %2805 = vrot.lane.b32.xlu1 %v2472_v63, %s7248_s17  ;;  %2803 = vrot.lane.b32.xlu0 %v2471_v30, %s7248_s17  ;;  %v2473_v44 = vmul.f32 %v8968_v15, %v8580_v62  ;;  %v2476_v30 = vmul.f32 %v8606_v7, %v7932_v46 }
 0x334   : > { %v8961_v35 = vpop.permute.xlu1 %2693  ;;  %v8963_v34 = vpop.permute.xlu0 %2691 }
 0x335   : > { %16698 = vst [vmem:[#allocation249_spill] sm:$0xff] %v8961_v35  ;;  %16699 = vst [vmem:[#allocation250_spill] sm:$0xff] %v8963_v34  ;;  %v2475_v34 = vmul.f32 %v8606_v7, %v7935_v37  ;;  %v7048_v35 = vld [vmem:[%s7409_s16 + $0x320] sm:$0xff] }
 0x336   : > { %2809 = vrot.lane.b32.xlu1 %v2474_v45, %s7248_s17  ;;  %2807 = vrot.lane.b32.xlu0 %v2473_v44, %s7248_s17  ;;  %v2478_v45 = vmul.f32 %v8606_v7, %v7949_v20  ;;  %v2477_v44 = vmul.f32 %v8606_v7, %v7952_v52  ;;  %v2482_v7 = vmul.f32 %v8620_v60, %v7995_v16 }
 0x338   : > { %v8974_v6 = vpop.permute.xlu1 %2697  ;;  %v8976_v63 = vpop.permute.xlu0 %2695 }
 0x339   : > { %16700 = vst [vmem:[#allocation251_spill] sm:$0xff] %v8974_v6  ;;  %16701 = vst [vmem:[#allocation252_spill] sm:$0xff] %v8976_v63  ;;  %v7044_v6 = vld [vmem:[%s7409_s16 + $0x2e0] sm:$0xff]  ;;  %v7046_v63 = vld [vmem:[%s7409_s16 + $0x2f0] sm:$0xff] }
 0x33a   : > { %2813 = vrot.lane.b32.xlu1 %v2476_v30, %s7248_s17  ;;  %2811 = vrot.lane.b32.xlu0 %v2475_v34, %s7248_s17  ;;  %v2480_v34 = vmul.f32 %v8620_v60, %v7982_v25  ;;  %v2479_v30 = vmul.f32 %v8620_v60, %v7967_v4 }
 0x33c   : > { %v8984_v59 = vpop.permute.xlu1 %2701  ;;  %v8986_v62 = vpop.permute.xlu0 %2699 }
 0x33d   : > { %16702 = vst [vmem:[#allocation253_spill] sm:$0xff] %v8984_v59  ;;  %16703 = vst [vmem:[#allocation254_spill] sm:$0xff] %v8986_v62  ;;  %v7043_v59 = vld [vmem:[%s7409_s16 + $0x2b8] sm:$0xff] }
 0x33e   : > { %2817 = vrot.lane.b32.xlu1 %v2478_v45, %s7248_s17  ;;  %2815 = vrot.lane.b32.xlu0 %v2477_v44, %s7248_s17  ;;  %v2481_v45 = vmul.f32 %v8620_v60, %v7979_v0  ;;  %v2484_v44 = vmul.f32 %v8624_v36, %v8004_v3  ;;  %v2486_v60 = vmul.f32 %v8624_v36, %v8021_v39 }
 0x340   : > { %v8994_v46 = vpop.permute.xlu1 %2705  ;;  %v8996_v37 = vpop.permute.xlu0 %2703 }
 0x341   : > { %16704 = vst [vmem:[#allocation255_spill] sm:$0xff] %v8994_v46  ;;  %16705 = vst [vmem:[#allocation256_spill] sm:$0xff] %v8996_v37  ;;  %v16790_v46 = vld [vmem:[#allocation204_spill] sm:$0xff] }
 0x342   : > { %2821 = vrot.lane.b32.xlu1 %v2480_v34, %s7248_s17  ;;  %2819 = vrot.lane.b32.xlu0 %v2479_v30, %s7248_s17  ;;  %v2483_v34 = vmul.f32 %v8624_v36, %v8007_v9  ;;  %v2485_v30 = vmul.f32 %v8624_v36, %v8024_v2  ;;  %v2490_v36 = vmul.f32 %v8664_v48, %v8067_v50 }
 0x344   : > { %v9004_v20 = vpop.permute.xlu1 %2709  ;;  %v9006_v52 = vpop.permute.xlu0 %2707 }
 0x345   : > { %16706 = vst [vmem:[#allocation257_spill] sm:$0xff] %v9004_v20  ;;  %16707 = vst [vmem:[#allocation258_spill] sm:$0xff] %v9006_v52 }
 0x346   : > { %2825 = vrot.lane.b32.xlu1 %v2482_v7, %s7248_s17  ;;  %2823 = vrot.lane.b32.xlu0 %v2481_v45, %s7248_s17  ;;  %v2488_v7 = vmul.f32 %v8664_v48, %v8054_v41  ;;  %v2487_v45 = vmul.f32 %v8664_v48, %v8039_v1 }
 0x348   : > { %v9014_v25 = vpop.permute.xlu1 %2713  ;;  %v9016_v4 = vpop.permute.xlu0 %2711 }
 0x349   : > { %16708 = vst [vmem:[#allocation259_spill] sm:$0xff] %v9014_v25  ;;  %16709 = vst [vmem:[#allocation260_spill] sm:$0xff] %v9016_v4 }
 0x34a   : > { %2829 = vrot.lane.b32.xlu1 %v2484_v44, %s7248_s17  ;;  %2827 = vrot.lane.b32.xlu0 %v2483_v34, %s7248_s17  ;;  %v2489_v44 = vmul.f32 %v8664_v48, %v8051_v24  ;;  %v2492_v34 = vmul.f32 %v8648_v54, %v8076_v26  ;;  %v2494_v48 = vmul.f32 %v8648_v54, %v8093_v61 }
 0x34c   : > { %v9024_v16 = vpop.permute.xlu1 %2717  ;;  %v9026_v0 = vpop.permute.xlu0 %2715 }
 0x34d   : > { %16710 = vst [vmem:[#allocation261_spill] sm:$0xff] %v9024_v16  ;;  %16711 = vst [vmem:[#allocation262_spill] sm:$0xff] %v9026_v0  ;;  %v9309_v0 = vmul.f32 0.0, %v7465_v19 }
 0x34e   : > { %2833 = vrot.lane.b32.xlu1 %v2486_v60, %s7248_s17  ;;  %2831 = vrot.lane.b32.xlu0 %v2485_v30, %s7248_s17  ;;  %v2491_v60 = vmul.f32 %v8648_v54, %v8079_v23  ;;  %v2493_v30 = vmul.f32 %v8648_v54, %v8096_v42  ;;  %v2498_v54 = vmul.f32 %v8706_v27, %v8139_v11 }
 0x350   : > { %v9034_v3 = vpop.permute.xlu1 %2721  ;;  %v9036_v9 = vpop.permute.xlu0 %2719 }
 0x351   : > { %16712 = vst [vmem:[#allocation263_spill] sm:$0xff] %v9034_v3  ;;  %16713 = vst [vmem:[#allocation264_spill] sm:$0xff] %v9036_v9  ;;  %v16776_v3 = vld [vmem:[#allocation221_spill] sm:$0xff] }
 0x352   : > { %2837 = vrot.lane.b32.xlu1 %v2488_v7, %s7248_s17  ;;  %2835 = vrot.lane.b32.xlu0 %v2487_v45, %s7248_s17  ;;  %v2496_v7 = vmul.f32 %v8706_v27, %v8126_v10  ;;  %v2495_v45 = vmul.f32 %v8706_v27, %v8111_v43  ;;  %v7039_v9 = vld [vmem:[%s7409_s16 + $0x278] sm:$0xff] }
 0x354   : > { %v9044_v39 = vpop.permute.xlu1 %2725  ;;  %v9046_v2 = vpop.permute.xlu0 %2723 }
 0x355   : > { %16714 = vst [vmem:[#allocation265_spill] sm:$0xff] %v9044_v39  ;;  %16715 = vst [vmem:[#allocation266_spill] sm:$0xff] %v9046_v2  ;;  %v16774_v2 = vld [vmem:[#allocation215_spill] sm:$0xff] }
 0x356   : > { %2841 = vrot.lane.b32.xlu1 %v2490_v36, %s7248_s17  ;;  %2839 = vrot.lane.b32.xlu0 %v2489_v44, %s7248_s17  ;;  %v2497_v36 = vmul.f32 %v8706_v27, %v8123_v55  ;;  %v2500_v44 = vmul.f32 %v8658_v18, %v8148_v58  ;;  %v2502_v55 = vmul.f32 %v8658_v18, %v8165_v49 }
 0x358   : > { %v9054_v41 = vpop.permute.xlu1 %2729  ;;  %v9056_v1 = vpop.permute.xlu0 %2727 }
 0x359   : > { %16716 = vst [vmem:[#allocation267_spill] sm:$0xff] %v9054_v41  ;;  %16717 = vst [vmem:[#allocation268_spill] sm:$0xff] %v9056_v1  ;;  %v16772_v41 = vld [vmem:[#allocation113_spill] sm:$0xff] }
 0x35a   : > { %2845 = vrot.lane.b32.xlu1 %v2492_v34, %s7248_s17  ;;  %2843 = vrot.lane.b32.xlu0 %v2491_v60, %s7248_s17  ;;  %v2499_v34 = vmul.f32 %v8658_v18, %v8151_v51  ;;  %v2501_v60 = vmul.f32 %v8658_v18, %v8168_v40  ;;  %v2506_v18 = vmul.f32 %v8750_v57, %v8209_v8  ;;  %v16773_v1 = vld [vmem:[#allocation109_spill] sm:$0xff] }
 0x35b   : > { %v9150_v8 = vmul.f32 %v8571_v21, %v7465_v19  ;;  %v16739_v21 = vld [vmem:[#allocation10_spill] sm:$0xff] }
 0x35c   : > { %v9064_v50 = vpop.permute.xlu1 %2733  ;;  %v9066_v24 = vpop.permute.xlu0 %2731 }
 0x35d   : > { %16718 = vst [vmem:[#allocation269_spill] sm:$0xff] %v9064_v50  ;;  %16719 = vst [vmem:[#allocation270_spill] sm:$0xff] %v9066_v24  ;;  %v16769_v24 = vld [vmem:[#allocation216_spill] sm:$0xff] }
 0x35e   : > { %2849 = vrot.lane.b32.xlu1 %v2494_v48, %s7248_s17  ;;  %2847 = vrot.lane.b32.xlu0 %v2493_v30, %s7248_s17  ;;  %v2504_v48 = vmul.f32 %v8750_v57, %v8195_v14  ;;  %v2503_v30 = vmul.f32 %v8750_v57, %v8181_v29 }
 0x360   : > { %v9074_v26 = vpop.permute.xlu1 %2737  ;;  %v9076_v23 = vpop.permute.xlu0 %2735 }
 0x361   : > { %16720 = vst [vmem:[#allocation271_spill] sm:$0xff] %v9074_v26  ;;  %16721 = vst [vmem:[#allocation272_spill] sm:$0xff] %v9076_v23 }
 0x362   : > { %2853 = vrot.lane.b32.xlu1 %v2496_v7, %s7248_s17  ;;  %2851 = vrot.lane.b32.xlu0 %v2495_v45, %s7248_s17  ;;  %v2505_v7 = vmul.f32 %v8750_v57, %v8192_v22  ;;  %v2508_v45 = vmul.f32 %v8678_v32, %v8220_v28  ;;  %v9146_v22 = vmul.f32 %v8564_v5, %v7465_v19  ;;  %v16734_v28 = vld [vmem:[#allocation191_spill] sm:$0xff] }
 0x363   : > { %v9154_v57 = vmul.f32 %v8559_v47, %v7465_v19  ;;  %v16741_v47 = vld [vmem:[#allocation192_spill] sm:$0xff] }
 0x364   : > { %v9084_v61 = vpop.permute.xlu1 %2741  ;;  %v9086_v42 = vpop.permute.xlu0 %2739 }
 0x365   : > { %16722 = vst [vmem:[#allocation273_spill] sm:$0xff] %v9084_v61  ;;  %16723 = vst [vmem:[#allocation274_spill] sm:$0xff] %v9086_v42  ;;  %v16762_v42 = vld [vmem:[#allocation210_spill] sm:$0xff] }
 0x366   : > { %2857 = vrot.lane.b32.xlu1 %v2498_v54, %s7248_s17  ;;  %2855 = vrot.lane.b32.xlu0 %v2497_v36, %s7248_s17  ;;  %v2507_v54 = vmul.f32 %v8678_v32, %v8223_v12  ;;  %v9158_v36 = vmul.f32 %v16734_v28, %v7465_v19  ;;  %v16765_v61 = vld [vmem:[#allocation214_spill] sm:$0xff] }
 0x368   : > { %v9094_v10 = vpop.permute.xlu1 %2745  ;;  %v9096_v43 = vpop.permute.xlu0 %2743 }
 0x369   : > { %16724 = vst [vmem:[#allocation275_spill] sm:$0xff] %v9094_v10  ;;  %16725 = vst [vmem:[#allocation276_spill] sm:$0xff] %v9096_v43 }
 0x36a   : > { %2861 = vrot.lane.b32.xlu1 %v2500_v44, %s7248_s17  ;;  %2859 = vrot.lane.b32.xlu0 %v2499_v34, %s7248_s17  ;;  %v16737_v34 = vld [vmem:[#allocation102_spill] sm:$0xff] }
 0x36b   : > { %v2510_v5 = vmul.f32 %v8678_v32, %v16737_v34  ;;  %v16744_v34 = vld [vmem:[#allocation11_spill] sm:$0xff] }
 0x36c   : > { %v9104_v11 = vpop.permute.xlu1 %2749  ;;  %v9106_v27 = vpop.permute.xlu0 %2747 }
 0x36d   : > { %16726 = vst [vmem:[#allocation277_spill] sm:$0xff] %v9104_v11  ;;  %16727 = vst [vmem:[#allocation278_spill] sm:$0xff] %v9106_v27  ;;  %v16757_v27 = vld [vmem:[#allocation203_spill] sm:$0xff] }
 0x36e   : > { %2865 = vrot.lane.b32.xlu1 %v2502_v55, %s7248_s17  ;;  %2863 = vrot.lane.b32.xlu0 %v2501_v60, %s7248_s17  ;;  %v16738_v55 = vld [vmem:[#allocation103_spill] sm:$0xff] }
 0x36f   : > { %v2509_v60 = vmul.f32 %v8678_v32, %v16738_v55  ;;  %v16746_v32 = vld [vmem:[#allocation196_spill] sm:$0xff] }
 0x370   : > { %v9114_v58 = vpop.permute.xlu1 %2753  ;;  %v9116_v51 = vpop.permute.xlu0 %2751  ;;  %v9190_v55 = vmul.f32 %v16746_v32, %v16744_v34  ;;  %v9208_v32 = vmul.f32 %v8937_v17, %v7465_v19  ;;  %v16755_v17 = vld [vmem:[#allocation219_spill] sm:$0xff] }
 0x371   : > { %16728 = vst [vmem:[#allocation279_spill] sm:$0xff] %v9114_v58  ;;  %16729 = vst [vmem:[#allocation280_spill] sm:$0xff] %v9116_v51  ;;  %v16756_v51 = vld [vmem:[#allocation106_spill] sm:$0xff] }
 0x372   : > { %2869 = vrot.lane.b32.xlu1 %v2504_v48, %s7248_s17  ;;  %2867 = vrot.lane.b32.xlu0 %v2503_v30, %s7248_s17  ;;  %v16740_v48 = vld [vmem:[#allocation193_spill] sm:$0xff] }
 0x373   : > { %v9170_v30 = vmul.f32 %v16740_v48, %v16739_v21  ;;  %v9194_v48 = vmul.f32 %v8926_v53, %v7465_v19  ;;  %v9212_v53 = vmul.f32 %v8921_v33, %v7465_v19  ;;  %v2511_v33 = vmul.f32 %v16755_v17, %v16756_v51  ;;  %v16761_v51 = vld [vmem:[#allocation206_spill] sm:$0xff] }
 0x374   : > { %v9124_v49 = vpop.permute.xlu1 %2757  ;;  %v9126_v40 = vpop.permute.xlu0 %2755 }
 0x375   : > { %16730 = vst [vmem:[#allocation281_spill] sm:$0xff] %v9124_v49  ;;  %16731 = vst [vmem:[#allocation282_spill] sm:$0xff] %v9126_v40  ;;  %v16754_v49 = vld [vmem:[#allocation110_spill] sm:$0xff] }
 0x376   : > { %2873 = vrot.lane.b32.xlu1 %v2506_v18, %s7248_s17  ;;  %2871 = vrot.lane.b32.xlu0 %v2505_v7, %s7248_s17  ;;  %v9174_v18 = vmul.f32 %v16741_v47, %v16739_v21  ;;  %v16742_v7 = vld [vmem:[#allocation195_spill] sm:$0xff]  ;;  %v2512_v58 = vmul.f32 %v16755_v17, %v16754_v49  ;;  %v16759_v49 = vld [vmem:[#allocation13_spill] sm:$0xff] }
 0x377   : > { %v16747_v47 = vld [vmem:[#allocation199_spill] sm:$0xff] }
 0x378   : > { %v9134_v14 = vpop.permute.xlu1 %2761  ;;  %v9136_v29 = vpop.permute.xlu0 %2759 }
 0x379   : > { %16732 = vst [vmem:[#allocation283_spill] sm:$0xff] %v9134_v14  ;;  %16733 = vst [vmem:[#allocation284_spill] sm:$0xff] %v9136_v29  ;;  %v16749_v14 = vld [vmem:[#allocation12_spill] sm:$0xff] }
 0x37a   : > { %2877 = vrot.lane.b32.xlu1 %v2508_v45, %s7248_s17  ;;  %2875 = vrot.lane.b32.xlu0 %v2507_v54, %s7248_s17  ;;  %v9178_v45 = vmul.f32 %v16742_v7, %v16739_v21  ;;  %v16743_v54 = vld [vmem:[#allocation194_spill] sm:$0xff]  ;;  %v9200_v7 = vmul.f32 %v16747_v47, %v16744_v34  ;;  %v9232_v11 = vmul.f32 %v16757_v27, %v16749_v14 }
 0x37b   : > { %v9182_v28 = vmul.f32 %v16743_v54, %v16739_v21  ;;  %v16748_v54 = vld [vmem:[#allocation198_spill] sm:$0xff]  ;;  %v9252_v27 = vmul.f32 %v16761_v51, %v16759_v49  ;;  %v7038_v51 = vld [vmem:[%s7409_s16 + $0x268] sm:$0xff] }
 0x37c   : > { %v9160_v12 = vpop.permute.xlu1 %2765  ;;  %v9162_v44 = vpop.permute.xlu0 %2763  ;;  %v9270_v23 = vmul.f32 %v7038_v51, %v16739_v21  ;;  %v2514_v51 = vmul.f32 %v16755_v17, %v16772_v41 }
 0x37d   : > { %16735 = vst [vmem:[#allocation191_spill] sm:$0xff] %v9160_v12  ;;  %16736 = vst [vmem:[#allocation285_spill] sm:$0xff] %v9162_v44  ;;  %v16745_v44 = vld [vmem:[#allocation197_spill] sm:$0xff] }
 0x37e   : > { %v9186_v12 = vmul.f32 %v16745_v44, %v16744_v34  ;;  %2881 = vrot.lane.b32.xlu1 %v2510_v5, %s7248_s17  ;;  %2879 = vrot.lane.b32.xlu0 %v2509_v60, %s7248_s17  ;;  %v9204_v44 = vmul.f32 %v16748_v54, %v16744_v34  ;;  %v16750_v5 = vld [vmem:[#allocation201_spill] sm:$0xff]  ;;  %v16751_v60 = vld [vmem:[#allocation200_spill] sm:$0xff]  ;;  %16766 = vst [vmem:[#allocation10_spill] sm:$0xff] %v9270_v23 }
 0x37f   : > { %v9216_v29 = vmul.f32 %v16750_v5, %v16749_v14  ;;  %v9220_v47 = vmul.f32 %v16751_v60, %v16749_v14  ;;  %v16758_v5 = vld [vmem:[#allocation202_spill] sm:$0xff]  ;;  %v9240_v60 = vmul.f32 %v8942_v31, %v7465_v19  ;;  %v16763_v31 = vld [vmem:[#allocation209_spill] sm:$0xff]  ;;  %v16782_v19 = vld [vmem:[#allocation16_spill] sm:$0xff] }
 0x380   : > { %v9222_v40 = vpop.permute.xlu1 %2769  ;;  %v9224_v54 = vpop.permute.xlu0 %2767  ;;  %v9236_v10 = vmul.f32 %v16758_v5, %v16749_v14  ;;  %v9256_v5 = vmul.f32 %v16762_v42, %v16759_v49  ;;  %v9274_v42 = vmul.f32 %v8968_v15, %v16739_v21  ;;  %v2513_v15 = vmul.f32 %v16755_v17, %v16773_v1  ;;  %v16779_v1 = vld [vmem:[#allocation220_spill] sm:$0xff] }
 0x381   : > { %16752 = vst [vmem:[#allocation102_spill] sm:$0xff] %v9222_v40  ;;  %16753 = vst [vmem:[#allocation103_spill] sm:$0xff] %v9224_v54  ;;  %v9244_v40 = vmul.f32 %v8955_v56, %v16739_v21  ;;  %v16760_v54 = vld [vmem:[#allocation207_spill] sm:$0xff]  ;;  %v9262_v56 = vmul.f32 %v16763_v31, %v16759_v49  ;;  %v16780_v17 = vld [vmem:[#allocation224_spill] sm:$0xff] }
 0x382   : > { %v9248_v43 = vmul.f32 %v16760_v54, %v16759_v49  ;;  %2885 = vrot.lane.b32.xlu1 %v2512_v58, %s7248_s17  ;;  %2883 = vrot.lane.b32.xlu0 %v2511_v33, %s7248_s17  ;;  %v16764_v54 = vld [vmem:[#allocation14_spill] sm:$0xff]  ;;  %16767 = vst [vmem:[#allocation193_spill] sm:$0xff] %v9274_v42  ;;  %v16768_v58 = vld [vmem:[#allocation213_spill] sm:$0xff]  ;;  %v16851_v42 = vld [vmem:[#allocation35_spill] sm:$0xff] }
 0x383   : > { %v9266_v26 = vmul.f32 %v16765_v61, %v16764_v54  ;;  %v9278_v33 = vmul.f32 %v16768_v58, %v16764_v54  ;;  %v9282_v31 = vmul.f32 %v16769_v24, %v16764_v54  ;;  %v9294_v39 = vmul.f32 %v16774_v2, %v16764_v54  ;;  %v16775_v58 = vld [vmem:[#allocation15_spill] sm:$0xff] }
 0x384   : > { %v9284_v50 = vpop.permute.xlu1 %2773  ;;  %v9286_v61 = vpop.permute.xlu0 %2771  ;;  %v9298_v24 = vmul.f32 %v16776_v3, %v16775_v58  ;;  %v9313_v2 = vmul.f32 %v16779_v1, %v16775_v58  ;;  %v9317_v16 = vmul.f32 %v16780_v17, %v16775_v58  ;;  %v16781_v3 = vld [vmem:[#allocation223_spill] sm:$0xff] }
 0x385   : > { %16770 = vst [vmem:[#allocation192_spill] sm:$0xff] %v9284_v50  ;;  %16771 = vst [vmem:[#allocation195_spill] sm:$0xff] %v9286_v61  ;;  %v9302_v50 = vmul.f32 %v7039_v9, %v16739_v21  ;;  %v7040_v61 = vld [vmem:[%s7409_s16 + $0x2a0] sm:$0xff]  ;;  %v9321_v9 = vmul.f32 %v16781_v3, %v16775_v58  ;;  %v16783_v1 = vld [vmem:[#allocation231_spill] sm:$0xff] }
 0x386   : > { %v9306_v41 = vmul.f32 %v7040_v61, %v16744_v34  ;;  %2889 = vrot.lane.b32.xlu1 %v2514_v51, %s7248_s17  ;;  %2887 = vrot.lane.b32.xlu0 %v2513_v15, %s7248_s17  ;;  %v9327_v61 = vmul.f32 %v8854_v13, %v16782_v19  ;;  %v9331_v25 = vmul.f32 %v16783_v1, %v16782_v19  ;;  %v7041_v17 = vld [vmem:[%s7409_s16 + $0x2a8] sm:$0xff]  ;;  %v7042_v3 = vld [vmem:[%s7409_s16 + $0x2b0] sm:$0xff]  ;;  %v16786_v13 = vld [vmem:[#allocation234_spill] sm:$0xff] }
 0x387   : > { %16777 = vst [vmem:[#allocation194_spill] sm:$0xff] %v9302_v50  ;;  %v9335_v4 = vmul.f32 %v7041_v17, %v16744_v34  ;;  %v9339_v51 = vmul.f32 %v7042_v3, %v16744_v34  ;;  %v9343_v15 = vmul.f32 %v8870_v38, %v16782_v19  ;;  %v9347_v52 = vmul.f32 %v16786_v13, %v16782_v19  ;;  %v16789_v17 = vld [vmem:[#allocation116_spill] sm:$0xff]  ;;  %v16791_v3 = vld [vmem:[#allocation117_spill] sm:$0xff] }
 0x388   : > { %16778 = vst [vmem:[#allocation11_spill] sm:$0xff] %v9306_v41  ;;  %v9349_v1 = vpop.permute.xlu1 %2777  ;;  %v9351_v20 = vpop.permute.xlu0 %2775  ;;  %v2516_v37 = vmul.f32 %v16790_v46, %v16789_v17  ;;  %v2515_v62 = vmul.f32 %v16790_v46, %v16791_v3  ;;  %v9359_v38 = vmul.f32 %v7043_v59, %v16744_v34  ;;  %v9363_v13 = vmul.f32 %v7044_v6, %v16749_v14  ;;  %v7047_v3 = vld [vmem:[%s7409_s16 + $0x2f8] sm:$0xff]  ;;  %v16837_v41 = vld [vmem:[#allocation23_spill] sm:$0xff] }
 0x389   : > { %16784 = vst [vmem:[#allocation197_spill] sm:$0xff] %v9335_v4  ;;  %16785 = vst [vmem:[#allocation196_spill] sm:$0xff] %v9339_v51  ;;  %v9371_v17 = vmul.f32 %v7046_v63, %v16749_v14  ;;  %v9375_v59 = vmul.f32 %v7047_v3, %v16749_v14  ;;  %v9379_v6 = vmul.f32 %v7048_v35, %v16759_v49  ;;  %v7050_v63 = vld [vmem:[%s7409_s16 + $0x330] sm:$0xff]  ;;  %v7051_v3 = vld [vmem:[%s7409_s16 + $0x338] sm:$0xff] }
 0x38a   : > { %16787 = vst [vmem:[#allocation199_spill] sm:$0xff] %v9349_v1  ;;  %16788 = vst [vmem:[#allocation198_spill] sm:$0xff] %v9351_v20  ;;  %v7045_v1 = vld [vmem:[%s7409_s16 + $0x2e8] sm:$0xff]  ;;  %2893 = vrot.lane.b32.xlu1 %v2516_v37, %s7248_s17  ;;  %2891 = vrot.lane.b32.xlu0 %v2515_v62, %s7248_s17  ;;  %v7052_v35 = vld [vmem:[%s7409_s16 + $0x360] sm:$0xff] }
 0x38b   : > { %16792 = vst [vmem:[#allocation12_spill] sm:$0xff] %v9359_v38  ;;  %16793 = vst [vmem:[#allocation201_spill] sm:$0xff] %v9363_v13  ;;  %v9367_v20 = vmul.f32 %v7045_v1, %v16749_v14  ;;  %v7049_v13 = vld [vmem:[%s7409_s16 + $0x328] sm:$0xff]  ;;  %v7054_v62 = vld [vmem:[%s7409_s16 + $0x370] sm:$0xff] }
 0x38c   : > { %16795 = vst [vmem:[#allocation110_spill] sm:$0xff] %v9371_v17  ;;  %16796 = vst [vmem:[#allocation219_spill] sm:$0xff] %v9375_v59  ;;  %v9383_v1 = vmul.f32 %v7049_v13, %v16759_v49  ;;  %v9389_v17 = vmul.f32 %v7050_v63, %v16759_v49  ;;  %v9393_v59 = vmul.f32 %v7051_v3, %v16759_v49  ;;  %v7053_v13 = vld [vmem:[%s7409_s16 + $0x368] sm:$0xff]  ;;  %v7055_v63 = vld [vmem:[%s7409_s16 + $0x378] sm:$0xff]  ;;  %v9411_v3 = vpop.permute.xlu1 %2781 }
 0x38d   : > { %16794 = vst [vmem:[#allocation200_spill] sm:$0xff] %v9367_v20  ;;  %16797 = vst [vmem:[#allocation106_spill] sm:$0xff] %v9379_v6  ;;  %v9397_v6 = vmul.f32 %v7052_v35, %v16764_v54  ;;  %v9401_v37 = vmul.f32 %v7053_v13, %v16764_v54  ;;  %v16807_v20 = vld [vmem:[#allocation120_spill] sm:$0xff]  ;;  %v7056_v13 = vld [vmem:[%s7409_s16 + $0x3a0] sm:$0xff] }
 0x38e   : > { %16798 = vst [vmem:[#allocation203_spill] sm:$0xff] %v9383_v1  ;;  %16799 = vst [vmem:[#allocation202_spill] sm:$0xff] %v9389_v17  ;;  %v9405_v1 = vmul.f32 %v7054_v62, %v16764_v54  ;;  %v9409_v17 = vmul.f32 %v7055_v63, %v16764_v54  ;;  %v2518_v35 = vmul.f32 %v16790_v46, %v16807_v20  ;;  %v7057_v62 = vld [vmem:[%s7409_s16 + $0x3a8] sm:$0xff]  ;;  %v7058_v63 = vld [vmem:[%s7409_s16 + $0x3b0] sm:$0xff]  ;;  %v9436_v20 = vmul.f32 0.0, %v16739_v21 }
 0x38f   : > { %16800 = vst [vmem:[#allocation13_spill] sm:$0xff] %v9393_v59  ;;  %16801 = vst [vmem:[#allocation207_spill] sm:$0xff] %v9397_v6  ;;  %v9413_v59 = vpop.permute.xlu0 %2779  ;;  %v16808_v6 = vld [vmem:[#allocation121_spill] sm:$0xff] }
 0x390   : > { %16802 = vst [vmem:[#allocation206_spill] sm:$0xff] %v9401_v37  ;;  %16803 = vst [vmem:[#allocation210_spill] sm:$0xff] %v9405_v1  ;;  %v2517_v51 = vmul.f32 %v16790_v46, %v16808_v6  ;;  %v9421_v37 = vmul.f32 %v7056_v13, %v16775_v58  ;;  %v9425_v1 = vmul.f32 %v7057_v62, %v16775_v58  ;;  %v16813_v46 = vld [vmem:[#allocation124_spill] sm:$0xff]  ;;  %2897 = vrot.lane.b32.xlu1 %v2518_v35, %s7248_s17  ;;  %v9477_v38 = vpop.permute.xlu1 %2785 }
 0x391   : > { %16804 = vst [vmem:[#allocation209_spill] sm:$0xff] %v9409_v17  ;;  %16805 = vst [vmem:[#allocation14_spill] sm:$0xff] %v9411_v3  ;;  %v9429_v17 = vmul.f32 %v7058_v63, %v16775_v58  ;;  %v7059_v3 = vld [vmem:[%s7409_s16 + $0x3b8] sm:$0xff]  ;;  %v9440_v6 = vmul.f32 %v16782_v19, %v16813_v46  ;;  %v16815_v13 = vld [vmem:[#allocation128_spill] sm:$0xff] }
 0x392   : > { %16806 = vst [vmem:[#allocation214_spill] sm:$0xff] %v9413_v59  ;;  %16809 = vst [vmem:[#allocation213_spill] sm:$0xff] %v9421_v37  ;;  %v9433_v59 = vmul.f32 %v7059_v3, %v16775_v58  ;;  %v9444_v62 = vmul.f32 %v16782_v19, %v16815_v13  ;;  %2895 = vrot.lane.b32.xlu0 %v2517_v51, %s7248_s17  ;;  %v16819_v3 = vld [vmem:[#allocation19_spill] sm:$0xff]  ;;  %v16828_v51 = vld [vmem:[#allocation29_spill] sm:$0xff] }
 0x393   : > { %16810 = vst [vmem:[#allocation216_spill] sm:$0xff] %v9425_v1  ;;  %16811 = vst [vmem:[#allocation113_spill] sm:$0xff] %v9429_v17  ;;  %v16817_v1 = vld [vmem:[#allocation127_spill] sm:$0xff]  ;;  %v16820_v17 = vld [vmem:[#allocation17_spill] sm:$0xff] }
 0x394   : > { %16812 = vst [vmem:[#allocation109_spill] sm:$0xff] %v9433_v59  ;;  %16814 = vst [vmem:[#allocation215_spill] sm:$0xff] %v9440_v6  ;;  %v9448_v63 = vmul.f32 %v16782_v19, %v16817_v1  ;;  %v9455_v21 = vsel %vm1882_vm0, %v16820_v17, %v16819_v3  ;;  %v16822_v59 = vld [vmem:[#allocation18_spill] sm:$0xff]  ;;  %v16824_v6 = vld [vmem:[#allocation21_spill] sm:$0xff] }
 0x395   : > { %16816 = vst [vmem:[#allocation15_spill] sm:$0xff] %v9444_v62  ;;  %16821 = vst [vmem:[#allocation220_spill] sm:$0xff] %v9455_v21  ;;  %v9460_v46 = vsel %vm1882_vm0, %v16819_v3, %v16822_v59  ;;  %v9465_v62 = vsel %vm1882_vm0, %v16822_v59, %v16824_v6  ;;  %v16826_v1 = vld [vmem:[#allocation131_spill] sm:$0xff]  ;;  %v16830_v17 = vld [vmem:[#allocation28_spill] sm:$0xff]  ;;  %v9479_v3 = vpop.permute.xlu0 %2783 }
 0x396   : > { %16818 = vst [vmem:[#allocation221_spill] sm:$0xff] %v9448_v63  ;;  %16823 = vst [vmem:[#allocation224_spill] sm:$0xff] %v9460_v46  ;;  %v9469_v35 = vmul.f32 %v16782_v19, %v16826_v1  ;;  %v16829_v63 = vld [vmem:[#allocation26_spill] sm:$0xff]  ;;  %v1892_v21 = vsel %vm1882_vm0, %v16828_v51, %v16830_v17  ;;  %v16833_v46 = vld [vmem:[#allocation225_spill] sm:$0xff] }
 0x397   : > { %16825 = vst [vmem:[#allocation223_spill] sm:$0xff] %v9465_v62  ;;  %v1891_v37 = vsel %vm1882_vm0, %v16829_v63, %v16828_v51  ;;  %16831 = vst [vmem:[#allocation231_spill] sm:$0xff] %v9477_v38  ;;  %v2520_v59 = vmul.f32 %v16833_v46, %v16815_v13  ;;  %v7060_v62 = vld [vmem:[%s7409_s16 + $0x3e0] sm:$0xff]  ;;  %v16834_v1 = vld [vmem:[#allocation20_spill] sm:$0xff] }
 0x398   : > { %16827 = vst [vmem:[#allocation16_spill] sm:$0xff] %v9469_v35  ;;  %16832 = vst [vmem:[#allocation234_spill] sm:$0xff] %v9479_v3  ;;  %v2519_v4 = vmul.f32 %v7060_v62, %v16833_v46  ;;  %v9488_v35 = vsel %vm1882_vm0, %v16824_v6, %v16834_v1  ;;  %v16836_v63 = vld [vmem:[#allocation22_spill] sm:$0xff]  ;;  %v16839_v51 = vld [vmem:[#allocation25_spill] sm:$0xff] }
 0x399   : > { %16835 = vst [vmem:[#allocation116_spill] sm:$0xff] %v9488_v35  ;;  %v9493_v50 = vsel %vm1882_vm0, %v16837_v41, %v16836_v63  ;;  %v9498_v38 = vsel %vm1882_vm0, %v16836_v63, %v16839_v51  ;;  %v16841_v3 = vld [vmem:[#allocation24_spill] sm:$0xff]  ;;  %v16843_v62 = vld [vmem:[#allocation31_spill] sm:$0xff]  ;;  %v16844_v35 = vld [vmem:[#allocation30_spill] sm:$0xff]  ;;  %2901 = vrot.lane.b32.xlu1 %v2520_v59, %s7248_s17 }
 0x39a   : > { %16838 = vst [vmem:[#allocation204_spill] sm:$0xff] %v9493_v50  ;;  %16840 = vst [vmem:[#allocation117_spill] sm:$0xff] %v9498_v38  ;;  %v9503_v13 = vsel %vm1882_vm0, %v16839_v51, %v16841_v3  ;;  %v1893_v6 = vsel %vm1882_vm0, %v16830_v17, %v16843_v62  ;;  %v1894_v41 = vsel %vm1882_vm0, %v16843_v62, %v16844_v35  ;;  %v16845_v50 = vld [vmem:[#allocation32_spill] sm:$0xff]  ;;  %v16846_v1 = vld [vmem:[#allocation33_spill] sm:$0xff]  ;;  %v9515_v38 = vmul.f32 0.0, %v16744_v34 }
 0x39b   : > { %16842 = vst [vmem:[#allocation120_spill] sm:$0xff] %v9503_v13  ;;  %v1895_v63 = vsel %vm1882_vm0, %v16846_v1, %v16845_v50  ;;  %2899 = vrot.lane.b32.xlu0 %v2519_v4, %s7248_s17  ;;  %v16847_v51 = vld [vmem:[#allocation27_spill] sm:$0xff]  ;;  %v9525_v13 = vadd.f32 %v1891_v37, %v9309_v0  ;;  %v9528_v62 = vadd.f32 %v1892_v21, %v9146_v22  ;;  %v16852_v1 = vld [vmem:[#allocation34_spill] sm:$0xff]  ;;  %v16853_v4 = vld [vmem:[#allocation37_spill] sm:$0xff] }
 0x39c   : > { %v9522_v17 = vsel %vm1882_vm0, %v16841_v3, %v16847_v51  ;;  %v1896_v34 = vsel %vm1882_vm0, %v16845_v50, %v16851_v42  ;;  %v1897_v59 = vsel %vm1882_vm0, %v16851_v42, %v16852_v1  ;;  %v1898_v23 = vsel %vm1882_vm0, %v16852_v1, %v16853_v4  ;;  %v9539_v3 = vpop.permute.xlu1 %2789  ;;  %v7061_v37 = vld [vmem:[%s7409_s16 + $0x3f8] sm:$0xff]  ;;  %v7062_v21 = vld [vmem:[%s7409_s16 + $0x3f0] sm:$0xff] }
 0x39d   : > { %16848 = vst [vmem:[#allocation121_spill] sm:$0xff] %v9522_v17  ;;  %16849 = vst [vmem:[#allocation124_spill] sm:$0xff] %v9525_v13  ;;  %v9541_v17 = vpop.permute.xlu0 %2787  ;;  %v2522_v22 = vmul.f32 %v7061_v37, %v16833_v46  ;;  %v9549_v50 = vadd.f32 %v16844_v35, %v9150_v8  ;;  %v9552_v42 = vadd.f32 %v1893_v6, %v9154_v57  ;;  %v16861_v37 = vld [vmem:[#allocation42_spill] sm:$0xff]  ;;  %v9570_v57 = vmul.f32 0.0, %v16749_v14  ;;  %v16867_v6 = vld [vmem:[#allocation44_spill] sm:$0xff] }
 0x39e   : > { %16850 = vst [vmem:[#allocation128_spill] sm:$0xff] %v9528_v62  ;;  %16854 = vst [vmem:[#allocation127_spill] sm:$0xff] %v9539_v3  ;;  %v2521_v62 = vmul.f32 %v7062_v21, %v16833_v46  ;;  %v9555_v13 = vadd.f32 %v1894_v41, %v9158_v36  ;;  %v9558_v1 = vadd.f32 %v1895_v63, %v9436_v20  ;;  %v16862_v3 = vld [vmem:[#allocation43_spill] sm:$0xff]  ;;  %v16863_v21 = vld [vmem:[#allocation45_spill] sm:$0xff] }
 0x39f   : > { %16855 = vst [vmem:[#allocation19_spill] sm:$0xff] %v9541_v17  ;;  %16856 = vst [vmem:[#allocation17_spill] sm:$0xff] %v9549_v50  ;;  %v9561_v17 = vadd.f32 %v1896_v34, %v9170_v30  ;;  %v1903_v46 = vsel %vm1882_vm0, %v16862_v3, %v16861_v37  ;;  %v1904_v8 = vsel %vm1882_vm0, %v16861_v37, %v16863_v21  ;;  %2905 = vrot.lane.b32.xlu1 %v2522_v22, %s7248_s17  ;;  %v727_v14 = vld [vmem:[%s15821_s3 + $0x8] sm:$0xff]  ;;  %v16871_v34 = vld [vmem:[#allocation41_spill] sm:$0xff] }
 0x3a0   : > { %16857 = vst [vmem:[#allocation18_spill] sm:$0xff] %v9552_v42  ;;  %16858 = vst [vmem:[#allocation21_spill] sm:$0xff] %v9555_v13  ;;  %2903 = vrot.lane.b32.xlu0 %v2521_v62, %s7248_s17  ;;  %v9575_v36 = vadd.f32 %v1897_v59, %v9174_v18  ;;  %v9578_v30 = vadd.f32 %v1898_v23, %v9178_v45  ;;  %v9582_v35 = vadd.f32 %v16853_v4, %v9182_v28  ;;  %v726_v18 = vld [vmem:[%s15821_s3] sm:$0xff]  ;;  %v16868_v63 = vld [vmem:[#allocation39_spill] sm:$0xff]  ;;  %v9611_v22 = vpop.permute.xlu1 %2793 }
 0x3a1   : > { %16859 = vst [vmem:[#allocation131_spill] sm:$0xff] %v9558_v1  ;;  %16860 = vst [vmem:[#allocation29_spill] sm:$0xff] %v9561_v17  ;;  %v1905_v41 = vsel %vm1882_vm0, %v16863_v21, %v16867_v6  ;;  %v16869_v62 = vld [vmem:[#allocation36_spill] sm:$0xff]  ;;  %v16870_v45 = vld [vmem:[#allocation38_spill] sm:$0xff]  ;;  %v9613_v37 = vpop.permute.xlu0 %2791 }
 0x3a2   : > { %16864 = vst [vmem:[#allocation26_spill] sm:$0xff] %v9575_v36  ;;  %16865 = vst [vmem:[#allocation28_spill] sm:$0xff] %v9578_v30  ;;  %v9596_v23 = vsel %vm1882_vm0, %v16869_v62, %v16868_v63  ;;  %v9601_v28 = vsel %vm1882_vm0, %v16868_v63, %v16870_v45  ;;  %v9606_v59 = vsel %vm1882_vm0, %v16870_v45, %v16871_v34  ;;  %v16872_v4 = vld [vmem:[#allocation47_spill] sm:$0xff]  ;;  %v16875_v21 = vld [vmem:[#allocation40_spill] sm:$0xff] }
 0x3a3   : > { %16866 = vst [vmem:[#allocation225_spill] sm:$0xff] %v9582_v35  ;;  %v1906_v3 = vsel %vm1882_vm0, %v16867_v6, %v16872_v4  ;;  %16873 = vst [vmem:[#allocation22_spill] sm:$0xff] %v9611_v22  ;;  %v9618_v62 = vsel %vm1882_vm0, %v16871_v34, %v16875_v21  ;;  %v9621_v63 = vadd.f32 %v1903_v46, %v9515_v38  ;;  %v16878_v45 = vld [vmem:[#allocation52_spill] sm:$0xff]  ;;  %v16879_v36 = vld [vmem:[#allocation53_spill] sm:$0xff]  ;;  %v9639_v46 = vmul.f32 0.0, %v16759_v49 }
 0x3a4   : > { %16874 = vst [vmem:[#allocation23_spill] sm:$0xff] %v9613_v37  ;;  %v9624_v30 = vadd.f32 %v1904_v8, %v9186_v12  ;;  %v1911_v35 = vsel %vm1882_vm0, %v16879_v36, %v16878_v45  ;;  %v9630_v6 = vadd.f32 %v1905_v41, %v9190_v55  ;;  %v16881_v22 = vld [vmem:[#allocation55_spill] sm:$0xff]  ;;  %v16882_v17 = vld [vmem:[#allocation54_spill] sm:$0xff]  ;;  %3331 = vperm.xlu1 %6923, %v727_v14   ;;  %v16885_v8 = vld [vmem:[#allocation49_spill] sm:$0xff] }
 0x3a5   : > { %16876 = vst [vmem:[#allocation25_spill] sm:$0xff] %v9621_v63  ;;  %v1912_v37 = vsel %vm1882_vm0, %v16878_v45, %v16881_v22  ;;  %v1913_v34 = vsel %vm1882_vm0, %v16881_v22, %v16882_v17  ;;  %3326 = vperm.xlu0 %6922, %v726_v18   ;;  %v9642_v12 = vadd.f32 %v1906_v3, %v9200_v7  ;;  %v16886_v36 = vld [vmem:[#allocation46_spill] sm:$0xff]  ;;  %v16887_v45 = vld [vmem:[#allocation57_spill] sm:$0xff]  ;;  %v728_v49 = vld [vmem:[%s15821_s3 + $0x10] sm:$0xff] }
 0x3a6   : > { %16877 = vst [vmem:[#allocation24_spill] sm:$0xff] %v9624_v30  ;;  %16880 = vst [vmem:[#allocation31_spill] sm:$0xff] %v9630_v6  ;;  %v9646_v55 = vadd.f32 %v16872_v4, %v9204_v44  ;;  %v9651_v41 = vsel %vm1882_vm0, %v16886_v36, %v16885_v8  ;;  %v1914_v22 = vsel %vm1882_vm0, %v16882_v17, %v16887_v45  ;;  %v729_v7 = vld [vmem:[%s15821_s3 + $0x18] sm:$0xff]  ;;  %v16888_v14 = vld [vmem:[#allocation48_spill] sm:$0xff]  ;;  %v9682_v6 = vpop.permute.xlu0 %2795 }
 0x3a7   : > { %16883 = vst [vmem:[#allocation30_spill] sm:$0xff] %v9642_v12  ;;  %v9665_v44 = vsel %vm1882_vm0, %v16885_v8, %v16888_v14  ;;  %v16889_v18 = vld [vmem:[#allocation51_spill] sm:$0xff]  ;;  %v16890_v3 = vld [vmem:[#allocation50_spill] sm:$0xff]  ;;  %v9678_v36 = vadd.f32 %v1911_v35, %v9570_v57  ;;  %v9680_v12 = vpop.permute.xlu1 %2797  ;;  %16893 = vst [vmem:[#allocation35_spill] sm:$0xff] %v9682_v6  ;;  %v9685_v8 = vadd.f32 %v1912_v37, %v9216_v29  ;;  %v9707_v37 = vmul.f32 0.0, %v16764_v54 }
 0x3a8   : > { %16884 = vst [vmem:[#allocation32_spill] sm:$0xff] %v9646_v55  ;;  %v9670_v4 = vsel %vm1882_vm0, %v16888_v14, %v16889_v18  ;;  %v9675_v17 = vsel %vm1882_vm0, %v16889_v18, %v16890_v3  ;;  %16892 = vst [vmem:[#allocation27_spill] sm:$0xff] %v9680_v12  ;;  %v9688_v55 = vadd.f32 %v1913_v34, %v9220_v47  ;;  %v16896_v14 = vld [vmem:[#allocation62_spill] sm:$0xff]  ;;  %v16897_v30 = vld [vmem:[#allocation63_spill] sm:$0xff]  ;;  %3336 = vperm.xlu1 %6923, %v728_v49  }
 0x3a9   : > { %16891 = vst [vmem:[#allocation33_spill] sm:$0xff] %v9678_v36  ;;  %16894 = vst [vmem:[#allocation34_spill] sm:$0xff] %v9685_v8  ;;  %v1919_v63 = vsel %vm1882_vm0, %v16897_v30, %v16896_v14  ;;  %v16898_v1 = vld [vmem:[#allocation65_spill] sm:$0xff]  ;;  %v9697_v35 = vadd.f32 %v1914_v22, %v9232_v11  ;;  %v9701_v6 = vadd.f32 %v16887_v45, %v9236_v10  ;;  %v16901_v29 = vld [vmem:[#allocation64_spill] sm:$0xff]  ;;  %3341 = vperm.xlu0 %6922, %v729_v7  }
 0x3aa   : > { %16895 = vst [vmem:[#allocation37_spill] sm:$0xff] %v9688_v55  ;;  %v1920_v18 = vsel %vm1882_vm0, %v16896_v14, %v16898_v1  ;;  %v1921_v47 = vsel %vm1882_vm0, %v16898_v1, %v16901_v29  ;;  %v16902_v30 = vld [vmem:[#allocation59_spill] sm:$0xff]  ;;  %v16903_v34 = vld [vmem:[#allocation56_spill] sm:$0xff]  ;;  %v16904_v11 = vld [vmem:[#allocation58_spill] sm:$0xff]  ;;  %v9749_v8 = vpop.permute.xlu0 %2799 }
 0x3ab   : > { %16899 = vst [vmem:[#allocation42_spill] sm:$0xff] %v9697_v35  ;;  %16900 = vst [vmem:[#allocation43_spill] sm:$0xff] %v9701_v6  ;;  %v9712_v14 = vsel %vm1882_vm0, %v16903_v34, %v16902_v30  ;;  %v9717_v22 = vsel %vm1882_vm0, %v16902_v30, %v16904_v11  ;;  %v16905_v10 = vld [vmem:[#allocation61_spill] sm:$0xff]  ;;  %v16906_v1 = vld [vmem:[#allocation67_spill] sm:$0xff]  ;;  %v9742_v12 = vadd.f32 %v1920_v18, %v9248_v43  ;;  %v9747_v6 = vpop.permute.xlu1 %2801 }
 0x3ac   : > { %v9722_v45 = vsel %vm1882_vm0, %v16904_v11, %v16905_v10  ;;  %v1922_v54 = vsel %vm1882_vm0, %v16901_v29, %v16906_v1  ;;  %v730_v49 = vld [vmem:[%s15821_s3 + $0x20] sm:$0xff]  ;;  %v731_v7 = vld [vmem:[%s15821_s3 + $0x28] sm:$0xff]  ;;  %v16907_v34 = vld [vmem:[#allocation60_spill] sm:$0xff]  ;;  %v9739_v11 = vadd.f32 %v1919_v63, %v9639_v46  ;;  %16912 = vst [vmem:[#allocation39_spill] sm:$0xff] %v9747_v6  ;;  %v9752_v36 = vadd.f32 %v1921_v47, %v9252_v27 }
 0x3ad   : > { %v9736_v30 = vsel %vm1882_vm0, %v16905_v10, %v16907_v34  ;;  %16909 = vst [vmem:[#allocation44_spill] sm:$0xff] %v9742_v12  ;;  %v16910_v29 = vld [vmem:[#allocation72_spill] sm:$0xff]  ;;  %v16911_v35 = vld [vmem:[#allocation73_spill] sm:$0xff]  ;;  %16913 = vst [vmem:[#allocation36_spill] sm:$0xff] %v9749_v8  ;;  %v9756_v10 = vadd.f32 %v16906_v1, %v9262_v56  ;;  %v9776_v1 = vmul.f32 0.0, %v16775_v58  ;;  %3346 = vperm.xlu1 %6923, %v730_v49   ;;  %3351 = vperm.xlu0 %6922, %v731_v7  }
 0x3ae   : > { %16908 = vst [vmem:[#allocation45_spill] sm:$0xff] %v9739_v11  ;;  %v1927_v55 = vsel %vm1882_vm0, %v16911_v35, %v16910_v29  ;;  %16914 = vst [vmem:[#allocation38_spill] sm:$0xff] %v9752_v36  ;;  %v16916_v63 = vld [vmem:[#allocation75_spill] sm:$0xff]  ;;  %v16917_v18 = vld [vmem:[#allocation74_spill] sm:$0xff]  ;;  %v9765_v35 = vadd.f32 %v1922_v54, %v9256_v5  ;;  %v9816_v11 = vpop.permute.xlu0 %2803 }
 0x3af   : > { %16915 = vst [vmem:[#allocation41_spill] sm:$0xff] %v9756_v10  ;;  %v1928_v43 = vsel %vm1882_vm0, %v16910_v29, %v16916_v63  ;;  %v1929_v12 = vsel %vm1882_vm0, %v16916_v63, %v16917_v18  ;;  %v16919_v6 = vld [vmem:[#allocation69_spill] sm:$0xff]  ;;  %v16920_v8 = vld [vmem:[#allocation66_spill] sm:$0xff]  ;;  %v16922_v29 = vld [vmem:[#allocation68_spill] sm:$0xff]  ;;  %v9794_v58 = vadd.f32 %v1927_v55, %v9707_v37  ;;  %v9814_v10 = vpop.permute.xlu1 %2805 }
 0x3b0   : > { %16918 = vst [vmem:[#allocation47_spill] sm:$0xff] %v9765_v35  ;;  %v9770_v27 = vsel %vm1882_vm0, %v16920_v8, %v16919_v6  ;;  %v16921_v47 = vld [vmem:[#allocation77_spill] sm:$0xff]  ;;  %v9781_v63 = vsel %vm1882_vm0, %v16919_v6, %v16922_v29  ;;  %v16923_v5 = vld [vmem:[#allocation71_spill] sm:$0xff]  ;;  %v16924_v8 = vld [vmem:[#allocation70_spill] sm:$0xff]  ;;  %v9803_v7 = vadd.f32 %v1928_v43, %v9266_v26 }
 0x3b1   : > { %v1930_v56 = vsel %vm1882_vm0, %v16917_v18, %v16921_v47  ;;  %v9786_v54 = vsel %vm1882_vm0, %v16922_v29, %v16923_v5  ;;  %v9791_v35 = vsel %vm1882_vm0, %v16923_v5, %v16924_v8  ;;  %16925 = vst [vmem:[#allocation40_spill] sm:$0xff] %v9794_v58  ;;  %v732_v49 = vld [vmem:[%s15821_s3 + $0x30] sm:$0xff]  ;;  %v733_v6 = vld [vmem:[%s15821_s3 + $0x38] sm:$0xff]  ;;  %v9806_v18 = vadd.f32 %v1929_v12, %v9278_v33  ;;  %v16928_v29 = vld [vmem:[#allocation82_spill] sm:$0xff] }
 0x3b2   : > { %16926 = vst [vmem:[#allocation52_spill] sm:$0xff] %v9803_v7  ;;  %v16929_v5 = vld [vmem:[#allocation83_spill] sm:$0xff]  ;;  %v16930_v55 = vld [vmem:[#allocation85_spill] sm:$0xff]  ;;  %16931 = vst [vmem:[#allocation55_spill] sm:$0xff] %v9814_v10  ;;  %v9819_v13 = vadd.f32 %v1930_v56, %v9282_v31  ;;  %v9823_v26 = vadd.f32 %v16921_v47, %v9294_v39  ;;  %3356 = vperm.xlu1 %6923, %v732_v49   ;;  %3361 = vperm.xlu0 %6922, %v733_v6   ;;  %v9883_v7 = vpop.permute.xlu0 %2807 }
 0x3b3   : > { %16927 = vst [vmem:[#allocation53_spill] sm:$0xff] %v9806_v18  ;;  %v1935_v36 = vsel %vm1882_vm0, %v16929_v5, %v16928_v29  ;;  %v1936_v58 = vsel %vm1882_vm0, %v16928_v29, %v16930_v55  ;;  %16932 = vst [vmem:[#allocation54_spill] sm:$0xff] %v9816_v11  ;;  %v16935_v33 = vld [vmem:[#allocation79_spill] sm:$0xff]  ;;  %v16936_v12 = vld [vmem:[#allocation76_spill] sm:$0xff] }
 0x3b4   : > { %16933 = vst [vmem:[#allocation49_spill] sm:$0xff] %v9819_v13  ;;  %16934 = vst [vmem:[#allocation46_spill] sm:$0xff] %v9823_v26  ;;  %v9828_v43 = vsel %vm1882_vm0, %v16936_v12, %v16935_v33  ;;  %v16937_v5 = vld [vmem:[#allocation84_spill] sm:$0xff]  ;;  %v16938_v18 = vld [vmem:[#allocation78_spill] sm:$0xff]  ;;  %v9847_v12 = vmul.f32 0.0, %v16782_v19 }
 0x3b5   : > { %v1937_v29 = vsel %vm1882_vm0, %v16930_v55, %v16937_v5  ;;  %v9836_v11 = vsel %vm1882_vm0, %v16935_v33, %v16938_v18  ;;  %v16940_v31 = vld [vmem:[#allocation81_spill] sm:$0xff]  ;;  %v16942_v39 = vld [vmem:[#allocation87_spill] sm:$0xff]  ;;  %v16943_v55 = vld [vmem:[#allocation80_spill] sm:$0xff]  ;;  %v9855_v33 = vadd.f32 %v1935_v36, %v9776_v1  ;;  %16954 = vst [vmem:[#allocation64_spill] sm:$0xff] %v9883_v7 }
 0x3b6   : > { %16939 = vst [vmem:[#allocation57_spill] sm:$0xff] %v9836_v11  ;;  %v9841_v56 = vsel %vm1882_vm0, %v16938_v18, %v16940_v31  ;;  %v1938_v47 = vsel %vm1882_vm0, %v16937_v5, %v16942_v39  ;;  %v9852_v10 = vsel %vm1882_vm0, %v16940_v31, %v16943_v55  ;;  %v9858_v18 = vadd.f32 %v1936_v58, %v9298_v24  ;;  %v16947_v13 = vld [vmem:[#allocation92_spill] sm:$0xff]  ;;  %v16948_v26 = vld [vmem:[#allocation93_spill] sm:$0xff]  ;;  %v734_v19 = vld [vmem:[%s15821_s3 + $0x40] sm:$0xff] }
 0x3b7   : > { %16941 = vst [vmem:[#allocation48_spill] sm:$0xff] %v9841_v56  ;;  %16944 = vst [vmem:[#allocation51_spill] sm:$0xff] %v9852_v10  ;;  %v1943_v5 = vsel %vm1882_vm0, %v16948_v26, %v16947_v13  ;;  %v735_v49 = vld [vmem:[%s15821_s3 + $0x48] sm:$0xff]  ;;  %v9870_v6 = vadd.f32 %v1937_v29, %v9313_v2  ;;  %v16951_v58 = vld [vmem:[#allocation94_spill] sm:$0xff]  ;;  %v9886_v42 = vadd.f32 %v1938_v47, %v9317_v16  ;;  %3366 = vperm.xlu1 %6923, %v734_v19  }
 0x3b8   : > { %16945 = vst [vmem:[#allocation50_spill] sm:$0xff] %v9855_v33  ;;  %16946 = vst [vmem:[#allocation62_spill] sm:$0xff] %v9858_v18  ;;  %v16950_v36 = vld [vmem:[#allocation95_spill] sm:$0xff]  ;;  %v16952_v26 = vld [vmem:[#allocation97_spill] sm:$0xff]  ;;  %v9881_v33 = vpop.permute.xlu1 %2809  ;;  %v9890_v2 = vadd.f32 %v16942_v39, %v9321_v9  ;;  %v9913_v39 = vadd.f32 %v1943_v5, %v9847_v12  ;;  %3371 = vperm.xlu0 %6922, %v735_v49  }
 0x3b9   : > { %16949 = vst [vmem:[#allocation63_spill] sm:$0xff] %v9870_v6  ;;  %v1944_v24 = vsel %vm1882_vm0, %v16947_v13, %v16950_v36  ;;  %v1945_v31 = vsel %vm1882_vm0, %v16950_v36, %v16951_v58  ;;  %v1946_v18 = vsel %vm1882_vm0, %v16951_v58, %v16952_v26  ;;  %16953 = vst [vmem:[#allocation65_spill] sm:$0xff] %v9881_v33  ;;  %v16957_v13 = vld [vmem:[#allocation89_spill] sm:$0xff]  ;;  %v16958_v29 = vld [vmem:[#allocation86_spill] sm:$0xff] }
 0x3ba   : > { %16955 = vst [vmem:[#allocation59_spill] sm:$0xff] %v9886_v42  ;;  %16956 = vst [vmem:[#allocation56_spill] sm:$0xff] %v9890_v2  ;;  %v9895_v6 = vsel %vm1882_vm0, %v16958_v29, %v16957_v13  ;;  %v16960_v36 = vld [vmem:[#allocation88_spill] sm:$0xff]  ;;  %v16962_v33 = vld [vmem:[#allocation91_spill] sm:$0xff]  ;;  %v9916_v47 = vadd.f32 %v1944_v24, %v9327_v61  ;;  %v9922_v29 = vadd.f32 %v1946_v18, %v9343_v15 }
 0x3bb   : > { %16959 = vst [vmem:[#allocation58_spill] sm:$0xff] %v9895_v6  ;;  %v9900_v58 = vsel %vm1882_vm0, %v16957_v13, %v16960_v36  ;;  %v9905_v7 = vsel %vm1882_vm0, %v16960_v36, %v16962_v33  ;;  %v16964_v16 = vld [vmem:[#allocation90_spill] sm:$0xff]  ;;  %16966 = vst [vmem:[#allocation72_spill] sm:$0xff] %v9913_v39  ;;  %v9919_v13 = vadd.f32 %v1945_v31, %v9331_v25  ;;  %v737_v5 = vld [vmem:[%s15821_s3 + $0x58] sm:$0xff] }
 0x3bc   : > { %16961 = vst [vmem:[#allocation61_spill] sm:$0xff] %v9900_v58  ;;  %16963 = vst [vmem:[#allocation67_spill] sm:$0xff] %v9905_v7  ;;  %v9910_v9 = vsel %vm1882_vm0, %v16962_v33, %v16964_v16  ;;  %v9926_v36 = vadd.f32 %v16952_v26, %v9347_v52  ;;  %v736_v33 = vld [vmem:[%s15821_s3 + $0x50] sm:$0xff]  ;;  %v16971_v61 = vld [vmem:[#allocation99_spill] sm:$0xff]  ;;  %v9954_v26 = vpop.permute.xlu1 %2813  ;;  %3381 = vperm.xlu0 %6922, %v737_v5  }
 0x3bd   : > { %16965 = vst [vmem:[#allocation60_spill] sm:$0xff] %v9910_v9  ;;  %16967 = vst [vmem:[#allocation73_spill] sm:$0xff] %v9916_v47  ;;  %v16972_v19 = vld [vmem:[#allocation96_spill] sm:$0xff]  ;;  %v16973_v49 = vld [vmem:[#allocation98_spill] sm:$0xff]  ;;  %3376 = vperm.xlu1 %6923, %v736_v33  }
 0x3be   : > { %16968 = vst [vmem:[#allocation75_spill] sm:$0xff] %v9919_v13  ;;  %16969 = vst [vmem:[#allocation74_spill] sm:$0xff] %v9922_v29  ;;  %v9937_v25 = vsel %vm1882_vm0, %v16972_v19, %v16971_v61  ;;  %v9942_v15 = vsel %vm1882_vm0, %v16971_v61, %v16973_v49  ;;  %v16974_v52 = vld [vmem:[#allocation101_spill] sm:$0xff]  ;;  %v16975_v24 = vld [vmem:[#allocation100_spill] sm:$0xff]  ;;  %v9956_v29 = vpop.permute.xlu0 %2811 }
 0x3bf   : > { %16970 = vst [vmem:[#allocation69_spill] sm:$0xff] %v9926_v36  ;;  %v9947_v18 = vsel %vm1882_vm0, %v16973_v49, %v16974_v52  ;;  %v9952_v31 = vsel %vm1882_vm0, %v16974_v52, %v16975_v24  ;;  %16976 = vst [vmem:[#allocation66_spill] sm:$0xff] %v9954_v26  ;;  %v16978_v19 = vld [vmem:[#allocation104_spill] sm:$0xff]  ;;  %v16979_v13 = vld [vmem:[#allocation105_spill] sm:$0xff] }
 0x3c0   : > { %16977 = vst [vmem:[#allocation77_spill] sm:$0xff] %v9956_v29  ;;  %v9961_v36 = vsel %vm1882_vm0, %v16979_v13, %v16978_v19  ;;  %v16980_v61 = vld [vmem:[#allocation115_spill] sm:$0xff]  ;;  %v16982_v49 = vld [vmem:[#allocation114_spill] sm:$0xff]  ;;  %v16988_v16 = vld [vmem:[#allocation108_spill] sm:$0xff]  ;;  %v10018_v56 = vpop.permute.xlu1 %2817 }
 0x3c1   : > { %v16981_v47 = vld [vmem:[#allocation111_spill] sm:$0xff]  ;;  %v1956_v42 = vsel %vm1882_vm0, %v16980_v61, %v16982_v49  ;;  %v16984_v26 = vld [vmem:[#allocation118_spill] sm:$0xff]  ;;  %v16991_v6 = vld [vmem:[#allocation125_spill] sm:$0xff]  ;;  %16996 = vst [vmem:[#allocation82_spill] sm:$0xff] %v10018_v56 }
 0x3c2   : > { %v1955_v39 = vsel %vm1882_vm0, %v16981_v47, %v16980_v61  ;;  %v16983_v2 = vld [vmem:[#allocation119_spill] sm:$0xff]  ;;  %v16985_v50 = vld [vmem:[#allocation122_spill] sm:$0xff]  ;;  %v9984_v61 = vsel %vm1882_vm0, %v16978_v19, %v16988_v16  ;;  %v10009_v19 = vadd.f32 %v1956_v42, %v9194_v48  ;;  %v10020_v55 = vpop.permute.xlu0 %2815 }
 0x3c3   : > { %v1957_v52 = vsel %vm1882_vm0, %v16982_v49, %v16983_v2  ;;  %v1958_v29 = vsel %vm1882_vm0, %v16983_v2, %v16984_v26  ;;  %v16986_v9 = vld [vmem:[#allocation123_spill] sm:$0xff]  ;;  %v16987_v7 = vld [vmem:[#allocation126_spill] sm:$0xff]  ;;  %v16990_v2 = vld [vmem:[#allocation112_spill] sm:$0xff]  ;;  %16997 = vst [vmem:[#allocation83_spill] sm:$0xff] %v10020_v55 }
 0x3c4   : > { %v1959_v13 = vsel %vm1882_vm0, %v16986_v9, %v16985_v50  ;;  %v1960_v47 = vsel %vm1882_vm0, %v16985_v50, %v16987_v7  ;;  %v16989_v49 = vld [vmem:[#allocation107_spill] sm:$0xff]  ;;  %v1961_v50 = vsel %vm1882_vm0, %v16987_v7, %v16991_v6  ;;  %v738_v33 = vld [vmem:[%s15821_s3 + $0x60] sm:$0xff]  ;;  %16993 = vst [vmem:[#allocation71_spill] sm:$0xff] %v10009_v19  ;;  %v10023_v11 = vadd.f32 %v1957_v52, %v9212_v53  ;;  %v17011_v52 = vld [vmem:[#allocation133_spill] sm:$0xff] }
 0x3c5   : > { %v9989_v58 = vsel %vm1882_vm0, %v16988_v16, %v16989_v49  ;;  %v9994_v9 = vsel %vm1882_vm0, %v16989_v49, %v16990_v2  ;;  %v739_v5 = vld [vmem:[%s15821_s3 + $0x68] sm:$0xff]  ;;  %v10006_v16 = vadd.f32 %v1955_v39, %v9309_v0  ;;  %v10013_v49 = vadd.f32 %v16984_v26, %v9208_v32  ;;  %v16995_v10 = vld [vmem:[#allocation130_spill] sm:$0xff]  ;;  %v17005_v26 = vld [vmem:[#allocation137_spill] sm:$0xff]  ;;  %3386 = vperm.xlu1 %6923, %v738_v33  }
 0x3c6   : > { %v1962_v7 = vsel %vm1882_vm0, %v16991_v6, %v16995_v10  ;;  %16998 = vst [vmem:[#allocation85_spill] sm:$0xff] %v10023_v11  ;;  %v10026_v0 = vadd.f32 %v1958_v29, %v9240_v60  ;;  %v10029_v48 = vadd.f32 %v1959_v13, %v9436_v20  ;;  %v10032_v32 = vadd.f32 %v1960_v47, %v9244_v40  ;;  %v17002_v42 = vld [vmem:[#allocation10_spill] sm:$0xff]  ;;  %v17004_v6 = vld [vmem:[#allocation136_spill] sm:$0xff]  ;;  %v17006_v55 = vld [vmem:[#allocation139_spill] sm:$0xff] }
 0x3c7   : > { %16992 = vst [vmem:[#allocation68_spill] sm:$0xff] %v10006_v16  ;;  %16994 = vst [vmem:[#allocation70_spill] sm:$0xff] %v10013_v49  ;;  %v10035_v39 = vadd.f32 %v1961_v50, %v17002_v42  ;;  %v1967_v56 = vsel %vm1882_vm0, %v17005_v26, %v17004_v6  ;;  %v1968_v53 = vsel %vm1882_vm0, %v17004_v6, %v17006_v55  ;;  %3391 = vperm.xlu0 %6922, %v739_v5   ;;  %v17007_v60 = vld [vmem:[#allocation193_spill] sm:$0xff]  ;;  %v17009_v20 = vld [vmem:[#allocation194_spill] sm:$0xff] }
 0x3c8   : > { %16999 = vst [vmem:[#allocation79_spill] sm:$0xff] %v10026_v0  ;;  %17000 = vst [vmem:[#allocation76_spill] sm:$0xff] %v10029_v48  ;;  %v10044_v29 = vadd.f32 %v1962_v7, %v17007_v60  ;;  %v10048_v40 = vadd.f32 %v16995_v10, %v17009_v20  ;;  %v17012_v13 = vld [vmem:[#allocation129_spill] sm:$0xff]  ;;  %v17013_v50 = vld [vmem:[#allocation138_spill] sm:$0xff] }
 0x3c9   : > { %17001 = vst [vmem:[#allocation84_spill] sm:$0xff] %v10032_v32  ;;  %17003 = vst [vmem:[#allocation78_spill] sm:$0xff] %v10035_v39  ;;  %v10053_v47 = vsel %vm1882_vm0, %v17012_v13, %v17011_v52  ;;  %v1969_v42 = vsel %vm1882_vm0, %v17006_v55, %v17013_v50  ;;  %v740_v33 = vld [vmem:[%s15821_s3 + $0x70] sm:$0xff]  ;;  %v741_v5 = vld [vmem:[%s15821_s3 + $0x78] sm:$0xff]  ;;  %v10084_v39 = vpop.permute.xlu0 %2819 }
 0x3ca   : > { %17008 = vst [vmem:[#allocation81_spill] sm:$0xff] %v10044_v29  ;;  %17010 = vst [vmem:[#allocation87_spill] sm:$0xff] %v10048_v40  ;;  %v17014_v7 = vld [vmem:[#allocation132_spill] sm:$0xff]  ;;  %v17015_v6 = vld [vmem:[#allocation135_spill] sm:$0xff]  ;;  %v10082_v29 = vpop.permute.xlu1 %2821  ;;  %3396 = vperm.xlu1 %6923, %v740_v33  }
 0x3cb   : > { %v10067_v10 = vsel %vm1882_vm0, %v17011_v52, %v17014_v7  ;;  %v10072_v26 = vsel %vm1882_vm0, %v17014_v7, %v17015_v6  ;;  %v17016_v60 = vld [vmem:[#allocation134_spill] sm:$0xff]  ;;  %v17017_v20 = vld [vmem:[#allocation141_spill] sm:$0xff]  ;;  %17018 = vst [vmem:[#allocation92_spill] sm:$0xff] %v10082_v29  ;;  %17019 = vst [vmem:[#allocation93_spill] sm:$0xff] %v10084_v39  ;;  %v10087_v52 = vadd.f32 %v1967_v56, %v9515_v38  ;;  %3401 = vperm.xlu0 %6922, %v741_v5  }
 0x3cc   : > { %v10077_v55 = vsel %vm1882_vm0, %v17015_v6, %v17016_v60  ;;  %v1970_v13 = vsel %vm1882_vm0, %v17013_v50, %v17017_v20  ;;  %v17021_v40 = vld [vmem:[#allocation11_spill] sm:$0xff]  ;;  %v17023_v7 = vld [vmem:[#allocation146_spill] sm:$0xff]  ;;  %v17025_v6 = vld [vmem:[#allocation149_spill] sm:$0xff] }
 0x3cd   : > { %17020 = vst [vmem:[#allocation95_spill] sm:$0xff] %v10087_v52  ;;  %v10090_v32 = vadd.f32 %v1968_v53, %v17021_v40  ;;  %v17024_v48 = vld [vmem:[#allocation147_spill] sm:$0xff]  ;;  %v1976_v11 = vsel %vm1882_vm0, %v17023_v7, %v17025_v6  ;;  %v17026_v49 = vld [vmem:[#allocation197_spill] sm:$0xff]  ;;  %v17028_v29 = vld [vmem:[#allocation12_spill] sm:$0xff] }
 0x3ce   : > { %v1975_v0 = vsel %vm1882_vm0, %v17024_v48, %v17023_v7  ;;  %v10099_v50 = vadd.f32 %v1969_v42, %v17026_v49  ;;  %v10103_v39 = vadd.f32 %v17017_v20, %v17028_v29  ;;  %v17030_v38 = vld [vmem:[#allocation148_spill] sm:$0xff]  ;;  %v17033_v48 = vld [vmem:[#allocation143_spill] sm:$0xff]  ;;  %v17035_v49 = vld [vmem:[#allocation142_spill] sm:$0xff] }
 0x3cf   : > { %17022 = vst [vmem:[#allocation94_spill] sm:$0xff] %v10090_v32  ;;  %v1977_v56 = vsel %vm1882_vm0, %v17025_v6, %v17030_v38  ;;  %v17031_v53 = vld [vmem:[#allocation196_spill] sm:$0xff]  ;;  %v10119_v42 = vsel %vm1882_vm0, %v17033_v48, %v17035_v49  ;;  %v17036_v29 = vld [vmem:[#allocation151_spill] sm:$0xff]  ;;  %v742_v33 = vld [vmem:[%s15822_s4] sm:$0xff] }
 0x3d0   : > { %17027 = vst [vmem:[#allocation97_spill] sm:$0xff] %v10099_v50  ;;  %17029 = vst [vmem:[#allocation89_spill] sm:$0xff] %v10103_v39  ;;  %v10109_v40 = vadd.f32 %v1970_v13, %v17031_v53  ;;  %v17034_v32 = vld [vmem:[#allocation140_spill] sm:$0xff]  ;;  %v1978_v20 = vsel %vm1882_vm0, %v17030_v38, %v17036_v29  ;;  %v743_v5 = vld [vmem:[%s15822_s4 + $0x8] sm:$0xff]  ;;  %v10141_v38 = vadd.f32 %v1975_v0, %v9570_v57  ;;  %v10146_v50 = vpop.permute.xlu1 %2825  ;;  %v10148_v39 = vpop.permute.xlu0 %2823  ;;  %4636 = vperm.xlu1 %6923, %v742_v33  }
 0x3d1   : > { %v10114_v7 = vsel %vm1882_vm0, %v17034_v32, %v17033_v48  ;;  %v17037_v13 = vld [vmem:[#allocation145_spill] sm:$0xff]  ;;  %v17039_v6 = vld [vmem:[#allocation144_spill] sm:$0xff]  ;;  %17044 = vst [vmem:[#allocation98_spill] sm:$0xff] %v10146_v50  ;;  %17045 = vst [vmem:[#allocation101_spill] sm:$0xff] %v10148_v39  ;;  %4641 = vperm.xlu0 %6922, %v743_v5  }
 0x3d2   : > { %17032 = vst [vmem:[#allocation86_spill] sm:$0xff] %v10109_v40  ;;  %v10133_v32 = vsel %vm1882_vm0, %v17035_v49, %v17037_v13  ;;  %v10138_v53 = vsel %vm1882_vm0, %v17037_v13, %v17039_v6  ;;  %17041 = vst [vmem:[#allocation99_spill] sm:$0xff] %v10141_v38  ;;  %v17042_v48 = vld [vmem:[#allocation201_spill] sm:$0xff]  ;;  %v17046_v52 = vld [vmem:[#allocation200_spill] sm:$0xff] }
 0x3d3   : > { %17038 = vst [vmem:[#allocation88_spill] sm:$0xff] %v10133_v32  ;;  %17040 = vst [vmem:[#allocation91_spill] sm:$0xff] %v10138_v53  ;;  %v10144_v40 = vadd.f32 %v1976_v11, %v17042_v48  ;;  %v10151_v19 = vadd.f32 %v1977_v56, %v17046_v52  ;;  %v17048_v49 = vld [vmem:[#allocation219_spill] sm:$0xff]  ;;  %v17050_v32 = vld [vmem:[#allocation156_spill] sm:$0xff] }
 0x3d4   : > { %v10155_v16 = vadd.f32 %v17036_v29, %v17048_v49  ;;  %v17051_v13 = vld [vmem:[#allocation157_spill] sm:$0xff]  ;;  %v17052_v57 = vld [vmem:[#allocation159_spill] sm:$0xff]  ;;  %v17053_v0 = vld [vmem:[#allocation110_spill] sm:$0xff] }
 0x3d5   : > { %17043 = vst [vmem:[#allocation96_spill] sm:$0xff] %v10144_v40  ;;  %17047 = vst [vmem:[#allocation100_spill] sm:$0xff] %v10151_v19  ;;  %v1983_v53 = vsel %vm1882_vm0, %v17051_v13, %v17050_v32  ;;  %v1984_v11 = vsel %vm1882_vm0, %v17050_v32, %v17052_v57  ;;  %v10164_v48 = vadd.f32 %v1978_v20, %v17053_v0  ;;  %v17055_v40 = vld [vmem:[#allocation158_spill] sm:$0xff]  ;;  %v17056_v56 = vld [vmem:[#allocation161_spill] sm:$0xff] }
 0x3d6   : > { %17049 = vst [vmem:[#allocation104_spill] sm:$0xff] %v10155_v16  ;;  %v1985_v52 = vsel %vm1882_vm0, %v17052_v57, %v17055_v40  ;;  %v1986_v29 = vsel %vm1882_vm0, %v17055_v40, %v17056_v56  ;;  %v17057_v49 = vld [vmem:[#allocation153_spill] sm:$0xff]  ;;  %v17058_v19 = vld [vmem:[#allocation150_spill] sm:$0xff]  ;;  %v17060_v16 = vld [vmem:[#allocation152_spill] sm:$0xff]  ;;  %v10199_v5 = vadd.f32 %v1983_v53, %v9639_v46 }
 0x3d7   : > { %17054 = vst [vmem:[#allocation105_spill] sm:$0xff] %v10164_v48  ;;  %v10175_v13 = vsel %vm1882_vm0, %v17058_v19, %v17057_v49  ;;  %v10180_v20 = vsel %vm1882_vm0, %v17057_v49, %v17060_v16  ;;  %v17062_v32 = vld [vmem:[#allocation155_spill] sm:$0xff]  ;;  %v17064_v0 = vld [vmem:[#allocation154_spill] sm:$0xff]  ;;  %v744_v19 = vld [vmem:[%s15822_s4 + $0x10] sm:$0xff] }
 0x3d8   : > { %17059 = vst [vmem:[#allocation115_spill] sm:$0xff] %v10175_v13  ;;  %17061 = vst [vmem:[#allocation111_spill] sm:$0xff] %v10180_v20  ;;  %v10185_v57 = vsel %vm1882_vm0, %v17060_v16, %v17062_v32  ;;  %v10190_v40 = vsel %vm1882_vm0, %v17062_v32, %v17064_v0  ;;  %v745_v33 = vld [vmem:[%s15822_s4 + $0x18] sm:$0xff]  ;;  %v17067_v49 = vld [vmem:[#allocation106_spill] sm:$0xff]  ;;  %4646 = vperm.xlu1 %6923, %v744_v19  }
 0x3d9   : > { %17063 = vst [vmem:[#allocation114_spill] sm:$0xff] %v10185_v57  ;;  %17065 = vst [vmem:[#allocation119_spill] sm:$0xff] %v10190_v40  ;;  %v10202_v48 = vadd.f32 %v1984_v11, %v17067_v49  ;;  %v17069_v16 = vld [vmem:[#allocation166_spill] sm:$0xff]  ;;  %v17070_v38 = vld [vmem:[#allocation167_spill] sm:$0xff]  ;;  %v10210_v40 = vpop.permute.xlu1 %2829  ;;  %v10212_v57 = vpop.permute.xlu0 %2827  ;;  %4651 = vperm.xlu0 %6922, %v745_v33  }
 0x3da   : > { %17066 = vst [vmem:[#allocation118_spill] sm:$0xff] %v10199_v5  ;;  %v1991_v50 = vsel %vm1882_vm0, %v17070_v38, %v17069_v16  ;;  %v17071_v32 = vld [vmem:[#allocation169_spill] sm:$0xff]  ;;  %17072 = vst [vmem:[#allocation123_spill] sm:$0xff] %v10210_v40  ;;  %v17074_v0 = vld [vmem:[#allocation203_spill] sm:$0xff] }
 0x3db   : > { %17068 = vst [vmem:[#allocation122_spill] sm:$0xff] %v10202_v48  ;;  %v1992_v39 = vsel %vm1882_vm0, %v17069_v16, %v17071_v32  ;;  %17073 = vst [vmem:[#allocation126_spill] sm:$0xff] %v10212_v57  ;;  %v10215_v20 = vadd.f32 %v1985_v52, %v17074_v0  ;;  %v17076_v46 = vld [vmem:[#allocation202_spill] sm:$0xff]  ;;  %v17078_v11 = vld [vmem:[#allocation13_spill] sm:$0xff] }
 0x3dc   : > { %v10218_v53 = vadd.f32 %v1986_v29, %v17076_v46  ;;  %v10222_v49 = vadd.f32 %v17056_v56, %v17078_v11  ;;  %v17080_v48 = vld [vmem:[#allocation168_spill] sm:$0xff]  ;;  %v17081_v5 = vld [vmem:[#allocation163_spill] sm:$0xff]  ;;  %v17084_v57 = vld [vmem:[#allocation162_spill] sm:$0xff] }
 0x3dd   : > { %17075 = vst [vmem:[#allocation108_spill] sm:$0xff] %v10215_v20  ;;  %v1993_v38 = vsel %vm1882_vm0, %v17071_v32, %v17080_v48  ;;  %v17082_v16 = vld [vmem:[#allocation160_spill] sm:$0xff]  ;;  %v10235_v52 = vsel %vm1882_vm0, %v17081_v5, %v17084_v57  ;;  %v17086_v29 = vld [vmem:[#allocation171_spill] sm:$0xff]  ;;  %v17087_v56 = vld [vmem:[#allocation165_spill] sm:$0xff] }
 0x3de   : > { %17077 = vst [vmem:[#allocation107_spill] sm:$0xff] %v10218_v53  ;;  %17079 = vst [vmem:[#allocation112_spill] sm:$0xff] %v10222_v49  ;;  %v10230_v40 = vsel %vm1882_vm0, %v17082_v16, %v17081_v5  ;;  %v1994_v0 = vsel %vm1882_vm0, %v17080_v48, %v17086_v29  ;;  %v10243_v32 = vsel %vm1882_vm0, %v17084_v57, %v17087_v56  ;;  %v17089_v46 = vld [vmem:[#allocation164_spill] sm:$0xff]  ;;  %v17092_v5 = vld [vmem:[#allocation207_spill] sm:$0xff] }
 0x3df   : > { %17083 = vst [vmem:[#allocation125_spill] sm:$0xff] %v10230_v40  ;;  %17085 = vst [vmem:[#allocation130_spill] sm:$0xff] %v10235_v52  ;;  %v10248_v11 = vsel %vm1882_vm0, %v17087_v56, %v17089_v46  ;;  %v10251_v16 = vadd.f32 %v1991_v50, %v9707_v37  ;;  %v10254_v53 = vadd.f32 %v1992_v39, %v17092_v5  ;;  %v746_v48 = vld [vmem:[%s15822_s4 + $0x20] sm:$0xff]  ;;  %v747_v57 = vld [vmem:[%s15822_s4 + $0x28] sm:$0xff] }
 0x3e0   : > { %17088 = vst [vmem:[#allocation10_spill] sm:$0xff] %v10243_v32  ;;  %17090 = vst [vmem:[#allocation136_spill] sm:$0xff] %v10248_v11  ;;  %v17094_v19 = vld [vmem:[#allocation206_spill] sm:$0xff]  ;;  %v17096_v20 = vld [vmem:[#allocation176_spill] sm:$0xff]  ;;  %4656 = vperm.xlu1 %6923, %v746_v48   ;;  %4661 = vperm.xlu0 %6922, %v747_v57  }
 0x3e1   : > { %17091 = vst [vmem:[#allocation137_spill] sm:$0xff] %v10251_v16  ;;  %17093 = vst [vmem:[#allocation139_spill] sm:$0xff] %v10254_v53  ;;  %v10263_v33 = vadd.f32 %v1993_v38, %v17094_v19  ;;  %v17097_v56 = vld [vmem:[#allocation177_spill] sm:$0xff]  ;;  %v17098_v37 = vld [vmem:[#allocation179_spill] sm:$0xff]  ;;  %v10274_v53 = vpop.permute.xlu1 %2833  ;;  %v10276_v16 = vpop.permute.xlu0 %2831 }
 0x3e2   : > { %v1999_v49 = vsel %vm1882_vm0, %v17097_v56, %v17096_v20  ;;  %v2000_v39 = vsel %vm1882_vm0, %v17096_v20, %v17098_v37  ;;  %v17099_v50 = vld [vmem:[#allocation178_spill] sm:$0xff]  ;;  %17100 = vst [vmem:[#allocation194_spill] sm:$0xff] %v10274_v53  ;;  %17101 = vst [vmem:[#allocation133_spill] sm:$0xff] %v10276_v16  ;;  %v17104_v38 = vld [vmem:[#allocation209_spill] sm:$0xff] }
 0x3e3   : > { %17095 = vst [vmem:[#allocation193_spill] sm:$0xff] %v10263_v33  ;;  %v2001_v5 = vsel %vm1882_vm0, %v17098_v37, %v17099_v50  ;;  %v17102_v11 = vld [vmem:[#allocation210_spill] sm:$0xff]  ;;  %v10283_v19 = vadd.f32 %v17086_v29, %v17104_v38  ;;  %v17106_v56 = vld [vmem:[#allocation173_spill] sm:$0xff]  ;;  %v17110_v52 = vld [vmem:[#allocation172_spill] sm:$0xff] }
 0x3e4   : > { %v10279_v32 = vadd.f32 %v1994_v0, %v17102_v11  ;;  %v17107_v33 = vld [vmem:[#allocation170_spill] sm:$0xff]  ;;  %v17109_v20 = vld [vmem:[#allocation181_spill] sm:$0xff]  ;;  %v10296_v53 = vsel %vm1882_vm0, %v17106_v56, %v17110_v52  ;;  %v17112_v0 = vld [vmem:[#allocation175_spill] sm:$0xff] }
 0x3e5   : > { %17105 = vst [vmem:[#allocation138_spill] sm:$0xff] %v10283_v19  ;;  %v10288_v46 = vsel %vm1882_vm0, %v17107_v33, %v17106_v56  ;;  %v2002_v37 = vsel %vm1882_vm0, %v17099_v50, %v17109_v20  ;;  %17111 = vst [vmem:[#allocation135_spill] sm:$0xff] %v10296_v53  ;;  %v10301_v11 = vsel %vm1882_vm0, %v17110_v52, %v17112_v0  ;;  %v17114_v29 = vld [vmem:[#allocation174_spill] sm:$0xff]  ;;  %v17117_v50 = vld [vmem:[#allocation213_spill] sm:$0xff] }
 0x3e6   : > { %17103 = vst [vmem:[#allocation129_spill] sm:$0xff] %v10279_v32  ;;  %17108 = vst [vmem:[#allocation132_spill] sm:$0xff] %v10288_v46  ;;  %v10306_v38 = vsel %vm1882_vm0, %v17112_v0, %v17114_v29  ;;  %v10309_v33 = vadd.f32 %v1999_v49, %v9776_v1  ;;  %v10312_v32 = vadd.f32 %v2000_v39, %v17117_v50  ;;  %v17119_v56 = vld [vmem:[#allocation216_spill] sm:$0xff]  ;;  %v17121_v16 = vld [vmem:[#allocation109_spill] sm:$0xff] }
 0x3e7   : > { %17113 = vst [vmem:[#allocation134_spill] sm:$0xff] %v10301_v11  ;;  %17115 = vst [vmem:[#allocation141_spill] sm:$0xff] %v10306_v38  ;;  %v10315_v19 = vadd.f32 %v2001_v5, %v17119_v56  ;;  %v10319_v52 = vadd.f32 %v17109_v20, %v17121_v16  ;;  %v748_v48 = vld [vmem:[%s15822_s4 + $0x30] sm:$0xff]  ;;  %v749_v1 = vld [vmem:[%s15822_s4 + $0x38] sm:$0xff] }
 0x3e8   : > { %17116 = vst [vmem:[#allocation11_spill] sm:$0xff] %v10309_v33  ;;  %17118 = vst [vmem:[#allocation146_spill] sm:$0xff] %v10312_v32  ;;  %v17123_v49 = vld [vmem:[#allocation113_spill] sm:$0xff]  ;;  %v17125_v39 = vld [vmem:[#allocation183_spill] sm:$0xff]  ;;  %v10345_v32 = vpop.permute.xlu0 %2835  ;;  %4666 = vperm.xlu1 %6923, %v748_v48   ;;  %4671 = vperm.xlu0 %6922, %v749_v1  }
 0x3e9   : > { %17120 = vst [vmem:[#allocation147_spill] sm:$0xff] %v10315_v19  ;;  %17122 = vst [vmem:[#allocation149_spill] sm:$0xff] %v10319_v52  ;;  %v10328_v57 = vadd.f32 %v2002_v37, %v17123_v49  ;;  %v17126_v0 = vld [vmem:[#allocation180_spill] sm:$0xff]  ;;  %v17128_v50 = vld [vmem:[#allocation182_spill] sm:$0xff]  ;;  %v10343_v52 = vpop.permute.xlu1 %2837 }
 0x3ea   : > { %v10333_v5 = vsel %vm1882_vm0, %v17126_v0, %v17125_v39  ;;  %v10338_v16 = vsel %vm1882_vm0, %v17125_v39, %v17128_v50  ;;  %v17130_v20 = vld [vmem:[#allocation186_spill] sm:$0xff]  ;;  %v17131_v56 = vld [vmem:[#allocation187_spill] sm:$0xff]  ;;  %17132 = vst [vmem:[#allocation196_spill] sm:$0xff] %v10343_v52  ;;  %17133 = vst [vmem:[#allocation143_spill] sm:$0xff] %v10345_v32 }
 0x3eb   : > { %17124 = vst [vmem:[#allocation197_spill] sm:$0xff] %v10328_v57  ;;  %17127 = vst [vmem:[#allocation12_spill] sm:$0xff] %v10333_v5  ;;  %v2007_v19 = vsel %vm1882_vm0, %v17131_v56, %v17130_v20  ;;  %v17134_v37 = vld [vmem:[#allocation185_spill] sm:$0xff]  ;;  %v17137_v57 = vld [vmem:[#allocation188_spill] sm:$0xff] }
 0x3ec   : > { %17129 = vst [vmem:[#allocation148_spill] sm:$0xff] %v10338_v16  ;;  %v10350_v49 = vsel %vm1882_vm0, %v17128_v50, %v17134_v37  ;;  %v17136_v0 = vld [vmem:[#allocation189_spill] sm:$0xff]  ;;  %v17139_v38 = vld [vmem:[#allocation190_spill] sm:$0xff]  ;;  %v7065_v29 = vld [vmem:[%s7409_s16 + $0x8] sm:$0xff]  ;;  %v10399_v46 = vpop.permute.xlu0 %2839 }
 0x3ed   : > { %17135 = vst [vmem:[#allocation140_spill] sm:$0xff] %v10350_v49  ;;  %v2008_v39 = vsel %vm1882_vm0, %v17130_v20, %v17136_v0  ;;  %v2009_v33 = vsel %vm1882_vm0, %v17136_v0, %v17137_v57  ;;  %v17138_v56 = vld [vmem:[#allocation205_spill] sm:$0xff]  ;;  %v2010_v32 = vsel %vm1882_vm0, %v17137_v57, %v17139_v38  ;;  %v7063_v52 = vld [vmem:[%s7409_s16] sm:$0xff]  ;;  %v17140_v49 = vld [vmem:[#allocation184_spill] sm:$0xff]  ;;  %v10372_v0 = vadd.f32 %v2007_v19, %v9847_v12 }
 0x3ee   : > { %v1018_v16 = vmul.f32 0.0, %v17138_v56  ;;  %v1019_v11 = vmul.f32 %v7063_v52, %v17138_v56  ;;  %v7064_v5 = vld [vmem:[%s7409_s16 + $0x18] sm:$0xff]  ;;  %v10369_v20 = vsel %vm1882_vm0, %v17134_v37, %v17140_v49  ;;  %v1020_v57 = vmul.f32 %v7065_v29, %v17138_v56  ;;  %v7066_v53 = vld [vmem:[%s7409_s16 + $0x10] sm:$0xff]  ;;  %v750_v48 = vld [vmem:[%s15822_s4 + $0x40] sm:$0xff]  ;;  %v10397_v49 = vpop.permute.xlu1 %2841  ;;  %17151 = vst [vmem:[#allocation219_spill] sm:$0xff] %v10399_v46 }
 0x3ef   : > { %v1022_v50 = vmul.f32 %v7064_v5, %v17138_v56  ;;  %17141 = vst [vmem:[#allocation142_spill] sm:$0xff] %v10369_v20  ;;  %17142 = vst [vmem:[#allocation151_spill] sm:$0xff] %v10372_v0  ;;  %v1021_v52 = vmul.f32 %v7066_v53, %v17138_v56  ;;  %v751_v1 = vld [vmem:[%s15822_s4 + $0x48] sm:$0xff]  ;;  %v17147_v0 = vld [vmem:[#allocation16_spill] sm:$0xff]  ;;  %4676 = vperm.xlu1 %6923, %v750_v48  }
 0x3f0   : > { %v17143_v5 = vld [vmem:[#allocation215_spill] sm:$0xff]  ;;  %v10392_v29 = vadd.f32 %v17139_v38, %v17147_v0  ;;  %v17149_v53 = vld [vmem:[#allocation208_spill] sm:$0xff]  ;;  %17150 = vst [vmem:[#allocation200_spill] sm:$0xff] %v10397_v49  ;;  %v17152_v40 = vld [vmem:[#allocation221_spill] sm:$0xff]  ;;  %4681 = vperm.xlu0 %6922, %v751_v1  }
 0x3f1   : > { %v10385_v37 = vadd.f32 %v2008_v39, %v17143_v5  ;;  %v17145_v12 = vld [vmem:[#allocation15_spill] sm:$0xff]  ;;  %v10395_v20 = vmul.f32 0.0, %v17149_v53  ;;  %v10402_v13 = vadd.f32 %v2010_v32, %v17152_v40  ;;  %v17154_v39 = vld [vmem:[#allocation220_spill] sm:$0xff]  ;;  %v7068_v38 = vld [vmem:[%s7409_s16 + $0x38] sm:$0xff] }
 0x3f2   : > { %v10388_v19 = vadd.f32 %v2009_v33, %v17145_v12  ;;  %17148 = vst [vmem:[#allocation201_spill] sm:$0xff] %v10392_v29  ;;  %v10405_v5 = vadd.f32 %v17154_v39, %v1018_v16  ;;  %v7067_v33 = vld [vmem:[%s7409_s16 + $0x20] sm:$0xff]  ;;  %v1027_v0 = vmul.f32 %v7068_v38, %v17149_v53  ;;  %v7069_v46 = vld [vmem:[%s7409_s16 + $0x28] sm:$0xff]  ;;  %v7070_v38 = vld [vmem:[%s7409_s16 + $0x30] sm:$0xff] }
 0x3f3   : > { %17144 = vst [vmem:[#allocation145_spill] sm:$0xff] %v10385_v37  ;;  %17153 = vst [vmem:[#allocation156_spill] sm:$0xff] %v10402_v13  ;;  %v1024_v12 = vmul.f32 %v7067_v33, %v17149_v53  ;;  %v17158_v37 = vld [vmem:[#allocation20_spill] sm:$0xff]  ;;  %v1025_v40 = vmul.f32 %v7069_v46, %v17149_v53  ;;  %v17160_v32 = vld [vmem:[#allocation223_spill] sm:$0xff] }
 0x3f4   : > { %17146 = vst [vmem:[#allocation144_spill] sm:$0xff] %v10388_v19  ;;  %17155 = vst [vmem:[#allocation157_spill] sm:$0xff] %v10405_v5  ;;  %v17156_v19 = vld [vmem:[#allocation224_spill] sm:$0xff]  ;;  %v10415_v49 = vadd.f32 %v17158_v37, %v1022_v50  ;;  %v10420_v39 = vadd.f32 %v17160_v32, %v1020_v57  ;;  %v753_v57 = vld [vmem:[%s15822_s4 + $0x58] sm:$0xff] }
 0x3f5   : > { %v10412_v29 = vadd.f32 %v17156_v19, %v1019_v11  ;;  %v17162_v13 = vld [vmem:[#allocation116_spill] sm:$0xff]  ;;  %v1026_v11 = vmul.f32 %v7070_v38, %v17149_v53  ;;  %v7071_v19 = vld [vmem:[%s7409_s16 + $0x200] sm:$0xff]  ;;  %v17166_v48 = vld [vmem:[#allocation211_spill] sm:$0xff]  ;;  %v10445_v38 = vadd.f32 %v9937_v25, %v1018_v16  ;;  %4691 = vperm.xlu0 %6922, %v753_v57  }
 0x3f6   : > { %17159 = vst [vmem:[#allocation110_spill] sm:$0xff] %v10415_v49  ;;  %17161 = vst [vmem:[#allocation158_spill] sm:$0xff] %v10420_v39  ;;  %v10423_v33 = vadd.f32 %v17162_v13, %v1021_v52  ;;  %v1099_v50 = vmul.f32 %v7071_v19, %v17138_v56  ;;  %v752_v46 = vld [vmem:[%s15822_s4 + $0x50] sm:$0xff]  ;;  %v10440_v1 = vmul.f32 0.0, %v17166_v48  ;;  %v7072_v37 = vld [vmem:[%s7409_s16 + $0x80] sm:$0xff]  ;;  %v10447_v19 = vpop.permute.xlu1 %2845 }
 0x3f7   : > { %17157 = vst [vmem:[#allocation159_spill] sm:$0xff] %v10412_v29  ;;  %v17164_v13 = vld [vmem:[#allocation204_spill] sm:$0xff]  ;;  %v1039_v32 = vmul.f32 %v7072_v37, %v17166_v48  ;;  %17167 = vst [vmem:[#allocation150_spill] sm:$0xff] %v10445_v38  ;;  %v17170_v39 = vld [vmem:[#allocation117_spill] sm:$0xff]  ;;  %4686 = vperm.xlu1 %6923, %v752_v46  }
 0x3f8   : > { %17163 = vst [vmem:[#allocation161_spill] sm:$0xff] %v10423_v33  ;;  %v10437_v52 = vadd.f32 %v17164_v13, %v10395_v20  ;;  %17168 = vst [vmem:[#allocation152_spill] sm:$0xff] %v10447_v19  ;;  %v10449_v33 = vpop.permute.xlu0 %2843  ;;  %v10452_v49 = vadd.f32 %v17170_v39, %v1024_v12  ;;  %v10455_v13 = vadd.f32 %v16847_v51, %v1027_v0  ;;  %v7074_v5 = vld [vmem:[%s7409_s16 + $0x88] sm:$0xff]  ;;  %v17171_v25 = vld [vmem:[#allocation120_spill] sm:$0xff] }
 0x3f9   : > { %17169 = vst [vmem:[#allocation155_spill] sm:$0xff] %v10449_v33  ;;  %v1040_v37 = vmul.f32 %v7074_v5, %v17166_v48  ;;  %v10462_v16 = vadd.f32 %v17171_v25, %v1025_v40  ;;  %v7075_v19 = vld [vmem:[%s7409_s16 + $0x90] sm:$0xff]  ;;  %v7076_v38 = vld [vmem:[%s7409_s16 + $0x218] sm:$0xff]  ;;  %v10472_v39 = vadd.f32 %v9942_v15, %v1099_v50  ;;  %v7077_v5 = vld [vmem:[%s7409_s16 + $0x208] sm:$0xff]  ;;  %v10486_v15 = vadd.f32 %v9596_v23, %v10440_v1 }
 0x3fa   : > { %17165 = vst [vmem:[#allocation153_spill] sm:$0xff] %v10437_v52  ;;  %v7073_v52 = vld [vmem:[%s7409_s16 + $0x98] sm:$0xff]  ;;  %v1041_v33 = vmul.f32 %v7075_v19, %v17166_v48  ;;  %v1102_v12 = vmul.f32 %v7076_v38, %v17138_v56  ;;  %v1100_v40 = vmul.f32 %v7077_v5, %v17138_v56  ;;  %v754_v38 = vld [vmem:[%s15822_s4 + $0x60] sm:$0xff]  ;;  %v10489_v50 = vadd.f32 %v9601_v28, %v1039_v32  ;;  %v17175_v46 = vld [vmem:[#allocation212_spill] sm:$0xff] }
 0x3fb   : > { %v1042_v29 = vmul.f32 %v7073_v52, %v17166_v48  ;;  %v17172_v51 = vld [vmem:[#allocation121_spill] sm:$0xff]  ;;  %17173 = vst [vmem:[#allocation106_spill] sm:$0xff] %v10472_v39  ;;  %v7078_v52 = vld [vmem:[%s7409_s16 + $0x210] sm:$0xff]  ;;  %v10492_v57 = vmul.f32 0.0, %v17175_v46  ;;  %v10504_v23 = vadd.f32 %v9606_v59, %v1040_v37  ;;  %v7081_v32 = vld [vmem:[%s7409_s16 + $0xc8] sm:$0xff]  ;;  %4696 = vperm.xlu1 %6923, %v754_v38  }
 0x3fc   : > { %v10469_v0 = vadd.f32 %v17172_v51, %v1026_v11  ;;  %v1101_v19 = vmul.f32 %v7078_v52, %v17138_v56  ;;  %v755_v11 = vld [vmem:[%s15822_s4 + $0x68] sm:$0xff]  ;;  %17174 = vst [vmem:[#allocation166_spill] sm:$0xff] %v10489_v50  ;;  %v7079_v56 = vld [vmem:[%s7409_s16 + $0xc0] sm:$0xff]  ;;  %v10496_v51 = vpop.permute.xlu1 %2849  ;;  %v10498_v5 = vpop.permute.xlu0 %2847  ;;  %v7080_v39 = vld [vmem:[%s7409_s16 + $0xd8] sm:$0xff]  ;;  %v1050_v50 = vmul.f32 %v7081_v32, %v17175_v46  ;;  %v10522_v37 = vadd.f32 %v9947_v18, %v1100_v40 }
 0x3fd   : > { %v1049_v25 = vmul.f32 %v7079_v56, %v17175_v46  ;;  %17176 = vst [vmem:[#allocation167_spill] sm:$0xff] %v10496_v51  ;;  %17177 = vst [vmem:[#allocation169_spill] sm:$0xff] %v10498_v5  ;;  %v10501_v52 = vadd.f32 %v16875_v21, %v1042_v29  ;;  %v1052_v28 = vmul.f32 %v7080_v39, %v17175_v46  ;;  %v7082_v51 = vld [vmem:[%s7409_s16 + $0xd0] sm:$0xff]  ;;  %4701 = vperm.xlu0 %6922, %v755_v11   ;;  %v17179_v59 = vld [vmem:[#allocation217_spill] sm:$0xff] }
 0x3fe   : > { %v10511_v56 = vadd.f32 %v9618_v62, %v1041_v33  ;;  %v1051_v5 = vmul.f32 %v7082_v51, %v17175_v46  ;;  %v10516_v21 = vadd.f32 %v16975_v24, %v1102_v12  ;;  %v10519_v29 = vmul.f32 0.0, %v17179_v59  ;;  %17180 = vst [vmem:[#allocation202_spill] sm:$0xff] %v10522_v37  ;;  %v7083_v62 = vld [vmem:[%s7409_s16 + $0x220] sm:$0xff]  ;;  %v756_v24 = vld [vmem:[%s15822_s4 + $0x70] sm:$0xff]  ;;  %v757_v12 = vld [vmem:[%s15822_s4 + $0x78] sm:$0xff] }
 0x3ff   : > { %v10525_v39 = vadd.f32 %v9952_v31, %v1101_v19  ;;  %v1104_v33 = vmul.f32 %v7083_v62, %v17149_v53  ;;  %v10537_v18 = vadd.f32 %v9651_v41, %v10492_v57  ;;  %v10540_v40 = vadd.f32 %v9665_v44, %v1049_v25  ;;  %v7084_v31 = vld [vmem:[%s7409_s16 + $0x100] sm:$0xff]  ;;  %v7085_v38 = vld [vmem:[%s7409_s16 + $0x118] sm:$0xff]  ;;  %v7086_v44 = vld [vmem:[%s7409_s16 + $0x108] sm:$0xff]  ;;  %4706 = vperm.xlu1 %6923, %v756_v24  }
 0x400   : > { %17178 = vst [vmem:[#allocation203_spill] sm:$0xff] %v10516_v21  ;;  %v1059_v19 = vmul.f32 %v7084_v31, %v17179_v59  ;;  %v1062_v11 = vmul.f32 %v7085_v38, %v17179_v59  ;;  %v10546_v51 = vpop.permute.xlu1 %2853  ;;  %v10548_v32 = vpop.permute.xlu0 %2851  ;;  %v10551_v62 = vadd.f32 %v16890_v3, %v1052_v28  ;;  %v10554_v41 = vadd.f32 %v9670_v4, %v1050_v50  ;;  %v7088_v28 = vld [vmem:[%s7409_s16 + $0x238] sm:$0xff] }
 0x401   : > { %17181 = vst [vmem:[#allocation13_spill] sm:$0xff] %v10525_v39  ;;  %17182 = vst [vmem:[#allocation168_spill] sm:$0xff] %v10546_v51  ;;  %v1060_v25 = vmul.f32 %v7086_v44, %v17179_v59  ;;  %v7087_v39 = vld [vmem:[%s7409_s16 + $0x110] sm:$0xff]  ;;  %v10561_v38 = vadd.f32 %v9675_v17, %v1051_v5  ;;  %v17184_v51 = vld [vmem:[#allocation218_spill] sm:$0xff]  ;;  %v10568_v3 = vadd.f32 %v9961_v36, %v10395_v20  ;;  %4711 = vperm.xlu0 %6922, %v757_v12  }
 0x402   : > { %17183 = vst [vmem:[#allocation163_spill] sm:$0xff] %v10548_v32  ;;  %v1061_v31 = vmul.f32 %v7087_v39, %v17179_v59  ;;  %v10564_v37 = vmul.f32 0.0, %v17184_v51  ;;  %v1107_v4 = vmul.f32 %v7088_v28, %v17149_v53  ;;  %v10574_v50 = vadd.f32 %v9712_v14, %v10519_v29  ;;  %v7089_v17 = vld [vmem:[%s7409_s16 + $0x140] sm:$0xff]  ;;  %v7090_v39 = vld [vmem:[%s7409_s16 + $0x158] sm:$0xff]  ;;  %v759_v14 = vld [vmem:[%s15823_s5 + $0x8] sm:$0xff] }
 0x403   : > { %17185 = vst [vmem:[#allocation160_spill] sm:$0xff] %v10568_v3  ;;  %v1069_v5 = vmul.f32 %v7089_v17, %v17184_v51  ;;  %v1072_v44 = vmul.f32 %v7090_v39, %v17184_v51  ;;  %v10581_v36 = vadd.f32 %v9984_v61, %v1104_v33  ;;  %v758_v20 = vld [vmem:[%s15823_s5] sm:$0xff]  ;;  %v10590_v24 = vadd.f32 %v9717_v22, %v1059_v19  ;;  %v7091_v28 = vld [vmem:[%s7409_s16 + $0x148] sm:$0xff]  ;;  %v7092_v61 = vld [vmem:[%s7409_s16 + $0x150] sm:$0xff] }
 0x404   : > { %v10593_v12 = vadd.f32 %v16907_v34, %v1062_v11  ;;  %v1070_v17 = vmul.f32 %v7091_v28, %v17184_v51  ;;  %v1071_v33 = vmul.f32 %v7092_v61, %v17184_v51  ;;  %v10599_v39 = vpop.permute.xlu1 %2857  ;;  %v10601_v32 = vpop.permute.xlu0 %2855  ;;  %v10607_v22 = vadd.f32 %v9736_v30, %v1061_v31  ;;  %v7093_v19 = vld [vmem:[%s7409_s16 + $0x228] sm:$0xff]  ;;  %v7094_v11 = vld [vmem:[%s7409_s16 + $0x230] sm:$0xff]  ;;  %4876 = vperm.xlu1 %6923, %v758_v20   ;;  %v17190_v31 = vld [vmem:[#allocation222_spill] sm:$0xff] }
 0x405   : > { %17186 = vst [vmem:[#allocation162_spill] sm:$0xff] %v10581_v36  ;;  %17187 = vst [vmem:[#allocation171_spill] sm:$0xff] %v10599_v39  ;;  %v10604_v36 = vadd.f32 %v9722_v45, %v1060_v25  ;;  %v1105_v34 = vmul.f32 %v7093_v19, %v17149_v53  ;;  %v1106_v28 = vmul.f32 %v7094_v11, %v17149_v53  ;;  %v7095_v45 = vld [vmem:[%s7409_s16 + $0x280] sm:$0xff]  ;;  %4881 = vperm.xlu0 %6922, %v759_v14   ;;  %v761_v20 = vld [vmem:[%s15823_s5 + $0x18] sm:$0xff] }
 0x406   : > { %17188 = vst [vmem:[#allocation165_spill] sm:$0xff] %v10601_v32  ;;  %v10615_v61 = vadd.f32 %v9770_v27, %v10564_v37  ;;  %v10618_v39 = vadd.f32 %v16990_v2, %v1107_v4  ;;  %v1119_v25 = vmul.f32 %v7095_v45, %v17166_v48  ;;  %v10623_v30 = vadd.f32 %v9781_v63, %v1069_v5  ;;  %v7096_v27 = vld [vmem:[%s7409_s16 + $0x180] sm:$0xff]  ;;  %v760_v4 = vld [vmem:[%s15823_s5 + $0x10] sm:$0xff]  ;;  %v7097_v5 = vld [vmem:[%s7409_s16 + $0x198] sm:$0xff] }
 0x407   : > { %v10626_v53 = vadd.f32 %v16924_v8, %v1072_v44  ;;  %v10629_v19 = vmul.f32 0.0, %v17190_v31  ;;  %v1079_v2 = vmul.f32 %v7096_v27, %v17190_v31  ;;  %v10640_v63 = vadd.f32 %v9786_v54, %v1070_v17  ;;  %v7098_v14 = vld [vmem:[%s7409_s16 + $0x188] sm:$0xff]  ;;  %v7099_v32 = vld [vmem:[%s7409_s16 + $0x190] sm:$0xff]  ;;  %v7100_v17 = vld [vmem:[%s7409_s16 + $0x298] sm:$0xff] }
 0x408   : > { %17189 = vst [vmem:[#allocation207_spill] sm:$0xff] %v10618_v39  ;;  %v10643_v8 = vadd.f32 %v9791_v35, %v1071_v33  ;;  %v1082_v44 = vmul.f32 %v7097_v5, %v17190_v31  ;;  %v1080_v11 = vmul.f32 %v7098_v14, %v17190_v31  ;;  %v10649_v45 = vpop.permute.xlu1 %2861  ;;  %v10651_v27 = vpop.permute.xlu0 %2859  ;;  %v1081_v39 = vmul.f32 %v7099_v32, %v17190_v31  ;;  %v17195_v5 = vld [vmem:[#allocation226_spill] sm:$0xff] }
 0x409   : > { %17191 = vst [vmem:[#allocation206_spill] sm:$0xff] %v10649_v45  ;;  %17192 = vst [vmem:[#allocation176_spill] sm:$0xff] %v10651_v27  ;;  %v10656_v54 = vadd.f32 %v9989_v58, %v1105_v34  ;;  %v10659_v35 = vadd.f32 %v9994_v9, %v1106_v28  ;;  %v1122_v33 = vmul.f32 %v7100_v17, %v17166_v48  ;;  %v10664_v14 = vmul.f32 0.0, %v17195_v5  ;;  %v7101_v45 = vld [vmem:[%s7409_s16 + $0x288] sm:$0xff]  ;;  %v17198_v34 = vld [vmem:[#allocation57_spill] sm:$0xff] }
 0x40a   : > { %v10668_v27 = vadd.f32 %v10053_v47, %v10440_v1  ;;  %v10671_v32 = vadd.f32 %v10067_v10, %v1119_v25  ;;  %v1120_v58 = vmul.f32 %v7101_v45, %v17166_v48  ;;  %4886 = vperm.xlu1 %6923, %v760_v4   ;;  %4891 = vperm.xlu0 %6922, %v761_v20   ;;  %v7102_v17 = vld [vmem:[%s7409_s16 + $0x1c0] sm:$0xff]  ;;  %v7103_v1 = vld [vmem:[%s7409_s16 + $0x1d8] sm:$0xff]  ;;  %v17199_v4 = vld [vmem:[#allocation80_spill] sm:$0xff] }
 0x40b   : > { %17193 = vst [vmem:[#allocation177_spill] sm:$0xff] %v10656_v54  ;;  %17194 = vst [vmem:[#allocation179_spill] sm:$0xff] %v10659_v35  ;;  %v10677_v9 = vadd.f32 %v9828_v43, %v10629_v19  ;;  %v10680_v28 = vadd.f32 %v17198_v34, %v1079_v2  ;;  %v1089_v47 = vmul.f32 %v7102_v17, %v17195_v5  ;;  %v762_v25 = vld [vmem:[%s15823_s5 + $0x20] sm:$0xff]  ;;  %v763_v43 = vld [vmem:[%s15823_s5 + $0x28] sm:$0xff] }
 0x40c   : > { %17196 = vst [vmem:[#allocation178_spill] sm:$0xff] %v10668_v27  ;;  %17197 = vst [vmem:[#allocation210_spill] sm:$0xff] %v10671_v32  ;;  %v1092_v10 = vmul.f32 %v7103_v1, %v17195_v5  ;;  %v10693_v20 = vadd.f32 %v17199_v4, %v1082_v44  ;;  %v17200_v2 = vld [vmem:[#allocation48_spill] sm:$0xff]  ;;  %v7104_v34 = vld [vmem:[%s7409_s16 + $0x1c8] sm:$0xff]  ;;  %v10702_v27 = vpop.permute.xlu1 %2865  ;;  %v10704_v35 = vpop.permute.xlu0 %2863  ;;  %v10710_v44 = vadd.f32 %v17016_v60, %v1122_v33 }
 0x40d   : > { %v10696_v45 = vadd.f32 %v17200_v2, %v1080_v11  ;;  %v1090_v17 = vmul.f32 %v7104_v34, %v17195_v5  ;;  %v7105_v32 = vld [vmem:[%s7409_s16 + $0x1d0] sm:$0xff]  ;;  %17201 = vst [vmem:[#allocation209_spill] sm:$0xff] %v10702_v27  ;;  %17202 = vst [vmem:[#allocation173_spill] sm:$0xff] %v10704_v35  ;;  %v17203_v54 = vld [vmem:[#allocation51_spill] sm:$0xff]  ;;  %v10721_v27 = vadd.f32 %v10072_v26, %v1120_v58 }
 0x40e   : > { %v1091_v1 = vmul.f32 %v7105_v32, %v17195_v5  ;;  %v10707_v3 = vadd.f32 %v17203_v54, %v1081_v39  ;;  %v7106_v11 = vld [vmem:[%s7409_s16 + $0x290] sm:$0xff]  ;;  %v7107_v2 = vld [vmem:[%s7409_s16 + $0x2c0] sm:$0xff]  ;;  %v7108_v39 = vld [vmem:[%s7409_s16 + $0x2d8] sm:$0xff]  ;;  %4896 = vperm.xlu1 %6923, %v762_v25   ;;  %4901 = vperm.xlu0 %6922, %v763_v43  }
 0x40f   : > { %v1121_v4 = vmul.f32 %v7106_v11, %v17166_v48  ;;  %v1129_v34 = vmul.f32 %v7107_v2, %v17175_v46  ;;  %v17204_v32 = vld [vmem:[#allocation58_spill] sm:$0xff]  ;;  %17205 = vst [vmem:[#allocation170_spill] sm:$0xff] %v10721_v27  ;;  %v1132_v54 = vmul.f32 %v7108_v39, %v17175_v46  ;;  %v17206_v60 = vld [vmem:[#allocation61_spill] sm:$0xff]  ;;  %v7109_v2 = vld [vmem:[%s7409_s16 + $0x2c8] sm:$0xff] }
 0x410   : > { %v10718_v21 = vadd.f32 %v17204_v32, %v10664_v14  ;;  %v10726_v33 = vadd.f32 %v17206_v60, %v1089_v47  ;;  %v17207_v48 = vld [vmem:[#allocation90_spill] sm:$0xff]  ;;  %v1130_v32 = vmul.f32 %v7109_v2, %v17175_v46  ;;  %v7110_v35 = vld [vmem:[%s7409_s16 + $0x2d0] sm:$0xff]  ;;  %v765_v47 = vld [vmem:[%s15823_s5 + $0x38] sm:$0xff] }
 0x411   : > { %v10729_v11 = vadd.f32 %v17207_v48, %v1092_v10  ;;  %v1131_v26 = vmul.f32 %v7110_v35, %v17175_v46  ;;  %v764_v58 = vld [vmem:[%s15823_s5 + $0x30] sm:$0xff]  ;;  %v17208_v25 = vld [vmem:[#allocation67_spill] sm:$0xff]  ;;  %v7111_v60 = vld [vmem:[%s7409_s16 + $0x300] sm:$0xff]  ;;  %v10751_v35 = vpop.permute.xlu1 %2869  ;;  %v10754_v27 = vadd.f32 %v10077_v55, %v1121_v4 }
 0x412   : > { %v10742_v43 = vadd.f32 %v17208_v25, %v1090_v17  ;;  %v17209_v10 = vld [vmem:[#allocation60_spill] sm:$0xff]  ;;  %v1139_v48 = vmul.f32 %v7111_v60, %v17179_v59  ;;  %v7112_v2 = vld [vmem:[%s7409_s16 + $0x318] sm:$0xff]  ;;  %17210 = vst [vmem:[#allocation181_spill] sm:$0xff] %v10751_v35  ;;  %v10758_v17 = vadd.f32 %v10114_v7, %v10492_v57  ;;  %v7113_v25 = vld [vmem:[%s7409_s16 + $0x308] sm:$0xff]  ;;  %v10766_v60 = vadd.f32 %v17039_v6, %v1132_v54  ;;  %v10774_v7 = vpop.permute.xlu0 %2867 }
 0x413   : > { %v10745_v39 = vadd.f32 %v17209_v10, %v1091_v1  ;;  %v1142_v46 = vmul.f32 %v7112_v2, %v17179_v59  ;;  %v10761_v1 = vadd.f32 %v10119_v42, %v1129_v34  ;;  %v1140_v10 = vmul.f32 %v7113_v25, %v17179_v59  ;;  %v17211_v2 = vld [vmem:[#allocation115_spill] sm:$0xff]  ;;  %v7114_v55 = vld [vmem:[%s7409_s16 + $0x310] sm:$0xff]  ;;  %17213 = vst [vmem:[#allocation175_spill] sm:$0xff] %v10774_v7  ;;  %v7115_v6 = vld [vmem:[%s7409_s16 + $0x340] sm:$0xff] }
 0x414   : > { %v10770_v35 = vadd.f32 %v17211_v2, %v10519_v29  ;;  %v1141_v4 = vmul.f32 %v7114_v55, %v17179_v59  ;;  %4906 = vperm.xlu1 %6923, %v764_v58   ;;  %4911 = vperm.xlu0 %6922, %v765_v47   ;;  %v17214_v42 = vld [vmem:[#allocation88_spill] sm:$0xff]  ;;  %v17216_v34 = vld [vmem:[#allocation91_spill] sm:$0xff]  ;;  %v1149_v29 = vmul.f32 %v7115_v6, %v17184_v51  ;;  %v7116_v54 = vld [vmem:[%s7409_s16 + $0x358] sm:$0xff] }
 0x415   : > { %v10777_v57 = vadd.f32 %v17214_v42, %v1130_v32  ;;  %v10780_v25 = vadd.f32 %v17216_v34, %v1131_v26  ;;  %v1152_v2 = vmul.f32 %v7116_v54, %v17184_v51  ;;  %v766_v59 = vld [vmem:[%s15823_s5 + $0x40] sm:$0xff]  ;;  %v767_v32 = vld [vmem:[%s15823_s5 + $0x48] sm:$0xff]  ;;  %v7118_v6 = vld [vmem:[%s7409_s16 + $0x350] sm:$0xff]  ;;  %v10802_v7 = vpop.permute.xlu1 %2873 }
 0x416   : > { %17212 = vst [vmem:[#allocation172_spill] sm:$0xff] %v10770_v35  ;;  %v17218_v58 = vld [vmem:[#allocation111_spill] sm:$0xff]  ;;  %v17220_v26 = vld [vmem:[#allocation154_spill] sm:$0xff]  ;;  %v1151_v54 = vmul.f32 %v7118_v6, %v17184_v51  ;;  %17222 = vst [vmem:[#allocation183_spill] sm:$0xff] %v10802_v7 }
 0x417   : > { %17215 = vst [vmem:[#allocation213_spill] sm:$0xff] %v10777_v57  ;;  %17217 = vst [vmem:[#allocation216_spill] sm:$0xff] %v10780_v25  ;;  %v10793_v47 = vadd.f32 %v17218_v58, %v1139_v48  ;;  %v10796_v55 = vadd.f32 %v17220_v26, %v1142_v46  ;;  %v7117_v42 = vld [vmem:[%s7409_s16 + $0x348] sm:$0xff]  ;;  %v17223_v35 = vld [vmem:[#allocation114_spill] sm:$0xff] }
 0x418   : > { %v1150_v34 = vmul.f32 %v7117_v42, %v17184_v51  ;;  %v10805_v25 = vadd.f32 %v17223_v35, %v1140_v10  ;;  %v17225_v57 = vld [vmem:[#allocation125_spill] sm:$0xff]  ;;  %v7119_v58 = vld [vmem:[%s7409_s16 + $0x380] sm:$0xff]  ;;  %4916 = vperm.xlu1 %6923, %v766_v59   ;;  %4921 = vperm.xlu0 %6922, %v767_v32   ;;  %v7121_v35 = vld [vmem:[%s7409_s16 + $0x388] sm:$0xff] }
 0x419   : > { %17219 = vst [vmem:[#allocation109_spill] sm:$0xff] %v10793_v47  ;;  %17221 = vst [vmem:[#allocation113_spill] sm:$0xff] %v10796_v55  ;;  %v10809_v48 = vadd.f32 %v17225_v57, %v10564_v37  ;;  %v1159_v46 = vmul.f32 %v7119_v58, %v17190_v31  ;;  %v7120_v26 = vld [vmem:[%s7409_s16 + $0x398] sm:$0xff]  ;;  %v17227_v55 = vld [vmem:[#allocation119_spill] sm:$0xff]  ;;  %v1160_v10 = vmul.f32 %v7121_v35, %v17190_v31 }
 0x41a   : > { %17224 = vst [vmem:[#allocation180_spill] sm:$0xff] %v10805_v25  ;;  %v1162_v42 = vmul.f32 %v7120_v26, %v17190_v31  ;;  %v10816_v51 = vadd.f32 %v17227_v55, %v1141_v4  ;;  %v7122_v37 = vld [vmem:[%s7409_s16 + $0x390] sm:$0xff]  ;;  %v17229_v6 = vld [vmem:[#allocation130_spill] sm:$0xff]  ;;  %v769_v59 = vld [vmem:[%s15823_s5 + $0x58] sm:$0xff] }
 0x41b   : > { %17226 = vst [vmem:[#allocation182_spill] sm:$0xff] %v10809_v48  ;;  %v1161_v57 = vmul.f32 %v7122_v37, %v17190_v31  ;;  %v10823_v58 = vadd.f32 %v17229_v6, %v1149_v29  ;;  %v17231_v7 = vld [vmem:[#allocation164_spill] sm:$0xff]  ;;  %v7123_v32 = vld [vmem:[%s7409_s16 + $0x3c0] sm:$0xff]  ;;  %v7124_v26 = vld [vmem:[%s7409_s16 + $0x3d8] sm:$0xff] }
 0x41c   : > { %17228 = vst [vmem:[#allocation186_spill] sm:$0xff] %v10816_v51  ;;  %v10826_v48 = vadd.f32 %v17231_v7, %v1152_v2  ;;  %v768_v4 = vld [vmem:[%s15823_s5 + $0x50] sm:$0xff]  ;;  %v1169_v55 = vmul.f32 %v7123_v32, %v17195_v5  ;;  %v1172_v31 = vmul.f32 %v7124_v26, %v17195_v5  ;;  %v17233_v35 = vld [vmem:[#allocation10_spill] sm:$0xff]  ;;  %v10844_v2 = vpop.permute.xlu0 %2871  ;;  %v7125_v6 = vld [vmem:[%s7409_s16 + $0x3c8] sm:$0xff]  ;;  %4931 = vperm.xlu0 %6922, %v769_v59  }
 0x41d   : > { %17230 = vst [vmem:[#allocation187_spill] sm:$0xff] %v10823_v58  ;;  %v10839_v29 = vadd.f32 %v17233_v35, %v1150_v34  ;;  %v17235_v37 = vld [vmem:[#allocation136_spill] sm:$0xff]  ;;  %17237 = vst [vmem:[#allocation205_spill] sm:$0xff] %v10844_v2  ;;  %v17240_v47 = vld [vmem:[#allocation135_spill] sm:$0xff]  ;;  %v10867_v2 = vpop.permute.xlu1 %2877  ;;  %4926 = vperm.xlu1 %6923, %v768_v4  }
 0x41e   : > { %17232 = vst [vmem:[#allocation185_spill] sm:$0xff] %v10826_v48  ;;  %v10842_v7 = vadd.f32 %v17235_v37, %v1151_v54  ;;  %v1170_v48 = vmul.f32 %v7125_v6, %v17195_v5  ;;  %v7126_v58 = vld [vmem:[%s7409_s16 + $0x3d0] sm:$0xff]  ;;  %v10855_v26 = vadd.f32 %v17240_v47, %v1159_v46  ;;  %v17242_v34 = vld [vmem:[#allocation174_spill] sm:$0xff] }
 0x41f   : > { %17234 = vst [vmem:[#allocation189_spill] sm:$0xff] %v10839_v29  ;;  %v1171_v51 = vmul.f32 %v7126_v58, %v17195_v5  ;;  %v17238_v25 = vld [vmem:[#allocation132_spill] sm:$0xff]  ;;  %v10858_v35 = vadd.f32 %v17242_v34, %v1162_v42  ;;  %v17252_v46 = vld [vmem:[#allocation230_spill] sm:$0xff] }
 0x420   : > { %17236 = vst [vmem:[#allocation188_spill] sm:$0xff] %v10842_v7  ;;  %v10852_v32 = vadd.f32 %v17238_v25, %v10629_v19  ;;  %17241 = vst [vmem:[#allocation215_spill] sm:$0xff] %v10855_v26  ;;  %v17244_v54 = vld [vmem:[#allocation12_spill] sm:$0xff]  ;;  %v17246_v7 = vld [vmem:[#allocation227_spill] sm:$0xff] }
 0x421   : > { %17243 = vst [vmem:[#allocation15_spill] sm:$0xff] %v10858_v35  ;;  %v10862_v37 = vadd.f32 %v17244_v54, %v10664_v14  ;;  %v17247_v29 = vld [vmem:[#allocation228_spill] sm:$0xff]  ;;  %v17248_v19 = vld [vmem:[#allocation134_spill] sm:$0xff]  ;;  %v17250_v25 = vld [vmem:[#allocation141_spill] sm:$0xff]  ;;  %v2909_v42 = vsel %vm2907_vm1, %v17246_v7, %v17252_v46 }
 0x422   : > { %17239 = vst [vmem:[#allocation190_spill] sm:$0xff] %v10852_v32  ;;  %v2908_v6 = vsel %vm2907_vm1, %v17247_v29, %v17246_v7  ;;  %v10870_v5 = vadd.f32 %v17248_v19, %v1160_v10  ;;  %v10873_v47 = vadd.f32 %v17250_v25, %v1161_v57  ;;  %v17253_v14 = vld [vmem:[#allocation229_spill] sm:$0xff]  ;;  %v770_v34 = vld [vmem:[%s15823_s5 + $0x60] sm:$0xff]  ;;  %v771_v10 = vld [vmem:[%s15823_s5 + $0x68] sm:$0xff] }
 0x423   : > { %17245 = vst [vmem:[#allocation16_spill] sm:$0xff] %v10862_v37  ;;  %v2910_v58 = vsel %vm2907_vm1, %v17252_v46, %v17253_v14  ;;  %v17254_v4 = vld [vmem:[#allocation148_spill] sm:$0xff]  ;;  %v17258_v19 = vld [vmem:[#allocation157_spill] sm:$0xff]  ;;  %v17263_v35 = vld [vmem:[#allocation142_spill] sm:$0xff]  ;;  %4936 = vperm.xlu1 %6923, %v770_v34   ;;  %4941 = vperm.xlu0 %6922, %v771_v10  }
 0x424   : > { %17249 = vst [vmem:[#allocation208_spill] sm:$0xff] %v10870_v5  ;;  %17251 = vst [vmem:[#allocation221_spill] sm:$0xff] %v10873_v47  ;;  %v10888_v59 = vadd.f32 %v17254_v4, %v1169_v55  ;;  %v17256_v57 = vld [vmem:[#allocation184_spill] sm:$0xff]  ;;  %v10895_v7 = vadd.f32 %v17247_v29, %v17258_v19  ;;  %v17260_v46 = vld [vmem:[#allocation233_spill] sm:$0xff]  ;;  %v10904_v26 = vadd.f32 %v17263_v35, %v1171_v51 }
 0x425   : > { %v10891_v54 = vadd.f32 %v17256_v57, %v1172_v31  ;;  %v17259_v25 = vld [vmem:[#allocation232_spill] sm:$0xff]  ;;  %v17265_v32 = vld [vmem:[#allocation159_spill] sm:$0xff]  ;;  %v17266_v4 = vld [vmem:[#allocation110_spill] sm:$0xff] }
 0x426   : > { %17255 = vst [vmem:[#allocation220_spill] sm:$0xff] %v10888_v59  ;;  %v2911_v37 = vsel %vm2907_vm1, %v17260_v46, %v17259_v25  ;;  %v17261_v47 = vld [vmem:[#allocation140_spill] sm:$0xff]  ;;  %17264 = vst [vmem:[#allocation223_spill] sm:$0xff] %v10904_v26  ;;  %v10907_v55 = vadd.f32 %v2908_v6, %v17265_v32  ;;  %v10911_v31 = vadd.f32 %v17253_v14, %v17266_v4  ;;  %v17269_v19 = vld [vmem:[#allocation235_spill] sm:$0xff]  ;;  %v10928_v14 = vpop.permute.xlu0 %2875 }
 0x427   : > { %17257 = vst [vmem:[#allocation224_spill] sm:$0xff] %v10891_v54  ;;  %v10901_v5 = vadd.f32 %v17261_v47, %v1170_v48  ;;  %v17268_v57 = vld [vmem:[#allocation236_spill] sm:$0xff]  ;;  %v17270_v48 = vld [vmem:[#allocation158_spill] sm:$0xff]  ;;  %v17272_v51 = vld [vmem:[#allocation161_spill] sm:$0xff] }
 0x428   : > { %17267 = vst [vmem:[#allocation116_spill] sm:$0xff] %v10911_v31  ;;  %v2912_v29 = vsel %vm2907_vm1, %v17259_v25, %v17268_v57  ;;  %v2913_v54 = vsel %vm2907_vm1, %v17268_v57, %v17269_v19  ;;  %v10920_v47 = vadd.f32 %v2909_v42, %v17270_v48  ;;  %v10923_v35 = vadd.f32 %v2910_v58, %v17272_v51  ;;  %v17274_v32 = vld [vmem:[#allocation237_spill] sm:$0xff]  ;;  %v17275_v6 = vld [vmem:[#allocation238_spill] sm:$0xff]  ;;  %v17277_v42 = vld [vmem:[#allocation240_spill] sm:$0xff]  ;;  %v10962_v31 = vpop.permute.xlu1 %2881 }
 0x429   : > { %17262 = vst [vmem:[#allocation20_spill] sm:$0xff] %v10901_v5  ;;  %v2914_v26 = vsel %vm2907_vm1, %v17275_v6, %v17274_v32  ;;  %v17276_v4 = vld [vmem:[#allocation153_spill] sm:$0xff]  ;;  %v10935_v57 = vadd.f32 %v2911_v37, %v10452_v49  ;;  %v2915_v58 = vsel %vm2907_vm1, %v17274_v32, %v17277_v42  ;;  %v17278_v48 = vld [vmem:[#allocation239_spill] sm:$0xff]  ;;  %v772_v34 = vld [vmem:[%s15823_s5 + $0x70] sm:$0xff]  ;;  %v10951_v49 = vadd.f32 %v17269_v19, %v10455_v13 }
 0x42a   : > { %17271 = vst [vmem:[#allocation204_spill] sm:$0xff] %v10920_v47  ;;  %17273 = vst [vmem:[#allocation211_spill] sm:$0xff] %v10923_v35  ;;  %v10932_v25 = vadd.f32 %v17260_v46, %v17276_v4  ;;  %v2916_v51 = vsel %vm2907_vm1, %v17277_v42, %v17278_v48  ;;  %v773_v10 = vld [vmem:[%s15823_s5 + $0x78] sm:$0xff]  ;;  %v10954_v37 = vadd.f32 %v2912_v29, %v10462_v16  ;;  %v17283_v4 = vld [vmem:[#allocation242_spill] sm:$0xff]  ;;  %4946 = vperm.xlu1 %6923, %v772_v34  }
 0x42b   : > { %17279 = vst [vmem:[#allocation117_spill] sm:$0xff] %v10951_v49  ;;  %v10957_v46 = vadd.f32 %v2913_v54, %v10469_v0  ;;  %v17282_v32 = vld [vmem:[#allocation241_spill] sm:$0xff]  ;;  %v17284_v5 = vld [vmem:[#allocation124_spill] sm:$0xff]  ;;  %v17288_v29 = vld [vmem:[#allocation243_spill] sm:$0xff]  ;;  %4951 = vperm.xlu0 %6922, %v773_v10  }
 0x42c   : > { %17280 = vst [vmem:[#allocation120_spill] sm:$0xff] %v10954_v37  ;;  %v2917_v42 = vsel %vm2907_vm1, %v17283_v4, %v17282_v32  ;;  %v10966_v47 = vadd.f32 %v17275_v6, %v17284_v5  ;;  %v17286_v35 = vld [vmem:[#allocation128_spill] sm:$0xff]  ;;  %v17289_v54 = vld [vmem:[#allocation17_spill] sm:$0xff]  ;;  %v17291_v49 = vld [vmem:[#allocation18_spill] sm:$0xff] }
 0x42d   : > { %17281 = vst [vmem:[#allocation121_spill] sm:$0xff] %v10957_v46  ;;  %v10969_v59 = vadd.f32 %v2914_v26, %v17286_v35  ;;  %v17287_v13 = vld [vmem:[#allocation244_spill] sm:$0xff]  ;;  %v10979_v19 = vadd.f32 %v17278_v48, %v17289_v54  ;;  %v10982_v37 = vadd.f32 %v2915_v58, %v17291_v49  ;;  %v17293_v5 = vld [vmem:[#allocation21_spill] sm:$0xff]  ;;  %v17295_v26 = vld [vmem:[#allocation131_spill] sm:$0xff] }
 0x42e   : > { %17285 = vst [vmem:[#allocation212_spill] sm:$0xff] %v10966_v47  ;;  %v2918_v16 = vsel %vm2907_vm1, %v17282_v32, %v17287_v13  ;;  %v2919_v0 = vsel %vm2907_vm1, %v17287_v13, %v17288_v29  ;;  %v10985_v6 = vadd.f32 %v2916_v51, %v17293_v5  ;;  %v10989_v35 = vadd.f32 %v17283_v4, %v17295_v26  ;;  %v17296_v32 = vld [vmem:[#allocation29_spill] sm:$0xff]  ;;  %v17298_v47 = vld [vmem:[#allocation246_spill] sm:$0xff]  ;;  %v17299_v54 = vld [vmem:[#allocation248_spill] sm:$0xff] }
 0x42f   : > { %17290 = vst [vmem:[#allocation217_spill] sm:$0xff] %v10979_v19  ;;  %17292 = vst [vmem:[#allocation218_spill] sm:$0xff] %v10982_v37  ;;  %v10992_v46 = vadd.f32 %v2917_v42, %v17296_v32  ;;  %v17297_v13 = vld [vmem:[#allocation245_spill] sm:$0xff]  ;;  %v17302_v34 = vld [vmem:[#allocation26_spill] sm:$0xff]  ;;  %v11013_v32 = vpop.permute.xlu0 %2879  ;;  %v11017_v19 = vadd.f32 %v17298_v47, %v10486_v15 }
 0x430   : > { %17294 = vst [vmem:[#allocation222_spill] sm:$0xff] %v10985_v6  ;;  %v2920_v48 = vsel %vm2907_vm1, %v17298_v47, %v17297_v13  ;;  %v2921_v58 = vsel %vm2907_vm1, %v17297_v13, %v17299_v54  ;;  %v17300_v49 = vld [vmem:[#allocation225_spill] sm:$0xff]  ;;  %v11005_v10 = vadd.f32 %v2918_v16, %v17302_v34  ;;  %v17304_v4 = vld [vmem:[#allocation28_spill] sm:$0xff]  ;;  %v17306_v42 = vld [vmem:[#allocation247_spill] sm:$0xff]  ;;  %v11041_v6 = vpop.permute.xlu1 %2885 }
 0x431   : > { %v11002_v51 = vadd.f32 %v17288_v29, %v17300_v49  ;;  %v11008_v5 = vadd.f32 %v2919_v0, %v17304_v4  ;;  %v2922_v26 = vsel %vm2907_vm1, %v17299_v54, %v17306_v42  ;;  %17307 = vst [vmem:[#allocation48_spill] sm:$0xff] %v11017_v19  ;;  %v17308_v13 = vld [vmem:[#allocation249_spill] sm:$0xff]  ;;  %v17309_v37 = vld [vmem:[#allocation250_spill] sm:$0xff]  ;;  %v17310_v49 = vld [vmem:[#allocation252_spill] sm:$0xff]  ;;  %v11036_v15 = vadd.f32 %v2921_v58, %v10504_v23 }
 0x432   : > { %17303 = vst [vmem:[#allocation57_spill] sm:$0xff] %v11005_v10  ;;  %v2923_v29 = vsel %vm2907_vm1, %v17309_v37, %v17308_v13  ;;  %v2924_v16 = vsel %vm2907_vm1, %v17308_v13, %v17310_v49  ;;  %v17311_v0 = vld [vmem:[#allocation251_spill] sm:$0xff]  ;;  %v17312_v4 = vld [vmem:[#allocation166_spill] sm:$0xff]  ;;  %v17315_v47 = vld [vmem:[#allocation253_spill] sm:$0xff]  ;;  %v11044_v13 = vadd.f32 %v2922_v26, %v10511_v56 }
 0x433   : > { %17301 = vst [vmem:[#allocation226_spill] sm:$0xff] %v11002_v51  ;;  %17305 = vst [vmem:[#allocation80_spill] sm:$0xff] %v11008_v5  ;;  %v2925_v34 = vsel %vm2907_vm1, %v17310_v49, %v17311_v0  ;;  %v11029_v54 = vadd.f32 %v2920_v48, %v17312_v4  ;;  %v11033_v51 = vadd.f32 %v17306_v42, %v10501_v52  ;;  %v17316_v10 = vld [vmem:[#allocation254_spill] sm:$0xff]  ;;  %v17318_v49 = vld [vmem:[#allocation25_spill] sm:$0xff] }
 0x434   : > { %17314 = vst [vmem:[#allocation58_spill] sm:$0xff] %v11036_v15  ;;  %v2926_v5 = vsel %vm2907_vm1, %v17316_v10, %v17315_v47  ;;  %17317 = vst [vmem:[#allocation61_spill] sm:$0xff] %v11044_v13  ;;  %v11048_v48 = vadd.f32 %v17309_v37, %v17318_v49  ;;  %v17319_v4 = vld [vmem:[#allocation256_spill] sm:$0xff]  ;;  %v17320_v42 = vld [vmem:[#allocation255_spill] sm:$0xff] }
 0x435   : > { %17313 = vst [vmem:[#allocation51_spill] sm:$0xff] %v11033_v51  ;;  %v2927_v52 = vsel %vm2907_vm1, %v17315_v47, %v17319_v4  ;;  %v2928_v23 = vsel %vm2907_vm1, %v17319_v4, %v17320_v42  ;;  %v17321_v58 = vld [vmem:[#allocation24_spill] sm:$0xff]  ;;  %v17325_v56 = vld [vmem:[#allocation31_spill] sm:$0xff]  ;;  %v17327_v37 = vld [vmem:[#allocation30_spill] sm:$0xff]  ;;  %v11071_v47 = vadd.f32 %v17316_v10, %v10537_v18  ;;  %v11074_v13 = vadd.f32 %v2926_v5, %v10540_v40  ;;  %v11095_v5 = vpop.permute.xlu0 %2883 }
 0x436   : > { %v11057_v51 = vadd.f32 %v2923_v29, %v17321_v58  ;;  %v17323_v15 = vld [vmem:[#allocation32_spill] sm:$0xff]  ;;  %v11064_v26 = vadd.f32 %v2924_v16, %v17325_v56  ;;  %v11067_v49 = vadd.f32 %v2925_v34, %v17327_v37  ;;  %v17330_v4 = vld [vmem:[#allocation257_spill] sm:$0xff]  ;;  %v17331_v29 = vld [vmem:[#allocation258_spill] sm:$0xff]  ;;  %v11084_v16 = vadd.f32 %v17320_v42, %v10551_v62 }
 0x437   : > { %v11061_v19 = vadd.f32 %v17311_v0, %v17323_v15  ;;  %17329 = vst [vmem:[#allocation88_spill] sm:$0xff] %v11071_v47  ;;  %v2929_v58 = vsel %vm2907_vm1, %v17331_v29, %v17330_v4  ;;  %v11087_v34 = vadd.f32 %v2927_v52, %v10554_v41  ;;  %v11090_v18 = vadd.f32 %v2928_v23, %v10561_v38  ;;  %v17336_v40 = vld [vmem:[#allocation259_spill] sm:$0xff]  ;;  %v17337_v15 = vld [vmem:[#allocation33_spill] sm:$0xff]  ;;  %v17340_v42 = vld [vmem:[#allocation264_spill] sm:$0xff] }
 0x438   : > { %17322 = vst [vmem:[#allocation90_spill] sm:$0xff] %v11057_v51  ;;  %17326 = vst [vmem:[#allocation60_spill] sm:$0xff] %v11064_v26  ;;  %v17332_v51 = vld [vmem:[#allocation260_spill] sm:$0xff]  ;;  %v11099_v56 = vadd.f32 %v17331_v29, %v17337_v15  ;;  %v17338_v37 = vld [vmem:[#allocation261_spill] sm:$0xff] }
 0x439   : > { %17324 = vst [vmem:[#allocation67_spill] sm:$0xff] %v11061_v19  ;;  %17328 = vst [vmem:[#allocation115_spill] sm:$0xff] %v11067_v49  ;;  %v2930_v0 = vsel %vm2907_vm1, %v17330_v4, %v17332_v51  ;;  %v2931_v10 = vsel %vm2907_vm1, %v17332_v51, %v17336_v40  ;;  %v17339_v4 = vld [vmem:[#allocation262_spill] sm:$0xff]  ;;  %v2933_v41 = vsel %vm2907_vm1, %v17338_v37, %v17340_v42  ;;  %v17341_v38 = vld [vmem:[#allocation263_spill] sm:$0xff]  ;;  %v11123_v49 = vpop.permute.xlu1 %2889 }
 0x43a   : > { %17333 = vst [vmem:[#allocation91_spill] sm:$0xff] %v11084_v16  ;;  %17334 = vst [vmem:[#allocation111_spill] sm:$0xff] %v11087_v34  ;;  %v2932_v62 = vsel %vm2907_vm1, %v17339_v4, %v17338_v37  ;;  %v2934_v52 = vsel %vm2907_vm1, %v17340_v42, %v17341_v38  ;;  %v17342_v23 = vld [vmem:[#allocation34_spill] sm:$0xff]  ;;  %v17343_v16 = vld [vmem:[#allocation43_spill] sm:$0xff] }
 0x43b   : > { %17335 = vst [vmem:[#allocation154_spill] sm:$0xff] %v11090_v18  ;;  %v11111_v51 = vadd.f32 %v2929_v58, %v17342_v23  ;;  %v11115_v19 = vadd.f32 %v17336_v40, %v17343_v16  ;;  %v17344_v29 = vld [vmem:[#allocation37_spill] sm:$0xff]  ;;  %v17347_v18 = vld [vmem:[#allocation266_spill] sm:$0xff]  ;;  %v11130_v58 = vadd.f32 %v17339_v4, %v10574_v50  ;;  %v17349_v42 = vld [vmem:[#allocation268_spill] sm:$0xff]  ;;  %v11139_v23 = vadd.f32 %v2932_v62, %v10590_v24 }
 0x43c   : > { %v11118_v15 = vadd.f32 %v2930_v0, %v17344_v29  ;;  %v17346_v34 = vld [vmem:[#allocation265_spill] sm:$0xff]  ;;  %v17348_v37 = vld [vmem:[#allocation42_spill] sm:$0xff]  ;;  %v17350_v40 = vld [vmem:[#allocation267_spill] sm:$0xff]  ;;  %v11143_v29 = vadd.f32 %v17341_v38, %v10593_v12  ;;  %v11149_v50 = vadd.f32 %v2934_v52, %v10607_v22 }
 0x43d   : > { %v2935_v26 = vsel %vm2907_vm1, %v17347_v18, %v17346_v34  ;;  %v11126_v47 = vadd.f32 %v2931_v10, %v17348_v37  ;;  %v2936_v16 = vsel %vm2907_vm1, %v17346_v34, %v17349_v42  ;;  %v2937_v0 = vsel %vm2907_vm1, %v17349_v42, %v17350_v40  ;;  %17351 = vst [vmem:[#allocation125_spill] sm:$0xff] %v11139_v23  ;;  %v17353_v4 = vld [vmem:[#allocation45_spill] sm:$0xff]  ;;  %v17354_v37 = vld [vmem:[#allocation44_spill] sm:$0xff]  ;;  %v17357_v24 = vld [vmem:[#allocation270_spill] sm:$0xff] }
 0x43e   : > { %17345 = vst [vmem:[#allocation114_spill] sm:$0xff] %v11118_v15  ;;  %17352 = vst [vmem:[#allocation119_spill] sm:$0xff] %v11143_v29  ;;  %v11146_v10 = vadd.f32 %v2933_v41, %v10604_v36  ;;  %v11153_v34 = vadd.f32 %v17347_v18, %v17353_v4  ;;  %v11156_v15 = vadd.f32 %v2935_v26, %v17354_v37  ;;  %v17356_v42 = vld [vmem:[#allocation269_spill] sm:$0xff]  ;;  %v17358_v23 = vld [vmem:[#allocation272_spill] sm:$0xff]  ;;  %v11177_v37 = vpop.permute.xlu0 %2887 }
 0x43f   : > { %v2938_v62 = vsel %vm2907_vm1, %v17357_v24, %v17356_v42  ;;  %v2939_v12 = vsel %vm2907_vm1, %v17356_v42, %v17358_v23  ;;  %v17359_v36 = vld [vmem:[#allocation41_spill] sm:$0xff]  ;;  %v17361_v22 = vld [vmem:[#allocation38_spill] sm:$0xff]  ;;  %v17363_v18 = vld [vmem:[#allocation47_spill] sm:$0xff] }
 0x440   : > { %17355 = vst [vmem:[#allocation130_spill] sm:$0xff] %v11156_v15  ;;  %v11166_v41 = vadd.f32 %v17350_v40, %v17359_v36  ;;  %v11169_v38 = vadd.f32 %v2936_v16, %v17361_v22  ;;  %v11172_v52 = vadd.f32 %v2937_v0, %v17363_v18  ;;  %v17365_v26 = vld [vmem:[#allocation271_spill] sm:$0xff]  ;;  %v11181_v15 = vadd.f32 %v17357_v24, %v10615_v61  ;;  %v17366_v42 = vld [vmem:[#allocation273_spill] sm:$0xff]  ;;  %v17367_v29 = vld [vmem:[#allocation274_spill] sm:$0xff] }
 0x441   : > { %v2940_v4 = vsel %vm2907_vm1, %v17358_v23, %v17365_v26  ;;  %v2941_v40 = vsel %vm2907_vm1, %v17367_v29, %v17366_v42  ;;  %v17368_v36 = vld [vmem:[#allocation276_spill] sm:$0xff]  ;;  %v17369_v0 = vld [vmem:[#allocation275_spill] sm:$0xff]  ;;  %v11193_v23 = vadd.f32 %v2938_v62, %v10623_v30  ;;  %v11197_v18 = vadd.f32 %v17365_v26, %v10626_v53  ;;  %v17373_v24 = vld [vmem:[#allocation277_spill] sm:$0xff] }
 0x442   : > { %17360 = vst [vmem:[#allocation164_spill] sm:$0xff] %v11166_v41  ;;  %17362 = vst [vmem:[#allocation10_spill] sm:$0xff] %v11169_v38  ;;  %v2942_v16 = vsel %vm2907_vm1, %v17366_v42, %v17368_v36  ;;  %v2943_v22 = vsel %vm2907_vm1, %v17368_v36, %v17369_v0  ;;  %v11200_v61 = vadd.f32 %v2939_v12, %v10640_v63  ;;  %v17374_v41 = vld [vmem:[#allocation278_spill] sm:$0xff]  ;;  %v11205_v38 = vpop.permute.xlu1 %2893  ;;  %v17376_v36 = vld [vmem:[#allocation40_spill] sm:$0xff] }
 0x443   : > { %17364 = vst [vmem:[#allocation136_spill] sm:$0xff] %v11172_v52  ;;  %17370 = vst [vmem:[#allocation132_spill] sm:$0xff] %v11193_v23  ;;  %v2944_v52 = vsel %vm2907_vm1, %v17374_v41, %v17373_v24  ;;  %v11208_v42 = vadd.f32 %v2940_v4, %v10643_v8  ;;  %v11212_v30 = vadd.f32 %v17367_v29, %v17376_v36  ;;  %v17377_v62 = vld [vmem:[#allocation280_spill] sm:$0xff]  ;;  %v17378_v26 = vld [vmem:[#allocation279_spill] sm:$0xff] }
 0x444   : > { %17371 = vst [vmem:[#allocation135_spill] sm:$0xff] %v11197_v18  ;;  %17372 = vst [vmem:[#allocation174_spill] sm:$0xff] %v11200_v61  ;;  %v2945_v53 = vsel %vm2907_vm1, %v17373_v24, %v17377_v62  ;;  %v2946_v63 = vsel %vm2907_vm1, %v17377_v62, %v17378_v26  ;;  %v17379_v12 = vld [vmem:[#allocation52_spill] sm:$0xff]  ;;  %v17381_v61 = vld [vmem:[#allocation46_spill] sm:$0xff]  ;;  %v11235_v24 = vadd.f32 %v17374_v41, %v10677_v9 }
 0x445   : > { %17375 = vst [vmem:[#allocation12_spill] sm:$0xff] %v11208_v42  ;;  %v11221_v18 = vadd.f32 %v2941_v40, %v17379_v12  ;;  %v11225_v23 = vadd.f32 %v17369_v0, %v17381_v61  ;;  %v17383_v8 = vld [vmem:[#allocation53_spill] sm:$0xff]  ;;  %v11238_v42 = vadd.f32 %v2944_v52, %v10680_v28  ;;  %v17390_v40 = vld [vmem:[#allocation282_spill] sm:$0xff]  ;;  %v11254_v9 = vadd.f32 %v2946_v63, %v10707_v3  ;;  %v17395_v28 = vld [vmem:[#allocation283_spill] sm:$0xff]  ;;  %v11259_v52 = vpop.permute.xlu0 %2891 }
 0x446   : > { %v11228_v4 = vadd.f32 %v2942_v16, %v17383_v8  ;;  %v17385_v29 = vld [vmem:[#allocation49_spill] sm:$0xff]  ;;  %17387 = vst [vmem:[#allocation230_spill] sm:$0xff] %v11235_v24  ;;  %v11248_v16 = vadd.f32 %v17378_v26, %v10693_v20  ;;  %v17396_v61 = vld [vmem:[#allocation50_spill] sm:$0xff]  ;;  %v17400_v26 = vld [vmem:[#allocation103_spill] sm:$0xff] }
 0x447   : > { %17380 = vst [vmem:[#allocation227_spill] sm:$0xff] %v11221_v18  ;;  %17382 = vst [vmem:[#allocation228_spill] sm:$0xff] %v11225_v23  ;;  %v11231_v36 = vadd.f32 %v2943_v22, %v17385_v29  ;;  %v17389_v62 = vld [vmem:[#allocation281_spill] sm:$0xff]  ;;  %v17391_v18 = vld [vmem:[#allocation284_spill] sm:$0xff]  ;;  %v11251_v22 = vadd.f32 %v2945_v53, %v10696_v45  ;;  %v11263_v8 = vadd.f32 %v17390_v40, %v17396_v61 }
 0x448   : > { %17384 = vst [vmem:[#allocation134_spill] sm:$0xff] %v11228_v4  ;;  %17388 = vst [vmem:[#allocation229_spill] sm:$0xff] %v11238_v42  ;;  %v2947_v12 = vsel %vm2907_vm1, %v17390_v40, %v17389_v62  ;;  %v2948_v0 = vsel %vm2907_vm1, %v17389_v62, %v17391_v18  ;;  %v2949_v41 = vsel %vm2907_vm1, %v17391_v18, %v17395_v28  ;;  %v17398_v29 = vld [vmem:[#allocation191_spill] sm:$0xff]  ;;  %v17399_v62 = vld [vmem:[#allocation285_spill] sm:$0xff] }
 0x449   : > { %17386 = vst [vmem:[#allocation141_spill] sm:$0xff] %v11231_v36  ;;  %17392 = vst [vmem:[#allocation148_spill] sm:$0xff] %v11248_v16  ;;  %v2950_v20 = vsel %vm2907_vm1, %v17399_v62, %v17398_v29  ;;  %v2951_v45 = vsel %vm2907_vm1, %v17398_v29, %v17400_v26  ;;  %v17401_v3 = vld [vmem:[#allocation102_spill] sm:$0xff]  ;;  %v17404_v16 = vld [vmem:[#allocation56_spill] sm:$0xff]  ;;  %v11287_v36 = vpop.permute.xlu1 %2897 }
 0x44a   : > { %17393 = vst [vmem:[#allocation184_spill] sm:$0xff] %v11251_v22  ;;  %17394 = vst [vmem:[#allocation157_spill] sm:$0xff] %v11254_v9  ;;  %v2952_v53 = vsel %vm2907_vm1, %v17400_v26, %v17401_v3  ;;  %v17402_v63 = vld [vmem:[#allocation62_spill] sm:$0xff]  ;;  %v11279_v23 = vadd.f32 %v17395_v28, %v17404_v16  ;;  %v17406_v40 = vld [vmem:[#allocation63_spill] sm:$0xff] }
 0x44b   : > { %17397 = vst [vmem:[#allocation232_spill] sm:$0xff] %v11263_v8  ;;  %v11275_v18 = vadd.f32 %v2947_v12, %v17402_v63  ;;  %v11282_v61 = vadd.f32 %v2948_v0, %v17406_v40  ;;  %v17408_v22 = vld [vmem:[#allocation192_spill] sm:$0xff]  ;;  %v17409_v4 = vld [vmem:[#allocation195_spill] sm:$0xff]  ;;  %v11294_v12 = vadd.f32 %v17399_v62, %v10718_v21  ;;  %v17413_v26 = vld [vmem:[#allocation198_spill] sm:$0xff]  ;;  %v11303_v63 = vadd.f32 %v2950_v20, %v10726_v33 }
 0x44c   : > { %17405 = vst [vmem:[#allocation140_spill] sm:$0xff] %v11279_v23  ;;  %v2953_v9 = vsel %vm2907_vm1, %v17409_v4, %v17408_v22  ;;  %v17410_v29 = vld [vmem:[#allocation59_spill] sm:$0xff]  ;;  %v2954_v16 = vsel %vm2907_vm1, %v17408_v22, %v17413_v26  ;;  %v11307_v40 = vadd.f32 %v17401_v3, %v10729_v11  ;;  %v11313_v21 = vadd.f32 %v2952_v53, %v10745_v39  ;;  %v17419_v62 = vld [vmem:[#allocation72_spill] sm:$0xff]  ;;  %v17424_v33 = vld [vmem:[#allocation214_spill] sm:$0xff] }
 0x44d   : > { %17403 = vst [vmem:[#allocation233_spill] sm:$0xff] %v11275_v18  ;;  %17407 = vst [vmem:[#allocation142_spill] sm:$0xff] %v11282_v61  ;;  %v11290_v8 = vadd.f32 %v2949_v41, %v17410_v29  ;;  %v17414_v28 = vld [vmem:[#allocation199_spill] sm:$0xff]  ;;  %v11310_v41 = vadd.f32 %v2951_v45, %v10742_v43  ;;  %v11317_v22 = vadd.f32 %v17409_v4, %v17419_v62  ;;  %v17421_v29 = vld [vmem:[#allocation73_spill] sm:$0xff] }
 0x44e   : > { %17412 = vst [vmem:[#allocation110_spill] sm:$0xff] %v11294_v12  ;;  %v2955_v0 = vsel %vm2907_vm1, %v17413_v26, %v17414_v28  ;;  %17415 = vst [vmem:[#allocation236_spill] sm:$0xff] %v11303_v63  ;;  %v11320_v23 = vadd.f32 %v2953_v9, %v17421_v29  ;;  %v17423_v26 = vld [vmem:[#allocation14_spill] sm:$0xff]  ;;  %v17426_v43 = vld [vmem:[#allocation69_spill] sm:$0xff]  ;;  %v11341_v29 = vpop.permute.xlu0 %2895 }
 0x44f   : > { %17411 = vst [vmem:[#allocation159_spill] sm:$0xff] %v11290_v8  ;;  %17416 = vst [vmem:[#allocation235_spill] sm:$0xff] %v11307_v40  ;;  %v2956_v20 = vsel %vm2907_vm1, %v17424_v33, %v17423_v26  ;;  %v17425_v61 = vld [vmem:[#allocation234_spill] sm:$0xff]  ;;  %v11330_v45 = vadd.f32 %v17414_v28, %v17426_v43  ;;  %v17428_v39 = vld [vmem:[#allocation75_spill] sm:$0xff] }
 0x450   : > { %17417 = vst [vmem:[#allocation158_spill] sm:$0xff] %v11310_v41  ;;  %17418 = vst [vmem:[#allocation161_spill] sm:$0xff] %v11313_v21  ;;  %v2957_v11 = vsel %vm2907_vm1, %v17423_v26, %v17425_v61  ;;  %v11333_v3 = vadd.f32 %v2954_v16, %v17428_v39  ;;  %v17430_v4 = vld [vmem:[#allocation74_spill] sm:$0xff]  ;;  %v17432_v9 = vld [vmem:[#allocation231_spill] sm:$0xff] }
 0x451   : > { %17420 = vst [vmem:[#allocation237_spill] sm:$0xff] %v11317_v22  ;;  %17422 = vst [vmem:[#allocation238_spill] sm:$0xff] %v11320_v23  ;;  %v11336_v53 = vadd.f32 %v2955_v0, %v17430_v4  ;;  %v2958_v62 = vsel %vm2907_vm1, %v17425_v61, %v17432_v9  ;;  %v17433_v40 = vld [vmem:[#allocation150_spill] sm:$0xff]  ;;  %v17435_v26 = vld [vmem:[#allocation127_spill] sm:$0xff]  ;;  %v11369_v23 = vpop.permute.xlu1 %2901 }
 0x452   : > { %17427 = vst [vmem:[#allocation153_spill] sm:$0xff] %v11330_v45  ;;  %17429 = vst [vmem:[#allocation240_spill] sm:$0xff] %v11333_v3  ;;  %v11345_v41 = vadd.f32 %v17424_v33, %v17433_v40  ;;  %v17436_v21 = vld [vmem:[#allocation19_spill] sm:$0xff]  ;;  %v17438_v0 = vld [vmem:[#allocation22_spill] sm:$0xff] }
 0x453   : > { %17431 = vst [vmem:[#allocation239_spill] sm:$0xff] %v11336_v53  ;;  %v2959_v28 = vsel %vm2907_vm1, %v17436_v21, %v17435_v26  ;;  %v17437_v43 = vld [vmem:[#allocation23_spill] sm:$0xff]  ;;  %v17439_v4 = vld [vmem:[#allocation106_spill] sm:$0xff] }
 0x454   : > { %17434 = vst [vmem:[#allocation241_spill] sm:$0xff] %v11345_v41  ;;  %v2960_v16 = vsel %vm2907_vm1, %v17435_v26, %v17437_v43  ;;  %v2961_v39 = vsel %vm2907_vm1, %v17437_v43, %v17438_v0  ;;  %v11357_v61 = vadd.f32 %v2956_v20, %v17439_v4  ;;  %v17441_v45 = vld [vmem:[#allocation203_spill] sm:$0xff]  ;;  %v17443_v40 = vld [vmem:[#allocation202_spill] sm:$0xff]  ;;  %v17447_v26 = vld [vmem:[#allocation13_spill] sm:$0xff] }
 0x455   : > { %v11361_v3 = vadd.f32 %v17432_v9, %v17441_v45  ;;  %v11364_v33 = vadd.f32 %v2957_v11, %v17443_v40  ;;  %v17445_v41 = vld [vmem:[#allocation27_spill] sm:$0xff]  ;;  %v11372_v22 = vadd.f32 %v2958_v62, %v17447_v26  ;;  %v17449_v43 = vld [vmem:[#allocation160_spill] sm:$0xff]  ;;  %v17453_v40 = vld [vmem:[#allocation162_spill] sm:$0xff] }
 0x456   : > { %17440 = vst [vmem:[#allocation242_spill] sm:$0xff] %v11357_v61  ;;  %v17446_v53 = vld [vmem:[#allocation35_spill] sm:$0xff]  ;;  %v11376_v20 = vadd.f32 %v17436_v21, %v17449_v43  ;;  %v17451_v4 = vld [vmem:[#allocation36_spill] sm:$0xff]  ;;  %v17457_v62 = vld [vmem:[#allocation177_spill] sm:$0xff] }
 0x457   : > { %17442 = vst [vmem:[#allocation124_spill] sm:$0xff] %v11361_v3  ;;  %17444 = vst [vmem:[#allocation128_spill] sm:$0xff] %v11364_v33  ;;  %v2962_v8 = vsel %vm2907_vm1, %v17446_v53, %v17445_v41  ;;  %v2963_v45 = vsel %vm2907_vm1, %v17445_v41, %v17451_v4  ;;  %v17452_v9 = vld [vmem:[#allocation39_spill] sm:$0xff]  ;;  %v11385_v3 = vadd.f32 %v2959_v28, %v17453_v40  ;;  %v17466_v28 = vld [vmem:[#allocation54_spill] sm:$0xff] }
 0x458   : > { %17448 = vst [vmem:[#allocation244_spill] sm:$0xff] %v11372_v22  ;;  %17450 = vst [vmem:[#allocation243_spill] sm:$0xff] %v11376_v20  ;;  %v2964_v11 = vsel %vm2907_vm1, %v17451_v4, %v17452_v9  ;;  %v17455_v33 = vld [vmem:[#allocation207_spill] sm:$0xff]  ;;  %v11392_v26 = vadd.f32 %v2960_v16, %v17457_v62  ;;  %v17461_v22 = vld [vmem:[#allocation68_spill] sm:$0xff] }
 0x459   : > { %17454 = vst [vmem:[#allocation17_spill] sm:$0xff] %v11385_v3  ;;  %v11389_v61 = vadd.f32 %v17438_v0, %v17455_v33  ;;  %v17459_v21 = vld [vmem:[#allocation179_spill] sm:$0xff]  ;;  %v11399_v41 = vadd.f32 %v17446_v53, %v17461_v22  ;;  %v17467_v3 = vld [vmem:[#allocation64_spill] sm:$0xff]  ;;  %v17468_v16 = vld [vmem:[#allocation70_spill] sm:$0xff] }
 0x45a   : > { %17458 = vst [vmem:[#allocation21_spill] sm:$0xff] %v11392_v26  ;;  %v11395_v43 = vadd.f32 %v2961_v39, %v17459_v21  ;;  %v17463_v20 = vld [vmem:[#allocation71_spill] sm:$0xff]  ;;  %v11412_v33 = vadd.f32 %v17452_v9, %v17468_v16  ;;  %v17470_v39 = vld [vmem:[#allocation85_spill] sm:$0xff]  ;;  %v11423_v21 = vpop.permute.xlu0 %2899  ;;  %v17570_v24 = vld [vmem:[#allocation182_spill] sm:$0xff] }
 0x45b   : > { %17456 = vst [vmem:[#allocation18_spill] sm:$0xff] %v11389_v61  ;;  %17462 = vst [vmem:[#allocation29_spill] sm:$0xff] %v11399_v41  ;;  %v11402_v63 = vadd.f32 %v2962_v8, %v17463_v20  ;;  %v17465_v4 = vld [vmem:[#allocation55_spill] sm:$0xff]  ;;  %v11415_v62 = vadd.f32 %v2963_v45, %v17470_v39  ;;  %v17474_v8 = vld [vmem:[#allocation65_spill] sm:$0xff] }
 0x45c   : > { %17460 = vst [vmem:[#allocation131_spill] sm:$0xff] %v11395_v43  ;;  %v2965_v40 = vsel %vm2907_vm1, %v17466_v28, %v17465_v4  ;;  %v2966_v0 = vsel %vm2907_vm1, %v17465_v4, %v17467_v3  ;;  %17469 = vst [vmem:[#allocation246_spill] sm:$0xff] %v11412_v33  ;;  %v17472_v22 = vld [vmem:[#allocation79_spill] sm:$0xff]  ;;  %v2967_v20 = vsel %vm2907_vm1, %v17467_v3, %v17474_v8  ;;  %v17475_v61 = vld [vmem:[#allocation76_spill] sm:$0xff] }
 0x45d   : > { %17464 = vst [vmem:[#allocation245_spill] sm:$0xff] %v11402_v63  ;;  %17471 = vst [vmem:[#allocation248_spill] sm:$0xff] %v11415_v62  ;;  %v11418_v53 = vadd.f32 %v2964_v11, %v17472_v22  ;;  %v11427_v26 = vadd.f32 %v17466_v28, %v17475_v61  ;;  %v17477_v4 = vld [vmem:[#allocation66_spill] sm:$0xff]  ;;  %v17478_v43 = vld [vmem:[#allocation77_spill] sm:$0xff]  ;;  %v11451_v63 = vpop.permute.xlu1 %2905 }
 0x45e   : > { %v2968_v9 = vsel %vm2907_vm1, %v17478_v43, %v17477_v4  ;;  %v17479_v16 = vld [vmem:[#allocation83_spill] sm:$0xff]  ;;  %v17480_v11 = vld [vmem:[#allocation82_spill] sm:$0xff]  ;;  %v17481_v22 = vld [vmem:[#allocation84_spill] sm:$0xff] }
 0x45f   : > { %17473 = vst [vmem:[#allocation225_spill] sm:$0xff] %v11418_v53  ;;  %17476 = vst [vmem:[#allocation26_spill] sm:$0xff] %v11427_v26  ;;  %v2969_v45 = vsel %vm2907_vm1, %v17477_v4, %v17479_v16  ;;  %v2970_v39 = vsel %vm2907_vm1, %v17479_v16, %v17480_v11  ;;  %v11439_v3 = vadd.f32 %v2965_v40, %v17481_v22  ;;  %v17483_v33 = vld [vmem:[#allocation87_spill] sm:$0xff]  ;;  %v17485_v61 = vld [vmem:[#allocation78_spill] sm:$0xff] }
 0x460   : > { %v11443_v62 = vadd.f32 %v17474_v8, %v17483_v33  ;;  %v11446_v28 = vadd.f32 %v2966_v0, %v17485_v61  ;;  %v17487_v53 = vld [vmem:[#allocation92_spill] sm:$0xff]  ;;  %v17488_v26 = vld [vmem:[#allocation93_spill] sm:$0xff]  ;;  %v17491_v16 = vld [vmem:[#allocation178_spill] sm:$0xff] }
 0x461   : > { %17482 = vst [vmem:[#allocation28_spill] sm:$0xff] %v11439_v3  ;;  %v2971_v41 = vsel %vm2907_vm1, %v17488_v26, %v17487_v53  ;;  %v17489_v4 = vld [vmem:[#allocation81_spill] sm:$0xff]  ;;  %v11458_v40 = vadd.f32 %v17478_v43, %v17491_v16  ;;  %v17494_v8 = vld [vmem:[#allocation98_spill] sm:$0xff]  ;;  %v11477_v43 = vadd.f32 %v2970_v39, %v10754_v27  ;;  %v17501_v16 = vld [vmem:[#allocation95_spill] sm:$0xff] }
 0x462   : > { %17484 = vst [vmem:[#allocation247_spill] sm:$0xff] %v11443_v62  ;;  %17486 = vst [vmem:[#allocation249_spill] sm:$0xff] %v11446_v28  ;;  %v11454_v12 = vadd.f32 %v2967_v20, %v17489_v4  ;;  %v17493_v22 = vld [vmem:[#allocation101_spill] sm:$0xff]  ;;  %v17495_v61 = vld [vmem:[#allocation210_spill] sm:$0xff]  ;;  %v11471_v28 = vadd.f32 %v17480_v11, %v10710_v44 }
 0x463   : > { %17492 = vst [vmem:[#allocation252_spill] sm:$0xff] %v11458_v40  ;;  %v2972_v33 = vsel %vm2907_vm1, %v17487_v53, %v17493_v22  ;;  %v2973_v0 = vsel %vm2907_vm1, %v17493_v22, %v17494_v8  ;;  %v11467_v62 = vadd.f32 %v2968_v9, %v17495_v61  ;;  %v17498_v20 = vld [vmem:[#allocation170_spill] sm:$0xff]  ;;  %17500 = vst [vmem:[#allocation254_spill] sm:$0xff] %v11477_v43  ;;  %v17505_v22 = vld [vmem:[#allocation123_spill] sm:$0xff] }
 0x464   : > { %17490 = vst [vmem:[#allocation250_spill] sm:$0xff] %v11454_v12  ;;  %17497 = vst [vmem:[#allocation166_spill] sm:$0xff] %v11471_v28  ;;  %v11474_v4 = vadd.f32 %v2969_v45, %v17498_v20  ;;  %v11481_v53 = vadd.f32 %v17488_v26, %v17501_v16  ;;  %v17503_v12 = vld [vmem:[#allocation94_spill] sm:$0xff]  ;;  %v17508_v45 = vld [vmem:[#allocation89_spill] sm:$0xff]  ;;  %v11505_v16 = vpop.permute.xlu0 %2903  ;;  %v11507_v28 = vpop.permute.xlu1 %3331 }
 0x465   : > { %17496 = vst [vmem:[#allocation251_spill] sm:$0xff] %v11467_v62  ;;  %v11484_v40 = vadd.f32 %v2971_v41, %v17503_v12  ;;  %v17506_v9 = vld [vmem:[#allocation126_spill] sm:$0xff]  ;;  %v17507_v62 = vld [vmem:[#allocation133_spill] sm:$0xff]  ;;  %v11494_v11 = vadd.f32 %v17494_v8, %v17508_v45  ;;  %17515 = vst [vmem:[#allocation31_spill] sm:$0xff] %v11507_v28 }
 0x466   : > { %17499 = vst [vmem:[#allocation253_spill] sm:$0xff] %v11474_v4  ;;  %17502 = vst [vmem:[#allocation25_spill] sm:$0xff] %v11481_v53  ;;  %v2974_v61 = vsel %vm2907_vm1, %v17506_v9, %v17505_v22  ;;  %v2975_v44 = vsel %vm2907_vm1, %v17505_v22, %v17507_v62  ;;  %v17510_v27 = vld [vmem:[#allocation97_spill] sm:$0xff]  ;;  %v17512_v26 = vld [vmem:[#allocation86_spill] sm:$0xff]  ;;  %v11511_v22 = vadd.f32 %v17506_v9, %v10758_v17 }
 0x467   : > { %17504 = vst [vmem:[#allocation256_spill] sm:$0xff] %v11484_v40  ;;  %17509 = vst [vmem:[#allocation255_spill] sm:$0xff] %v11494_v11  ;;  %v11497_v39 = vadd.f32 %v2972_v33, %v17510_v27  ;;  %v11500_v20 = vadd.f32 %v2973_v0, %v17512_v26  ;;  %v17514_v12 = vld [vmem:[#allocation194_spill] sm:$0xff]  ;;  %v17517_v8 = vld [vmem:[#allocation196_spill] sm:$0xff]  ;;  %v11523_v11 = vadd.f32 %v2974_v61, %v10761_v1 }
 0x468   : > { %v2976_v41 = vsel %vm2907_vm1, %v17507_v62, %v17514_v12  ;;  %17516 = vst [vmem:[#allocation30_spill] sm:$0xff] %v11511_v22  ;;  %v17518_v45 = vld [vmem:[#allocation143_spill] sm:$0xff]  ;;  %v17520_v26 = vld [vmem:[#allocation200_spill] sm:$0xff]  ;;  %v17523_v17 = vld [vmem:[#allocation213_spill] sm:$0xff] }
 0x469   : > { %17511 = vst [vmem:[#allocation24_spill] sm:$0xff] %v11497_v39  ;;  %17513 = vst [vmem:[#allocation32_spill] sm:$0xff] %v11500_v20  ;;  %v2977_v33 = vsel %vm2907_vm1, %v17518_v45, %v17517_v8  ;;  %v17519_v27 = vld [vmem:[#allocation219_spill] sm:$0xff]  ;;  %v11527_v39 = vadd.f32 %v17514_v12, %v10766_v60  ;;  %v11530_v9 = vadd.f32 %v2975_v44, %v17523_v17  ;;  %v17525_v4 = vld [vmem:[#allocation152_spill] sm:$0xff] }
 0x46a   : > { %v2978_v0 = vsel %vm2907_vm1, %v17517_v8, %v17519_v27  ;;  %v2979_v62 = vsel %vm2907_vm1, %v17519_v27, %v17520_v26  ;;  %17521 = vst [vmem:[#allocation257_spill] sm:$0xff] %v11523_v11  ;;  %v17526_v20 = vld [vmem:[#allocation155_spill] sm:$0xff]  ;;  %v17527_v22 = vld [vmem:[#allocation216_spill] sm:$0xff]  ;;  %v17530_v1 = vld [vmem:[#allocation169_spill] sm:$0xff] }
 0x46b   : > { %17522 = vst [vmem:[#allocation258_spill] sm:$0xff] %v11527_v39  ;;  %17524 = vst [vmem:[#allocation260_spill] sm:$0xff] %v11530_v9  ;;  %v2980_v43 = vsel %vm2907_vm1, %v17526_v20, %v17525_v4  ;;  %v11536_v8 = vadd.f32 %v2976_v41, %v17527_v22  ;;  %v17529_v53 = vld [vmem:[#allocation99_spill] sm:$0xff]  ;;  %v2981_v61 = vsel %vm2907_vm1, %v17525_v4, %v17530_v1  ;;  %v17532_v12 = vld [vmem:[#allocation96_spill] sm:$0xff] }
 0x46c   : > { %v11540_v27 = vadd.f32 %v17518_v45, %v17529_v53  ;;  %v17531_v60 = vld [vmem:[#allocation167_spill] sm:$0xff]  ;;  %v11549_v17 = vadd.f32 %v2977_v33, %v17532_v12  ;;  %v17534_v39 = vld [vmem:[#allocation104_spill] sm:$0xff]  ;;  %v17537_v53 = vld [vmem:[#allocation105_spill] sm:$0xff] }
 0x46d   : > { %17528 = vst [vmem:[#allocation259_spill] sm:$0xff] %v11536_v8  ;;  %v2982_v44 = vsel %vm2907_vm1, %v17530_v1, %v17531_v60  ;;  %v11553_v9 = vadd.f32 %v17520_v26, %v17534_v39  ;;  %v17535_v41 = vld [vmem:[#allocation100_spill] sm:$0xff]  ;;  %v11559_v45 = vadd.f32 %v2979_v62, %v17537_v53  ;;  %v11561_v8 = vpop.permute.xlu0 %3326  ;;  %v17541_v1 = vld [vmem:[#allocation109_spill] sm:$0xff]  ;;  %v17544_v12 = vld [vmem:[#allocation163_spill] sm:$0xff] }
 0x46e   : > { %17533 = vst [vmem:[#allocation33_spill] sm:$0xff] %v11549_v17  ;;  %v11556_v22 = vadd.f32 %v2978_v0, %v17535_v41  ;;  %17539 = vst [vmem:[#allocation264_spill] sm:$0xff] %v11561_v8  ;;  %v17540_v4 = vld [vmem:[#allocation172_spill] sm:$0xff]  ;;  %v11568_v40 = vadd.f32 %v2980_v43, %v17541_v1  ;;  %v17545_v26 = vld [vmem:[#allocation165_spill] sm:$0xff] }
 0x46f   : > { %17538 = vst [vmem:[#allocation262_spill] sm:$0xff] %v11559_v45  ;;  %v11565_v11 = vadd.f32 %v17526_v20, %v17540_v4  ;;  %v17543_v33 = vld [vmem:[#allocation168_spill] sm:$0xff]  ;;  %v17546_v41 = vld [vmem:[#allocation113_spill] sm:$0xff]  ;;  %v17550_v20 = vld [vmem:[#allocation186_spill] sm:$0xff]  ;;  %v11589_v45 = vpop.permute.xlu1 %3336 }
 0x470   : > { %17536 = vst [vmem:[#allocation261_spill] sm:$0xff] %v11556_v22  ;;  %17542 = vst [vmem:[#allocation263_spill] sm:$0xff] %v11568_v40  ;;  %v2983_v39 = vsel %vm2907_vm1, %v17544_v12, %v17543_v33  ;;  %v2984_v0 = vsel %vm2907_vm1, %v17543_v33, %v17545_v26  ;;  %v11578_v62 = vadd.f32 %v17531_v60, %v17546_v41  ;;  %v17548_v53 = vld [vmem:[#allocation180_spill] sm:$0xff]  ;;  %v17552_v43 = vld [vmem:[#allocation171_spill] sm:$0xff] }
 0x471   : > { %v11581_v22 = vadd.f32 %v2981_v61, %v17548_v53  ;;  %v11584_v4 = vadd.f32 %v2982_v44, %v17550_v20  ;;  %v2985_v1 = vsel %vm2907_vm1, %v17545_v26, %v17552_v43  ;;  %17553 = vst [vmem:[#allocation265_spill] sm:$0xff] %v11589_v45  ;;  %v17554_v17 = vld [vmem:[#allocation118_spill] sm:$0xff]  ;;  %v17557_v60 = vld [vmem:[#allocation176_spill] sm:$0xff]  ;;  %v17558_v61 = vld [vmem:[#allocation173_spill] sm:$0xff] }
 0x472   : > { %17547 = vst [vmem:[#allocation34_spill] sm:$0xff] %v11578_v62  ;;  %v11593_v33 = vadd.f32 %v17544_v12, %v17554_v17  ;;  %v17556_v3 = vld [vmem:[#allocation206_spill] sm:$0xff]  ;;  %v17559_v53 = vld [vmem:[#allocation209_spill] sm:$0xff]  ;;  %v17564_v17 = vld [vmem:[#allocation108_spill] sm:$0xff] }
 0x473   : > { %17549 = vst [vmem:[#allocation43_spill] sm:$0xff] %v11581_v22  ;;  %17551 = vst [vmem:[#allocation37_spill] sm:$0xff] %v11584_v4  ;;  %v2986_v41 = vsel %vm2907_vm1, %v17557_v60, %v17556_v3  ;;  %v2987_v44 = vsel %vm2907_vm1, %v17556_v3, %v17558_v61  ;;  %v2988_v20 = vsel %vm2907_vm1, %v17558_v61, %v17559_v53  ;;  %v17560_v26 = vld [vmem:[#allocation122_spill] sm:$0xff]  ;;  %v17562_v4 = vld [vmem:[#allocation112_spill] sm:$0xff] }
 0x474   : > { %17555 = vst [vmem:[#allocation266_spill] sm:$0xff] %v11593_v33  ;;  %v11605_v62 = vadd.f32 %v2983_v39, %v17560_v26  ;;  %v11609_v22 = vadd.f32 %v17552_v43, %v17562_v4  ;;  %v11612_v12 = vadd.f32 %v2984_v0, %v17564_v17  ;;  %v17566_v33 = vld [vmem:[#allocation181_spill] sm:$0xff]  ;;  %v17567_v40 = vld [vmem:[#allocation175_spill] sm:$0xff]  ;;  %v11622_v61 = vadd.f32 %v17557_v60, %v17570_v24  ;;  %v17577_v24 = vld [vmem:[#allocation188_spill] sm:$0xff] }
 0x475   : > { %v2989_v18 = vsel %vm2907_vm1, %v17567_v40, %v17566_v33  ;;  %v17568_v42 = vld [vmem:[#allocation107_spill] sm:$0xff]  ;;  %v17572_v39 = vld [vmem:[#allocation205_spill] sm:$0xff]  ;;  %v11641_v60 = vadd.f32 %v2988_v20, %v17577_v24  ;;  %v11675_v24 = vadd.f32 %v11561_v8, %v10907_v55 }
 0x476   : > { %17561 = vst [vmem:[#allocation42_spill] sm:$0xff] %v11605_v62  ;;  %17563 = vst [vmem:[#allocation268_spill] sm:$0xff] %v11609_v22  ;;  %v11618_v3 = vadd.f32 %v2985_v1, %v17568_v42  ;;  %v2990_v26 = vsel %vm2907_vm1, %v17566_v33, %v17572_v39  ;;  %v17573_v4 = vld [vmem:[#allocation183_spill] sm:$0xff]  ;;  %v17575_v22 = vld [vmem:[#allocation185_spill] sm:$0xff] }
 0x477   : > { %17565 = vst [vmem:[#allocation267_spill] sm:$0xff] %v11612_v12  ;;  %17571 = vst [vmem:[#allocation44_spill] sm:$0xff] %v11622_v61  ;;  %v2991_v0 = vsel %vm2907_vm1, %v17572_v39, %v17573_v4  ;;  %v17574_v43 = vld [vmem:[#allocation187_spill] sm:$0xff]  ;;  %v11635_v12 = vadd.f32 %v17559_v53, %v17575_v22  ;;  %v17576_v42 = vld [vmem:[#allocation189_spill] sm:$0xff]  ;;  %v11643_v61 = vpop.permute.xlu0 %3341  ;;  %v2992_v22 = vsel %vm2907_vm1, %v10928_v14, %v10867_v2 }
 0x478   : > { %17569 = vst [vmem:[#allocation45_spill] sm:$0xff] %v11618_v3  ;;  %v11631_v17 = vadd.f32 %v2986_v41, %v17574_v43  ;;  %v11638_v1 = vadd.f32 %v2987_v44, %v17576_v42  ;;  %17578 = vst [vmem:[#allocation269_spill] sm:$0xff] %v11643_v61  ;;  %v17579_v33 = vld [vmem:[#allocation137_spill] sm:$0xff]  ;;  %v17580_v39 = vld [vmem:[#allocation139_spill] sm:$0xff] }
 0x479   : > { %v11647_v3 = vadd.f32 %v17567_v40, %v17579_v33  ;;  %v11650_v62 = vadd.f32 %v2989_v18, %v17580_v39  ;;  %v17581_v41 = vld [vmem:[#allocation138_spill] sm:$0xff]  ;;  %v17583_v44 = vld [vmem:[#allocation193_spill] sm:$0xff]  ;;  %v2993_v40 = vsel %vm2907_vm1, %v10867_v2, %v11013_v32  ;;  %v2994_v18 = vsel %vm2907_vm1, %v11013_v32, %v10962_v31  ;;  %17588 = vst [vmem:[#allocation47_spill] sm:$0xff] %v11675_v24  ;;  %v17594_v39 = vld [vmem:[#allocation215_spill] sm:$0xff] }
 0x47a   : > { %v11654_v43 = vadd.f32 %v17573_v4, %v17581_v41  ;;  %v11660_v53 = vadd.f32 %v2990_v26, %v17583_v44  ;;  %v17585_v20 = vld [vmem:[#allocation129_spill] sm:$0xff]  ;;  %v11671_v4 = vpop.permute.xlu1 %3346  ;;  %v11679_v26 = vadd.f32 %v11507_v28, %v10935_v57  ;;  %v11687_v2 = vadd.f32 %v11507_v28, %v10932_v25  ;;  %v17592_v33 = vld [vmem:[#allocation190_spill] sm:$0xff]  ;;  %v17596_v55 = vld [vmem:[#allocation15_spill] sm:$0xff] }
 0x47b   : > { %v11663_v42 = vadd.f32 %v2991_v0, %v17585_v20  ;;  %17587 = vst [vmem:[#allocation38_spill] sm:$0xff] %v11671_v4  ;;  %v11683_v0 = vadd.f32 %v11561_v8, %v10895_v7  ;;  %v11691_v32 = vadd.f32 %v10928_v14, %v17592_v33  ;;  %v11694_v41 = vadd.f32 %v2992_v22, %v17594_v39  ;;  %v17599_v22 = vld [vmem:[#allocation212_spill] sm:$0xff]  ;;  %v17603_v39 = vld [vmem:[#allocation221_spill] sm:$0xff] }
 0x47c   : > { %17582 = vst [vmem:[#allocation270_spill] sm:$0xff] %v11654_v43  ;;  %17584 = vst [vmem:[#allocation272_spill] sm:$0xff] %v11660_v53  ;;  %v11698_v44 = vadd.f32 %v10962_v31, %v17596_v55  ;;  %v2995_v7 = vsel %vm2907_vm1, %v11095_v5, %v11041_v6  ;;  %v2996_v25 = vsel %vm2907_vm1, %v11041_v6, %v11177_v37  ;;  %v17601_v20 = vld [vmem:[#allocation208_spill] sm:$0xff] }
 0x47d   : > { %17586 = vst [vmem:[#allocation41_spill] sm:$0xff] %v11663_v42  ;;  %17589 = vst [vmem:[#allocation271_spill] sm:$0xff] %v11679_v26  ;;  %v2997_v14 = vsel %vm2907_vm1, %v11177_v37, %v11123_v49  ;;  %v11711_v57 = vadd.f32 %v11589_v45, %v10969_v59  ;;  %v11715_v31 = vadd.f32 %v11589_v45, %v17599_v22  ;;  %v11730_v59 = vpop.permute.xlu0 %3351  ;;  %v3566_v22 = vsel %vm3564_vm2, %v11687_v2, 0.0 }
 0x47e   : > { %17590 = vst [vmem:[#allocation273_spill] sm:$0xff] %v11683_v0  ;;  %17591 = vst [vmem:[#allocation274_spill] sm:$0xff] %v11687_v2  ;;  %v11718_v33 = vadd.f32 %v2993_v40, %v17601_v20  ;;  %v11721_v55 = vadd.f32 %v2994_v18, %v17603_v39  ;;  %v2998_v37 = vsel %vm2907_vm1, %v11259_v52, %v11205_v38  ;;  %v3565_v18 = vsel %vm3564_vm2, %v11683_v0, 0.0  ;;  %v17612_v20 = vld [vmem:[#allocation147_spill] sm:$0xff]  ;;  %v17619_v0 = vld [vmem:[#allocation220_spill] sm:$0xff] }
 0x47f   : > { %17593 = vst [vmem:[#allocation276_spill] sm:$0xff] %v11691_v32  ;;  %17595 = vst [vmem:[#allocation275_spill] sm:$0xff] %v11694_v41  ;;  %v17608_v41 = vld [vmem:[#allocation146_spill] sm:$0xff]  ;;  %v3602_v40 = vadd.f32 %v11679_v26, %v11675_v24  ;;  %v11746_v39 = vadd.f32 %v2996_v25, %v17612_v20  ;;  %v17621_v2 = vld [vmem:[#allocation224_spill] sm:$0xff]  ;;  %v3568_v25 = vsel %vm3564_vm2, %v11715_v31, 0.0 }
 0x480   : > { %17597 = vst [vmem:[#allocation277_spill] sm:$0xff] %v11698_v44  ;;  %17598 = vst [vmem:[#allocation278_spill] sm:$0xff] %v11711_v57  ;;  %v17605_v44 = vld [vmem:[#allocation11_spill] sm:$0xff]  ;;  %v11733_v32 = vadd.f32 %v2995_v7, %v17608_v41  ;;  %v17616_v41 = vld [vmem:[#allocation16_spill] sm:$0xff]  ;;  %v11762_v43 = vadd.f32 %v11287_v36, %v17621_v2  ;;  %v3002_v2 = vsel %vm2907_vm1, %v11369_v23, %v11505_v16 }
 0x481   : > { %17600 = vst [vmem:[#allocation40_spill] sm:$0xff] %v11715_v31  ;;  %17602 = vst [vmem:[#allocation280_spill] sm:$0xff] %v11718_v33  ;;  %v11725_v6 = vadd.f32 %v11095_v5, %v17605_v44  ;;  %v17610_v5 = vld [vmem:[#allocation149_spill] sm:$0xff]  ;;  %v11753_v7 = vadd.f32 %v11259_v52, %v17616_v41  ;;  %v11758_v33 = vadd.f32 %v2998_v37, %v17619_v0  ;;  %v17633_v41 = vld [vmem:[#allocation48_spill] sm:$0xff] }
 0x482   : > { %17604 = vst [vmem:[#allocation279_spill] sm:$0xff] %v11721_v55  ;;  %17607 = vst [vmem:[#allocation46_spill] sm:$0xff] %v11730_v59  ;;  %v11743_v44 = vadd.f32 %v11123_v49, %v17610_v5  ;;  %v3603_v49 = vadd.f32 %v3602_v40, %v11711_v57  ;;  %v3000_v52 = vsel %vm2907_vm1, %v11341_v29, %v11287_v36  ;;  %v17700_v31 = vld [vmem:[#allocation132_spill] sm:$0xff] }
 0x483   : > { %17606 = vst [vmem:[#allocation52_spill] sm:$0xff] %v11725_v6  ;;  %17609 = vst [vmem:[#allocation53_spill] sm:$0xff] %v11733_v32  ;;  %v17614_v6 = vld [vmem:[#allocation197_spill] sm:$0xff]  ;;  %v11755_v32 = vpop.permute.xlu1 %3356  ;;  %v3001_v0 = vsel %vm2907_vm1, %v11423_v21, %v11369_v23  ;;  %v3003_v37 = vsel %vm2907_vm1, %v11505_v16, %v11451_v63  ;;  %v11788_v36 = vadd.f32 %v11643_v61, %v10989_v35  ;;  %v17630_v16 = vld [vmem:[#allocation204_spill] sm:$0xff] }
 0x484   : > { %17611 = vst [vmem:[#allocation49_spill] sm:$0xff] %v11743_v44  ;;  %17613 = vst [vmem:[#allocation281_spill] sm:$0xff] %v11746_v39  ;;  %v11749_v55 = vadd.f32 %v2997_v14, %v17614_v6  ;;  %v2999_v14 = vsel %vm2907_vm1, %v11205_v38, %v11341_v29  ;;  %v3567_v6 = vadd.f32 %v3566_v22, %v3565_v18  ;;  %v11790_v29 = vpop.permute.xlu0 %3361  ;;  %v17626_v18 = vld [vmem:[#allocation211_spill] sm:$0xff]  ;;  %v17628_v23 = vld [vmem:[#allocation121_spill] sm:$0xff] }
 0x485   : > { %17617 = vst [vmem:[#allocation284_spill] sm:$0xff] %v11753_v7  ;;  %17618 = vst [vmem:[#allocation283_spill] sm:$0xff] %v11755_v32  ;;  %v11784_v38 = vadd.f32 %v11643_v61, %v10992_v46  ;;  %v11794_v22 = vadd.f32 %v11561_v8, %v17626_v18  ;;  %v11798_v5 = vadd.f32 %v11507_v28, %v17628_v23  ;;  %v17637_v23 = vld [vmem:[#allocation20_spill] sm:$0xff]  ;;  %v17641_v7 = vld [vmem:[#allocation151_spill] sm:$0xff] }
 0x486   : > { %17615 = vst [vmem:[#allocation282_spill] sm:$0xff] %v11749_v55  ;;  %17620 = vst [vmem:[#allocation50_spill] sm:$0xff] %v11758_v33  ;;  %v3569_v40 = vadd.f32 %v3568_v25, %v3567_v6  ;;  %v11802_v20 = vadd.f32 %v11561_v8, %v17630_v16  ;;  %v11806_v46 = vadd.f32 %v11671_v4, %v11029_v54  ;;  %v17635_v6 = vld [vmem:[#allocation120_spill] sm:$0xff]  ;;  %v17639_v33 = vld [vmem:[#allocation223_spill] sm:$0xff] }
 0x487   : > { %17622 = vst [vmem:[#allocation191_spill] sm:$0xff] %v11762_v43  ;;  %17623 = vst [vmem:[#allocation285_spill] sm:$0xff] %v11784_v38  ;;  %v3604_v35 = vadd.f32 %v3603_v49, %v11784_v38  ;;  %v11811_v25 = vadd.f32 %v11671_v4, %v17633_v41  ;;  %v11815_v18 = vadd.f32 %v11507_v28, %v17635_v6  ;;  %v11827_v44 = vpop.permute.xlu1 %3366  ;;  %v17643_v49 = vld [vmem:[#allocation222_spill] sm:$0xff]  ;;  %v17645_v55 = vld [vmem:[#allocation145_spill] sm:$0xff] }
 0x488   : > { %17624 = vst [vmem:[#allocation103_spill] sm:$0xff] %v11788_v36  ;;  %17625 = vst [vmem:[#allocation102_spill] sm:$0xff] %v11790_v29  ;;  %v11818_v43 = vadd.f32 %v2999_v14, %v17637_v23  ;;  %v11821_v16 = vadd.f32 %v3000_v52, %v17639_v33  ;;  %v11825_v54 = vadd.f32 %v11423_v21, %v17641_v7  ;;  %v17647_v6 = vld [vmem:[#allocation201_spill] sm:$0xff]  ;;  %v3570_v33 = vsel %vm3564_vm2, %v11788_v36, 0.0  ;;  %v17649_v52 = vld [vmem:[#allocation218_spill] sm:$0xff] }
 0x489   : > { %17627 = vst [vmem:[#allocation62_spill] sm:$0xff] %v11794_v22  ;;  %17629 = vst [vmem:[#allocation56_spill] sm:$0xff] %v11798_v5  ;;  %v11831_v41 = vadd.f32 %v11589_v45, %v17643_v49  ;;  %v11834_v39 = vadd.f32 %v3001_v0, %v17645_v55  ;;  %v11838_v14 = vadd.f32 %v11451_v63, %v17647_v6  ;;  %v17651_v7 = vld [vmem:[#allocation144_spill] sm:$0xff]  ;;  %v3572_v0 = vsel %vm3564_vm2, %v11811_v25, 0.0  ;;  %v17706_v38 = vld [vmem:[#allocation227_spill] sm:$0xff] }
 0x48a   : > { %17631 = vst [vmem:[#allocation63_spill] sm:$0xff] %v11802_v20  ;;  %17632 = vst [vmem:[#allocation192_spill] sm:$0xff] %v11806_v46  ;;  %v11844_v21 = vadd.f32 %v11589_v45, %v17649_v52  ;;  %v11847_v23 = vadd.f32 %v3002_v2, %v17651_v7  ;;  %v3644_v55 = vadd.f32 %v11798_v5, %v11794_v22  ;;  %v17655_v52 = vld [vmem:[#allocation116_spill] sm:$0xff]  ;;  %v11863_v2 = vpop.permute.xlu0 %3371  ;;  %v17676_v5 = vld [vmem:[#allocation115_spill] sm:$0xff] }
 0x48b   : > { %17634 = vst [vmem:[#allocation195_spill] sm:$0xff] %v11811_v25  ;;  %17636 = vst [vmem:[#allocation59_spill] sm:$0xff] %v11815_v18  ;;  %v3605_v63 = vadd.f32 %v3604_v35, %v11806_v46  ;;  %v3623_v6 = vadd.f32 %v11815_v18, %v11802_v20  ;;  %v17669_v20 = vld [vmem:[#allocation61_spill] sm:$0xff]  ;;  %v17685_v25 = vld [vmem:[#allocation154_spill] sm:$0xff] }
 0x48c   : > { %17638 = vst [vmem:[#allocation198_spill] sm:$0xff] %v11818_v43  ;;  %17640 = vst [vmem:[#allocation199_spill] sm:$0xff] %v11821_v16  ;;  %v3571_v16 = vadd.f32 %v3570_v33, %v3569_v40  ;;  %v17658_v40 = vld [vmem:[#allocation80_spill] sm:$0xff]  ;;  %v3645_v35 = vadd.f32 %v3644_v55, %v11831_v41  ;;  %v17660_v33 = vld [vmem:[#allocation117_spill] sm:$0xff]  ;;  %v11893_v55 = vadd.f32 %v11790_v29, %v11099_v56 }
 0x48d   : > { %17642 = vst [vmem:[#allocation72_spill] sm:$0xff] %v11825_v54  ;;  %17644 = vst [vmem:[#allocation73_spill] sm:$0xff] %v11831_v41  ;;  %v17653_v54 = vld [vmem:[#allocation156_spill] sm:$0xff]  ;;  %v11876_v7 = vadd.f32 %v11507_v28, %v17660_v33  ;;  %v17666_v43 = vld [vmem:[#allocation217_spill] sm:$0xff]  ;;  %v11895_v33 = vpop.permute.xlu1 %3376 }
 0x48e   : > { %17646 = vst [vmem:[#allocation14_spill] sm:$0xff] %v11834_v39  ;;  %17648 = vst [vmem:[#allocation214_spill] sm:$0xff] %v11838_v14  ;;  %v11850_v49 = vadd.f32 %v3003_v37, %v17653_v54  ;;  %v11861_v14 = vadd.f32 %v11561_v8, %v17655_v52  ;;  %v11867_v37 = vadd.f32 %v11730_v59, %v11048_v48  ;;  %v17671_v41 = vld [vmem:[#allocation226_spill] sm:$0xff]  ;;  %v17699_v36 = vld [vmem:[#allocation136_spill] sm:$0xff] }
 0x48f   : > { %17650 = vst [vmem:[#allocation234_spill] sm:$0xff] %v11844_v21  ;;  %17652 = vst [vmem:[#allocation69_spill] sm:$0xff] %v11847_v23  ;;  %v11871_v54 = vadd.f32 %v11643_v61, %v17658_v40  ;;  %v17664_v23 = vld [vmem:[#allocation57_spill] sm:$0xff]  ;;  %v3624_v48 = vadd.f32 %v3623_v6, %v11844_v21  ;;  %v11889_v40 = vadd.f32 %v11589_v45, %v17666_v43  ;;  %v17674_v21 = vld [vmem:[#allocation88_spill] sm:$0xff] }
 0x490   : > { %17654 = vst [vmem:[#allocation75_spill] sm:$0xff] %v11850_v49  ;;  %17656 = vst [vmem:[#allocation74_spill] sm:$0xff] %v11861_v14  ;;  %v17662_v49 = vld [vmem:[#allocation90_spill] sm:$0xff]  ;;  %v11884_v39 = vadd.f32 %v11643_v61, %v17664_v23  ;;  %v3573_v18 = vadd.f32 %v3572_v0, %v3571_v16  ;;  %v11903_v23 = vadd.f32 %v11643_v61, %v17671_v41 }
 0x491   : > { %17657 = vst [vmem:[#allocation231_spill] sm:$0xff] %v11867_v37  ;;  %17659 = vst [vmem:[#allocation150_spill] sm:$0xff] %v11871_v54  ;;  %v11880_v52 = vadd.f32 %v11730_v59, %v17662_v49  ;;  %v11899_v49 = vadd.f32 %v11671_v4, %v17669_v20  ;;  %v11907_v6 = vadd.f32 %v11755_v32, %v11074_v13  ;;  %v3574_v20 = vsel %vm3564_vm2, %v11867_v37, 0.0  ;;  %v17678_v0 = vld [vmem:[#allocation58_spill] sm:$0xff]  ;;  %v17680_v13 = vld [vmem:[#allocation60_spill] sm:$0xff] }
 0x492   : > { %17661 = vst [vmem:[#allocation127_spill] sm:$0xff] %v11876_v7  ;;  %17665 = vst [vmem:[#allocation23_spill] sm:$0xff] %v11884_v39  ;;  %v11912_v56 = vadd.f32 %v11755_v32, %v17674_v21  ;;  %v11916_v16 = vadd.f32 %v11730_v59, %v17676_v5  ;;  %v3646_v41 = vadd.f32 %v3645_v35, %v11871_v54 }
 0x493   : > { %17663 = vst [vmem:[#allocation19_spill] sm:$0xff] %v11880_v52  ;;  %17667 = vst [vmem:[#allocation22_spill] sm:$0xff] %v11889_v40  ;;  %v3606_v43 = vadd.f32 %v3605_v63, %v11880_v52  ;;  %v11923_v22 = vadd.f32 %v11671_v4, %v17678_v0  ;;  %v11927_v63 = vadd.f32 %v11730_v59, %v17680_v13  ;;  %v11942_v0 = vpop.permute.xlu0 %3381 }
 0x494   : > { %17668 = vst [vmem:[#allocation106_spill] sm:$0xff] %v11893_v55  ;;  %17670 = vst [vmem:[#allocation203_spill] sm:$0xff] %v11899_v49  ;;  %v11931_v21 = vadd.f32 %v11790_v29, %v11115_v19  ;;  %v11935_v5 = vadd.f32 %v11790_v29, %v11540_v27  ;;  %v11939_v37 = vadd.f32 %v11790_v29, %v11553_v9  ;;  %v3578_v19 = vsel %vm3564_vm2, %v11893_v55, 0.0 }
 0x495   : > { %17672 = vst [vmem:[#allocation202_spill] sm:$0xff] %v11903_v23  ;;  %17673 = vst [vmem:[#allocation27_spill] sm:$0xff] %v11907_v6  ;;  %v3625_v35 = vadd.f32 %v3624_v48, %v11884_v39  ;;  %v11946_v13 = vadd.f32 %v11790_v29, %v11111_v51  ;;  %v3575_v54 = vadd.f32 %v3574_v20, %v3573_v18  ;;  %v11973_v20 = vpop.permute.xlu1 %3386  ;;  %v17691_v39 = vld [vmem:[#allocation125_spill] sm:$0xff] }
 0x496   : > { %17675 = vst [vmem:[#allocation35_spill] sm:$0xff] %v11912_v56  ;;  %17677 = vst [vmem:[#allocation13_spill] sm:$0xff] %v11916_v16  ;;  %v11952_v27 = vadd.f32 %v11755_v32, %v17685_v25  ;;  %v11956_v9 = vadd.f32 %v11863_v2, %v11153_v34  ;;  %v3607_v48 = vadd.f32 %v3606_v43, %v11907_v6  ;;  %v17689_v43 = vld [vmem:[#allocation111_spill] sm:$0xff] }
 0x497   : > { %17679 = vst [vmem:[#allocation160_spill] sm:$0xff] %v11923_v22  ;;  %17681 = vst [vmem:[#allocation36_spill] sm:$0xff] %v11927_v63  ;;  %v11963_v51 = vadd.f32 %v11790_v29, %v11126_v47  ;;  %v11967_v18 = vadd.f32 %v11827_v44, %v11130_v58  ;;  %v11971_v25 = vadd.f32 %v11895_v33, %v11181_v15 }
 0x498   : > { %17682 = vst [vmem:[#allocation39_spill] sm:$0xff] %v11935_v5  ;;  %17683 = vst [vmem:[#allocation162_spill] sm:$0xff] %v11939_v37  ;;  %v3576_v37 = vsel %vm3564_vm2, %v11912_v56, 0.0  ;;  %v3647_v34 = vadd.f32 %v3646_v41, %v11899_v49  ;;  %v11978_v5 = vadd.f32 %v11755_v32, %v17689_v43  ;;  %v11982_v47 = vadd.f32 %v11827_v44, %v17691_v39  ;;  %v17694_v41 = vld [vmem:[#allocation119_spill] sm:$0xff]  ;;  %v17696_v49 = vld [vmem:[#allocation130_spill] sm:$0xff] }
 0x499   : > { %17684 = vst [vmem:[#allocation207_spill] sm:$0xff] %v11946_v13  ;;  %17686 = vst [vmem:[#allocation177_spill] sm:$0xff] %v11956_v9  ;;  %v11986_v58 = vadd.f32 %v11827_v44, %v11146_v10  ;;  %v11990_v15 = vadd.f32 %v11827_v44, %v11149_v50  ;;  %v11994_v55 = vadd.f32 %v11942_v0, %v11212_v30  ;;  %v17697_v56 = vld [vmem:[#allocation10_spill] sm:$0xff] }
 0x49a   : > { %17687 = vst [vmem:[#allocation179_spill] sm:$0xff] %v11963_v51  ;;  %17688 = vst [vmem:[#allocation68_spill] sm:$0xff] %v11971_v25  ;;  %v11998_v43 = vadd.f32 %v11827_v44, %v17694_v41  ;;  %v12002_v39 = vadd.f32 %v11827_v44, %v11565_v11  ;;  %v12006_v10 = vadd.f32 %v11863_v2, %v17696_v49  ;;  %v3582_v41 = vsel %vm3564_vm2, %v11956_v9, 0.0  ;;  %v17701_v11 = vld [vmem:[#allocation230_spill] sm:$0xff]  ;;  %v12036_v9 = vpop.permute.xlu0 %3391 }
 0x49b   : > { %17690 = vst [vmem:[#allocation71_spill] sm:$0xff] %v11978_v5  ;;  %17692 = vst [vmem:[#allocation55_spill] sm:$0xff] %v11986_v58  ;;  %v12010_v50 = vadd.f32 %v11863_v2, %v17697_v56  ;;  %v12014_v30 = vadd.f32 %v11863_v2, %v17699_v36  ;;  %v12020_v6 = vadd.f32 %v11895_v33, %v17700_v31  ;;  %v17703_v49 = vld [vmem:[#allocation174_spill] sm:$0xff]  ;;  %v17705_v56 = vld [vmem:[#allocation12_spill] sm:$0xff]  ;;  %v3584_v36 = vsel %vm3564_vm2, %v11971_v25, 0.0 }
 0x49c   : > { %17693 = vst [vmem:[#allocation54_spill] sm:$0xff] %v11994_v55  ;;  %17695 = vst [vmem:[#allocation64_spill] sm:$0xff] %v12002_v39  ;;  %v12024_v39 = vadd.f32 %v11973_v20, %v17701_v11  ;;  %v12028_v52 = vadd.f32 %v11895_v33, %v17703_v49  ;;  %v12032_v46 = vadd.f32 %v11895_v33, %v17705_v56  ;;  %v3586_v11 = vsel %vm3564_vm2, %v11994_v55, 0.0  ;;  %v17707_v49 = vld [vmem:[#allocation229_spill] sm:$0xff] }
 0x49d   : > { %17698 = vst [vmem:[#allocation70_spill] sm:$0xff] %v12010_v50  ;;  %v3608_v31 = vadd.f32 %v3607_v48, %v11946_v13  ;;  %v12041_v57 = vadd.f32 %v11942_v0, %v17706_v38  ;;  %v12047_v42 = vadd.f32 %v11973_v20, %v17707_v49  ;;  %v3577_v56 = vadd.f32 %v3576_v37, %v3575_v54  ;;  %v17708_v13 = vld [vmem:[#allocation232_spill] sm:$0xff]  ;;  %v17709_v49 = vld [vmem:[#allocation114_spill] sm:$0xff]  ;;  %v12064_v54 = vpop.permute.xlu1 %3396 }
 0x49e   : > { %17702 = vst [vmem:[#allocation85_spill] sm:$0xff] %v12024_v39  ;;  %17704 = vst [vmem:[#allocation79_spill] sm:$0xff] %v12028_v52  ;;  %v3580_v25 = vsel %vm3564_vm2, %v11967_v18, 0.0  ;;  %v3648_v26 = vadd.f32 %v3647_v34, %v11916_v16  ;;  %v3626_v48 = vadd.f32 %v3625_v35, %v11923_v22  ;;  %v3588_v38 = vsel %vm3564_vm2, %v12024_v39, 0.0  ;;  %v17711_v39 = vld [vmem:[#allocation51_spill] sm:$0xff] }
 0x49f   : > { %v3609_v53 = vadd.f32 %v3608_v31, %v11982_v47  ;;  %v12058_v55 = vadd.f32 %v12036_v9, %v17708_v13  ;;  %v3579_v24 = vadd.f32 %v3578_v19, %v3577_v56  ;;  %v12062_v37 = vadd.f32 %v11790_v29, %v17709_v49 }
 0x4a0   : > { %v3649_v34 = vadd.f32 %v3648_v26, %v11952_v27  ;;  %v3627_v35 = vadd.f32 %v3626_v48, %v11927_v63  ;;  %v3665_v22 = vsel %vm2907_vm1, %v11861_v14, 0.0  ;;  %v12073_v13 = vadd.f32 %v11671_v4, %v17711_v39  ;;  %v17713_v63 = vld [vmem:[#allocation233_spill] sm:$0xff]  ;;  %v17715_v14 = vld [vmem:[#allocation236_spill] sm:$0xff] }
 0x4a1   : > { %17710 = vst [vmem:[#allocation65_spill] sm:$0xff] %v12062_v37  ;;  %v3610_v31 = vadd.f32 %v3609_v53, %v12006_v10  ;;  %v3581_v16 = vadd.f32 %v3580_v25, %v3579_v24  ;;  %v3666_v19 = vsel %vm2907_vm1, %v11876_v7, 0.0  ;;  %v3668_v56 = vsel %vm2907_vm1, %v11889_v40, 0.0  ;;  %v17714_v25 = vld [vmem:[#allocation110_spill] sm:$0xff] }
 0x4a2   : > { %17712 = vst [vmem:[#allocation76_spill] sm:$0xff] %v12073_v13  ;;  %v3650_v26 = vadd.f32 %v3649_v34, %v11963_v51  ;;  %v3628_v48 = vadd.f32 %v3627_v35, %v11978_v5  ;;  %v3667_v49 = vadd.f32 %v3666_v19, %v3665_v22  ;;  %v12084_v24 = vadd.f32 %v12036_v9, %v17713_v63  ;;  %v17716_v5 = vld [vmem:[#allocation67_spill] sm:$0xff]  ;;  %v12105_v51 = vpop.permute.xlu0 %3401 }
 0x4a3   : > { %v3611_v53 = vadd.f32 %v3610_v31, %v12020_v6  ;;  %v12088_v39 = vadd.f32 %v12064_v54, %v17714_v25  ;;  %v12092_v7 = vadd.f32 %v12064_v54, %v17715_v14  ;;  %v3583_v40 = vadd.f32 %v3582_v41, %v3581_v16 }
 0x4a4   : > { %v3651_v34 = vadd.f32 %v3650_v26, %v11990_v15  ;;  %v3629_v35 = vadd.f32 %v3628_v48, %v12062_v37  ;;  %v3669_v22 = vadd.f32 %v3668_v56, %v3667_v49  ;;  %v12099_v63 = vadd.f32 %v11730_v59, %v17716_v5  ;;  %v17719_v5 = vld [vmem:[#allocation157_spill] sm:$0xff]  ;;  %v17720_v49 = vld [vmem:[#allocation91_spill] sm:$0xff]  ;;  %v17730_v37 = vld [vmem:[#allocation34_spill] sm:$0xff] }
 0x4a5   : > { %v3612_v31 = vadd.f32 %v3611_v53, %v12041_v57  ;;  %v3585_v19 = vadd.f32 %v3584_v36, %v3583_v40  ;;  %v3670_v25 = vsel %vm2907_vm1, %v11903_v23, 0.0  ;;  %v3672_v14 = vsel %vm2907_vm1, %v12073_v13, 0.0  ;;  %v17718_v40 = vld [vmem:[#allocation141_spill] sm:$0xff] }
 0x4a6   : > { %17717 = vst [vmem:[#allocation66_spill] sm:$0xff] %v12099_v63  ;;  %v3652_v41 = vadd.f32 %v3651_v34, %v12014_v30  ;;  %v3630_v53 = vadd.f32 %v3629_v35, %v11986_v58  ;;  %v3671_v56 = vadd.f32 %v3670_v25, %v3669_v22  ;;  %v12112_v36 = vadd.f32 %v11942_v0, %v17718_v40 }
 0x4a7   : > { %v3613_v16 = vadd.f32 %v3612_v31, %v12047_v42  ;;  %v12116_v26 = vadd.f32 %v11973_v20, %v17719_v5  ;;  %v3587_v48 = vadd.f32 %v3586_v11, %v3585_v19  ;;  %v12120_v13 = vadd.f32 %v11755_v32, %v17720_v49  ;;  %v17722_v5 = vld [vmem:[#allocation237_spill] sm:$0xff]  ;;  %v17723_v49 = vld [vmem:[#allocation238_spill] sm:$0xff] }
 0x4a8   : > { %v3653_v34 = vadd.f32 %v3652_v41, %v12032_v46  ;;  %v3631_v35 = vadd.f32 %v3630_v53, %v12010_v50  ;;  %v3673_v22 = vadd.f32 %v3672_v14, %v3671_v56  ;;  %v3590_v25 = vsel %vm3564_vm2, %v12058_v55, 0.0  ;;  %v17724_v53 = vld [vmem:[#allocation263_spill] sm:$0xff] }
 0x4a9   : > { %17721 = vst [vmem:[#allocation77_spill] sm:$0xff] %v12120_v13  ;;  %v3614_v31 = vadd.f32 %v3613_v16, %v12084_v24  ;;  %v3592_v40 = vsel %vm3564_vm2, %v12088_v39, 0.0  ;;  %v12131_v11 = vadd.f32 %v12105_v51, %v17722_v5  ;;  %v3589_v19 = vadd.f32 %v3588_v38, %v3587_v48  ;;  %v17726_v38 = vld [vmem:[#allocation43_spill] sm:$0xff] }
 0x4aa   : > { %v12135_v23 = vadd.f32 %v12105_v51, %v17723_v49  ;;  %v3654_v41 = vadd.f32 %v3653_v34, %v12112_v36  ;;  %v3674_v14 = vsel %vm2907_vm1, %v12099_v63, 0.0  ;;  %v12143_v56 = vadd.f32 %v11827_v44, %v17724_v53  ;;  %v17728_v49 = vld [vmem:[#allocation37_spill] sm:$0xff] }
 0x4ab   : > { %v3615_v16 = vadd.f32 %v3614_v31, %v12092_v7  ;;  %v3591_v50 = vadd.f32 %v3590_v25, %v3589_v19  ;;  %v3632_v5 = vadd.f32 %v3631_v35, %v12028_v52  ;;  %v3675_v58 = vadd.f32 %v3674_v14, %v3673_v22  ;;  %v17732_v25 = vld [vmem:[#allocation134_spill] sm:$0xff]  ;;  %v17734_v22 = vld [vmem:[#allocation184_spill] sm:$0xff]  ;;  %v17751_v52 = vld [vmem:[#allocation45_spill] sm:$0xff] }
 0x4ac   : > { %17725 = vst [vmem:[#allocation83_spill] sm:$0xff] %v12143_v56  ;;  %v12148_v48 = vadd.f32 %v11827_v44, %v17726_v38  ;;  %v12152_v31 = vadd.f32 %v11827_v44, %v17728_v49  ;;  %v3676_v63 = vsel %vm2907_vm1, %v12120_v13, 0.0  ;;  %v12159_v53 = vadd.f32 %v11827_v44, %v17730_v37 }
 0x4ad   : > { %v3616_v34 = vadd.f32 %v3615_v16, %v12135_v23  ;;  %v12163_v35 = vadd.f32 %v11942_v0, %v17732_v25  ;;  %v12167_v19 = vadd.f32 %v11973_v20, %v17734_v22  ;;  %v3593_v14 = vadd.f32 %v3592_v40, %v3591_v50  ;;  %v17739_v22 = vld [vmem:[#allocation164_spill] sm:$0xff]  ;;  %v17741_v40 = vld [vmem:[#allocation266_spill] sm:$0xff] }
 0x4ae   : > { %17727 = vst [vmem:[#allocation82_spill] sm:$0xff] %v12148_v48  ;;  %17729 = vst [vmem:[#allocation84_spill] sm:$0xff] %v12152_v31  ;;  %v3594_v38 = vsel %vm3564_vm2, %v12131_v11, 0.0  ;;  %v3655_v49 = vadd.f32 %v3654_v41, %v12116_v26  ;;  %v17735_v48 = vld [vmem:[#allocation242_spill] sm:$0xff]  ;;  %v3677_v25 = vadd.f32 %v3676_v63, %v3675_v58  ;;  %v12183_v50 = vadd.f32 %v11863_v2, %v17739_v22  ;;  %v17743_v41 = vld [vmem:[#allocation159_spill] sm:$0xff] }
 0x4af   : > { %17731 = vst [vmem:[#allocation87_spill] sm:$0xff] %v12159_v53  ;;  %17733 = vst [vmem:[#allocation78_spill] sm:$0xff] %v12163_v35  ;;  %v3617_v16 = vrot.slane %v3616_v34, 4  ;;  %v12174_v31 = vadd.f32 %v11561_v8, %v17735_v48  ;;  %v3595_v44 = vadd.f32 %v3594_v38, %v3593_v14  ;;  %v3633_v37 = vadd.f32 %v3632_v5, %v12163_v35  ;;  %v17737_v53 = vld [vmem:[#allocation17_spill] sm:$0xff]  ;;  %v17744_v38 = vld [vmem:[#allocation42_spill] sm:$0xff] }
 0x4b0   : > { %v12179_v13 = vadd.f32 %v11507_v28, %v17737_v53  ;;  %17740 = vst [vmem:[#allocation81_spill] sm:$0xff] %v12183_v50  ;;  %v12187_v56 = vadd.f32 %v11863_v2, %v17741_v40  ;;  %v12191_v48 = vadd.f32 %v12036_v9, %v17743_v41  ;;  %v12195_v58 = vadd.f32 %v11863_v2, %v17744_v38  ;;  %v17746_v63 = vld [vmem:[#allocation267_spill] sm:$0xff]  ;;  %v17748_v22 = vld [vmem:[#allocation245_spill] sm:$0xff] }
 0x4b1   : > { %17736 = vst [vmem:[#allocation92_spill] sm:$0xff] %v12174_v31  ;;  %v3618_v14 = vadd.f32 %v3617_v16, %v3616_v34  ;;  %v12199_v5 = vadd.f32 %v11863_v2, %v17746_v63  ;;  %v3596_v53 = vrot.slane %v3595_v44, 4  ;;  %v12203_v35 = vadd.f32 %v11589_v45, %v17748_v22  ;;  %v17750_v40 = vld [vmem:[#allocation161_spill] sm:$0xff]  ;;  %v17753_v45 = vld [vmem:[#allocation268_spill] sm:$0xff] }
 0x4b2   : > { %17738 = vst [vmem:[#allocation93_spill] sm:$0xff] %v12179_v13  ;;  %17742 = vst [vmem:[#allocation178_spill] sm:$0xff] %v12187_v56  ;;  %v12207_v56 = vadd.f32 %v12064_v54, %v17750_v40  ;;  %v3656_v34 = vadd.f32 %v3655_v49, %v12191_v48  ;;  %v3678_v16 = vsel %vm2907_vm1, %v11931_v21, 0.0  ;;  %v12217_v22 = vadd.f32 %v11863_v2, %v17751_v52  ;;  %v17756_v52 = vld [vmem:[#allocation135_spill] sm:$0xff] }
 0x4b3   : > { %17745 = vst [vmem:[#allocation101_spill] sm:$0xff] %v12195_v58  ;;  %17747 = vst [vmem:[#allocation98_spill] sm:$0xff] %v12199_v5  ;;  %v3619_v41 = vrot.slane %v3618_v14, 2  ;;  %v3597_v38 = vadd.f32 %v3596_v53, %v3595_v44  ;;  %v3634_v58 = vadd.f32 %v3633_v37, %v12167_v19  ;;  %v3679_v63 = vadd.f32 %v3678_v16, %v3677_v25  ;;  %v17755_v37 = vld [vmem:[#allocation142_spill] sm:$0xff] }
 0x4b4   : > { %17749 = vst [vmem:[#allocation210_spill] sm:$0xff] %v12203_v35  ;;  %v3739_v5 = vadd.f32 %v12179_v13, %v12174_v31  ;;  %17752 = vst [vmem:[#allocation170_spill] sm:$0xff] %v12217_v22  ;;  %v12221_v40 = vadd.f32 %v11863_v2, %v17753_v45  ;;  %v3680_v49 = vsel %vm2907_vm1, %v11998_v43, 0.0  ;;  %v3682_v44 = vsel %vm2907_vm1, %v12183_v50, 0.0  ;;  %v17758_v45 = vld [vmem:[#allocation44_spill] sm:$0xff]  ;;  %v17760_v13 = vld [vmem:[#allocation158_spill] sm:$0xff] }
 0x4b5   : > { %v3620_v28 = vadd.f32 %v3619_v41, %v3618_v14  ;;  %v12229_v25 = vadd.f32 %v12036_v9, %v17755_v37  ;;  %v3598_v53 = vrot.slane %v3597_v38, 2  ;;  %v12234_v22 = vadd.f32 %v11895_v33, %v17756_v52  ;;  %v17761_v50 = vld [vmem:[#allocation28_spill] sm:$0xff] }
 0x4b6   : > { %17754 = vst [vmem:[#allocation95_spill] sm:$0xff] %v12221_v40  ;;  %v3740_v16 = vadd.f32 %v3739_v5, %v12203_v35  ;;  %v12238_v2 = vadd.f32 %v11895_v33, %v17758_v45  ;;  %v3657_v41 = vadd.f32 %v3656_v34, %v12207_v56  ;;  %v12243_v31 = vadd.f32 %v12064_v54, %v17760_v13  ;;  %v17764_v45 = vld [vmem:[#allocation239_spill] sm:$0xff] }
 0x4b7   : > { %17757 = vst [vmem:[#allocation94_spill] sm:$0xff] %v12234_v22  ;;  %v3621_v14 = vrot.slane %v3620_v28, 1  ;;  %v3635_v37 = vadd.f32 %v3634_v58, %v12229_v25  ;;  %v3681_v40 = vadd.f32 %v3680_v49, %v3679_v63  ;;  %v12248_v5 = vadd.f32 %v11643_v61, %v17761_v50  ;;  %v17767_v50 = vld [vmem:[#allocation251_spill] sm:$0xff] }
 0x4b8   : > { %17759 = vst [vmem:[#allocation123_spill] sm:$0xff] %v12238_v2  ;;  %v12252_v52 = vadd.f32 %v11895_v33, %v11631_v17  ;;  %v12256_v35 = vadd.f32 %v12105_v51, %v17764_v45  ;;  %v3599_v2 = vadd.f32 %v3598_v53, %v3597_v38  ;;  %v12260_v13 = vadd.f32 %v11895_v33, %v11638_v1 }
 0x4b9   : > { %17762 = vst [vmem:[#allocation126_spill] sm:$0xff] %v12248_v5  ;;  %v3622_v34 = vadd.f32 %v3621_v14, %v3620_v28  ;;  %v12264_v58 = vadd.f32 %v11895_v33, %v11641_v60  ;;  %v12268_v63 = vadd.f32 %v11671_v4, %v17767_v50  ;;  %v3741_v17 = vadd.f32 %v3740_v16, %v12248_v5  ;;  %v17770_v28 = vld [vmem:[#allocation228_spill] sm:$0xff] }
 0x4ba   : > { %17763 = vst [vmem:[#allocation133_spill] sm:$0xff] %v12252_v52  ;;  %17765 = vst [vmem:[#allocation89_spill] sm:$0xff] %v12260_v13  ;;  %v12273_v49 = vadd.f32 %v11895_v33, %v11635_v12  ;;  %v12277_v38 = vadd.f32 %v11942_v0, %v17770_v28  ;;  %v3658_v53 = vadd.f32 %v3657_v41, %v12256_v35  ;;  %v3684_v60 = vsel %vm2907_vm1, %v12234_v22, 0.0  ;;  %v17774_v33 = vld [vmem:[#allocation47_spill] sm:$0xff]  ;;  %v17777_v13 = vld [vmem:[#allocation272_spill] sm:$0xff] }
 0x4bb   : > { %17766 = vst [vmem:[#allocation97_spill] sm:$0xff] %v12264_v58  ;;  %17768 = vst [vmem:[#allocation86_spill] sm:$0xff] %v12268_v63  ;;  %v12279_v1 = vmul.f32 0.0078125, %v3622_v34  ;;  %v12286_v14 = vadd.f32 %v11942_v0, %v11647_v3  ;;  %v3636_v16 = vadd.f32 %v3635_v37, %v12243_v31  ;;  %v3683_v45 = vadd.f32 %v3682_v44, %v3681_v40  ;;  %v17775_v41 = vld [vmem:[#allocation271_spill] sm:$0xff]  ;;  %v17781_v44 = vld [vmem:[#allocation240_spill] sm:$0xff] }
 0x4bc   : > { %17769 = vst [vmem:[#allocation194_spill] sm:$0xff] %v12273_v49  ;;  %17771 = vst [vmem:[#allocation196_spill] sm:$0xff] %v12277_v38  ;;  %v12291_v12 = vadd.f32 %v11942_v0, %v11650_v62  ;;  %v3600_v28 = vrot.slane %v3599_v2, 1  ;;  %v12303_v3 = vadd.f32 %v11942_v0, %v17777_v13  ;;  %v17779_v49 = vld [vmem:[#allocation41_spill] sm:$0xff]  ;;  %v12311_v62 = vadd.f32 %v12105_v51, %v17781_v44  ;;  %v17784_v5 = vld [vmem:[#allocation148_spill] sm:$0xff] }
 0x4bd   : > { %17772 = vst [vmem:[#allocation143_spill] sm:$0xff] %v12286_v14  ;;  %v12295_v34 = vsub.f32 %v17774_v33, %v12279_v1  ;;  %v12299_v50 = vsub.f32 %v17775_v41, %v12279_v1  ;;  %v12307_v40 = vadd.f32 %v11942_v0, %v17779_v49  ;;  %v3742_v37 = vadd.f32 %v3741_v17, %v12268_v63  ;;  %v17782_v33 = vld [vmem:[#allocation270_spill] sm:$0xff]  ;;  %v17786_v49 = vld [vmem:[#allocation276_spill] sm:$0xff] }
 0x4be   : > { %17773 = vst [vmem:[#allocation219_spill] sm:$0xff] %v12291_v12  ;;  %17778 = vst [vmem:[#allocation213_spill] sm:$0xff] %v12303_v3  ;;  %v12316_v58 = vadd.f32 %v11942_v0, %v17782_v33  ;;  %v3686_v41 = vsel %vm2907_vm1, %v12277_v38, 0.0  ;;  %v12322_v13 = vadd.f32 %v11973_v20, %v17784_v5  ;;  %v3659_v3 = vrot.slane %v3658_v53, 4  ;;  %v17788_v17 = vld [vmem:[#allocation256_spill] sm:$0xff]  ;;  %v17790_v0 = vld [vmem:[#allocation278_spill] sm:$0xff] }
 0x4bf   : > { %17776 = vst [vmem:[#allocation200_spill] sm:$0xff] %v12299_v50  ;;  %17780 = vst [vmem:[#allocation152_spill] sm:$0xff] %v12307_v40  ;;  %v12326_v40 = vadd.f32 %v11973_v20, %v17786_v49  ;;  %v3637_v44 = vadd.f32 %v3636_v16, %v12311_v62  ;;  %v3685_v14 = vadd.f32 %v3684_v60, %v3683_v45  ;;  %v17792_v49 = vld [vmem:[#allocation275_spill] sm:$0xff]  ;;  %v17794_v60 = vld [vmem:[#allocation140_spill] sm:$0xff] }
 0x4c0   : > { %17783 = vst [vmem:[#allocation155_spill] sm:$0xff] %v12316_v58  ;;  %17785 = vst [vmem:[#allocation216_spill] sm:$0xff] %v12322_v13  ;;  %v12331_v63 = vadd.f32 %v11730_v59, %v17788_v17  ;;  %v12335_v33 = vsub.f32 %v17790_v0, %v12279_v1  ;;  %v4011_v5 = vmul.f32 %v12295_v34, %v12295_v34  ;;  %v17796_v45 = vld [vmem:[#allocation257_spill] sm:$0xff]  ;;  %v17798_v59 = vld [vmem:[#allocation280_spill] sm:$0xff] }
 0x4c1   : > { %17787 = vst [vmem:[#allocation99_spill] sm:$0xff] %v12326_v40  ;;  %v4016_v58 = vmul.f32 %v12299_v50, %v12299_v50  ;;  %v3601_v4 = vadd.f32 %v3600_v28, %v3599_v2  ;;  %v12343_v40 = vadd.f32 %v11973_v20, %v17792_v49  ;;  %v12347_v16 = vadd.f32 %v12036_v9, %v17794_v60  ;;  %v17800_v50 = vld [vmem:[#allocation279_spill] sm:$0xff]  ;;  %v17802_v28 = vld [vmem:[#allocation285_spill] sm:$0xff] }
 0x4c2   : > { %17789 = vst [vmem:[#allocation169_spill] sm:$0xff] %v12331_v63  ;;  %17791 = vst [vmem:[#allocation167_spill] sm:$0xff] %v12335_v33  ;;  %v12351_v17 = vadd.f32 %v11755_v32, %v17796_v45  ;;  %v3743_v0 = vadd.f32 %v3742_v37, %v12331_v63  ;;  %v12356_v61 = vadd.f32 %v11973_v20, %v17798_v59  ;;  %v17804_v38 = vld [vmem:[#allocation277_spill] sm:$0xff]  ;;  %v3688_v37 = vsel %vm2907_vm1, %v12322_v13, 0.0  ;;  %v17806_v59 = vld [vmem:[#allocation192_spill] sm:$0xff] }
 0x4c3   : > { %17793 = vst [vmem:[#allocation96_spill] sm:$0xff] %v12343_v40  ;;  %17795 = vst [vmem:[#allocation104_spill] sm:$0xff] %v12347_v16  ;;  %v12360_v2 = vadd.f32 %v11973_v20, %v17800_v50  ;;  %v12364_v49 = vsub.f32 %v17802_v28, %v12279_v1  ;;  %v3660_v60 = vadd.f32 %v3659_v3, %v3658_v53  ;;  %v3638_v45 = vrot.slane %v3637_v44, 4  ;;  %v17810_v3 = vld [vmem:[#allocation153_spill] sm:$0xff] }
 0x4c4   : > { %17797 = vst [vmem:[#allocation100_spill] sm:$0xff] %v12351_v17  ;;  %17799 = vst [vmem:[#allocation105_spill] sm:$0xff] %v12356_v61  ;;  %v12368_v22 = vadd.f32 %v11973_v20, %v17804_v38  ;;  %v3687_v63 = vadd.f32 %v3686_v41, %v3685_v14  ;;  %v12374_v61 = vsub.f32 %v17806_v59, %v12279_v1  ;;  %v12378_v28 = vmul.f32 0.0078125, %v3601_v4  ;;  %v17808_v20 = vld [vmem:[#allocation235_spill] sm:$0xff]  ;;  %v17814_v32 = vld [vmem:[#allocation273_spill] sm:$0xff] }
 0x4c5   : > { %17801 = vst [vmem:[#allocation172_spill] sm:$0xff] %v12360_v2  ;;  %17803 = vst [vmem:[#allocation109_spill] sm:$0xff] %v12364_v49  ;;  %v4021_v50 = vmul.f32 %v12335_v33, %v12335_v33  ;;  %v4207_v2 = vadd.f32 %v4016_v58, %v4011_v5  ;;  %v3690_v53 = vsel %vm2907_vm1, %v12347_v16, 0.0  ;;  %v12384_v38 = vadd.f32 %v12064_v54, %v17808_v20  ;;  %v17812_v59 = vld [vmem:[#allocation19_spill] sm:$0xff]  ;;  %v17815_v20 = vld [vmem:[#allocation274_spill] sm:$0xff] }
 0x4c6   : > { %17805 = vst [vmem:[#allocation168_spill] sm:$0xff] %v12368_v22  ;;  %17807 = vst [vmem:[#allocation163_spill] sm:$0xff] %v12374_v61  ;;  %v12388_v14 = vadd.f32 %v12105_v51, %v17810_v3  ;;  %v3744_v41 = vadd.f32 %v3743_v0, %v12351_v17  ;;  %v12393_v22 = vsub.f32 %v17812_v59, %v12279_v1  ;;  %v3661_v5 = vrot.slane %v3660_v60, 2  ;;  %v17817_v0 = vld [vmem:[#allocation33_spill] sm:$0xff]  ;;  %v17819_v59 = vld [vmem:[#allocation27_spill] sm:$0xff] }
 0x4c7   : > { %17809 = vst [vmem:[#allocation165_spill] sm:$0xff] %v12384_v38  ;;  %v4026_v4 = vmul.f32 %v12364_v49, %v12364_v49  ;;  %v4208_v58 = vadd.f32 %v4207_v2, %v4021_v50  ;;  %v12399_v33 = vsub.f32 %v17814_v32, %v12378_v28  ;;  %v12403_v16 = vsub.f32 %v17815_v20, %v12378_v28 }
 0x4c8   : > { %17811 = vst [vmem:[#allocation113_spill] sm:$0xff] %v12388_v14  ;;  %17813 = vst [vmem:[#allocation180_spill] sm:$0xff] %v12393_v22  ;;  %v12405_v3 = vadd.f32 %v3638_v45, %v3637_v44  ;;  %v12409_v17 = vadd.f32 %v11790_v29, %v17817_v0  ;;  %v12413_v13 = vsub.f32 %v17819_v59, %v12279_v1  ;;  %v12419_v49 = vsel %vm2907_vm1, %v12384_v38, 0.0  ;;  %v17821_v45 = vld [vmem:[#allocation40_spill] sm:$0xff]  ;;  %v17823_v59 = vld [vmem:[#allocation207_spill] sm:$0xff] }
 0x4c9   : > { %17816 = vst [vmem:[#allocation186_spill] sm:$0xff] %v12403_v16  ;;  %v4031_v2 = vmul.f32 %v12374_v61, %v12374_v61  ;;  %v4209_v50 = vadd.f32 %v4208_v58, %v4026_v4  ;;  %v3689_v32 = vadd.f32 %v3688_v37, %v3687_v63  ;;  %v12423_v44 = vsel %vm2907_vm1, %v12388_v14, 0.0  ;;  %v17825_v58 = vld [vmem:[#allocation103_spill] sm:$0xff] }
 0x4ca   : > { %17818 = vst [vmem:[#allocation171_spill] sm:$0xff] %v12409_v17  ;;  %17820 = vst [vmem:[#allocation118_spill] sm:$0xff] %v12413_v13  ;;  %v12427_v20 = vsub.f32 %v17821_v45, %v12378_v28  ;;  %v12430_v0 = vadd.f32 %v3744_v41, %v12409_v17  ;;  %v12434_v29 = vsub.f32 %v17823_v59, %v12279_v1  ;;  %v3640_v17 = vrot.slane %v12405_v3, 2 }
 0x4cb   : > { %v4036_v63 = vmul.f32 %v12393_v22, %v12393_v22  ;;  %v4210_v37 = vadd.f32 %v4209_v50, %v4031_v2  ;;  %v3662_v4 = vadd.f32 %v3661_v5, %v3660_v60  ;;  %v12440_v61 = vsub.f32 %v17825_v58, %v12378_v28  ;;  %v17830_v22 = vld [vmem:[#allocation195_spill] sm:$0xff] }
 0x4cc   : > { %17822 = vst [vmem:[#allocation206_spill] sm:$0xff] %v12427_v20  ;;  %17824 = vst [vmem:[#allocation176_spill] sm:$0xff] %v12434_v29  ;;  %v4010_v45 = vmul.f32 %v12399_v33, %v12399_v33  ;;  %v4015_v41 = vmul.f32 %v12403_v16, %v12403_v16  ;;  %v12449_v59 = vsub.f32 %v11982_v47, %v12279_v1 }
 0x4cd   : > { %17826 = vst [vmem:[#allocation173_spill] sm:$0xff] %v12440_v61  ;;  %v4041_v2 = vmul.f32 %v12413_v13, %v12413_v13  ;;  %v4211_v60 = vadd.f32 %v4210_v37, %v4036_v63  ;;  %v3691_v5 = vadd.f32 %v3690_v53, %v3689_v32  ;;  %v12455_v50 = vsub.f32 %v12006_v10, %v12279_v1  ;;  %v17834_v32 = vld [vmem:[#allocation231_spill] sm:$0xff] }
 0x4ce   : > { %17827 = vst [vmem:[#allocation209_spill] sm:$0xff] %v12449_v59  ;;  %v12459_v58 = vsub.f32 %v12020_v6, %v12279_v1  ;;  %v12463_v14 = vsub.f32 %v17830_v22, %v12378_v28  ;;  %v4020_v47 = vmul.f32 %v12427_v20, %v12427_v20  ;;  %v12469_v13 = vsub.f32 %v12041_v57, %v12279_v1  ;;  %v12485_v20 = vpop.permute.xlu1 %4636 }
 0x4cf   : > { %17828 = vst [vmem:[#allocation122_spill] sm:$0xff] %v12455_v50  ;;  %v12473_v53 = vsub.f32 %v12047_v42, %v12279_v1  ;;  %v4046_v10 = vmul.f32 %v12434_v29, %v12434_v29  ;;  %v4212_v6 = vadd.f32 %v4211_v60, %v4041_v2  ;;  %v12479_v63 = vsub.f32 %v17834_v32, %v12378_v28  ;;  %v17837_v60 = vld [vmem:[#allocation35_spill] sm:$0xff] }
 0x4d0   : > { %17829 = vst [vmem:[#allocation112_spill] sm:$0xff] %v12459_v58  ;;  %17831 = vst [vmem:[#allocation108_spill] sm:$0xff] %v12463_v14  ;;  %v4025_v22 = vmul.f32 %v12440_v61, %v12440_v61  ;;  %v4170_v37 = vsel %vm3564_vm2, %v4010_v45, 0.0  ;;  %v4171_v57 = vsel %vm3564_vm2, %v4015_v41, 0.0  ;;  %v4051_v42 = vmul.f32 %v12449_v59, %v12449_v59 }
 0x4d1   : > { %17832 = vst [vmem:[#allocation181_spill] sm:$0xff] %v12469_v13  ;;  %17833 = vst [vmem:[#allocation175_spill] sm:$0xff] %v12473_v53  ;;  %v4213_v38 = vadd.f32 %v4212_v6, %v4046_v10  ;;  %v4172_v16 = vadd.f32 %v4171_v57, %v4170_v37  ;;  %v3663_v29 = vrot.slane %v3662_v4, 1  ;;  %v12491_v2 = vsub.f32 %v12084_v24, %v12279_v1  ;;  %v17840_v57 = vld [vmem:[#allocation106_spill] sm:$0xff] }
 0x4d2   : > { %17835 = vst [vmem:[#allocation107_spill] sm:$0xff] %v12485_v20  ;;  %v12495_v32 = vsub.f32 %v17837_v60, %v12378_v28  ;;  %v4030_v45 = vmul.f32 %v12463_v14, %v12463_v14  ;;  %v4173_v41 = vsel %vm3564_vm2, %v4020_v47, 0.0  ;;  %v12502_v61 = vsub.f32 %v12092_v7, %v12279_v1 }
 0x4d3   : > { %17836 = vst [vmem:[#allocation182_spill] sm:$0xff] %v12491_v2  ;;  %v4056_v10 = vmul.f32 %v12455_v50, %v12455_v50  ;;  %v4214_v6 = vadd.f32 %v4213_v38, %v4051_v42  ;;  %v4174_v37 = vadd.f32 %v4173_v41, %v4172_v16  ;;  %v12508_v24 = vsub.f32 %v12135_v23, %v12279_v1  ;;  %v12528_v41 = vpop.permute.xlu1 %4646 }
 0x4d4   : > { %17838 = vst [vmem:[#allocation205_spill] sm:$0xff] %v12502_v61  ;;  %v12512_v60 = vsub.f32 %v17840_v57, %v12378_v28  ;;  %v4035_v47 = vmul.f32 %v12479_v63, %v12479_v63  ;;  %v4175_v59 = vsel %vm3564_vm2, %v4025_v22, 0.0  ;;  %v4061_v7 = vmul.f32 %v12459_v58, %v12459_v58  ;;  %17843 = vst [vmem:[#allocation189_spill] sm:$0xff] %v12528_v41 }
 0x4d5   : > { %17839 = vst [vmem:[#allocation183_spill] sm:$0xff] %v12508_v24  ;;  %v4215_v14 = vadd.f32 %v4214_v6, %v4056_v10  ;;  %v4176_v50 = vadd.f32 %v4175_v59, %v4174_v37  ;;  %v3664_v38 = vadd.f32 %v3663_v29, %v3662_v4  ;;  %v4066_v16 = vmul.f32 %v12469_v13, %v12469_v13  ;;  %v17844_v10 = vld [vmem:[#allocation177_spill] sm:$0xff]  ;;  %v17848_v13 = vld [vmem:[#allocation54_spill] sm:$0xff] }
 0x4d6   : > { %17841 = vst [vmem:[#allocation187_spill] sm:$0xff] %v12512_v60  ;;  %v12523_v23 = vsub.f32 %v11967_v18, %v12378_v28  ;;  %v4040_v1 = vmul.f32 %v12495_v32, %v12495_v32  ;;  %v4177_v42 = vsel %vm3564_vm2, %v4030_v45, 0.0  ;;  %v4071_v22 = vmul.f32 %v12473_v53, %v12473_v53 }
 0x4d7   : > { %v4076_v29 = vmul.f32 %v12491_v2, %v12491_v2  ;;  %v4216_v4 = vadd.f32 %v4215_v14, %v4061_v7  ;;  %v4178_v59 = vadd.f32 %v4177_v42, %v4176_v50  ;;  %v12536_v6 = vsub.f32 %v17844_v10, %v12378_v28  ;;  %v17846_v50 = vld [vmem:[#allocation68_spill] sm:$0xff] }
 0x4d8   : > { %17842 = vst [vmem:[#allocation185_spill] sm:$0xff] %v12523_v23  ;;  %v4045_v18 = vmul.f32 %v12512_v60, %v12512_v60  ;;  %v4179_v37 = vsel %vm3564_vm2, %v4035_v47, 0.0  ;;  %v12541_v45 = vmul.f32 0.0078125, %v3664_v38  ;;  %v4081_v57 = vmul.f32 %v12502_v61, %v12502_v61 }
 0x4d9   : > { %17845 = vst [vmem:[#allocation188_spill] sm:$0xff] %v12536_v6  ;;  %v4086_v53 = vmul.f32 %v12508_v24, %v12508_v24  ;;  %v4217_v2 = vadd.f32 %v4216_v4, %v4066_v16  ;;  %v4180_v14 = vadd.f32 %v4179_v37, %v4178_v59  ;;  %v12549_v7 = vsub.f32 %v17846_v50, %v12378_v28  ;;  %v17850_v37 = vld [vmem:[#allocation62_spill] sm:$0xff] }
 0x4da   : > { %v4050_v42 = vmul.f32 %v12523_v23, %v12523_v23  ;;  %v4181_v10 = vsel %vm3564_vm2, %v4040_v1, 0.0  ;;  %v3641_v47 = vadd.f32 %v3640_v17, %v12405_v3  ;;  %v12557_v61 = vsub.f32 %v17848_v13, %v12378_v28  ;;  %v17851_v1 = vld [vmem:[#allocation56_spill] sm:$0xff]  ;;  %v12571_v3 = vpop.permute.xlu1 %4656 }
 0x4db   : > { %17847 = vst [vmem:[#allocation137_spill] sm:$0xff] %v12549_v7  ;;  %v4218_v38 = vadd.f32 %v4217_v2, %v4071_v22  ;;  %v4182_v58 = vadd.f32 %v4181_v10, %v4180_v14  ;;  %v3693_v16 = vadd.f32 %v12419_v49, %v3691_v5  ;;  %v4055_v4 = vmul.f32 %v12536_v6, %v12536_v6  ;;  %v17853_v2 = vld [vmem:[#allocation85_spill] sm:$0xff] }
 0x4dc   : > { %17849 = vst [vmem:[#allocation139_spill] sm:$0xff] %v12557_v61  ;;  %v4183_v59 = vsel %vm3564_vm2, %v4045_v18, 0.0  ;;  %v12565_v50 = vsub.f32 %v17850_v37, %v12541_v45  ;;  %v12569_v17 = vsub.f32 %v17851_v1, %v12541_v45  ;;  %17852 = vst [vmem:[#allocation138_spill] sm:$0xff] %v12571_v3  ;;  %v12575_v22 = vsub.f32 %v17853_v2, %v12378_v28 }
 0x4dd   : > { %v4219_v13 = vadd.f32 %v4218_v38, %v4076_v29  ;;  %v12579_v49 = vsub.f32 %v12058_v55, %v12378_v28  ;;  %v4184_v5 = vadd.f32 %v4183_v59, %v4182_v58  ;;  %v12583_v18 = vsub.f32 %v12088_v39, %v12378_v28  ;;  %v17858_v39 = vld [vmem:[#allocation73_spill] sm:$0xff] }
 0x4de   : > { %17854 = vst [vmem:[#allocation193_spill] sm:$0xff] %v12575_v22  ;;  %v4060_v14 = vmul.f32 %v12549_v7, %v12549_v7  ;;  %v4185_v10 = vsel %vm3564_vm2, %v4050_v42, 0.0  ;;  %v3642_v37 = vrot.slane %v3641_v47, 1  ;;  %v12590_v38 = vsub.f32 %v12131_v11, %v12378_v28 }
 0x4df   : > { %17855 = vst [vmem:[#allocation129_spill] sm:$0xff] %v12579_v49  ;;  %17856 = vst [vmem:[#allocation190_spill] sm:$0xff] %v12583_v18  ;;  %v4220_v29 = vadd.f32 %v4219_v13, %v4081_v57  ;;  %v4065_v55 = vmul.f32 %v12557_v61, %v12557_v61  ;;  %v4186_v1 = vadd.f32 %v4185_v10, %v4184_v5  ;;  %v4187_v58 = vsel %vm3564_vm2, %v4055_v4, 0.0  ;;  %v17859_v10 = vld [vmem:[#allocation150_spill] sm:$0xff]  ;;  %v12614_v61 = vpop.permute.xlu1 %4666 }
 0x4e0   : > { %17857 = vst [vmem:[#allocation215_spill] sm:$0xff] %v12590_v38  ;;  %v12597_v59 = vsub.f32 %v17858_v39, %v12541_v45  ;;  %v4013_v2 = vmul.f32 %v12565_v50, %v12565_v50  ;;  %v4018_v57 = vmul.f32 %v12569_v17, %v12569_v17  ;;  %v4070_v11 = vmul.f32 %v12575_v22, %v12575_v22 }
 0x4e1   : > { %v4221_v42 = vadd.f32 %v4220_v29, %v4086_v53  ;;  %v4075_v28 = vmul.f32 %v12579_v49, %v12579_v49  ;;  %v4188_v13 = vadd.f32 %v4187_v58, %v4186_v1  ;;  %v4080_v4 = vmul.f32 %v12583_v18, %v12583_v18  ;;  %17860 = vst [vmem:[#allocation15_spill] sm:$0xff] %v12614_v61  ;;  %v17861_v1 = vld [vmem:[#allocation203_spill] sm:$0xff] }
 0x4e2   : > { %v4189_v5 = vsel %vm3564_vm2, %v4060_v14, 0.0  ;;  %v12612_v39 = vsub.f32 %v17859_v10, %v12541_v45  ;;  %v3643_v24 = vadd.f32 %v3642_v37, %v3641_v47  ;;  %v4085_v29 = vmul.f32 %v12590_v38, %v12590_v38 }
 0x4e3   : > { %v4222_v53 = vrot.slane %v4221_v42, 4  ;;  %v4190_v22 = vadd.f32 %v4189_v5, %v4188_v13  ;;  %v4191_v49 = vsel %vm3564_vm2, %v4065_v55, 0.0  ;;  %v12621_v58 = vsub.f32 %v17861_v1, %v12541_v45  ;;  %v17862_v13 = vld [vmem:[#allocation13_spill] sm:$0xff] }
 0x4e4   : > { %v4023_v14 = vmul.f32 %v12597_v59, %v12597_v59  ;;  %v4249_v18 = vadd.f32 %v4018_v57, %v4013_v2  ;;  %v3695_v10 = vadd.f32 %v12423_v44, %v3693_v16  ;;  %v4193_v7 = vsel %vm3564_vm2, %v4070_v11, 0.0  ;;  %v12644_v11 = vpop.permute.xlu1 %4676 }
 0x4e5   : > { %v4223_v47 = vadd.f32 %v4222_v53, %v4221_v42  ;;  %v4192_v37 = vadd.f32 %v4191_v49, %v4190_v22  ;;  %v4195_v6 = vsel %vm3564_vm2, %v4075_v28, 0.0  ;;  %v12630_v5 = vsub.f32 %v17862_v13, %v12541_v45  ;;  %17863 = vst [vmem:[#allocation212_spill] sm:$0xff] %v12644_v11  ;;  %v17864_v28 = vld [vmem:[#allocation179_spill] sm:$0xff] }
 0x4e6   : > { %v4028_v55 = vmul.f32 %v12612_v39, %v12612_v39  ;;  %v4250_v1 = vadd.f32 %v4249_v18, %v4023_v14  ;;  %v12634_v38 = vmul.f32 0.0078125, %v3643_v24  ;;  %v4197_v44 = vsel %vm3564_vm2, %v4080_v4, 0.0 }
 0x4e7   : > { %v4224_v23 = vrot.slane %v4223_v47, 2  ;;  %v4194_v2 = vadd.f32 %v4193_v7, %v4192_v37  ;;  %v4199_v16 = vsel %vm3564_vm2, %v4085_v29, 0.0  ;;  %v12640_v22 = vsub.f32 %v11952_v27, %v12541_v45  ;;  %v17867_v29 = vld [vmem:[#allocation63_spill] sm:$0xff] }
 0x4e8   : > { %v4033_v49 = vmul.f32 %v12621_v58, %v12621_v58  ;;  %v4251_v57 = vadd.f32 %v4250_v1, %v4028_v55  ;;  %v3696_v42 = vrot.slane %v3695_v10, 4  ;;  %v12648_v7 = vsub.f32 %v17864_v28, %v12541_v45  ;;  %v17868_v37 = vld [vmem:[#allocation59_spill] sm:$0xff]  ;;  %v17875_v28 = vld [vmem:[#allocation234_spill] sm:$0xff] }
 0x4e9   : > { %v4225_v18 = vadd.f32 %v4224_v23, %v4223_v47  ;;  %v4196_v24 = vadd.f32 %v4195_v6, %v4194_v2  ;;  %v12652_v4 = vsub.f32 %v11990_v15, %v12541_v45  ;;  %v4038_v27 = vmul.f32 %v12630_v5, %v12630_v5 }
 0x4ea   : > { %17865 = vst [vmem:[#allocation208_spill] sm:$0xff] %v12648_v7  ;;  %v4252_v53 = vadd.f32 %v4251_v57, %v4033_v49  ;;  %v12658_v14 = vsub.f32 %v17867_v29, %v12634_v38  ;;  %v12662_v23 = vsub.f32 %v17868_v37, %v12634_v38  ;;  %v12666_v13 = vsub.f32 %v12014_v30, %v12541_v45  ;;  %v12682_v49 = vpop.permute.xlu0 %4641 }
 0x4eb   : > { %17866 = vst [vmem:[#allocation221_spill] sm:$0xff] %v12652_v4  ;;  %v4226_v6 = vrot.slane %v4225_v18, 1  ;;  %v4198_v47 = vadd.f32 %v4197_v44, %v4196_v24  ;;  %v12670_v15 = vsub.f32 %v12032_v46, %v12541_v45  ;;  %v12674_v55 = vsub.f32 %v12112_v36, %v12541_v45  ;;  %17873 = vst [vmem:[#allocation197_spill] sm:$0xff] %v12682_v49 }
 0x4ec   : > { %17869 = vst [vmem:[#allocation11_spill] sm:$0xff] %v12666_v13  ;;  %v12678_v1 = vsub.f32 %v12116_v26, %v12541_v45  ;;  %v4043_v2 = vmul.f32 %v12640_v22, %v12640_v22  ;;  %v4253_v44 = vadd.f32 %v4252_v53, %v4038_v27  ;;  %v12686_v46 = vsub.f32 %v12191_v48, %v12541_v45 }
 0x4ed   : > { %17870 = vst [vmem:[#allocation146_spill] sm:$0xff] %v12670_v15  ;;  %17871 = vst [vmem:[#allocation149_spill] sm:$0xff] %v12674_v55  ;;  %v4227_v30 = vadd.f32 %v4226_v6, %v4225_v18  ;;  %v4200_v57 = vadd.f32 %v4199_v16, %v4198_v47  ;;  %v4048_v36 = vmul.f32 %v12648_v7, %v12648_v7  ;;  %v12698_v18 = vpop.permute.xlu1 %4686  ;;  %v17886_v7 = vld [vmem:[#allocation243_spill] sm:$0xff] }
 0x4ee   : > { %17872 = vst [vmem:[#allocation147_spill] sm:$0xff] %v12678_v1  ;;  %17874 = vst [vmem:[#allocation16_spill] sm:$0xff] %v12686_v46  ;;  %v4254_v24 = vadd.f32 %v4253_v44, %v4043_v2  ;;  %v12692_v26 = vsub.f32 %v17875_v28, %v12634_v38  ;;  %v4012_v29 = vmul.f32 %v12658_v14, %v12658_v14  ;;  %v17879_v44 = vld [vmem:[#allocation23_spill] sm:$0xff] }
 0x4ef   : > { %v4017_v27 = vmul.f32 %v12662_v23, %v12662_v23  ;;  %17876 = vst [vmem:[#allocation220_spill] sm:$0xff] %v12698_v18  ;;  %v4445_v16 = vmul.f32 0.0078125, %v4227_v30  ;;  %v4201_v53 = vrot.slane %v4200_v57, 4  ;;  %v12702_v48 = vsub.f32 %v12207_v56, %v12541_v45 }
 0x4f0   : > { %v3697_v37 = vadd.f32 %v3696_v42, %v3695_v10  ;;  %v12706_v6 = vsub.f32 %v12256_v35, %v12541_v45  ;;  %v4053_v47 = vmul.f32 %v12652_v4, %v12652_v4  ;;  %v4255_v2 = vadd.f32 %v4254_v24, %v4048_v36  ;;  %v17880_v35 = vld [vmem:[#allocation160_spill] sm:$0xff]  ;;  %v12724_v24 = vpop.permute.xlu0 %4651 }
 0x4f1   : > { %17877 = vst [vmem:[#allocation224_spill] sm:$0xff] %v12702_v48  ;;  %v12712_v28 = vsub.f32 %v17879_v44, %v12634_v38  ;;  %v4455_v18 = vadd.f32 1e-05, %v4445_v16  ;;  %v4202_v30 = vadd.f32 %v4201_v53, %v4200_v57  ;;  %v4058_v11 = vmul.f32 %v12666_v13, %v12666_v13  ;;  %17881 = vst [vmem:[#allocation121_spill] sm:$0xff] %v12724_v24  ;;  %v17882_v57 = vld [vmem:[#allocation36_spill] sm:$0xff]  ;;  %v12736_v4 = vpop.permute.xlu1 %4696 }
 0x4f2   : > { %17878 = vst [vmem:[#allocation211_spill] sm:$0xff] %v12706_v6  ;;  %v4063_v56 = vmul.f32 %v12670_v15, %v12670_v15  ;;  %v4256_v10 = vadd.f32 %v4255_v2, %v4053_v47  ;;  %v12720_v45 = vsub.f32 %v17880_v35, %v12634_v38  ;;  %v4022_v42 = vmul.f32 %v12692_v26, %v12692_v26  ;;  %v17883_v35 = vld [vmem:[#allocation241_spill] sm:$0xff] }
 0x4f3   : > { %v4228_v36 = vadd.f32 %v4017_v27, %v4012_v29  ;;  %6924 = vrsqrt.f32 %v4455_v18  ;;  %v4203_v16 = vrot.slane %v4202_v30, 2  ;;  %v12728_v53 = vsub.f32 %v17882_v57, %v12634_v38  ;;  %17885 = vst [vmem:[#allocation48_spill] sm:$0xff] %v12736_v4  ;;  %v17887_v57 = vld [vmem:[#allocation31_spill] sm:$0xff] }
 0x4f4   : > { %v3698_v44 = vrot.slane %v3697_v37, 2  ;;  %v4257_v13 = vadd.f32 %v4256_v10, %v4058_v11  ;;  %v4027_v47 = vmul.f32 %v12712_v28, %v12712_v28  ;;  %v12734_v15 = vadd.f32 %v11561_v8, %v17883_v35  ;;  %v17889_v10 = vld [vmem:[#allocation71_spill] sm:$0xff] }
 0x4f5   : > { %v4229_v2 = vadd.f32 %v4228_v36, %v4022_v42  ;;  %v4204_v29 = vadd.f32 %v4203_v16, %v4202_v30  ;;  %v4068_v27 = vmul.f32 %v12674_v55, %v12674_v55  ;;  %v12742_v60 = vadd.f32 %v17887_v57, %v17886_v7  ;;  %v17890_v16 = vld [vmem:[#allocation65_spill] sm:$0xff]  ;;  %v12760_v57 = vpop.permute.xlu0 %4661  ;;  %v17892_v8 = vld [vmem:[#allocation55_spill] sm:$0xff] }
 0x4f6   : > { %17884 = vst [vmem:[#allocation204_spill] sm:$0xff] %v12734_v15  ;;  %v3699_v18 = vadd.f32 %v3698_v44, %v3697_v37  ;;  %v4258_v11 = vadd.f32 %v4257_v13, %v4063_v56  ;;  %v12746_v61 = vsub.f32 %v17889_v10, %v12634_v38  ;;  %v4032_v42 = vmul.f32 %v12720_v45, %v12720_v45 }
 0x4f7   : > { %17888 = vst [vmem:[#allocation120_spill] sm:$0xff] %v12742_v60  ;;  %v4230_v36 = vadd.f32 %v4229_v2, %v4027_v47  ;;  %v4205_v35 = vrot.slane %v4204_v29, 1  ;;  %v4073_v30 = vmul.f32 %v12678_v1, %v12678_v1  ;;  %v12754_v37 = vsub.f32 %v17890_v16, %v12634_v38  ;;  %17891 = vst [vmem:[#allocation20_spill] sm:$0xff] %v12760_v57 }
 0x4f8   : > { %v3700_v44 = vrot.slane %v3699_v18, 1  ;;  %v4259_v7 = vadd.f32 %v4258_v11, %v4068_v27  ;;  %v4037_v13 = vmul.f32 %v12728_v53, %v12728_v53  ;;  %v3702_v10 = vsel %vm3564_vm2, %v12734_v15, 0.0  ;;  %v17894_v15 = vld [vmem:[#allocation52_spill] sm:$0xff] }
 0x4f9   : > { %v4231_v56 = vadd.f32 %v4230_v36, %v4032_v42  ;;  %v4206_v47 = vadd.f32 %v4205_v35, %v4204_v29  ;;  %v4078_v2 = vmul.f32 %v12686_v46, %v12686_v46  ;;  %v12766_v4 = vsub.f32 %v17892_v8, %v12634_v38  ;;  %v12778_v35 = vpop.permute.xlu1 %4706 }
 0x4fa   : > { %v3703_v27 = vsel %vm3564_vm2, %v12742_v60, 0.0  ;;  %v4260_v11 = vadd.f32 %v4259_v7, %v4073_v30  ;;  %v4042_v42 = vmul.f32 %v12746_v61, %v12746_v61  ;;  %v12776_v29 = vadd.f32 %v12036_v9, %v17894_v15  ;;  %17896 = vst [vmem:[#allocation222_spill] sm:$0xff] %v12778_v35  ;;  %v17897_v30 = vld [vmem:[#allocation70_spill] sm:$0xff]  ;;  %v17902_v60 = vld [vmem:[#allocation53_spill] sm:$0xff] }
 0x4fb   : > { %17893 = vst [vmem:[#allocation223_spill] sm:$0xff] %v12766_v4  ;;  %v4232_v36 = vadd.f32 %v4231_v56, %v4037_v13  ;;  %v12772_v16 = vadd.f32 %v3703_v27, %v3702_v10  ;;  %v4444_v46 = vmul.f32 0.0078125, %v4206_v47  ;;  %v4083_v8 = vmul.f32 %v12702_v48, %v12702_v48  ;;  %v17899_v27 = vld [vmem:[#allocation79_spill] sm:$0xff] }
 0x4fc   : > { %17895 = vst [vmem:[#allocation151_spill] sm:$0xff] %v12776_v29  ;;  %v3701_v1 = vadd.f32 %v3700_v44, %v3699_v18  ;;  %v4261_v55 = vadd.f32 %v4260_v11, %v4078_v2  ;;  %v12784_v7 = vsub.f32 %v17897_v30, %v12634_v38  ;;  %v4047_v13 = vmul.f32 %v12754_v37, %v12754_v37  ;;  %v17901_v44 = vld [vmem:[#allocation83_spill] sm:$0xff] }
 0x4fd   : > { %v4233_v56 = vadd.f32 %v4232_v36, %v4042_v42  ;;  %v12788_v10 = vpop.eup %6924  ;;  %v4454_v15 = vadd.f32 1e-05, %v4444_v46  ;;  %v4088_v47 = vmul.f32 %v12706_v6, %v12706_v6  ;;  %v12796_v18 = vsub.f32 %v17899_v27, %v12634_v38  ;;  %v12808_v6 = vpop.permute.xlu0 %4671  ;;  %v17905_v27 = vld [vmem:[#allocation78_spill] sm:$0xff] }
 0x4fe   : > { %17898 = vst [vmem:[#allocation145_spill] sm:$0xff] %v12784_v7  ;;  %v3746_v2 = vadd.f32 %v12430_v0, %v17901_v44  ;;  %v4475_v11 = vmul.f32 %v12788_v10, %v12295_v34  ;;  %v4262_v30 = vadd.f32 %v4261_v55, %v4083_v8  ;;  %v4052_v42 = vmul.f32 %v12766_v4, %v12766_v4  ;;  %v17909_v44 = vld [vmem:[#allocation282_spill] sm:$0xff]  ;;  %v12827_v48 = vpop.permute.xlu1 %4876 }
 0x4ff   : > { %17900 = vst [vmem:[#allocation201_spill] sm:$0xff] %v12796_v18  ;;  %v4234_v36 = vadd.f32 %v4233_v56, %v4047_v13  ;;  %v12806_v46 = vadd.f32 %v12036_v9, %v17902_v60  ;;  %17904 = vst [vmem:[#allocation144_spill] sm:$0xff] %v12808_v6  ;;  %6926 = vrsqrt.f32 %v4454_v15  ;;  %v12812_v29 = vsub.f32 %v17905_v27, %v12634_v38  ;;  %v17907_v56 = vld [vmem:[#allocation281_spill] sm:$0xff] }
 0x500   : > { %v12814_v0 = vmul.f32 0.0078125, %v3701_v1  ;;  %v4715_v34 = vmul.f32 %v12485_v20, %v4475_v11  ;;  %v4263_v55 = vadd.f32 %v4262_v30, %v4088_v47  ;;  %v4057_v8 = vmul.f32 %v12784_v7, %v12784_v7  ;;  %17911 = vst [vmem:[#allocation117_spill] sm:$0xff] %v12827_v48  ;;  %v17913_v47 = vld [vmem:[#allocation101_spill] sm:$0xff] }
 0x501   : > { %17903 = vst [vmem:[#allocation218_spill] sm:$0xff] %v12806_v46  ;;  %17906 = vst [vmem:[#allocation156_spill] sm:$0xff] %v12812_v29  ;;  %v4235_v13 = vadd.f32 %v4234_v36, %v4052_v42  ;;  %v12821_v60 = vadd.f32 %v12036_v9, %v17907_v56  ;;  %v12825_v15 = vadd.f32 %v12036_v9, %v17909_v44  ;;  %v17914_v56 = vld [vmem:[#allocation49_spill] sm:$0xff] }
 0x502   : > { %v12831_v1 = vsub.f32 %v12167_v19, %v12634_v38  ;;  %v3747_v11 = vadd.f32 %v3746_v2, %v17913_v47  ;;  %v4955_v30 = vadd.f32 %v12827_v48, %v4715_v34  ;;  %v4264_v42 = vrot.slane %v4263_v55, 4  ;;  %v17917_v19 = vld [vmem:[#allocation74_spill] sm:$0xff]  ;;  %v17918_v2 = vld [vmem:[#allocation127_spill] sm:$0xff] }
 0x503   : > { %17908 = vst [vmem:[#allocation116_spill] sm:$0xff] %v12821_v60  ;;  %17910 = vst [vmem:[#allocation80_spill] sm:$0xff] %v12825_v15  ;;  %v4062_v36 = vmul.f32 %v12796_v18, %v12796_v18  ;;  %v4236_v27 = vadd.f32 %v4235_v13, %v4057_v8  ;;  %v12839_v44 = vadd.f32 %v12036_v9, %v17914_v56  ;;  %v12855_v9 = vpop.permute.xlu0 %4681  ;;  %v12858_v56 = vstv %s12790_s10 }
 0x504   : > { %17912 = vst [vmem:[#allocation90_spill] sm:$0xff] %v12831_v1  ;;  %v12843_v60 = vsub.f32 %v12229_v25, %v12634_v38  ;;  %v12847_v15 = vsub.f32 %v17917_v19, %v12814_v0  ;;  %v12851_v34 = vsub.f32 %v17918_v2, %v12814_v0  ;;  %v5115_v47 = vmul.f32 0.01, %v4955_v30  ;;  %17919 = vst [vmem:[#allocation61_spill] sm:$0xff] %v12855_v9 }
 0x505   : > { %17915 = vst [vmem:[#allocation57_spill] sm:$0xff] %v12839_v44  ;;  %v4265_v35 = vadd.f32 %v4264_v42, %v4263_v55  ;;  %v4067_v8 = vmul.f32 %v12812_v29, %v12812_v29  ;;  %v4237_v13 = vadd.f32 %v4236_v27, %v4062_v36  ;;  %v12862_v25 = vsub.f32 %v12243_v31, %v12634_v38  ;;  %v17921_v42 = vld [vmem:[#allocation22_spill] sm:$0xff] }
 0x506   : > { %17916 = vst [vmem:[#allocation217_spill] sm:$0xff] %v12843_v60  ;;  %v4072_v19 = vmul.f32 %v12831_v1, %v12831_v1  ;;  %v3748_v2 = vadd.f32 %v3747_v11, %v12252_v52  ;;  %v5275_v44 = vmax.f32 %v4955_v30, %v5115_v47  ;;  %v12869_v29 = vsub.f32 %v17921_v42, %v12814_v0  ;;  %v17927_v1 = vld [vmem:[#allocation76_spill] sm:$0xff] }
 0x507   : > { %17920 = vst [vmem:[#allocation226_spill] sm:$0xff] %v12862_v25  ;;  %v4266_v18 = vrot.slane %v4265_v35, 2  ;;  %v4238_v55 = vadd.f32 %v4237_v13, %v4067_v8  ;;  %v12873_v36 = vsub.f32 %v12311_v62, %v12634_v38  ;;  %v4077_v31 = vmul.f32 %v12843_v60, %v12843_v60  ;;  %v17923_v13 = vld [vmem:[#allocation202_spill] sm:$0xff]  ;;  %v17925_v62 = vld [vmem:[#allocation284_spill] sm:$0xff] }
 0x508   : > { %v4014_v27 = vmul.f32 %v12847_v15, %v12847_v15  ;;  %v4019_v11 = vmul.f32 %v12851_v34, %v12851_v34  ;;  %v5567_v47 = vmul.f32 %v12858_v56, %v5275_v44  ;;  %v12884_v42 = vsub.f32 %v17923_v13, %v12814_v0  ;;  %v12904_v13 = vpop.permute.xlu0 %4691 }
 0x509   : > { %17922 = vst [vmem:[#allocation88_spill] sm:$0xff] %v12873_v36  ;;  %v4267_v30 = vadd.f32 %v4266_v18, %v4265_v35  ;;  %v4239_v8 = vadd.f32 %v4238_v55, %v4072_v19  ;;  %v12886_v52 = vpop.eup %6926  ;;  %v12890_v38 = vadd.f32 %v12064_v54, %v17925_v62  ;;  %v4082_v60 = vmul.f32 %v12862_v25, %v12862_v25  ;;  %v17931_v25 = vld [vmem:[#allocation50_spill] sm:$0xff] }
 0x50a   : > { %17924 = vst [vmem:[#allocation115_spill] sm:$0xff] %v12884_v42  ;;  %v12896_v9 = vsub.f32 %v17927_v1, %v12814_v0  ;;  %v3749_v35 = vadd.f32 %v3748_v2, %v12291_v12  ;;  %5888 = vrot.lane.b32.xlu0 %v5567_v47, %s7249_s18  ;;  %v4474_v18 = vmul.f32 %v12886_v52, %v12399_v33  ;;  %17929 = vst [vmem:[#allocation154_spill] sm:$0xff] %v12904_v13  ;;  %v17930_v1 = vld [vmem:[#allocation66_spill] sm:$0xff] }
 0x50b   : > { %17926 = vst [vmem:[#allocation58_spill] sm:$0xff] %v12890_v38  ;;  %v4268_v44 = vrot.slane %v4267_v30, 1  ;;  %v4240_v19 = vadd.f32 %v4239_v8, %v4077_v31  ;;  %v4024_v55 = vmul.f32 %v12869_v29, %v12869_v29  ;;  %v4087_v62 = vmul.f32 %v12873_v36, %v12873_v36  ;;  %v17933_v36 = vld [vmem:[#allocation77_spill] sm:$0xff] }
 0x50c   : > { %17928 = vst [vmem:[#allocation60_spill] sm:$0xff] %v12896_v9  ;;  %v12910_v38 = vsub.f32 %v17930_v1, %v12814_v0  ;;  %v4270_v2 = vsel %vm2907_vm1, %v4014_v27, 0.0  ;;  %v4271_v47 = vsel %vm2907_vm1, %v4019_v11, 0.0  ;;  %v4714_v33 = vmul.f32 %v12485_v20, %v4474_v18 }
 0x50d   : > { %v4269_v12 = vadd.f32 %v4268_v44, %v4267_v30  ;;  %v4241_v31 = vadd.f32 %v4240_v19, %v4082_v60  ;;  %v4029_v8 = vmul.f32 %v12884_v42, %v12884_v42  ;;  %v12919_v13 = vadd.f32 %v12064_v54, %v17931_v25 }
 0x50e   : > { %v12923_v7 = vsub.f32 %v17933_v36, %v12814_v0  ;;  %v4034_v27 = vmul.f32 %v12896_v9, %v12896_v9  ;;  %v4272_v1 = vadd.f32 %v4271_v47, %v4270_v2  ;;  %v4954_v11 = vadd.f32 %v12827_v48, %v4714_v33  ;;  %v17935_v47 = vld [vmem:[#allocation198_spill] sm:$0xff] }
 0x50f   : > { %17932 = vst [vmem:[#allocation111_spill] sm:$0xff] %v12919_v13  ;;  %v4447_v18 = vmul.f32 0.0078125, %v4269_v12  ;;  %v4242_v30 = vadd.f32 %v4241_v31, %v4087_v62  ;;  %v4273_v60 = vsel %vm2907_vm1, %v4024_v55, 0.0  ;;  %v12931_v44 = vsub.f32 %v11931_v21, %v12814_v0  ;;  %v12941_v55 = vpop.permute.xlu0 %4701 }
 0x510   : > { %v4039_v25 = vmul.f32 %v12910_v38, %v12910_v38  ;;  %v4274_v19 = vadd.f32 %v4273_v60, %v4272_v1  ;;  %v3750_v36 = vadd.f32 %v3749_v35, %v12343_v40  ;;  %v5114_v4 = vmul.f32 0.01, %v4954_v11  ;;  %17937 = vst [vmem:[#allocation130_spill] sm:$0xff] %v12941_v55  ;;  %v17941_v60 = vld [vmem:[#allocation81_spill] sm:$0xff] }
 0x511   : > { %17934 = vst [vmem:[#allocation125_spill] sm:$0xff] %v12931_v44  ;;  %v4457_v42 = vadd.f32 1e-05, %v4447_v18  ;;  %v4243_v9 = vrot.slane %v4242_v30, 4  ;;  %v4275_v2 = vsel %vm2907_vm1, %v4029_v8, 0.0  ;;  %v12939_v12 = vadd.f32 %v12064_v54, %v17935_v47  ;;  %v17939_v8 = vld [vmem:[#allocation199_spill] sm:$0xff] }
 0x512   : > { %v12945_v21 = vsub.f32 %v11998_v43, %v12814_v0  ;;  %v4044_v62 = vmul.f32 %v12923_v7, %v12923_v7  ;;  %v4276_v33 = vadd.f32 %v4275_v2, %v4274_v19  ;;  %v5274_v35 = vmax.f32 %v4954_v11, %v5114_v4  ;;  %v17945_v11 = vld [vmem:[#allocation72_spill] sm:$0xff]  ;;  %v17947_v19 = vld [vmem:[#allocation94_spill] sm:$0xff] }
 0x513   : > { %17936 = vst [vmem:[#allocation119_spill] sm:$0xff] %v12939_v12  ;;  %6928 = vrsqrt.f32 %v4457_v42  ;;  %v4244_v31 = vadd.f32 %v4243_v9, %v4242_v30  ;;  %v4277_v1 = vsel %vm2907_vm1, %v4034_v27, 0.0  ;;  %v12952_v18 = vadd.f32 %v12064_v54, %v17939_v8  ;;  %v17943_v42 = vld [vmem:[#allocation191_spill] sm:$0xff]  ;;  %v17950_v8 = vld [vmem:[#allocation14_spill] sm:$0xff] }
 0x514   : > { %17938 = vst [vmem:[#allocation10_spill] sm:$0xff] %v12945_v21  ;;  %v12956_v47 = vsub.f32 %v17941_v60, %v12814_v0  ;;  %v4278_v12 = vadd.f32 %v4277_v1, %v4276_v33  ;;  %v3751_v43 = vadd.f32 %v3750_v36, %v12806_v46  ;;  %v5566_v40 = vmul.f32 %v12858_v56, %v5274_v35  ;;  %v17949_v35 = vld [vmem:[#allocation186_spill] sm:$0xff] }
 0x515   : > { %17940 = vst [vmem:[#allocation136_spill] sm:$0xff] %v12952_v18  ;;  %v4245_v55 = vrot.slane %v4244_v31, 2  ;;  %v4049_v4 = vmul.f32 %v12931_v44, %v12931_v44  ;;  %v4279_v9 = vsel %vm2907_vm1, %v4039_v25, 0.0  ;;  %v12965_v27 = vadd.f32 %v12064_v54, %v17943_v42  ;;  %v12985_v42 = vpop.permute.xlu0 %4711  ;;  %v17959_v18 = vld [vmem:[#allocation214_spill] sm:$0xff] }
 0x516   : > { %17942 = vst [vmem:[#allocation132_spill] sm:$0xff] %v12956_v47  ;;  %v12969_v30 = vadd.f32 %v12105_v51, %v17945_v11  ;;  %v12973_v2 = vsub.f32 %v17947_v19, %v12814_v0  ;;  %v4280_v36 = vadd.f32 %v4279_v9, %v4278_v12  ;;  %5886 = vrot.lane.b32.xlu1 %v5566_v40, %s7249_s18  ;;  %v4281_v54 = vsel %vm2907_vm1, %v4044_v62, 0.0  ;;  %v17953_v11 = vld [vmem:[#allocation196_spill] sm:$0xff] }
 0x517   : > { %17944 = vst [vmem:[#allocation230_spill] sm:$0xff] %v12965_v27  ;;  %v4246_v33 = vadd.f32 %v4245_v55, %v4244_v31  ;;  %v4479_v1 = vmul.f32 %v12886_v52, %v17949_v35  ;;  %v4054_v25 = vmul.f32 %v12945_v21, %v12945_v21  ;;  %v12983_v60 = vadd.f32 %v12105_v51, %v17950_v8  ;;  %v17955_v31 = vld [vmem:[#allocation69_spill] sm:$0xff]  ;;  %v17957_v8 = vld [vmem:[#allocation75_spill] sm:$0xff] }
 0x518   : > { %17946 = vst [vmem:[#allocation174_spill] sm:$0xff] %v12969_v30  ;;  %17948 = vst [vmem:[#allocation12_spill] sm:$0xff] %v12973_v2  ;;  %v12989_v12 = vsub.f32 %v17953_v11, %v12814_v0  ;;  %v4282_v40 = vadd.f32 %v4281_v54, %v4280_v36  ;;  %v3752_v55 = vadd.f32 %v3751_v43, %v12919_v13  ;;  %v4283_v35 = vsel %vm2907_vm1, %v4049_v4, 0.0  ;;  %v17961_v43 = vld [vmem:[#allocation216_spill] sm:$0xff]  ;;  %v17972_v30 = vld [vmem:[#allocation167_spill] sm:$0xff] }
 0x519   : > { %17951 = vst [vmem:[#allocation227_spill] sm:$0xff] %v12983_v60  ;;  %17952 = vst [vmem:[#allocation229_spill] sm:$0xff] %v12985_v42  ;;  %v12994_v9 = vadd.f32 %v12105_v51, %v17955_v31  ;;  %v4247_v19 = vrot.slane %v4246_v33, 1  ;;  %v4059_v62 = vmul.f32 %v12956_v47, %v12956_v47  ;;  %v13001_v27 = vadd.f32 %v12105_v51, %v17957_v8  ;;  %v17963_v8 = vld [vmem:[#allocation104_spill] sm:$0xff]  ;;  %v13075_v47 = vpop.permute.xlu1 %4886 }
 0x51a   : > { %17954 = vst [vmem:[#allocation232_spill] sm:$0xff] %v12989_v12  ;;  %v13005_v11 = vadd.f32 %v12105_v51, %v17959_v18  ;;  %v13009_v36 = vsub.f32 %v17961_v43, %v12814_v0  ;;  %v4284_v54 = vadd.f32 %v4283_v35, %v4282_v40  ;;  %v4064_v13 = vmul.f32 %v12973_v2, %v12973_v2  ;;  %v17968_v35 = vld [vmem:[#allocation200_spill] sm:$0xff]  ;;  %v17978_v2 = vld [vmem:[#allocation109_spill] sm:$0xff] }
 0x51b   : > { %17956 = vst [vmem:[#allocation114_spill] sm:$0xff] %v12994_v9  ;;  %17958 = vst [vmem:[#allocation51_spill] sm:$0xff] %v13001_v27  ;;  %v4248_v31 = vadd.f32 %v4247_v19, %v4246_v33  ;;  %v4719_v9 = vmul.f32 %v12682_v49, %v4479_v1  ;;  %v4285_v4 = vsel %vm2907_vm1, %v4054_v25, 0.0  ;;  %v13017_v27 = vsub.f32 %v17963_v8, %v12814_v0  ;;  %v17966_v1 = vld [vmem:[#allocation165_spill] sm:$0xff] }
 0x51c   : > { %17960 = vst [vmem:[#allocation233_spill] sm:$0xff] %v13005_v11  ;;  %17962 = vst [vmem:[#allocation110_spill] sm:$0xff] %v13009_v36  ;;  %v4069_v51 = vmul.f32 %v12989_v12, %v12989_v12  ;;  %v4286_v18 = vadd.f32 %v4285_v4, %v4284_v54  ;;  %v13022_v43 = vadd.f32 %v3752_v55, %v12983_v60  ;;  %v4287_v25 = vsel %vm2907_vm1, %v4059_v62, 0.0  ;;  %v13033_v11 = vpop.permute.xlu0 %4881  ;;  %v17970_v55 = vld [vmem:[#allocation113_spill] sm:$0xff] }
 0x51d   : > { %17964 = vst [vmem:[#allocation236_spill] sm:$0xff] %v13017_v27  ;;  %v13024_v40 = vpop.eup %6928  ;;  %v4446_v33 = vmul.f32 0.0078125, %v4248_v31  ;;  %v13028_v19 = vsub.f32 %v17966_v1, %v12814_v0  ;;  %v4480_v8 = vmul.f32 %v12788_v10, %v17968_v35  ;;  %17969 = vst [vmem:[#allocation157_spill] sm:$0xff] %v13033_v11  ;;  %v13039_v4 = vsub.f32 %v17970_v55, %v12814_v0 }
 0x51e   : > { %17965 = vst [vmem:[#allocation67_spill] sm:$0xff] %v13024_v40  ;;  %v4477_v54 = vmul.f32 %v13024_v40, %v12565_v50  ;;  %v4074_v31 = vmul.f32 %v13009_v36, %v13009_v36  ;;  %v4288_v60 = vadd.f32 %v4287_v25, %v4286_v18  ;;  %v4959_v46 = vadd.f32 %v13033_v11, %v4719_v9  ;;  %v17973_v18 = vld [vmem:[#allocation206_spill] sm:$0xff]  ;;  %v17974_v9 = vld [vmem:[#allocation173_spill] sm:$0xff] }
 0x51f   : > { %17967 = vst [vmem:[#allocation141_spill] sm:$0xff] %v13028_v19  ;;  %17971 = vst [vmem:[#allocation91_spill] sm:$0xff] %v13039_v4  ;;  %v4456_v1 = vadd.f32 1e-05, %v4446_v33  ;;  %v4289_v62 = vsel %vm2907_vm1, %v4064_v13, 0.0  ;;  %v4485_v35 = vmul.f32 %v12788_v10, %v17972_v30  ;;  %v4079_v50 = vmul.f32 %v13017_v27, %v13017_v27  ;;  %v17975_v36 = vld [vmem:[#allocation29_spill] sm:$0xff] }
 0x520   : > { %v4717_v42 = vmul.f32 %v12485_v20, %v4477_v54  ;;  %v4290_v12 = vadd.f32 %v4289_v62, %v4288_v60  ;;  %v4291_v0 = vsel %vm2907_vm1, %v4069_v51, 0.0  ;;  %v4720_v55 = vmul.f32 %v12682_v49, %v4480_v8  ;;  %v17976_v27 = vld [vmem:[#allocation265_spill] sm:$0xff]  ;;  %17980 = vst [vmem:[#allocation238_spill] sm:$0xff] %v13075_v47 }
 0x521   : > { %6930 = vrsqrt.f32 %v4456_v1  ;;  %v4484_v33 = vmul.f32 %v12886_v52, %v17973_v18  ;;  %v4489_v13 = vmul.f32 %v12886_v52, %v17974_v9  ;;  %v4084_v30 = vmul.f32 %v13028_v19, %v13028_v19 }
 0x522   : > { %v4957_v25 = vadd.f32 %v12827_v48, %v4717_v42  ;;  %v4292_v54 = vadd.f32 %v4291_v0, %v4290_v12  ;;  %v13061_v60 = vadd.f32 %v17976_v27, %v17975_v36  ;;  %v5119_v51 = vmul.f32 0.01, %v4959_v46  ;;  %v17979_v27 = vld [vmem:[#allocation163_spill] sm:$0xff] }
 0x523   : > { %v4089_v8 = vmul.f32 %v13039_v4, %v13039_v4  ;;  %v4293_v1 = vsel %vm2907_vm1, %v4074_v31, 0.0  ;;  %v4725_v62 = vmul.f32 %v12528_v41, %v4485_v35  ;;  %v4295_v42 = vsel %vm2907_vm1, %v4079_v50, 0.0  ;;  %v17982_v50 = vld [vmem:[#allocation269_spill] sm:$0xff] }
 0x524   : > { %17977 = vst [vmem:[#allocation237_spill] sm:$0xff] %v13061_v60  ;;  %v5117_v18 = vmul.f32 0.01, %v4957_v25  ;;  %v4294_v9 = vadd.f32 %v4293_v1, %v4292_v54  ;;  %v4490_v19 = vmul.f32 %v12788_v10, %v17978_v2  ;;  %v4960_v12 = vadd.f32 %v13033_v11, %v4720_v55  ;;  %v17981_v1 = vld [vmem:[#allocation26_spill] sm:$0xff] }
 0x525   : > { %v4724_v36 = vmul.f32 %v12528_v41, %v4484_v33  ;;  %v4729_v0 = vmul.f32 %v12724_v24, %v4489_v13  ;;  %v4495_v4 = vmul.f32 %v12788_v10, %v17979_v27  ;;  %v3754_v54 = vrot.slane %v13022_v43, 4  ;;  %v13088_v27 = vpop.permute.xlu0 %4891 }
 0x526   : > { %v5277_v31 = vmax.f32 %v4957_v25, %v5117_v18  ;;  %v4296_v35 = vadd.f32 %v4295_v42, %v4294_v9  ;;  %v13080_v21 = vadd.f32 %v17982_v50, %v17981_v1  ;;  %v5279_v2 = vmax.f32 %v4959_v46, %v5119_v51  ;;  %17984 = vst [vmem:[#allocation43_spill] sm:$0xff] %v13088_v27  ;;  %v17986_v50 = vld [vmem:[#allocation38_spill] sm:$0xff] }
 0x527   : > { %v4297_v55 = vsel %vm2907_vm1, %v4084_v30, 0.0  ;;  %v13084_v33 = vadd.f32 %v13075_v47, %v4725_v62  ;;  %v3705_v13 = vsel %vm3564_vm2, %v13061_v60, 0.0  ;;  %v4299_v9 = vsel %vm2907_vm1, %v4089_v8, 0.0  ;;  %v17985_v60 = vld [vmem:[#allocation252_spill] sm:$0xff]  ;;  %v17989_v8 = vld [vmem:[#allocation46_spill] sm:$0xff] }
 0x528   : > { %17983 = vst [vmem:[#allocation263_spill] sm:$0xff] %v13080_v21  ;;  %v5569_v25 = vmul.f32 %v12858_v56, %v5277_v31  ;;  %v4298_v18 = vadd.f32 %v4297_v55, %v4296_v35  ;;  %v4730_v42 = vmul.f32 %v12724_v24, %v4490_v19  ;;  %v5120_v1 = vmul.f32 0.01, %v4960_v12  ;;  %v17988_v35 = vld [vmem:[#allocation25_spill] sm:$0xff]  ;;  %v17991_v19 = vld [vmem:[#allocation30_spill] sm:$0xff]  ;;  %v17992_v21 = vld [vmem:[#allocation283_spill] sm:$0xff] }
 0x529   : > { %v13094_v46 = vadd.f32 %v13075_v47, %v4724_v36  ;;  %v13097_v30 = vadd.f32 %v13088_v27, %v4729_v0  ;;  %v4735_v51 = vmul.f32 %v12571_v3, %v4495_v4  ;;  %v13103_v31 = vadd.f32 %v17986_v50, %v17985_v60 }
 0x52a   : > { %5892 = vrot.lane.b32.xlu0 %v5569_v25, %s7249_s18  ;;  %v4300_v62 = vadd.f32 %v4299_v9, %v4298_v18  ;;  %v13107_v55 = vadd.f32 %v17989_v8, %v17988_v35  ;;  %v13111_v36 = vadd.f32 %v17992_v21, %v17991_v19  ;;  %v5571_v0 = vmul.f32 %v12858_v56, %v5279_v2  ;;  %v13123_v18 = vpop.permute.xlu1 %4896 }
 0x52b   : > { %17987 = vst [vmem:[#allocation37_spill] sm:$0xff] %v13103_v31  ;;  %v13113_v44 = vpop.eup %6930  ;;  %v5125_v4 = vmul.f32 0.01, %v13084_v33  ;;  %v13118_v25 = vadd.f32 %v3754_v54, %v13022_v43  ;;  %v13121_v60 = vadd.f32 %v3705_v13, %v12772_v16  ;;  %17996 = vst [vmem:[#allocation17_spill] sm:$0xff] %v13123_v18  ;;  %v13130_v21 = vadd.f32 %v13088_v27, %v4730_v42 }
 0x52c   : > { %17990 = vst [vmem:[#allocation34_spill] sm:$0xff] %v13107_v55  ;;  %17993 = vst [vmem:[#allocation134_spill] sm:$0xff] %v13111_v36  ;;  %v4476_v9 = vmul.f32 %v13113_v44, %v12658_v14  ;;  %v4301_v35 = vrot.slane %v4300_v62, 4  ;;  %v4481_v19 = vmul.f32 %v13113_v44, %v12662_v23  ;;  %v5280_v2 = vmax.f32 %v4960_v12, %v5120_v1 }
 0x52d   : > { %17994 = vst [vmem:[#allocation184_spill] sm:$0xff] %v13118_v25  ;;  %17995 = vst [vmem:[#allocation242_spill] sm:$0xff] %v13121_v60  ;;  %v5124_v8 = vmul.f32 0.01, %v13094_v46  ;;  %v13134_v43 = vmul.f32 0.01, %v13097_v30  ;;  %v13137_v16 = vadd.f32 %v13123_v18, %v4735_v51  ;;  %v4482_v23 = vmul.f32 %v13024_v40, %v12569_v17 }
 0x52e   : > { %v4716_v54 = vmul.f32 %v12485_v20, %v4476_v9  ;;  %5896 = vrot.lane.b32.xlu0 %v5571_v0, %s7249_s18  ;;  %v4302_v14 = vadd.f32 %v4301_v35, %v4300_v62  ;;  %v4721_v13 = vmul.f32 %v12682_v49, %v4481_v19  ;;  %v5285_v12 = vmax.f32 %v13084_v33, %v5125_v4  ;;  %v17997_v51 = vld [vmem:[#allocation108_spill] sm:$0xff] }
 0x52f   : > { %v4487_v42 = vmul.f32 %v13024_v40, %v12597_v59  ;;  %v4492_v1 = vmul.f32 %v13024_v40, %v12612_v39  ;;  %v4494_v50 = vmul.f32 %v12886_v52, %v17997_v51  ;;  %v5130_v35 = vmul.f32 0.01, %v13130_v21 }
 0x530   : > { %v4956_v9 = vadd.f32 %v12827_v48, %v4716_v54  ;;  %v4303_v0 = vrot.slane %v4302_v14, 2  ;;  %v4961_v62 = vadd.f32 %v13033_v11, %v4721_v13  ;;  %v13155_v17 = vmul.f32 %v12858_v56, %v5280_v2 }
 0x531   : > { %v5284_v33 = vmax.f32 %v13094_v46, %v5124_v8  ;;  %v4486_v59 = vmul.f32 %v13113_v44, %v12692_v26  ;;  %v4497_v39 = vmul.f32 %v13024_v40, %v12621_v58  ;;  %v4722_v54 = vmul.f32 %v12682_v49, %v4482_v23 }
 0x532   : > { %v5116_v4 = vmul.f32 0.01, %v4956_v9  ;;  %v4304_v19 = vadd.f32 %v4303_v0, %v4302_v14  ;;  %v5121_v51 = vmul.f32 0.01, %v4961_v62  ;;  %v4727_v13 = vmul.f32 %v12528_v41, %v4487_v42 }
 0x533   : > { %v4491_v36 = vmul.f32 %v13113_v44, %v12712_v28  ;;  %v4732_v2 = vmul.f32 %v12724_v24, %v4492_v1  ;;  %v4734_v46 = vmul.f32 %v12571_v3, %v4494_v50  ;;  %v4499_v58 = vmul.f32 %v12886_v52, %v12479_v63 }
 0x534   : > { %v5276_v8 = vmax.f32 %v4956_v9, %v5116_v4  ;;  %v4305_v55 = vrot.slane %v4304_v19, 1  ;;  %v5281_v26 = vmax.f32 %v4961_v62, %v5121_v51  ;;  %v4726_v14 = vmul.f32 %v12528_v41, %v4486_v59 }
 0x535   : > { %v4737_v0 = vmul.f32 %v12571_v3, %v4497_v39  ;;  %v4496_v23 = vmul.f32 %v13113_v44, %v12720_v45  ;;  %v4501_v28 = vmul.f32 %v13113_v44, %v12728_v53  ;;  %v13179_v9 = vmul.f32 %v12858_v56, %v5285_v12 }
 0x536   : > { %v5568_v42 = vmul.f32 %v12858_v56, %v5276_v8  ;;  %v4306_v1 = vadd.f32 %v4305_v55, %v4304_v19  ;;  %v5573_v50 = vmul.f32 %v12858_v56, %v5281_v26  ;;  %v4962_v63 = vadd.f32 %v13033_v11, %v4722_v54 }
 0x537   : > { %v4967_v62 = vadd.f32 %v13075_v47, %v4727_v13  ;;  %v4731_v59 = vmul.f32 %v12724_v24, %v4491_v36  ;;  %v5135_v39 = vmul.f32 0.01, %v13137_v16  ;;  %v4972_v53 = vadd.f32 %v13088_v27, %v4732_v2 }
 0x538   : > { %5890 = vrot.lane.b32.xlu1 %v5568_v42, %s7249_s18  ;;  %v4448_v45 = vmul.f32 0.0078125, %v4306_v1  ;;  %5900 = vrot.lane.b32.xlu0 %v5573_v50, %s7249_s18  ;;  %v4974_v55 = vadd.f32 %v13123_v18, %v4734_v46  ;;  %v4739_v12 = vmul.f32 %v12760_v57, %v4499_v58  ;;  %v4966_v4 = vadd.f32 %v13075_v47, %v4726_v14  ;;  %v13200_v46 = vpop.permute.xlu0 %4901 }
 0x539   : > { %v4977_v19 = vadd.f32 %v13123_v18, %v4737_v0  ;;  %v4736_v51 = vmul.f32 %v12571_v3, %v4496_v23  ;;  %v4741_v36 = vmul.f32 %v12760_v57, %v4501_v28  ;;  %v13195_v13 = vmul.f32 %v12858_v56, %v5284_v33  ;;  %17998 = vst [vmem:[#allocation164_spill] sm:$0xff] %v13200_v46 }
 0x53a   : > { %v4458_v54 = vadd.f32 1e-05, %v4448_v45  ;;  %v5289_v8 = vmax.f32 %v13097_v30, %v13134_v43  ;;  %v5290_v2 = vmax.f32 %v13130_v21, %v5130_v35  ;;  %v5122_v26 = vmul.f32 0.01, %v4962_v63  ;;  %v18001_v35 = vld [vmem:[#allocation180_spill] sm:$0xff] }
 0x53b   : > { %v5127_v58 = vmul.f32 0.01, %v4967_v62  ;;  %v4971_v14 = vadd.f32 %v13088_v27, %v4731_v59  ;;  %v5295_v0 = vmax.f32 %v13137_v16, %v5135_v39  ;;  %v5132_v23 = vmul.f32 0.01, %v4972_v53 }
 0x53c   : > { %6932 = vrsqrt.f32 %v4458_v54  ;;  %v5134_v28 = vmul.f32 0.01, %v4974_v55  ;;  %v4979_v42 = vadd.f32 %v13200_v46, %v4739_v12  ;;  %v5126_v33 = vmul.f32 0.01, %v4966_v4 }
 0x53d   : > { %v5137_v1 = vmul.f32 0.01, %v4977_v19  ;;  %v4976_v50 = vadd.f32 %v13123_v18, %v4736_v51  ;;  %v4981_v30 = vadd.f32 %v13200_v46, %v4741_v36  ;;  %v13208_v21 = vmul.f32 %v12858_v56, %v5289_v8  ;;  %v18002_v8 = vld [vmem:[#allocation118_spill] sm:$0xff] }
 0x53e   : > { %v13211_v43 = vmul.f32 %v12858_v56, %v5290_v2  ;;  %v4500_v16 = vmul.f32 %v12788_v10, %v18001_v35  ;;  %v4502_v59 = vmul.f32 %v13024_v40, %v12630_v5  ;;  %v5282_v39 = vmax.f32 %v4962_v63, %v5122_v26 }
 0x53f   : > { %17999 = vst [vmem:[#allocation266_spill] sm:$0xff] %v13208_v21  ;;  %v5287_v45 = vmax.f32 %v4967_v62, %v5127_v58  ;;  %v5131_v12 = vmul.f32 0.01, %v4971_v14  ;;  %v13218_v54 = vmul.f32 %v12858_v56, %v5295_v0  ;;  %v5292_v51 = vmax.f32 %v4972_v53, %v5132_v23  ;;  %v18003_v0 = vld [vmem:[#allocation15_spill] sm:$0xff] }
 0x540   : > { %18000 = vst [vmem:[#allocation159_spill] sm:$0xff] %v13211_v43  ;;  %v5294_v36 = vmax.f32 %v4974_v55, %v5134_v28  ;;  %v5139_v31 = vmul.f32 0.01, %v4979_v42  ;;  %v4505_v60 = vmul.f32 %v12788_v10, %v18002_v8  ;;  %v5286_v2 = vmax.f32 %v4966_v4, %v5126_v33 }
 0x541   : > { %v5297_v25 = vmax.f32 %v4977_v19, %v5137_v1  ;;  %v5136_v43 = vmul.f32 0.01, %v4976_v50  ;;  %v5141_v21 = vmul.f32 0.01, %v4981_v30  ;;  %v4740_v35 = vmul.f32 %v12760_v57, %v4500_v16 }
 0x542   : > { %v4742_v5 = vmul.f32 %v12760_v57, %v4502_v59  ;;  %v4504_v63 = vmul.f32 %v12886_v52, %v12495_v32  ;;  %v4507_v62 = vmul.f32 %v13024_v40, %v12640_v22  ;;  %v13229_v53 = vmul.f32 %v12858_v56, %v5282_v39  ;;  %v18006_v39 = vld [vmem:[#allocation187_spill] sm:$0xff] }
 0x543   : > { %v13232_v55 = vmul.f32 %v12858_v56, %v5287_v45  ;;  %v5291_v4 = vmax.f32 %v4971_v14, %v5131_v12  ;;  %v4506_v19 = vmul.f32 %v13113_v44, %v12746_v61  ;;  %v13237_v26 = vmul.f32 %v12858_v56, %v5292_v51 }
 0x544   : > { %v13240_v58 = vmul.f32 %v12858_v56, %v5294_v36  ;;  %v5299_v32 = vmax.f32 %v4979_v42, %v5139_v31  ;;  %v4745_v23 = vmul.f32 %v18003_v0, %v4505_v60  ;;  %v13244_v22 = vmul.f32 %v12858_v56, %v5286_v2  ;;  %v13259_v42 = vpop.permute.xlu1 %4906 }
 0x545   : > { %v13247_v28 = vmul.f32 %v12858_v56, %v5297_v25  ;;  %v5296_v33 = vmax.f32 %v4976_v50, %v5136_v43  ;;  %v5301_v14 = vmax.f32 %v4981_v30, %v5141_v21  ;;  %v13252_v61 = vadd.f32 %v13200_v46, %v4740_v35  ;;  %18005 = vst [vmem:[#allocation267_spill] sm:$0xff] %v13259_v42 }
 0x546   : > { %v13249_v1 = vpop.eup %6932  ;;  %v13255_v16 = vadd.f32 %v13200_v46, %v4742_v5  ;;  %v4744_v31 = vmul.f32 %v18003_v0, %v4504_v63  ;;  %v4747_v60 = vmul.f32 %v18003_v0, %v4507_v62  ;;  %v13266_v30 = vmul.f32 %v12858_v56, %v5291_v4  ;;  %v18008_v4 = vld [vmem:[#allocation176_spill] sm:$0xff] }
 0x547   : > { %18004 = vst [vmem:[#allocation42_spill] sm:$0xff] %v13249_v1  ;;  %v4478_v25 = vmul.f32 %v13249_v1, %v12847_v15  ;;  %v4483_v50 = vmul.f32 %v13249_v1, %v12851_v34  ;;  %v4746_v21 = vmul.f32 %v18003_v0, %v4506_v19  ;;  %v13270_v43 = vmul.f32 %v12858_v56, %v5299_v32 }
 0x548   : > { %v4985_v59 = vadd.f32 %v13259_v42, %v4745_v23  ;;  %v4509_v45 = vmul.f32 %v12886_v52, %v18006_v39  ;;  %v4511_v12 = vmul.f32 %v13113_v44, %v12754_v37  ;;  %v13280_v51 = vmul.f32 %v12858_v56, %v5296_v33  ;;  %v18010_v39 = vld [vmem:[#allocation60_spill] sm:$0xff] }
 0x549   : > { %v4718_v15 = vmul.f32 %v12485_v20, %v4478_v25  ;;  %v4723_v34 = vmul.f32 %v12682_v49, %v4483_v50  ;;  %v13283_v36 = vmul.f32 %v12858_v56, %v5301_v14  ;;  %v5140_v8 = vmul.f32 0.01, %v13252_v61  ;;  %v18009_v25 = vld [vmem:[#allocation115_spill] sm:$0xff] }
 0x54a   : > { %v5142_v2 = vmul.f32 0.01, %v13255_v16  ;;  %v4984_v35 = vadd.f32 %v13259_v42, %v4744_v31  ;;  %v13289_v5 = vadd.f32 %v13259_v42, %v4747_v60  ;;  %v4986_v62 = vadd.f32 %v13259_v42, %v4746_v21 }
 0x54b   : > { %18007 = vst [vmem:[#allocation245_spill] sm:$0xff] %v13283_v36  ;;  %v4958_v37 = vadd.f32 %v12827_v48, %v4718_v15  ;;  %v4963_v63 = vadd.f32 %v13033_v11, %v4723_v34  ;;  %v4510_v19 = vmul.f32 %v12788_v10, %v18008_v4  ;;  %v4488_v32 = vmul.f32 %v13249_v1, %v12869_v29  ;;  %v13308_v11 = vpop.permute.xlu0 %4911 }
 0x54c   : > { %v5145_v23 = vmul.f32 0.01, %v4985_v59  ;;  %v4749_v33 = vmul.f32 %v12808_v6, %v4509_v45  ;;  %v4751_v14 = vmul.f32 %v12808_v6, %v4511_v12  ;;  %v4493_v50 = vmul.f32 %v13249_v1, %v18009_v25  ;;  %18011 = vst [vmem:[#allocation161_spill] sm:$0xff] %v13308_v11 }
 0x54d   : > { %v5118_v31 = vmul.f32 0.01, %v4958_v37  ;;  %v5123_v60 = vmul.f32 0.01, %v4963_v63  ;;  %v4498_v15 = vmul.f32 %v13249_v1, %v18010_v39  ;;  %v5300_v21 = vmax.f32 %v13252_v61, %v5140_v8 }
 0x54e   : > { %v4503_v34 = vmul.f32 %v13249_v1, %v12910_v38  ;;  %v5144_v4 = vmul.f32 0.01, %v4984_v35  ;;  %v5147_v29 = vmul.f32 0.01, %v13289_v5  ;;  %v5146_v49 = vmul.f32 0.01, %v4986_v62 }
 0x54f   : > { %v5278_v45 = vmax.f32 %v4958_v37, %v5118_v31  ;;  %v5283_v12 = vmax.f32 %v4963_v63, %v5123_v60  ;;  %v4750_v48 = vmul.f32 %v12808_v6, %v4510_v19  ;;  %v4728_v25 = vmul.f32 %v12528_v41, %v4488_v32  ;;  %v18013_v60 = vld [vmem:[#allocation209_spill] sm:$0xff] }
 0x550   : > { %v4989_v20 = vadd.f32 %v13308_v11, %v4749_v33  ;;  %v4508_v61 = vmul.f32 %v13249_v1, %v12923_v7  ;;  %v4991_v8 = vadd.f32 %v13308_v11, %v4751_v14  ;;  %v4733_v36 = vmul.f32 %v12724_v24, %v4493_v50  ;;  %v18012_v33 = vld [vmem:[#allocation208_spill] sm:$0xff]  ;;  %v18038_v24 = vld [vmem:[#allocation159_spill] sm:$0xff] }
 0x551   : > { %v5570_v38 = vmul.f32 %v12858_v56, %v5278_v45  ;;  %v5575_v39 = vmul.f32 %v12858_v56, %v5283_v12  ;;  %v4738_v37 = vmul.f32 %v12571_v3, %v4498_v15  ;;  %v4743_v63 = vmul.f32 %v12760_v57, %v4503_v34  ;;  %v18033_v3 = vld [vmem:[#allocation112_spill] sm:$0xff] }
 0x552   : > { %v5302_v19 = vmax.f32 %v13255_v16, %v5142_v2  ;;  %v5305_v32 = vmax.f32 %v4985_v59, %v5145_v23  ;;  %v5304_v31 = vmax.f32 %v4984_v35, %v5144_v4  ;;  %v4990_v7 = vadd.f32 %v13308_v11, %v4750_v48 }
 0x553   : > { %5894 = vrot.lane.b32.xlu1 %v5570_v38, %s7249_s18  ;;  %5904 = vrot.lane.b32.xlu0 %v5575_v39, %s7249_s18  ;;  %v4512_v14 = vmul.f32 %v13024_v40, %v18012_v33  ;;  %v4515_v50 = vmul.f32 %v12788_v10, %v18013_v60  ;;  %v4968_v15 = vadd.f32 %v13075_v47, %v4728_v25  ;;  %v5149_v45 = vmul.f32 0.01, %v4989_v20 }
 0x554   : > { %v4748_v34 = vmul.f32 %v18003_v0, %v4508_v61  ;;  %v5151_v16 = vmul.f32 0.01, %v4991_v8  ;;  %v4973_v59 = vadd.f32 %v13088_v27, %v4733_v36  ;;  %v13333_v2 = vadd.f32 %v13123_v18, %v4738_v37  ;;  %v18020_v0 = vld [vmem:[#allocation223_spill] sm:$0xff] }
 0x555   : > { %v5307_v35 = vmax.f32 %v13289_v5, %v5147_v29  ;;  %v5306_v48 = vmax.f32 %v4986_v62, %v5146_v49  ;;  %v13337_v23 = vmul.f32 %v12858_v56, %v5300_v21  ;;  %v13340_v4 = vadd.f32 %v13200_v46, %v4743_v63  ;;  %v18014_v62 = vld [vmem:[#allocation212_spill] sm:$0xff] }
 0x556   : > { %v13343_v12 = vmul.f32 %v12858_v56, %v5302_v19  ;;  %v13346_v25 = vmul.f32 %v12858_v56, %v5305_v32  ;;  %v13353_v49 = vmul.f32 %v12858_v56, %v5304_v31  ;;  %v5150_v36 = vmul.f32 0.01, %v4990_v7  ;;  %v13365_v19 = vpop.permute.xlu1 %4916  ;;  %v18016_v31 = vld [vmem:[#allocation125_spill] sm:$0xff] }
 0x557   : > { %5898 = vrot.lane.b32.xlu1 %v13155_v17, %s7249_s18  ;;  %5908 = vrot.lane.b32.xlu0 %v13179_v9, %s7249_s18  ;;  %v4752_v5 = vmul.f32 %v12808_v6, %v4512_v14  ;;  %v4755_v21 = vmul.f32 %v18014_v62, %v4515_v50  ;;  %v5128_v29 = vmul.f32 0.01, %v4968_v15  ;;  %v5309_v61 = vmax.f32 %v4989_v20, %v5149_v45  ;;  %v18017_v20 = vld [vmem:[#allocation185_spill] sm:$0xff]  ;;  %v18019_v50 = vld [vmem:[#allocation178_spill] sm:$0xff] }
 0x558   : > { %v4988_v38 = vadd.f32 %v13259_v42, %v4748_v34  ;;  %v5311_v39 = vmax.f32 %v4991_v8, %v5151_v16  ;;  %v5133_v37 = vmul.f32 0.01, %v4973_v59  ;;  %v5138_v63 = vmul.f32 0.01, %v13333_v2  ;;  %18015 = vst [vmem:[#allocation45_spill] sm:$0xff] %v13365_v19  ;;  %v18018_v8 = vld [vmem:[#allocation221_spill] sm:$0xff] }
 0x559   : > { %v13360_v17 = vmul.f32 %v12858_v56, %v5307_v35  ;;  %v13363_v9 = vmul.f32 %v12858_v56, %v5306_v48  ;;  %v5143_v32 = vmul.f32 0.01, %v13340_v4  ;;  %v4513_v33 = vmul.f32 %v13249_v1, %v18016_v31 }
 0x55a   : > { %v4514_v14 = vmul.f32 %v12886_v52, %v18017_v20  ;;  %v4517_v60 = vmul.f32 %v13024_v40, %v18018_v8  ;;  %v13376_v45 = vsel %vm3564_vm2, %v18019_v50, 0.0  ;;  %v5310_v34 = vmax.f32 %v4990_v7, %v5150_v36  ;;  %v18021_v7 = vld [vmem:[#allocation188_spill] sm:$0xff] }
 0x55b   : > { %5902 = vrot.lane.b32.xlu1 %v13229_v53, %s7249_s18  ;;  %5912 = vrot.lane.b32.xlu0 %v13232_v55, %s7249_s18  ;;  %v4992_v16 = vadd.f32 %v13308_v11, %v4752_v5  ;;  %v13384_v35 = vadd.f32 %v13365_v19, %v4755_v21  ;;  %v5288_v48 = vmax.f32 %v4968_v15, %v5128_v29  ;;  %v5148_v20 = vmul.f32 0.01, %v4988_v38  ;;  %v18022_v29 = vld [vmem:[#allocation10_spill] sm:$0xff] }
 0x55c   : > { %v13387_v31 = vmul.f32 %v12858_v56, %v5309_v61  ;;  %v13390_v8 = vmul.f32 %v12858_v56, %v5311_v39  ;;  %v5293_v42 = vmax.f32 %v4973_v59, %v5133_v37  ;;  %v5298_v53 = vmax.f32 %v13333_v2, %v5138_v63  ;;  %v18023_v39 = vld [vmem:[#allocation95_spill] sm:$0xff]  ;;  %v18026_v37 = vld [vmem:[#allocation145_spill] sm:$0xff] }
 0x55d   : > { %v4516_v55 = vmul.f32 %v13113_v44, %v18020_v0  ;;  %v4519_v36 = vmul.f32 %v12886_v52, %v18021_v7  ;;  %v5303_v5 = vmax.f32 %v13340_v4, %v5143_v32  ;;  %v4753_v15 = vmul.f32 %v12808_v6, %v4513_v33  ;;  %v18025_v0 = vld [vmem:[#allocation266_spill] sm:$0xff] }
 0x55e   : > { %v4754_v21 = vmul.f32 %v18014_v62, %v4514_v14  ;;  %v4518_v61 = vmul.f32 %v13249_v1, %v18022_v29  ;;  %v13404_v59 = vsel %vm2907_vm1, %v18023_v39, 0.0  ;;  %v13411_v2 = vmul.f32 %v12858_v56, %v5310_v34  ;;  %v18027_v7 = vld [vmem:[#allocation122_spill] sm:$0xff]  ;;  %v18029_v34 = vld [vmem:[#allocation132_spill] sm:$0xff] }
 0x55f   : > { %18024 = vst [vmem:[#allocation268_spill] sm:$0xff] %v13404_v59  ;;  %5906 = vrot.lane.b32.xlu1 %v13195_v13, %s7249_s18  ;;  %5916 = vrot.lane.b32.xlu0 %v18025_v0, %s7249_s18  ;;  %v4757_v4 = vmul.f32 %v18014_v62, %v4517_v60  ;;  %v4521_v63 = vmul.f32 %v13113_v44, %v18026_v37  ;;  %v5152_v14 = vmul.f32 0.01, %v4992_v16  ;;  %v18028_v0 = vld [vmem:[#allocation61_spill] sm:$0xff]  ;;  %v5155_v37 = vmul.f32 0.01, %v13384_v35 }
 0x560   : > { %v5580_v32 = vmul.f32 %v12858_v56, %v5288_v48  ;;  %v5308_v33 = vmax.f32 %v4988_v38, %v5148_v20  ;;  %v4520_v29 = vmul.f32 %v12788_v10, %v18027_v7  ;;  %v5585_v13 = vmul.f32 %v12858_v56, %v5293_v42  ;;  %v18030_v20 = vld [vmem:[#allocation123_spill] sm:$0xff] }
 0x561   : > { %v4756_v6 = vmul.f32 %v18014_v62, %v4516_v55  ;;  %v4759_v46 = vmul.f32 %v18028_v0, %v4519_v36  ;;  %v4523_v57 = vmul.f32 %v13249_v1, %v18029_v34  ;;  %v4993_v60 = vadd.f32 %v13308_v11, %v4753_v15  ;;  %v18031_v36 = vld [vmem:[#allocation11_spill] sm:$0xff] }
 0x562   : > { %v4994_v48 = vadd.f32 %v13365_v19, %v4754_v21  ;;  %v4758_v38 = vmul.f32 %v18014_v62, %v4518_v61  ;;  %v13430_v7 = vsel %vm3564_vm2, %v18030_v20, 0.0  ;;  %v4997_v42 = vadd.f32 %v13365_v19, %v4757_v4  ;;  %v13440_v21 = vpop.permute.xlu0 %4921 }
 0x563   : > { %5910 = vrot.lane.b32.xlu1 %v13244_v22, %s7249_s18  ;;  %5920 = vrot.lane.b32.xlu0 %v13266_v30, %s7249_s18  ;;  %v4761_v55 = vmul.f32 %v18028_v0, %v4521_v63  ;;  %v4522_v15 = vmul.f32 %v13024_v40, %v18031_v36  ;;  %18032 = vst [vmem:[#allocation142_spill] sm:$0xff] %v13440_v21  ;;  %v5153_v11 = vmul.f32 0.01, %v4993_v60 }
 0x564   : > { %v13443_v61 = vmul.f32 %v12858_v56, %v5298_v53  ;;  %v13446_v34 = vmul.f32 %v12858_v56, %v5303_v5  ;;  %v5312_v62 = vmax.f32 %v4992_v16, %v5152_v14  ;;  %v4760_v22 = vmul.f32 %v18028_v0, %v4520_v29  ;;  %v18034_v14 = vld [vmem:[#allocation137_spill] sm:$0xff] }
 0x565   : > { %v13450_v30 = vmul.f32 %v12858_v56, %v5308_v33  ;;  %v4996_v4 = vadd.f32 %v13365_v19, %v4756_v6  ;;  %v4999_v63 = vadd.f32 %v13440_v21, %v4759_v46  ;;  %v4763_v36 = vmul.f32 %v18028_v0, %v4523_v57 }
 0x566   : > { %v5315_v18 = vmax.f32 %v13384_v35, %v5155_v37  ;;  %v4998_v53 = vadd.f32 %v13365_v19, %v4758_v38  ;;  %v4525_v5 = vmul.f32 %v12788_v10, %v18033_v3  ;;  %v5154_v16 = vmul.f32 0.01, %v4994_v48  ;;  %v18035_v37 = vld [vmem:[#allocation146_spill] sm:$0xff]  ;;  %v18036_v19 = vld [vmem:[#allocation201_spill] sm:$0xff] }
 0x567   : > { %5914 = vrot.lane.b32.xlu1 %v5580_v32, %s7249_s18  ;;  %5924 = vrot.lane.b32.xlu0 %v5585_v13, %s7249_s18  ;;  %v5157_v33 = vmul.f32 0.01, %v4997_v42  ;;  %v5001_v6 = vadd.f32 %v13440_v21, %v4761_v55  ;;  %v4762_v46 = vmul.f32 %v18028_v0, %v4522_v15  ;;  %v13464_v57 = vmul.f32 %v12858_v56, %v5312_v62  ;;  %v18037_v0 = vld [vmem:[#allocation220_spill] sm:$0xff] }
 0x568   : > { %v5000_v35 = vadd.f32 %v13440_v21, %v4760_v22  ;;  %v4524_v29 = vmul.f32 %v12886_v52, %v18034_v14  ;;  %v4527_v3 = vmul.f32 %v13024_v40, %v18035_v37  ;;  %v5156_v32 = vmul.f32 0.01, %v4996_v4 }
 0x569   : > { %v5159_v38 = vmul.f32 0.01, %v4999_v63  ;;  %v5003_v13 = vadd.f32 %v13440_v21, %v4763_v36  ;;  %v4526_v55 = vmul.f32 %v13113_v44, %v18036_v19  ;;  %v5313_v27 = vmax.f32 %v4993_v60, %v5153_v11  ;;  %v18039_v19 = vld [vmem:[#allocation139_spill] sm:$0xff] }
 0x56a   : > { %v13475_v15 = vmul.f32 %v12858_v56, %v5315_v18  ;;  %v5158_v62 = vmul.f32 0.01, %v4998_v53  ;;  %v4765_v22 = vmul.f32 %v18037_v0, %v4525_v5  ;;  %v5314_v14 = vmax.f32 %v4994_v48, %v5154_v16  ;;  %v13487_v5 = vpop.permute.xlu1 %4926 }
 0x56b   : > { %5918 = vrot.lane.b32.xlu1 %v18038_v24, %s7249_s18  ;;  %5928 = vrot.lane.b32.xlu0 %v13218_v54, %s7249_s18  ;;  %v5317_v37 = vmax.f32 %v4997_v42, %v5157_v33  ;;  %v5161_v47 = vmul.f32 0.01, %v5001_v6  ;;  %v5002_v36 = vadd.f32 %v13440_v21, %v4762_v46  ;;  %v5160_v41 = vmul.f32 0.01, %v5000_v35  ;;  %18040 = vst [vmem:[#allocation135_spill] sm:$0xff] %v13487_v5  ;;  %v18041_v33 = vld [vmem:[#allocation12_spill] sm:$0xff] }
 0x56c   : > { %v4764_v11 = vmul.f32 %v18037_v0, %v4524_v29  ;;  %v4767_v18 = vmul.f32 %v18037_v0, %v4527_v3  ;;  %v4529_v60 = vmul.f32 %v12886_v52, %v18039_v19  ;;  %v5316_v39 = vmax.f32 %v4996_v4, %v5156_v32 }
 0x56d   : > { %v5319_v24 = vmax.f32 %v4999_v63, %v5159_v38  ;;  %v5163_v50 = vmul.f32 0.01, %v5003_v13  ;;  %v4766_v54 = vmul.f32 %v18037_v0, %v4526_v55  ;;  %v13491_v48 = vmul.f32 %v12858_v56, %v5313_v27  ;;  %v18042_v38 = vld [vmem:[#allocation154_spill] sm:$0xff] }
 0x56e   : > { %v5318_v42 = vmax.f32 %v4998_v53, %v5158_v62  ;;  %v5005_v16 = vadd.f32 %v13487_v5, %v4765_v22  ;;  %v4528_v46 = vmul.f32 %v13249_v1, %v18041_v33  ;;  %v13501_v4 = vmul.f32 %v12858_v56, %v5314_v14 }
 0x56f   : > { %5922 = vrot.lane.b32.xlu1 %v13237_v26, %s7249_s18  ;;  %5932 = vrot.lane.b32.xlu0 %v13247_v28, %s7249_s18  ;;  %v13504_v63 = vmul.f32 %v12858_v56, %v5317_v37  ;;  %v5321_v27 = vmax.f32 %v5001_v6, %v5161_v47  ;;  %v5162_v29 = vmul.f32 0.01, %v5002_v36  ;;  %v5320_v53 = vmax.f32 %v5000_v35, %v5160_v41  ;;  %v18043_v6 = vld [vmem:[#allocation156_spill] sm:$0xff]  ;;  %v18044_v37 = vld [vmem:[#allocation143_spill] sm:$0xff] }
 0x570   : > { %v5004_v3 = vadd.f32 %v13487_v5, %v4764_v11  ;;  %v5007_v32 = vadd.f32 %v13487_v5, %v4767_v18  ;;  %v4769_v55 = vmul.f32 %v18042_v38, %v4529_v60  ;;  %v13510_v26 = vmul.f32 %v12858_v56, %v5316_v39  ;;  %v13526_v39 = vpop.permute.xlu0 %4931  ;;  %v18046_v18 = vld [vmem:[#allocation181_spill] sm:$0xff] }
 0x571   : > { %v13513_v28 = vmul.f32 %v12858_v56, %v5319_v24  ;;  %v5323_v62 = vmax.f32 %v5003_v13, %v5163_v50  ;;  %v5006_v22 = vadd.f32 %v13487_v5, %v4766_v54  ;;  %v13517_v14 = vmul.f32 %v12858_v56, %v5318_v42  ;;  %18045 = vst [vmem:[#allocation44_spill] sm:$0xff] %v13526_v39 }
 0x572   : > { %v5165_v47 = vmul.f32 0.01, %v5005_v16  ;;  %v4768_v41 = vmul.f32 %v18037_v0, %v4528_v46  ;;  %v4531_v35 = vmul.f32 %v13113_v44, %v18043_v6  ;;  %v13524_v11 = vsel %vm3564_vm2, %v18044_v37, 0.0  ;;  %v18047_v46 = vld [vmem:[#allocation232_spill] sm:$0xff] }
 0x573   : > { %5926 = vrot.lane.b32.xlu1 %v13240_v58, %s7249_s18  ;;  %5936 = vrot.lane.b32.xlu0 %v13270_v43, %s7249_s18  ;;  %v13533_v50 = vmul.f32 %v12858_v56, %v5321_v27  ;;  %v5322_v13 = vmax.f32 %v5002_v36, %v5162_v29  ;;  %v4530_v19 = vmul.f32 %v12788_v10, %v18046_v18  ;;  %v5164_v24 = vmul.f32 0.01, %v5004_v3  ;;  %v18048_v27 = vld [vmem:[#allocation149_spill] sm:$0xff]  ;;  %v18049_v18 = vld [vmem:[#allocation175_spill] sm:$0xff] }
 0x574   : > { %v13538_v60 = vmul.f32 %v12858_v56, %v5320_v53  ;;  %v5167_v54 = vmul.f32 0.01, %v5007_v32  ;;  %v5009_v42 = vadd.f32 %v13526_v39, %v4769_v55  ;;  %v13542_v33 = vmul.f32 %v12858_v56, %v5323_v62  ;;  %v18050_v55 = vld [vmem:[#allocation245_spill] sm:$0xff] }
 0x575   : > { %v5166_v58 = vmul.f32 0.01, %v5006_v22  ;;  %v4533_v43 = vmul.f32 %v13249_v1, %v18047_v46  ;;  %v4532_v36 = vmul.f32 %v13024_v40, %v18048_v27  ;;  %v5325_v29 = vmax.f32 %v5005_v16, %v5165_v47  ;;  %v18051_v27 = vld [vmem:[#allocation193_spill] sm:$0xff]  ;;  %v18052_v47 = vld [vmem:[#allocation184_spill] sm:$0xff] }
 0x576   : > { %v5008_v6 = vadd.f32 %v13487_v5, %v4768_v41  ;;  %v4771_v53 = vmul.f32 %v18042_v38, %v4531_v35  ;;  %v4535_v0 = vmul.f32 %v12788_v10, %v18049_v18  ;;  %v13557_v62 = vmul.f32 %v12858_v56, %v5322_v13  ;;  %v18053_v18 = vld [vmem:[#allocation147_spill] sm:$0xff]  ;;  %v18054_v13 = vld [vmem:[#allocation90_spill] sm:$0xff] }
 0x577   : > { %5930 = vrot.lane.b32.xlu1 %v13280_v51, %s7249_s18  ;;  %5940 = vrot.lane.b32.xlu0 %v18050_v55, %s7249_s18  ;;  %v4770_v46 = vmul.f32 %v18042_v38, %v4530_v19  ;;  %v4534_v16 = vmul.f32 %v12886_v52, %v18051_v27  ;;  %v5324_v35 = vmax.f32 %v5004_v3, %v5164_v24  ;;  %v5169_v21 = vmul.f32 0.01, %v5009_v42  ;;  %v18055_v3 = vld [vmem:[#allocation48_spill] sm:$0xff] }
 0x578   : > { %v5327_v5 = vmax.f32 %v5007_v32, %v5167_v54  ;;  %v4537_v37 = vmul.f32 %v13024_v40, %v18053_v18  ;;  %v5326_v51 = vmax.f32 %v5006_v22, %v5166_v58  ;;  %v4773_v59 = vmul.f32 %v18042_v38, %v4533_v43  ;;  %v18056_v54 = vld [vmem:[#allocation129_spill] sm:$0xff]  ;;  %v18057_v43 = vld [vmem:[#allocation263_spill] sm:$0xff] }
 0x579   : > { %v4772_v55 = vmul.f32 %v18042_v38, %v4532_v36  ;;  %v4536_v20 = vmul.f32 %v13113_v44, %v18054_v13  ;;  %v13570_v19 = vmul.f32 %v12858_v56, %v5325_v29  ;;  %v5168_v27 = vmul.f32 0.01, %v5008_v6 }
 0x57a   : > { %v5011_v41 = vadd.f32 %v13526_v39, %v4771_v53  ;;  %v4775_v32 = vmul.f32 %v18055_v3, %v4535_v0  ;;  %v5010_v22 = vadd.f32 %v13526_v39, %v4770_v46  ;;  %v4774_v24 = vmul.f32 %v18055_v3, %v4534_v16  ;;  %v13593_v53 = vpop.permute.xlu1 %4936 }
 0x57b   : > { %5934 = vrot.lane.b32.xlu1 %v13443_v61, %s7249_s18  ;;  %5944 = vrot.lane.b32.xlu0 %v13446_v34, %s7249_s18  ;;  %v4539_v58 = vmul.f32 %v12886_v52, %v18056_v54  ;;  %v13584_v36 = vsel %vm3564_vm2, %v18057_v43, 0.0  ;;  %v13587_v29 = vmul.f32 %v12858_v56, %v5324_v35  ;;  %v13590_v0 = vmul.f32 %v12858_v56, %v5327_v5  ;;  %v18062_v5 = vld [vmem:[#allocation110_spill] sm:$0xff] }
 0x57c   : > { %v5329_v61 = vmax.f32 %v5009_v42, %v5169_v21  ;;  %v4777_v34 = vmul.f32 %v18055_v3, %v4537_v37  ;;  %18060 = vst [vmem:[#allocation239_spill] sm:$0xff] %v13593_v53  ;;  %v13596_v46 = vmul.f32 %v12858_v56, %v5326_v51  ;;  %v5013_v16 = vadd.f32 %v13526_v39, %v4773_v59  ;;  %v13604_v42 = vpop.permute.xlu0 %4941  ;;  %v18065_v51 = vld [vmem:[#allocation217_spill] sm:$0xff] }
 0x57d   : > { %18058 = vst [vmem:[#allocation158_spill] sm:$0xff] %v13587_v29  ;;  %18059 = vst [vmem:[#allocation28_spill] sm:$0xff] %v13590_v0  ;;  %v5012_v18 = vadd.f32 %v13526_v39, %v4772_v55  ;;  %v4776_v13 = vmul.f32 %v18055_v3, %v4536_v20  ;;  %v5328_v54 = vmax.f32 %v5008_v6, %v5168_v27  ;;  %v5171_v35 = vmul.f32 0.01, %v5011_v41  ;;  %v18064_v20 = vld [vmem:[#allocation130_spill] sm:$0xff]  ;;  %v18068_v39 = vld [vmem:[#allocation236_spill] sm:$0xff] }
 0x57e   : > { %18061 = vst [vmem:[#allocation251_spill] sm:$0xff] %v13596_v46  ;;  %v5015_v38 = vadd.f32 %v13593_v53, %v4775_v32  ;;  %v4538_v21 = vmul.f32 %v13249_v1, %v18062_v5  ;;  %18063 = vst [vmem:[#allocation228_spill] sm:$0xff] %v13604_v42  ;;  %v5170_v59 = vmul.f32 0.01, %v5010_v22  ;;  %v5014_v37 = vadd.f32 %v13593_v53, %v4774_v24  ;;  %v18067_v5 = vld [vmem:[#allocation182_spill] sm:$0xff]  ;;  %v18069_v29 = vld [vmem:[#allocation16_spill] sm:$0xff] }
 0x57f   : > { %5938 = vrot.lane.b32.xlu1 %v13337_v23, %s7249_s18  ;;  %5948 = vrot.lane.b32.xlu0 %v13346_v25, %s7249_s18  ;;  %v4779_v6 = vmul.f32 %v18064_v20, %v4539_v58  ;;  %v4541_v55 = vmul.f32 %v13113_v44, %v18065_v51  ;;  %v13615_v27 = vmul.f32 %v12858_v56, %v5329_v61  ;;  %v5173_v43 = vmul.f32 0.01, %v5013_v16 }
 0x580   : > { %v5017_v32 = vadd.f32 %v13593_v53, %v4777_v34  ;;  %v4540_v23 = vmul.f32 %v12788_v10, %v18067_v5  ;;  %v4543_v25 = vmul.f32 %v13249_v1, %v18068_v39  ;;  %v5172_v46 = vmul.f32 0.01, %v5012_v18 }
 0x581   : > { %18066 = vst [vmem:[#allocation47_spill] sm:$0xff] %v13615_v27  ;;  %v5016_v24 = vadd.f32 %v13593_v53, %v4776_v13  ;;  %v4542_v58 = vmul.f32 %v13024_v40, %v18069_v29  ;;  %v13626_v51 = vmul.f32 %v12858_v56, %v5328_v54  ;;  %v5331_v61 = vmax.f32 %v5011_v41, %v5171_v35  ;;  %v18071_v35 = vld [vmem:[#allocation205_spill] sm:$0xff] }
 0x582   : > { %v5175_v27 = vmul.f32 0.01, %v5015_v38  ;;  %v4778_v34 = vmul.f32 %v18055_v3, %v4538_v21  ;;  %v5330_v39 = vmax.f32 %v5010_v22, %v5170_v59  ;;  %v5174_v5 = vmul.f32 0.01, %v5014_v37  ;;  %v13639_v3 = vpop.permute.xlu1 %4946 }
 0x583   : > { %18070 = vst [vmem:[#allocation271_spill] sm:$0xff] %v13626_v51  ;;  %5942 = vrot.lane.b32.xlu1 %v13343_v12, %s7249_s18  ;;  %5952 = vrot.lane.b32.xlu0 %v13360_v17, %s7249_s18  ;;  %v5019_v13 = vadd.f32 %v13604_v42, %v4779_v6  ;;  %v4781_v0 = vmul.f32 %v18064_v20, %v4541_v55  ;;  %v5177_v29 = vmul.f32 0.01, %v5017_v32  ;;  %18072 = vst [vmem:[#allocation272_spill] sm:$0xff] %v13639_v3  ;;  %v13641_v12 = vpop.permute.xlu0 %4951 }
 0x584   : > { %v4780_v54 = vmul.f32 %v18064_v20, %v4540_v23  ;;  %v4783_v41 = vmul.f32 %v18064_v20, %v4543_v25  ;;  %v4545_v21 = vmul.f32 %v12788_v10, %v18071_v35  ;;  %18073 = vst [vmem:[#allocation41_spill] sm:$0xff] %v13641_v12  ;;  %v5333_v17 = vmax.f32 %v5013_v16, %v5173_v43  ;;  %v18074_v25 = vld [vmem:[#allocation190_spill] sm:$0xff] }
 0x585   : > { %v5332_v22 = vmax.f32 %v5012_v18, %v5172_v46  ;;  %v5176_v59 = vmul.f32 0.01, %v5016_v24  ;;  %v4782_v6 = vmul.f32 %v18064_v20, %v4542_v58  ;;  %v13645_v55 = vmul.f32 %v12858_v56, %v5331_v61 }
 0x586   : > { %v5335_v51 = vmax.f32 %v5015_v38, %v5175_v27  ;;  %v13648_v23 = vadd.f32 %v13593_v53, %v4778_v34  ;;  %v4544_v35 = vmul.f32 %v12886_v52, %v18074_v25  ;;  %v13657_v43 = vmul.f32 %v12858_v56, %v5330_v39  ;;  %v5436_v38 = vld [vmem:[%s7409_s16] sm:$0xff] }
 0x587   : > { %5946 = vrot.lane.b32.xlu1 %v13353_v49, %s7249_s18  ;;  %5956 = vrot.lane.b32.xlu0 %v13387_v31, %s7249_s18  ;;  %v5334_v46 = vmax.f32 %v5014_v37, %v5174_v5  ;;  %v5179_v16 = vmul.f32 0.01, %v5019_v13  ;;  %v5021_v18 = vadd.f32 %v13604_v42, %v4781_v0  ;;  %v5337_v27 = vmax.f32 %v5017_v32, %v5177_v29  ;;  %v18075_v34 = vld [vmem:[#allocation222_spill] sm:$0xff]  ;;  %v13664_v20 = vpop.permute.xlu0 %5888 }
 0x588   : > { %v5020_v58 = vadd.f32 %v13604_v42, %v4780_v54  ;;  %v5023_v61 = vadd.f32 %v13604_v42, %v4783_v41  ;;  %v4785_v25 = vmul.f32 %v18075_v34, %v4545_v21  ;;  %v5887_v49 = vpop.permute.xlu1 %5886  ;;  %v13667_v31 = vmul.f32 %v12858_v56, %v5333_v17  ;;  %v18086_v53 = vld [vmem:[#allocation34_spill] sm:$0xff] }
 0x589   : > { %v13670_v39 = vmul.f32 %v12858_v56, %v5332_v22  ;;  %v5336_v37 = vmax.f32 %v5016_v24, %v5176_v59  ;;  %v5022_v0 = vadd.f32 %v13604_v42, %v4782_v6  ;;  %v6207_v32 = vsel %vm6206_vm3, %v5887_v49, %v13664_v20 }
 0x58a   : > { %v13676_v5 = vmul.f32 %v12858_v56, %v5335_v51  ;;  %v5178_v29 = vmul.f32 0.01, %v13648_v23  ;;  %v4784_v54 = vmul.f32 %v18075_v34, %v4544_v35  ;;  %v6463_v24 = vadd.f32 %v6207_v32, %v5436_v38  ;;  %v18083_v32 = vld [vmem:[#allocation226_spill] sm:$0xff] }
 0x58b   : > { %18076 = vst [vmem:[#allocation240_spill] sm:$0xff] %v13670_v39  ;;  %5950 = vrot.lane.b32.xlu1 %v13363_v9, %s7249_s18  ;;  %5960 = vrot.lane.b32.xlu0 %v13390_v8, %s7249_s18  ;;  %v13685_v41 = vmul.f32 %v12858_v56, %v5334_v46  ;;  %v5339_v21 = vmax.f32 %v5019_v13, %v5179_v16  ;;  %v5181_v17 = vmul.f32 0.01, %v5021_v18  ;;  %v5180_v51 = vmul.f32 0.01, %v5020_v58  ;;  %v18081_v46 = vld [vmem:[#allocation242_spill] sm:$0xff] }
 0x58c   : > { %v13688_v22 = vmul.f32 %v12858_v56, %v5337_v27  ;;  %v5183_v59 = vmul.f32 0.01, %v5023_v61  ;;  %v5025_v6 = vadd.f32 %v13639_v3, %v4785_v25  ;;  %6591 = vst [vmem:[%s13693_s20] sm:$0xff] %v6463_v24  ;;  %v13697_v9 = vmul.f32 %v12858_v56, %v5336_v37  ;;  %v18082_v25 = vld [vmem:[#allocation224_spill] sm:$0xff] }
 0x58d   : > { %18077 = vst [vmem:[#allocation270_spill] sm:$0xff] %v13685_v41  ;;  %v5182_v8 = vmul.f32 0.01, %v5022_v0  ;;  %v18080_v13 = vrot.slane %v18052_v47, 2  ;;  %v3708_v16 = vadd.f32 %v13584_v36, %v18081_v46  ;;  %v5338_v38 = vmax.f32 %v13648_v23, %v5178_v29  ;;  %v18085_v29 = vld [vmem:[#allocation37_spill] sm:$0xff] }
 0x58e   : > { %18078 = vst [vmem:[#allocation148_spill] sm:$0xff] %v13688_v22  ;;  %18079 = vst [vmem:[#allocation276_spill] sm:$0xff] %v13697_v9  ;;  %v13706_v27 = vadd.f32 %v13639_v3, %v4784_v54  ;;  %v4547_v49 = vmul.f32 %v13024_v40, %v18082_v25  ;;  %v4546_v37 = vmul.f32 %v13113_v44, %v18083_v32  ;;  %v3709_v54 = vsel %vm3564_vm2, %v18085_v29, 0.0  ;;  %v18087_v9 = vld [vmem:[#allocation134_spill] sm:$0xff] }
 0x58f   : > { %v3757_v35 = vadd.f32 %v18080_v13, %v18052_v47  ;;  %5954 = vrot.lane.b32.xlu1 %v13450_v30, %s7249_s18  ;;  %5964 = vrot.lane.b32.xlu0 %v13491_v48, %s7249_s18  ;;  %v13717_v47 = vmul.f32 %v12858_v56, %v5339_v21  ;;  %v5341_v36 = vmax.f32 %v5021_v18, %v5181_v17  ;;  %v5185_v46 = vmul.f32 0.01, %v5025_v6 }
 0x590   : > { %v5340_v24 = vmax.f32 %v5020_v58, %v5180_v51  ;;  %v5343_v13 = vmax.f32 %v5023_v61, %v5183_v59  ;;  %v3710_v25 = vadd.f32 %v3709_v54, %v3708_v16  ;;  %v5342_v42 = vmax.f32 %v5022_v0, %v5182_v8  ;;  %v18089_v61 = vld [vmem:[#allocation215_spill] sm:$0xff]  ;;  %v18090_v51 = vld [vmem:[#allocation141_spill] sm:$0xff] }
 0x591   : > { %18084 = vst [vmem:[#allocation256_spill] sm:$0xff] %v13717_v47  ;;  %v3758_v23 = vrot.slane %v3757_v35, 1  ;;  %v3711_v30 = vsel %vm3564_vm2, %v18086_v53, 0.0  ;;  %v3713_v48 = vsel %vm3564_vm2, %v18087_v9, 0.0  ;;  %v13726_v21 = vmul.f32 0.01, %v13706_v27 }
 0x592   : > { %v4787_v18 = vmul.f32 %v18075_v34, %v4547_v49  ;;  %v4786_v17 = vmul.f32 %v18075_v34, %v4546_v37  ;;  %v3712_v47 = vadd.f32 %v3711_v30, %v3710_v25  ;;  %v13735_v58 = vmul.f32 %v12858_v56, %v5338_v38  ;;  %v18092_v49 = vld [vmem:[#allocation88_spill] sm:$0xff]  ;;  %v18097_v54 = vld [vmem:[#allocation93_spill] sm:$0xff]  ;;  %v18102_v30 = vld [vmem:[#allocation183_spill] sm:$0xff] }
 0x593   : > { %v3759_v32 = vadd.f32 %v3758_v23, %v3757_v35  ;;  %5958 = vrot.lane.b32.xlu1 %v13411_v2, %s7249_s18  ;;  %5968 = vrot.lane.b32.xlu0 %v13475_v15, %s7249_s18  ;;  %v4549_v0 = vmul.f32 %v12886_v52, %v18089_v61  ;;  %v4548_v59 = vmul.f32 %v13249_v1, %v18090_v51  ;;  %v18095_v52 = vld [vmem:[#allocation92_spill] sm:$0xff] }
 0x594   : > { %18088 = vst [vmem:[#allocation278_spill] sm:$0xff] %v13735_v58  ;;  %v13744_v35 = vmul.f32 %v12858_v56, %v5341_v36  ;;  %v5345_v16 = vmax.f32 %v5025_v6, %v5185_v46  ;;  %v4551_v2 = vmul.f32 %v13113_v44, %v18092_v49  ;;  %v3714_v37 = vadd.f32 %v3713_v48, %v3712_v47  ;;  %v18106_v51 = vld [vmem:[#allocation264_spill] sm:$0xff]  ;;  %v18128_v58 = vld [vmem:[#allocation254_spill] sm:$0xff] }
 0x595   : > { %v13741_v8 = vmul.f32 0.0078125, %v3759_v32  ;;  %v13749_v15 = vmul.f32 %v12858_v56, %v5340_v24  ;;  %v13752_v38 = vmul.f32 %v12858_v56, %v5343_v13  ;;  %v13763_v6 = vmul.f32 %v12858_v56, %v5342_v42  ;;  %v18100_v24 = vld [vmem:[#allocation99_spill] sm:$0xff]  ;;  %v18101_v42 = vld [vmem:[#allocation229_spill] sm:$0xff] }
 0x596   : > { %18091 = vst [vmem:[#allocation275_spill] sm:$0xff] %v13744_v35  ;;  %v13768_v47 = vadd.f32 %v13639_v3, %v4787_v18  ;;  %v13771_v36 = vadd.f32 %v13639_v3, %v4786_v17  ;;  %v13775_v13 = vsel %vm3564_vm2, %v18100_v24, 0.0  ;;  %v13782_v46 = vmul.f32 %v18101_v42, %v4549_v0 }
 0x597   : > { %18093 = vst [vmem:[#allocation140_spill] sm:$0xff] %v13749_v15  ;;  %18094 = vst [vmem:[#allocation257_spill] sm:$0xff] %v13752_v38  ;;  %v13756_v23 = vsub.f32 %v18095_v52, %v13741_v8  ;;  %v13760_v25 = vsub.f32 %v18097_v54, %v13741_v8  ;;  %5962 = vrot.lane.b32.xlu1 %v13464_v57, %s7249_s18  ;;  %5972 = vrot.lane.b32.xlu0 %v13504_v63, %s7249_s18  ;;  %v18104_v57 = vld [vmem:[#allocation39_spill] sm:$0xff]  ;;  %v18105_v63 = vld [vmem:[#allocation244_spill] sm:$0xff] }
 0x598   : > { %18099 = vst [vmem:[#allocation285_spill] sm:$0xff] %v13763_v6  ;;  %v13785_v32 = vmul.f32 %v18075_v34, %v4548_v59  ;;  %v13789_v48 = vmul.f32 %v12788_v10, %v18102_v30  ;;  %v13792_v18 = vmul.f32 %v12858_v56, %v5345_v16  ;;  %v13795_v17 = vmul.f32 %v18101_v42, %v4551_v2  ;;  %v18108_v59 = vld [vmem:[#allocation210_spill] sm:$0xff]  ;;  %v18110_v52 = vld [vmem:[#allocation131_spill] sm:$0xff]  ;;  %v18118_v6 = vld [vmem:[#allocation265_spill] sm:$0xff] }
 0x599   : > { %18096 = vst [vmem:[#allocation280_spill] sm:$0xff] %v13756_v23  ;;  %18098 = vst [vmem:[#allocation279_spill] sm:$0xff] %v13760_v25  ;;  %v3715_v61 = vsel %vm3564_vm2, %v18104_v57, 0.0  ;;  %v13801_v0 = vadd.f32 %v18106_v51, %v18105_v63  ;;  %v13805_v49 = vsub.f32 %v18108_v59, %v13741_v8  ;;  %v4091_v10 = vmul.f32 %v13756_v23, %v13756_v23  ;;  %v18111_v2 = vld [vmem:[#allocation31_spill] sm:$0xff]  ;;  %v18113_v30 = vld [vmem:[#allocation126_spill] sm:$0xff] }
 0x59a   : > { %18103 = vst [vmem:[#allocation277_spill] sm:$0xff] %v13792_v18  ;;  %v4096_v16 = vmul.f32 %v13760_v25, %v13760_v25  ;;  %v13813_v54 = vadd.f32 %v18111_v2, %v18110_v52  ;;  %v13817_v44 = vsub.f32 %v18113_v30, %v13741_v8  ;;  %v18115_v63 = vld [vmem:[#allocation86_spill] sm:$0xff]  ;;  %v18117_v59 = vld [vmem:[#allocation225_spill] sm:$0xff]  ;;  %v3716_v22 = vadd.f32 %v3715_v61, %v3714_v37 }
 0x59b   : > { %18107 = vst [vmem:[#allocation192_spill] sm:$0xff] %v13801_v0  ;;  %18109 = vst [vmem:[#allocation235_spill] sm:$0xff] %v13805_v49  ;;  %v13821_v34 = vsub.f32 %v18115_v63, %v13741_v8  ;;  %v13825_v18 = vadd.f32 %v18118_v6, %v18117_v59  ;;  %v18120_v23 = vld [vmem:[#allocation250_spill] sm:$0xff]  ;;  %v18121_v15 = vld [vmem:[#allocation269_spill] sm:$0xff]  ;;  %5966 = vrot.lane.b32.xlu1 %v13501_v4, %s7249_s18  ;;  %5976 = vrot.lane.b32.xlu0 %v13513_v28, %s7249_s18 }
 0x59c   : > { %18112 = vst [vmem:[#allocation153_spill] sm:$0xff] %v13813_v54  ;;  %18114 = vst [vmem:[#allocation19_spill] sm:$0xff] %v13817_v44  ;;  %v13829_v57 = vadd.f32 %v18121_v15, %v18120_v23  ;;  %v18123_v52 = vld [vmem:[#allocation169_spill] sm:$0xff]  ;;  %v18125_v63 = vld [vmem:[#allocation100_spill] sm:$0xff]  ;;  %v4344_v29 = vadd.f32 %v4096_v16, %v4091_v10  ;;  %v3781_v40 = vadd.f32 %v13813_v54, %v13801_v0 }
 0x59d   : > { %18116 = vst [vmem:[#allocation273_spill] sm:$0xff] %v13821_v34  ;;  %18119 = vst [vmem:[#allocation274_spill] sm:$0xff] %v13825_v18  ;;  %v13837_v30 = vsub.f32 %v18123_v52, %v13741_v8  ;;  %v13841_v25 = vsub.f32 %v18125_v63, %v13741_v8  ;;  %v18127_v59 = vld [vmem:[#allocation64_spill] sm:$0xff]  ;;  %v18129_v23 = vld [vmem:[#allocation38_spill] sm:$0xff] }
 0x59e   : > { %18122 = vst [vmem:[#allocation33_spill] sm:$0xff] %v13829_v57  ;;  %v3717_v38 = vsel %vm3564_vm2, %v18127_v59, 0.0  ;;  %v13847_v53 = vadd.f32 %v18129_v23, %v18128_v58  ;;  %v18130_v4 = vld [vmem:[#allocation171_spill] sm:$0xff]  ;;  %v18134_v52 = vld [vmem:[#allocation101_spill] sm:$0xff]  ;;  %v18143_v10 = vld [vmem:[#allocation128_spill] sm:$0xff] }
 0x59f   : > { %18124 = vst [vmem:[#allocation27_spill] sm:$0xff] %v13837_v30  ;;  %18126 = vst [vmem:[#allocation40_spill] sm:$0xff] %v13841_v25  ;;  %v13851_v35 = vsub.f32 %v18130_v4, %v13741_v8  ;;  %v18132_v28 = vld [vmem:[#allocation83_spill] sm:$0xff]  ;;  %v13859_v24 = vsub.f32 %v18134_v52, %v13741_v8  ;;  %v18136_v63 = vld [vmem:[#allocation133_spill] sm:$0xff]  ;;  %v4101_v4 = vmul.f32 %v13805_v49, %v13805_v49  ;;  %5970 = vrot.lane.b32.xlu1 %v13510_v26, %s7249_s18 }
 0x5a0   : > { %v13855_v41 = vsub.f32 %v18132_v28, %v13741_v8  ;;  %v13863_v9 = vsub.f32 %v18136_v63, %v13741_v8  ;;  %v18138_v59 = vld [vmem:[#allocation219_spill] sm:$0xff]  ;;  %v18140_v28 = vld [vmem:[#allocation96_spill] sm:$0xff]  ;;  %v4106_v52 = vmul.f32 %v13817_v44, %v13817_v44  ;;  %v4111_v63 = vmul.f32 %v13821_v34, %v13821_v34  ;;  %5980 = vrot.lane.b32.xlu0 %v13533_v50, %s7249_s18  ;;  %v18145_v44 = vld [vmem:[#allocation21_spill] sm:$0xff] }
 0x5a1   : > { %18131 = vst [vmem:[#allocation207_spill] sm:$0xff] %v13851_v35  ;;  %18135 = vst [vmem:[#allocation195_spill] sm:$0xff] %v13859_v24  ;;  %v13867_v58 = vsub.f32 %v18138_v59, %v13741_v8  ;;  %v13873_v39 = vsub.f32 %v18140_v28, %v13741_v8  ;;  %v18142_v59 = vld [vmem:[#allocation151_spill] sm:$0xff]  ;;  %v4345_v37 = vadd.f32 %v4344_v29, %v4101_v4  ;;  %v18147_v54 = vld [vmem:[#allocation248_spill] sm:$0xff] }
 0x5a2   : > { %18133 = vst [vmem:[#allocation103_spill] sm:$0xff] %v13855_v41  ;;  %18137 = vst [vmem:[#allocation231_spill] sm:$0xff] %v13863_v9  ;;  %v3727_v1 = vsel %vm3564_vm2, %v18142_v59, 0.0  ;;  %v3718_v61 = vadd.f32 %v3717_v38, %v3716_v22  ;;  %v13889_v16 = vadd.f32 %v18106_v51, %v18143_v10  ;;  %v4116_v28 = vmul.f32 %v13837_v30, %v13837_v30  ;;  %v18148_v38 = vld [vmem:[#allocation32_spill] sm:$0xff]  ;;  %v18149_v4 = vld [vmem:[#allocation46_spill] sm:$0xff] }
 0x5a3   : > { %18139 = vst [vmem:[#allocation35_spill] sm:$0xff] %v13867_v58  ;;  %18141 = vst [vmem:[#allocation106_spill] sm:$0xff] %v13873_v39  ;;  %v3782_v34 = vadd.f32 %v3781_v40, %v13825_v18  ;;  %v13896_v49 = vadd.f32 %v18111_v2, %v18145_v44  ;;  %v13900_v26 = vadd.f32 %v18118_v6, %v18147_v54  ;;  %v18150_v30 = vld [vmem:[#allocation259_spill] sm:$0xff]  ;;  %v18152_v0 = vld [vmem:[#allocation249_spill] sm:$0xff]  ;;  %5974 = vrot.lane.b32.xlu1 %v13517_v14, %s7249_s18 }
 0x5a4   : > { %18144 = vst [vmem:[#allocation177_spill] sm:$0xff] %v13889_v16  ;;  %v4121_v50 = vmul.f32 %v13841_v25, %v13841_v25  ;;  %v4346_v22 = vadd.f32 %v4345_v37, %v4106_v52  ;;  %v3720_v29 = vadd.f32 %v13376_v45, %v3718_v61  ;;  %v13907_v10 = vadd.f32 %v18149_v4, %v18148_v38  ;;  %v18151_v40 = vld [vmem:[#allocation283_spill] sm:$0xff]  ;;  %v18154_v52 = vld [vmem:[#allocation58_spill] sm:$0xff]  ;;  %v18157_v38 = vld [vmem:[#allocation253_spill] sm:$0xff] }
 0x5a5   : > { %18146 = vst [vmem:[#allocation68_spill] sm:$0xff] %v13896_v49  ;;  %v13911_v18 = vadd.f32 %v18151_v40, %v18150_v30  ;;  %v3783_v44 = vadd.f32 %v3782_v34, %v13829_v57  ;;  %v13916_v54 = vadd.f32 %v18121_v15, %v18152_v0  ;;  %v3760_v25 = vadd.f32 %v13896_v49, %v13889_v16  ;;  %v18155_v34 = vld [vmem:[#allocation124_spill] sm:$0xff]  ;;  %v18159_v57 = vld [vmem:[#allocation18_spill] sm:$0xff] }
 0x5a6   : > { %v3729_v45 = vsel %vm3564_vm2, %v18154_v52, 0.0  ;;  %5984 = vrot.lane.b32.xlu0 %v13542_v33, %s7249_s18  ;;  %v4347_v30 = vadd.f32 %v4346_v22, %v4111_v63  ;;  %v3722_v37 = vadd.f32 %v13430_v7, %v3720_v29  ;;  %v13929_v61 = vadd.f32 %v18106_v51, %v18155_v34 }
 0x5a7   : > { %18153 = vst [vmem:[#allocation54_spill] sm:$0xff] %v13916_v54  ;;  %v3784_v0 = vadd.f32 %v3783_v44, %v13847_v53  ;;  %v13934_v49 = vadd.f32 %v18129_v23, %v18157_v38  ;;  %v3761_v16 = vadd.f32 %v3760_v25, %v13900_v26  ;;  %v13939_v14 = vadd.f32 %v18111_v2, %v18159_v57  ;;  %v18161_v57 = vld [vmem:[#allocation246_spill] sm:$0xff] }
 0x5a8   : > { %18156 = vst [vmem:[#allocation62_spill] sm:$0xff] %v13929_v61  ;;  %v4126_v33 = vmul.f32 %v13851_v35, %v13851_v35  ;;  %v4131_v7 = vmul.f32 %v13855_v41, %v13855_v41  ;;  %v4348_v51 = vadd.f32 %v4347_v30, %v4116_v28  ;;  %v3724_v63 = vadd.f32 %v13524_v11, %v3722_v37  ;;  %v18164_v37 = vld [vmem:[#allocation102_spill] sm:$0xff]  ;;  %v13983_v41 = vpop.permute.xlu0 %5892 }
 0x5a9   : > { %18158 = vst [vmem:[#allocation56_spill] sm:$0xff] %v13934_v49  ;;  %18160 = vst [vmem:[#allocation85_spill] sm:$0xff] %v13939_v14  ;;  %v4136_v22 = vmul.f32 %v13859_v24, %v13859_v24  ;;  %v3785_v25 = vadd.f32 %v3784_v0, %v13907_v10  ;;  %v3762_v29 = vadd.f32 %v3761_v16, %v13916_v54  ;;  %5978 = vrot.lane.b32.xlu1 %v13538_v60, %s7249_s18  ;;  %v18163_v16 = vld [vmem:[#allocation262_spill] sm:$0xff]  ;;  %v18165_v0 = vld [vmem:[#allocation24_spill] sm:$0xff] }
 0x5aa   : > { %v13952_v2 = vadd.f32 %v18118_v6, %v18161_v57  ;;  %5988 = vrot.lane.b32.xlu0 %v13570_v19, %s7249_s18  ;;  %v4349_v28 = vadd.f32 %v4348_v51, %v4121_v50  ;;  %v3726_v11 = vadd.f32 %v13775_v13, %v3724_v63  ;;  %v3802_v44 = vsel %vm2907_vm1, %v13929_v61, 0.0  ;;  %v5437_v50 = vld [vmem:[%s7409_s16 + $0x8] sm:$0xff]  ;;  %v5438_v13 = vld [vmem:[%s7409_s16 + $0x10] sm:$0xff]  ;;  %v18174_v54 = vld [vmem:[#allocation261_spill] sm:$0xff] }
 0x5ab   : > { %v3803_v30 = vsel %vm2907_vm1, %v13939_v14, 0.0  ;;  %v13965_v34 = vadd.f32 %v18164_v37, %v18163_v16  ;;  %v3786_v6 = vadd.f32 %v3785_v25, %v13911_v18  ;;  %v13970_v60 = vadd.f32 %v18149_v4, %v18165_v0  ;;  %v18167_v63 = vld [vmem:[#allocation260_spill] sm:$0xff]  ;;  %v18168_v24 = vld [vmem:[#allocation247_spill] sm:$0xff]  ;;  %v5891_v25 = vpop.permute.xlu1 %5890 }
 0x5ac   : > { %18162 = vst [vmem:[#allocation73_spill] sm:$0xff] %v13952_v2  ;;  %v3763_v19 = vadd.f32 %v3762_v29, %v13934_v49  ;;  %v4350_v38 = vadd.f32 %v4349_v28, %v4126_v33  ;;  %v3728_v51 = vadd.f32 %v3727_v1, %v3726_v11  ;;  %v13977_v57 = vadd.f32 %v18151_v40, %v18167_v63  ;;  %v18170_v33 = vld [vmem:[#allocation174_spill] sm:$0xff]  ;;  %v18172_v63 = vld [vmem:[#allocation84_spill] sm:$0xff] }
 0x5ad   : > { %18166 = vst [vmem:[#allocation150_spill] sm:$0xff] %v13970_v60  ;;  %v13981_v16 = vadd.f32 %v18121_v15, %v18168_v24  ;;  %v3787_v0 = vadd.f32 %v3786_v6, %v13965_v34  ;;  %v3804_v29 = vadd.f32 %v3803_v30, %v3802_v44  ;;  %v3805_v1 = vsel %vm2907_vm1, %v13952_v2, 0.0  ;;  %5982 = vrot.lane.b32.xlu1 %v13557_v62, %s7249_s18  ;;  %v18171_v15 = vld [vmem:[#allocation28_spill] sm:$0xff] }
 0x5ae   : > { %v3764_v35 = vadd.f32 %v3763_v19, %v13970_v60  ;;  %v3731_v28 = vsel %vm3564_vm2, %v18170_v33, 0.0  ;;  %5992 = vrot.lane.b32.xlu0 %v18171_v15, %s7249_s18  ;;  %v6208_v24 = vsel %vm6206_vm3, %v13664_v20, %v5891_v25  ;;  %v6209_v11 = vsel %vm6206_vm3, %v5891_v25, %v13983_v41  ;;  %v18173_v20 = vld [vmem:[#allocation170_spill] sm:$0xff] }
 0x5af   : > { %18169 = vst [vmem:[#allocation203_spill] sm:$0xff] %v13981_v16  ;;  %v4351_v44 = vadd.f32 %v4350_v38, %v4131_v7  ;;  %v6464_v30 = vadd.f32 %v6208_v24, %v5437_v50  ;;  %v6465_v6 = vadd.f32 %v6209_v11, %v5438_v13  ;;  %v3730_v19 = vadd.f32 %v3729_v45, %v3728_v51  ;;  %v18176_v50 = vld [vmem:[#allocation166_spill] sm:$0xff]  ;;  %v18184_v24 = vld [vmem:[#allocation97_spill] sm:$0xff] }
 0x5b0   : > { %v3788_v2 = vadd.f32 %v3787_v0, %v18172_v63  ;;  %v4141_v14 = vmul.f32 %v13863_v9, %v13863_v9  ;;  %v3765_v62 = vadd.f32 %v3764_v35, %v13977_v57  ;;  %v3806_v60 = vadd.f32 %v3805_v1, %v3804_v29  ;;  %v18178_v13 = vld [vmem:[#allocation158_spill] sm:$0xff] }
 0x5b1   : > { %v4352_v61 = vadd.f32 %v4351_v44, %v4136_v22  ;;  %6592 = vst [vmem:[%s13693_s20 + $0x8] sm:$0xff] %v6464_v30  ;;  %6593 = vst [vmem:[%s13693_s20 + $0x10] sm:$0xff] %v6465_v6  ;;  %v3732_v15 = vadd.f32 %v3731_v28, %v3730_v19  ;;  %v14008_v7 = vadd.f32 %v18164_v37, %v18174_v54  ;;  %5986 = vrot.lane.b32.xlu1 %v18178_v13, %s7249_s18  ;;  %v18179_v22 = vld [vmem:[#allocation47_spill] sm:$0xff]  ;;  %v18180_v38 = vld [vmem:[#allocation218_spill] sm:$0xff] }
 0x5b2   : > { %v3789_v49 = vadd.f32 %v3788_v2, %v18173_v20  ;;  %v14012_v45 = vadd.f32 %v18129_v23, %v18176_v50  ;;  %5996 = vrot.lane.b32.xlu0 %v18179_v22, %s7249_s18  ;;  %v5187_v35 = vmul.f32 0.01, %v13768_v47  ;;  %v14021_v51 = vsub.f32 %v18180_v38, %v13741_v8  ;;  %v18182_v37 = vld [vmem:[#allocation111_spill] sm:$0xff]  ;;  %v18189_v13 = vld [vmem:[#allocation82_spill] sm:$0xff] }
 0x5b3   : > { %18175 = vst [vmem:[#allocation13_spill] sm:$0xff] %v14008_v7  ;;  %v4146_v54 = vmul.f32 %v13867_v58, %v13867_v58  ;;  %v4353_v2 = vadd.f32 %v4352_v61, %v4141_v14  ;;  %v14027_v23 = vsub.f32 %v18182_v37, %v13741_v8  ;;  %v3733_v25 = vrot.slane %v3732_v15, 4  ;;  %v18190_v38 = vld [vmem:[#allocation255_spill] sm:$0xff]  ;;  %v18192_v37 = vld [vmem:[#allocation152_spill] sm:$0xff] }
 0x5b4   : > { %18177 = vst [vmem:[#allocation179_spill] sm:$0xff] %v14012_v45  ;;  %18181 = vst [vmem:[#allocation63_spill] sm:$0xff] %v14021_v51  ;;  %v3766_v0 = vadd.f32 %v3765_v62, %v14008_v7  ;;  %v3807_v29 = vsel %vm2907_vm1, %v13981_v16, 0.0  ;;  %v4151_v1 = vmul.f32 %v13873_v39, %v13873_v39  ;;  %v3790_v11 = vadd.f32 %v3789_v49, %v18184_v24  ;;  %v18186_v62 = vld [vmem:[#allocation251_spill] sm:$0xff] }
 0x5b5   : > { %18183 = vst [vmem:[#allocation59_spill] sm:$0xff] %v14027_v23  ;;  %v4354_v28 = vadd.f32 %v4353_v2, %v4146_v54  ;;  %v3808_v44 = vadd.f32 %v3807_v29, %v3806_v60  ;;  %v18185_v61 = vmax.f32 %v13706_v27, %v13726_v21  ;;  %v4790_v30 = vmul.f32 %v18101_v42, %v13789_v48  ;;  %v18187_v27 = vld [vmem:[#allocation227_spill] sm:$0xff] }
 0x5b6   : > { %v3734_v6 = vadd.f32 %v3733_v25, %v3732_v15  ;;  %v3809_v19 = vsel %vm2907_vm1, %v14012_v45, 0.0  ;;  %5990 = vrot.lane.b32.xlu1 %v18186_v62, %s7249_s18  ;;  %6000 = vrot.lane.b32.xlu0 %v13645_v55, %s7249_s18  ;;  %v5186_v49 = vmul.f32 0.01, %v13771_v36  ;;  %v14052_v21 = vsub.f32 %v18187_v27, %v13741_v8  ;;  %v14095_v27 = vpop.permute.xlu0 %5896  ;;  %v18221_v58 = vld [vmem:[#allocation99_spill] sm:$0xff] }
 0x5b7   : > { %v14039_v14 = vmul.f32 %v12858_v56, %v18185_v61  ;;  %v4156_v60 = vmul.f32 %v14021_v51, %v14021_v51  ;;  %v4355_v48 = vadd.f32 %v4354_v28, %v4151_v1  ;;  %v5347_v15 = vmax.f32 %v13768_v47, %v5187_v35  ;;  %v18195_v1 = vld [vmem:[#allocation194_spill] sm:$0xff]  ;;  %v18227_v45 = vld [vmem:[#allocation87_spill] sm:$0xff] }
 0x5b8   : > { %18188 = vst [vmem:[#allocation234_spill] sm:$0xff] %v14052_v21  ;;  %v3735_v50 = vrot.slane %v3734_v6, 2  ;;  %v3767_v22 = vadd.f32 %v3766_v0, %v18189_v13  ;;  %v14060_v54 = vadd.f32 %v18149_v4, %v18190_v38  ;;  %v4161_v55 = vmul.f32 %v14027_v23, %v14027_v23  ;;  %v18193_v0 = vld [vmem:[#allocation258_spill] sm:$0xff]  ;;  %v18239_v13 = vld [vmem:[#allocation268_spill] sm:$0xff] }
 0x5b9   : > { %v4356_v2 = vadd.f32 %v4355_v48, %v4156_v60  ;;  %v3791_v8 = vadd.f32 %v3790_v11, %v18192_v37  ;;  %v3810_v25 = vadd.f32 %v3809_v19, %v3808_v44  ;;  %v14067_v29 = vadd.f32 %v13641_v12, %v13782_v46  ;;  %v18196_v11 = vld [vmem:[#allocation271_spill] sm:$0xff] }
 0x5ba   : > { %18191 = vst [vmem:[#allocation23_spill] sm:$0xff] %v14060_v54  ;;  %v14071_v47 = vadd.f32 %v13639_v3, %v13785_v32  ;;  %v3736_v35 = vadd.f32 %v3735_v50, %v3734_v6  ;;  %v14075_v4 = vadd.f32 %v18151_v40, %v18193_v0  ;;  %v14079_v28 = vsel %vm2907_vm1, %v18195_v1, 0.0  ;;  %5994 = vrot.lane.b32.xlu1 %v18196_v11, %s7249_s18  ;;  %v18197_v6 = vld [vmem:[#allocation98_spill] sm:$0xff]  ;;  %v18202_v0 = vld [vmem:[#allocation67_spill] sm:$0xff] }
 0x5bb   : > { %6004 = vrot.lane.b32.xlu0 %v13667_v31, %s7249_s18  ;;  %v14087_v46 = vadd.f32 %v13641_v12, %v13795_v17  ;;  %v4166_v32 = vmul.f32 %v14052_v21, %v14052_v21  ;;  %v4357_v44 = vadd.f32 %v4356_v2, %v4161_v55  ;;  %v5346_v40 = vmax.f32 %v13771_v36, %v5186_v49  ;;  %v18198_v17 = vld [vmem:[#allocation172_spill] sm:$0xff]  ;;  %v18200_v2 = vld [vmem:[#allocation42_spill] sm:$0xff] }
 0x5bc   : > { %18194 = vst [vmem:[#allocation160_spill] sm:$0xff] %v14075_v4  ;;  %v3737_v61 = vrot.slane %v3736_v35, 1  ;;  %v3768_v19 = vadd.f32 %v3767_v22, %v18197_v6  ;;  %v3811_v62 = vsel %vm2907_vm1, %v14060_v54, 0.0  ;;  %v14098_v31 = vadd.f32 %v13641_v12, %v4790_v30  ;;  %v18199_v22 = vld [vmem:[#allocation91_spill] sm:$0xff]  ;;  %v18204_v21 = vld [vmem:[#allocation80_spill] sm:$0xff]  ;;  %v18224_v54 = vld [vmem:[#allocation237_spill] sm:$0xff] }
 0x5bd   : > { %v4358_v60 = vadd.f32 %v4357_v44, %v4166_v32  ;;  %v3792_v48 = vadd.f32 %v3791_v8, %v18198_v17  ;;  %v3812_v50 = vadd.f32 %v3811_v62, %v3810_v25  ;;  %v5189_v38 = vmul.f32 0.01, %v14067_v29  ;;  %v18201_v25 = vld [vmem:[#allocation211_spill] sm:$0xff] }
 0x5be   : > { %v5188_v55 = vmul.f32 0.01, %v14071_v47  ;;  %v3738_v36 = vadd.f32 %v3737_v61, %v3736_v35  ;;  %v3813_v49 = vsel %vm2907_vm1, %v14075_v4, 0.0  ;;  %5998 = vrot.lane.b32.xlu1 %v13657_v43, %s7249_s18  ;;  %v14110_v30 = vmul.f32 %v12858_v56, %v5347_v15  ;;  %v18203_v61 = vld [vmem:[#allocation89_spill] sm:$0xff] }
 0x5bf   : > { %6008 = vrot.lane.b32.xlu0 %v13676_v5, %s7249_s18  ;;  %v4553_v8 = vmul.f32 %v18200_v2, %v18199_v22  ;;  %v4552_v11 = vmul.f32 %v18202_v0, %v18201_v25  ;;  %v4359_v32 = vrot.slane %v4358_v60, 4  ;;  %v14117_v35 = vmul.f32 %v12858_v56, %v5346_v40  ;;  %v18205_v40 = vld [vmem:[#allocation204_spill] sm:$0xff] }
 0x5c0   : > { %v14120_v44 = vmul.f32 0.01, %v14087_v46  ;;  %v14122_v43 = vmul.f32 0.0078125, %v3738_v36  ;;  %v3769_v5 = vadd.f32 %v3768_v19, %v18203_v61  ;;  %v14126_v15 = vmul.f32 0.01, %v14098_v31  ;;  %v18207_v36 = vld [vmem:[#allocation120_spill] sm:$0xff] }
 0x5c1   : > { %v4360_v62 = vadd.f32 %v4359_v32, %v4358_v60  ;;  %v3793_v22 = vadd.f32 %v3792_v48, %v18204_v21  ;;  %v3814_v2 = vadd.f32 %v3813_v49, %v3812_v50  ;;  %v5349_v25 = vmax.f32 %v14067_v29, %v5189_v38  ;;  %v18209_v19 = vld [vmem:[#allocation240_spill] sm:$0xff]  ;;  %v14143_v48 = vpop.permute.xlu0 %5900  ;;  %v18233_v61 = vld [vmem:[#allocation51_spill] sm:$0xff] }
 0x5c2   : > { %v5348_v0 = vmax.f32 %v14071_v47, %v5188_v55  ;;  %v14133_v3 = vsub.f32 %v18205_v40, %v14122_v43  ;;  %v14137_v23 = vsub.f32 %v18207_v36, %v14122_v43  ;;  %6002 = vrot.lane.b32.xlu1 %v18209_v19, %s7249_s18  ;;  %v18210_v60 = vld [vmem:[#allocation148_spill] sm:$0xff]  ;;  %v4793_v29 = vmul.f32 %v18101_v42, %v4553_v8  ;;  %v18211_v47 = vld [vmem:[#allocation37_spill] sm:$0xff]  ;;  %v18213_v55 = vld [vmem:[#allocation134_spill] sm:$0xff] }
 0x5c3   : > { %6012 = vrot.lane.b32.xlu0 %v18210_v60, %s7249_s18  ;;  %v4361_v50 = vrot.slane %v4360_v62, 2  ;;  %v14148_v38 = vsub.f32 %v18211_v47, %v14122_v43  ;;  %v14152_v49 = vsub.f32 %v18213_v55, %v14122_v43  ;;  %v18215_v32 = vld [vmem:[#allocation64_spill] sm:$0xff]  ;;  %v18217_v36 = vld [vmem:[#allocation123_spill] sm:$0xff]  ;;  %v18219_v60 = vld [vmem:[#allocation213_spill] sm:$0xff]  ;;  %v14167_v9 = vsub.f32 %v18221_v58, %v14122_v43 }
 0x5c4   : > { %18206 = vst [vmem:[#allocation36_spill] sm:$0xff] %v14133_v3  ;;  %18208 = vst [vmem:[#allocation241_spill] sm:$0xff] %v14137_v23  ;;  %v14156_v40 = vsub.f32 %v18215_v32, %v14122_v43  ;;  %v14160_v19 = vsub.f32 %v18217_v36, %v14122_v43  ;;  %v3770_v51 = vadd.f32 %v3769_v5, %v18219_v60  ;;  %v18220_v8 = vld [vmem:[#allocation162_spill] sm:$0xff]  ;;  %v18223_v55 = vld [vmem:[#allocation136_spill] sm:$0xff] }
 0x5c5   : > { %18212 = vst [vmem:[#allocation243_spill] sm:$0xff] %v14148_v38  ;;  %18214 = vst [vmem:[#allocation71_spill] sm:$0xff] %v14152_v49  ;;  %v3815_v39 = vsel %vm2907_vm1, %v18220_v8, 0.0  ;;  %v4362_v47 = vadd.f32 %v4361_v50, %v4360_v62  ;;  %v3794_v1 = vadd.f32 %v3793_v22, %v18223_v55  ;;  %v4792_v32 = vmul.f32 %v18101_v42, %v4552_v11  ;;  %v18228_v50 = vld [vmem:[#allocation270_spill] sm:$0xff]  ;;  %v18229_v58 = vld [vmem:[#allocation256_spill] sm:$0xff]  ;;  %v5895_v8 = vpop.permute.xlu1 %5894 }
 0x5c6   : > { %18216 = vst [vmem:[#allocation65_spill] sm:$0xff] %v14156_v40  ;;  %18218 = vst [vmem:[#allocation55_spill] sm:$0xff] %v14160_v19  ;;  %v3816_v4 = vadd.f32 %v3815_v39, %v3814_v2  ;;  %v14173_v36 = vsub.f32 %v18224_v54, %v14122_v43  ;;  %v14177_v5 = vsub.f32 %v18154_v52, %v14122_v43  ;;  %v3817_v62 = vsel %vm2907_vm1, %v18227_v45, 0.0  ;;  %v5439_v22 = vld [vmem:[%s7409_s16 + $0x18] sm:$0xff]  ;;  %v18230_v42 = vld [vmem:[#allocation263_spill] sm:$0xff] }
 0x5c7   : > { %18222 = vst [vmem:[#allocation52_spill] sm:$0xff] %v14167_v9  ;;  %6006 = vrot.lane.b32.xlu1 %v18228_v50, %s7249_s18  ;;  %6016 = vrot.lane.b32.xlu0 %v18229_v58, %s7249_s18  ;;  %v14188_v11 = vadd.f32 %v13641_v12, %v4793_v29  ;;  %v4363_v54 = vrot.slane %v4362_v47, 1  ;;  %v4090_v52 = vmul.f32 %v14133_v3, %v14133_v3  ;;  %v18232_v45 = vld [vmem:[#allocation105_spill] sm:$0xff]  ;;  %v5905_v29 = vpop.permute.xlu0 %5904 }
 0x5c8   : > { %18225 = vst [vmem:[#allocation70_spill] sm:$0xff] %v14173_v36  ;;  %18226 = vst [vmem:[#allocation79_spill] sm:$0xff] %v14177_v5  ;;  %v14197_v50 = vsub.f32 %v18230_v42, %v14122_v43  ;;  %v4095_v58 = vmul.f32 %v14137_v23, %v14137_v23  ;;  %v3771_v39 = vadd.f32 %v3770_v51, %v18232_v45 }
 0x5c9   : > { %v14203_v16 = vmul.f32 %v12858_v56, %v5349_v25  ;;  %v4364_v60 = vadd.f32 %v4363_v54, %v4362_v47  ;;  %v3795_v3 = vadd.f32 %v3794_v1, %v18233_v61  ;;  %v3818_v2 = vadd.f32 %v3817_v62, %v3816_v4  ;;  %v18234_v25 = vld [vmem:[#allocation276_spill] sm:$0xff]  ;;  %v18235_v1 = vld [vmem:[#allocation275_spill] sm:$0xff] }
 0x5ca   : > { %18231 = vst [vmem:[#allocation53_spill] sm:$0xff] %v14197_v50  ;;  %v6210_v42 = vsel %vm6206_vm3, %v13983_v41, %v5895_v8  ;;  %v14209_v6 = vmul.f32 %v12858_v56, %v5348_v0  ;;  %v14212_v51 = vadd.f32 %v13641_v12, %v4792_v32  ;;  %v4100_v23 = vmul.f32 %v14173_v36, %v14173_v36  ;;  %v5440_v8 = vld [vmem:[%s7409_s16 + $0x20] sm:$0xff]  ;;  %v5441_v47 = vld [vmem:[%s7409_s16 + $0x28] sm:$0xff] }
 0x5cb   : > { %v6466_v45 = vadd.f32 %v6210_v42, %v5439_v22  ;;  %6010 = vrot.lane.b32.xlu1 %v18234_v25, %s7249_s18  ;;  %6020 = vrot.lane.b32.xlu0 %v18235_v1, %s7249_s18  ;;  %v14221_v4 = vmul.f32 0.01, %v14188_v11  ;;  %v4450_v41 = vmul.f32 0.0078125, %v4364_v60  ;;  %v4307_v0 = vsel %vm3564_vm2, %v4090_v52, 0.0  ;;  %v18236_v32 = vld [vmem:[#allocation34_spill] sm:$0xff]  ;;  %v18238_v42 = vld [vmem:[#allocation116_spill] sm:$0xff]  ;;  %v5899_v1 = vpop.permute.xlu1 %5898  ;;  %v14235_v12 = vpop.permute.xlu0 %5908 }
 0x5cc   : > { %v14228_v62 = vsub.f32 %v18236_v32, %v14122_v43  ;;  %v4105_v54 = vmul.f32 %v14197_v50, %v14197_v50  ;;  %v4308_v22 = vsel %vm3564_vm2, %v4095_v58, 0.0  ;;  %v3772_v25 = vadd.f32 %v3771_v39, %v18238_v42 }
 0x5cd   : > { %6594 = vst [vmem:[%s13693_s20 + $0x18] sm:$0xff] %v6466_v45  ;;  %v4460_v60 = vadd.f32 1e-05, %v4450_v41  ;;  %v4309_v52 = vadd.f32 %v4308_v22, %v4307_v0  ;;  %v3796_v36 = vrot.slane %v3795_v3, 4  ;;  %v3820_v7 = vadd.f32 %v18239_v13, %v3818_v2  ;;  %v18240_v41 = vld [vmem:[#allocation278_spill] sm:$0xff]  ;;  %v18241_v13 = vld [vmem:[#allocation257_spill] sm:$0xff] }
 0x5ce   : > { %18237 = vst [vmem:[#allocation78_spill] sm:$0xff] %v14228_v62  ;;  %v6211_v32 = vsel %vm6206_vm3, %v14095_v27, %v5899_v1  ;;  %v6212_v58 = vsel %vm6206_vm3, %v5899_v1, %v14143_v48  ;;  %v4110_v45 = vmul.f32 %v14148_v38, %v14148_v38  ;;  %v4310_v39 = vsel %vm3564_vm2, %v4100_v23, 0.0  ;;  %v5442_v2 = vld [vmem:[%s7409_s16 + $0x30] sm:$0xff]  ;;  %v5443_v0 = vld [vmem:[%s7409_s16 + $0x38] sm:$0xff]  ;;  %v18242_v22 = vld [vmem:[#allocation39_spill] sm:$0xff] }
 0x5cf   : > { %v6467_v50 = vadd.f32 %v6211_v32, %v5440_v8  ;;  %v6468_v42 = vadd.f32 %v6212_v58, %v5441_v47  ;;  %6014 = vrot.lane.b32.xlu1 %v18240_v41, %s7249_s18  ;;  %6024 = vrot.lane.b32.xlu0 %v18241_v13, %s7249_s18  ;;  %6934 = vrsqrt.f32 %v4460_v60  ;;  %v4311_v27 = vadd.f32 %v4310_v39, %v4309_v52  ;;  %v18244_v8 = vld [vmem:[#allocation119_spill] sm:$0xff]  ;;  %v5903_v32 = vpop.permute.xlu1 %5902  ;;  %v14261_v58 = vpop.permute.xlu0 %5912  ;;  %v18245_v60 = vld [vmem:[#allocation178_spill] sm:$0xff] }
 0x5d0   : > { %v14253_v1 = vsub.f32 %v18242_v22, %v14122_v43  ;;  %v4115_v38 = vmul.f32 %v14228_v62, %v14228_v62  ;;  %v4312_v23 = vsel %vm3564_vm2, %v4105_v54, 0.0  ;;  %v3773_v47 = vadd.f32 %v3772_v25, %v18244_v8  ;;  %v18247_v22 = vld [vmem:[#allocation155_spill] sm:$0xff] }
 0x5d1   : > { %6595 = vst [vmem:[%s13693_s20 + $0x20] sm:$0xff] %v6467_v50  ;;  %6596 = vst [vmem:[%s13693_s20 + $0x28] sm:$0xff] %v6468_v42  ;;  %v14265_v52 = vsub.f32 %v18245_v60, %v14122_v43  ;;  %v4120_v39 = vmul.f32 %v14152_v49, %v14152_v49  ;;  %v4313_v41 = vadd.f32 %v4312_v23, %v4311_v27  ;;  %v4314_v42 = vsel %vm3564_vm2, %v4110_v45, 0.0  ;;  %v18248_v49 = vld [vmem:[#allocation140_spill] sm:$0xff]  ;;  %v5444_v27 = vld [vmem:[%s7409_s16 + $0x40] sm:$0xff] }
 0x5d2   : > { %18243 = vst [vmem:[#allocation281_spill] sm:$0xff] %v14253_v1  ;;  %v3822_v13 = vadd.f32 %v14079_v28, %v3820_v7  ;;  %v6213_v54 = vsel %vm6206_vm3, %v14143_v48, %v5903_v32  ;;  %v6214_v50 = vsel %vm6206_vm3, %v5903_v32, %v5905_v29  ;;  %v3797_v25 = vadd.f32 %v3796_v36, %v3795_v3  ;;  %v18249_v7 = vld [vmem:[#allocation277_spill] sm:$0xff]  ;;  %v18250_v3 = vld [vmem:[#allocation114_spill] sm:$0xff] }
 0x5d3   : > { %18246 = vst [vmem:[#allocation282_spill] sm:$0xff] %v14265_v52  ;;  %v3823_v60 = vsel %vm2907_vm1, %v18247_v22, 0.0  ;;  %v6469_v62 = vadd.f32 %v6213_v54, %v5442_v2  ;;  %v6470_v8 = vadd.f32 %v6214_v50, %v5443_v0  ;;  %6018 = vrot.lane.b32.xlu1 %v18248_v49, %s7249_s18  ;;  %6028 = vrot.lane.b32.xlu0 %v18249_v7, %s7249_s18  ;;  %v4316_v29 = vsel %vm3564_vm2, %v4115_v38, 0.0  ;;  %v5907_v2 = vpop.permute.xlu1 %5906  ;;  %v14287_v0 = vpop.permute.xlu0 %5916  ;;  %v18252_v38 = vld [vmem:[#allocation143_spill] sm:$0xff]  ;;  %v18254_v54 = vld [vmem:[#allocation168_spill] sm:$0xff] }
 0x5d4   : > { %v4315_v28 = vadd.f32 %v4314_v42, %v4313_v41  ;;  %v4125_v48 = vmul.f32 %v14253_v1, %v14253_v1  ;;  %v3798_v45 = vrot.slane %v3797_v25, 2  ;;  %v3774_v36 = vadd.f32 %v3773_v47, %v18250_v3 }
 0x5d5   : > { %6597 = vst [vmem:[%s13693_s20 + $0x30] sm:$0xff] %v6469_v62  ;;  %6598 = vst [vmem:[%s13693_s20 + $0x38] sm:$0xff] %v6470_v8  ;;  %v18251_v49 = vmax.f32 %v14087_v46, %v14120_v44  ;;  %v5353_v32 = vmax.f32 %v14188_v11, %v14221_v4  ;;  %v14297_v41 = vsub.f32 %v18252_v38, %v14122_v43  ;;  %v4318_v46 = vsel %vm3564_vm2, %v4120_v39, 0.0  ;;  %v18255_v11 = vld [vmem:[#allocation285_spill] sm:$0xff] }
 0x5d6   : > { %v4317_v47 = vadd.f32 %v4316_v29, %v4315_v28  ;;  %v6215_v62 = vsel %vm6206_vm3, %v5907_v2, %v14235_v12  ;;  %v4130_v8 = vmul.f32 %v14156_v40, %v14156_v40  ;;  %v3799_v44 = vadd.f32 %v3798_v45, %v3797_v25  ;;  %v5445_v28 = vld [vmem:[%s7409_s16 + $0x48] sm:$0xff]  ;;  %v5446_v29 = vld [vmem:[%s7409_s16 + $0x50] sm:$0xff] }
 0x5d7   : > { %v5643_v23 = vmul.f32 %v12858_v56, %v18251_v49  ;;  %18253 = vst [vmem:[#allocation49_spill] sm:$0xff] %v14297_v41  ;;  %v3825_v50 = vsel %vm2907_vm1, %v18254_v54, 0.0  ;;  %v6471_v42 = vadd.f32 %v6215_v62, %v5444_v27  ;;  %6022 = vrot.lane.b32.xlu1 %v18255_v11, %s7249_s18  ;;  %6032 = vrot.lane.b32.xlu0 %v14110_v30, %s7249_s18  ;;  %v4320_v39 = vsel %vm3564_vm2, %v4125_v48, 0.0  ;;  %v5911_v27 = vpop.permute.xlu1 %5910  ;;  %v14318_v38 = vpop.permute.xlu0 %5920  ;;  %v18258_v11 = vld [vmem:[#allocation57_spill] sm:$0xff] }
 0x5d8   : > { %v4319_v4 = vadd.f32 %v4318_v46, %v4317_v47  ;;  %v3824_v7 = vadd.f32 %v3823_v60, %v3822_v13  ;;  %v4135_v2 = vmul.f32 %v14265_v52, %v14265_v52  ;;  %v3800_v25 = vrot.slane %v3799_v44, 1  ;;  %v18257_v46 = vld [vmem:[#allocation280_spill] sm:$0xff] }
 0x5d9   : > { %v3775_v45 = vrot.slane %v3774_v36, 4  ;;  %v14315_v49 = vpop.eup %6934  ;;  %6599 = vst [vmem:[%s13693_s20 + $0x40] sm:$0xff] %v6471_v42  ;;  %v14322_v30 = vsub.f32 %v18142_v59, %v14122_v43  ;;  %v4140_v13 = vmul.f32 %v14160_v19, %v14160_v19  ;;  %v4145_v60 = vmul.f32 %v14297_v41, %v14297_v41 }
 0x5da   : > { %v4321_v48 = vadd.f32 %v4320_v39, %v4319_v4  ;;  %v6216_v47 = vsel %vm6206_vm3, %v14235_v12, %v5911_v27  ;;  %v6217_v62 = vsel %vm6206_vm3, %v5911_v27, %v14261_v58  ;;  %v4555_v42 = vmul.f32 %v14315_v49, %v18257_v46  ;;  %v5447_v4 = vld [vmem:[%s7409_s16 + $0x58] sm:$0xff]  ;;  %v18259_v39 = vld [vmem:[#allocation107_spill] sm:$0xff] }
 0x5db   : > { %18256 = vst [vmem:[#allocation74_spill] sm:$0xff] %v14322_v30  ;;  %v4322_v59 = vsel %vm3564_vm2, %v4130_v8, 0.0  ;;  %v3827_v19 = vsel %vm2907_vm1, %v18258_v11, 0.0  ;;  %v6472_v52 = vadd.f32 %v6216_v47, %v5445_v28  ;;  %v6473_v40 = vadd.f32 %v6217_v62, %v5446_v29  ;;  %6026 = vrot.lane.b32.xlu1 %v14039_v14, %s7249_s18  ;;  %6036 = vrot.lane.b32.xlu0 %v14203_v16, %s7249_s18  ;;  %v5915_v1 = vpop.permute.xlu1 %5914  ;;  %v5925_v28 = vpop.permute.xlu0 %5924 }
 0x5dc   : > { %v4323_v12 = vadd.f32 %v4322_v59, %v4321_v48  ;;  %v4795_v27 = vmul.f32 %v18259_v39, %v4555_v42  ;;  %v4324_v41 = vsel %vm3564_vm2, %v4135_v2, 0.0  ;;  %v3801_v46 = vadd.f32 %v3800_v25, %v3799_v44  ;;  %v18261_v2 = vld [vmem:[#allocation117_spill] sm:$0xff] }
 0x5dd   : > { %v3776_v8 = vadd.f32 %v3775_v45, %v3774_v36  ;;  %6600 = vst [vmem:[%s13693_s20 + $0x48] sm:$0xff] %v6472_v52  ;;  %6601 = vst [vmem:[%s13693_s20 + $0x50] sm:$0xff] %v6473_v40  ;;  %v5645_v29 = vmul.f32 %v12858_v56, %v5353_v32  ;;  %v14349_v14 = vsub.f32 %v18170_v33, %v14122_v43  ;;  %v4326_v40 = vsel %vm3564_vm2, %v4140_v13, 0.0  ;;  %v5448_v32 = vld [vmem:[%s7409_s16 + $0x60] sm:$0xff] }
 0x5de   : > { %v4150_v16 = vmul.f32 %v14167_v9, %v14167_v9  ;;  %v4325_v48 = vadd.f32 %v4324_v41, %v4323_v12  ;;  %v6218_v44 = vsel %vm6206_vm3, %v14261_v58, %v5915_v1  ;;  %v5035_v52 = vadd.f32 %v18261_v2, %v4795_v27  ;;  %v5449_v1 = vld [vmem:[%s7409_s16 + $0x68] sm:$0xff]  ;;  %v18262_v27 = vld [vmem:[#allocation230_spill] sm:$0xff] }
 0x5df   : > { %18260 = vst [vmem:[#allocation127_spill] sm:$0xff] %v14349_v14  ;;  %v3826_v36 = vadd.f32 %v3825_v50, %v3824_v7  ;;  %v6474_v25 = vadd.f32 %v6218_v44, %v5447_v4  ;;  %6030 = vrot.lane.b32.xlu1 %v14117_v35, %s7249_s18  ;;  %6040 = vrot.lane.b32.xlu0 %v5643_v23, %s7249_s18  ;;  %v5192_v33 = vmul.f32 0.01, %v14212_v51  ;;  %v4328_v45 = vsel %vm3564_vm2, %v4145_v60, 0.0  ;;  %v5919_v7 = vpop.permute.xlu1 %5918  ;;  %v14369_v35 = vpop.permute.xlu0 %5928 }
 0x5e0   : > { %v4155_v43 = vmul.f32 %v14322_v30, %v14322_v30  ;;  %v4327_v41 = vadd.f32 %v4326_v40, %v4325_v48  ;;  %v5195_v58 = vmul.f32 0.01, %v5035_v52  ;;  %v14366_v47 = vmul.f32 0.0078125, %v3801_v46  ;;  %v5450_v40 = vld [vmem:[%s7409_s16 + $0x70] sm:$0xff] }
 0x5e1   : > { %v3777_v50 = vrot.slane %v3776_v8, 2  ;;  %6602 = vst [vmem:[%s13693_s20 + $0x58] sm:$0xff] %v6474_v25  ;;  %v4160_v23 = vmul.f32 %v14177_v5, %v14177_v5  ;;  %v4165_v13 = vmul.f32 %v14349_v14, %v14349_v14  ;;  %v4330_v42 = vsel %vm3564_vm2, %v4150_v16, 0.0 }
 0x5e2   : > { %v4329_v62 = vadd.f32 %v4328_v45, %v4327_v41  ;;  %v6219_v60 = vsel %vm6206_vm3, %v14287_v0, %v5919_v7  ;;  %v6220_v59 = vsel %vm6206_vm3, %v5919_v7, %v14318_v38  ;;  %v5355_v12 = vmax.f32 %v5035_v52, %v5195_v58  ;;  %v5451_v0 = vld [vmem:[%s7409_s16 + $0x78] sm:$0xff]  ;;  %v18263_v41 = vld [vmem:[#allocation192_spill] sm:$0xff] }
 0x5e3   : > { %v3828_v4 = vadd.f32 %v3827_v19, %v3826_v36  ;;  %v3829_v46 = vsel %vm2907_vm1, %v18262_v27, 0.0  ;;  %v6475_v48 = vadd.f32 %v6219_v60, %v5448_v32  ;;  %v6476_v44 = vadd.f32 %v6220_v59, %v5449_v1  ;;  %6034 = vrot.lane.b32.xlu1 %v14209_v6, %s7249_s18  ;;  %6044 = vrot.lane.b32.xlu0 %v5645_v29, %s7249_s18  ;;  %v18264_v19 = vld [vmem:[#allocation153_spill] sm:$0xff]  ;;  %v5923_v32 = vpop.permute.xlu1 %5922  ;;  %v14403_v1 = vpop.permute.xlu0 %5932  ;;  %v5452_v60 = vld [vmem:[%s7409_s16 + $0x80] sm:$0xff] }
 0x5e4   : > { %v4331_v16 = vadd.f32 %v4330_v42, %v4329_v62  ;;  %v4332_v25 = vsel %vm3564_vm2, %v4155_v43, 0.0  ;;  %v14390_v45 = vsub.f32 %v18263_v41, %v14366_v47  ;;  %v14394_v52 = vsub.f32 %v18264_v19, %v14366_v47  ;;  %v18266_v59 = vld [vmem:[#allocation274_spill] sm:$0xff] }
 0x5e5   : > { %v3778_v36 = vadd.f32 %v3777_v50, %v3776_v8  ;;  %6603 = vst [vmem:[%s13693_s20 + $0x60] sm:$0xff] %v6475_v48  ;;  %6604 = vst [vmem:[%s13693_s20 + $0x68] sm:$0xff] %v6476_v44  ;;  %v18265_v6 = vmax.f32 %v14098_v31, %v14126_v15  ;;  %v5352_v43 = vmax.f32 %v14212_v51, %v5192_v33  ;;  %v4334_v62 = vsel %vm3564_vm2, %v4160_v23, 0.0  ;;  %v18267_v44 = vld [vmem:[#allocation233_spill] sm:$0xff] }
 0x5e6   : > { %v5647_v58 = vmul.f32 %v12858_v56, %v5355_v12  ;;  %v4333_v7 = vadd.f32 %v4332_v25, %v4331_v16  ;;  %v6221_v8 = vsel %vm6206_vm3, %v14318_v38, %v5923_v32  ;;  %v6222_v50 = vsel %vm6206_vm3, %v5923_v32, %v5925_v28 }
 0x5e7   : > { %v5642_v29 = vmul.f32 %v12858_v56, %v18265_v6  ;;  %v3830_v31 = vadd.f32 %v3829_v46, %v3828_v4  ;;  %v6477_v15 = vadd.f32 %v6221_v8, %v5450_v40  ;;  %v6478_v42 = vadd.f32 %v6222_v50, %v5451_v0  ;;  %v5927_v4 = vpop.permute.xlu1 %5926  ;;  %v14425_v48 = vpop.permute.xlu0 %5936  ;;  %v18268_v0 = vld [vmem:[#allocation33_spill] sm:$0xff]  ;;  %v5453_v6 = vld [vmem:[%s7409_s16 + $0x88] sm:$0xff] }
 0x5e8   : > { %6048 = vrot.lane.b32.xlu0 %v5647_v58, %s7249_s18  ;;  %v4335_v51 = vadd.f32 %v4334_v62, %v4333_v7  ;;  %v4336_v33 = vsel %vm3564_vm2, %v4165_v13, 0.0  ;;  %v14416_v12 = vsub.f32 %v18266_v59, %v14366_v47  ;;  %v4093_v38 = vmul.f32 %v14390_v45, %v14390_v45 }
 0x5e9   : > { %6038 = vrot.lane.b32.xlu1 %v5642_v29, %s7249_s18  ;;  %v4098_v28 = vmul.f32 %v14394_v52, %v14394_v52  ;;  %v3779_v23 = vrot.slane %v3778_v36, 1  ;;  %6605 = vst [vmem:[%s13693_s20 + $0x70] sm:$0xff] %v6477_v15  ;;  %6606 = vst [vmem:[%s13693_s20 + $0x78] sm:$0xff] %v6478_v42  ;;  %v5644_v46 = vmul.f32 %v12858_v56, %v5352_v43  ;;  %v3831_v16 = vsel %vm2907_vm1, %v18267_v44, 0.0  ;;  %v5454_v29 = vld [vmem:[%s7409_s16 + $0x90] sm:$0xff] }
 0x5ea   : > { %v4337_v13 = vadd.f32 %v4336_v33, %v4335_v51  ;;  %v6223_v40 = vsel %vm6206_vm3, %v5927_v4, %v14369_v35  ;;  %v14433_v25 = vsub.f32 %v18268_v0, %v14366_v47  ;;  %v3832_v32 = vadd.f32 %v3831_v16, %v3830_v31 }
 0x5eb   : > { %v6479_v41 = vadd.f32 %v6223_v40, %v5452_v60  ;;  %v14440_v43 = vsub.f32 %v13847_v53, %v14366_v47  ;;  %v4103_v58 = vmul.f32 %v14416_v12, %v14416_v12  ;;  %v4386_v7 = vadd.f32 %v4098_v28, %v4093_v38  ;;  %v5931_v50 = vpop.permute.xlu1 %5930  ;;  %v14449_v31 = vpop.permute.xlu0 %5940 }
 0x5ec   : > { %v4338_v19 = vrot.slane %v4337_v13, 4  ;;  %v3780_v8 = vadd.f32 %v3779_v23, %v3778_v36  ;;  %v14447_v15 = vsub.f32 %v13907_v10, %v14366_v47  ;;  %v6224_v53 = vsel %vm6206_vm3, %v14369_v35, %v5931_v50  ;;  %v5455_v10 = vld [vmem:[%s7409_s16 + $0x98] sm:$0xff] }
 0x5ed   : > { %6042 = vrot.lane.b32.xlu1 %v5644_v46, %s7249_s18  ;;  %6607 = vst [vmem:[%s13693_s20 + $0x80] sm:$0xff] %v6479_v41  ;;  %v6225_v42 = vsel %vm6206_vm3, %v5931_v50, %v14403_v1  ;;  %v4108_v36 = vmul.f32 %v14433_v25, %v14433_v25  ;;  %v4387_v51 = vadd.f32 %v4386_v7, %v4103_v58  ;;  %v3833_v4 = vrot.slane %v3832_v32, 4  ;;  %v18274_v58 = vld [vmem:[#allocation177_spill] sm:$0xff] }
 0x5ee   : > { %v4339_v62 = vadd.f32 %v4338_v19, %v4337_v13  ;;  %18269 = vst [vmem:[#allocation22_spill] sm:$0xff] %v14447_v15  ;;  %v6480_v33 = vadd.f32 %v6224_v53, %v5453_v6  ;;  %v6481_v60 = vadd.f32 %v6225_v42, %v5454_v29  ;;  %v14457_v38 = vmul.f32 0.0078125, %v3780_v8 }
 0x5ef   : > { %v14462_v28 = vsub.f32 %v13911_v18, %v14366_v47  ;;  %v4113_v35 = vmul.f32 %v14440_v43, %v14440_v43  ;;  %v4388_v23 = vadd.f32 %v4387_v51, %v4108_v36  ;;  %v5935_v13 = vpop.permute.xlu1 %5934  ;;  %v14470_v16 = vsub.f32 %v13965_v34, %v14366_v47  ;;  %v5945_v18 = vpop.permute.xlu0 %5944 }
 0x5f0   : > { %v4340_v59 = vrot.slane %v4339_v62, 2  ;;  %6608 = vst [vmem:[%s13693_s20 + $0x88] sm:$0xff] %v6480_v33  ;;  %6609 = vst [vmem:[%s13693_s20 + $0x90] sm:$0xff] %v6481_v60  ;;  %v14474_v40 = vsub.f32 %v18172_v63, %v14366_v47  ;;  %v6226_v0 = vsel %vm6206_vm3, %v14403_v1, %v5935_v13  ;;  %v14480_v41 = vsub.f32 %v18173_v20, %v14366_v47  ;;  %v18275_v63 = vld [vmem:[#allocation68_spill] sm:$0xff] }
 0x5f1   : > { %18270 = vst [vmem:[#allocation202_spill] sm:$0xff] %v14462_v28  ;;  %18271 = vst [vmem:[#allocation284_spill] sm:$0xff] %v14470_v16  ;;  %v4118_v19 = vmul.f32 %v14447_v15, %v14447_v15  ;;  %v4389_v6 = vadd.f32 %v4388_v23, %v4113_v35  ;;  %v6482_v34 = vadd.f32 %v6226_v0, %v5455_v10 }
 0x5f2   : > { %v4341_v46 = vadd.f32 %v4340_v59, %v4339_v62  ;;  %18272 = vst [vmem:[#allocation76_spill] sm:$0xff] %v14474_v40  ;;  %18273 = vst [vmem:[#allocation66_spill] sm:$0xff] %v14480_v41  ;;  %v14486_v7 = vsub.f32 %v18274_v58, %v14457_v38  ;;  %v14490_v8 = vsub.f32 %v18275_v63, %v14457_v38  ;;  %v18283_v58 = vld [vmem:[#allocation56_spill] sm:$0xff] }
 0x5f3   : > { %v14494_v1 = vsub.f32 %v18184_v24, %v14366_v47  ;;  %v4123_v20 = vmul.f32 %v14462_v28, %v14462_v28  ;;  %v4390_v50 = vadd.f32 %v4389_v6, %v4118_v19  ;;  %v3834_v62 = vadd.f32 %v3833_v4, %v3832_v32  ;;  %6610 = vst [vmem:[%s13693_s20 + $0x98] sm:$0xff] %v6482_v34  ;;  %v5939_v24 = vpop.permute.xlu1 %5938  ;;  %v14511_v33 = vpop.permute.xlu0 %5948 }
 0x5f4   : > { %v4342_v29 = vrot.slane %v4341_v46, 1  ;;  %v14501_v42 = vsub.f32 %v18192_v37, %v14366_v47  ;;  %v14505_v36 = vsub.f32 %v18198_v17, %v14366_v47  ;;  %v14509_v51 = vsub.f32 %v18204_v21, %v14366_v47  ;;  %v18281_v21 = vld [vmem:[#allocation54_spill] sm:$0xff] }
 0x5f5   : > { %18276 = vst [vmem:[#allocation50_spill] sm:$0xff] %v14494_v1  ;;  %v14515_v32 = vsub.f32 %v18223_v55, %v14366_v47  ;;  %v4128_v37 = vmul.f32 %v14470_v16, %v14470_v16  ;;  %v4391_v60 = vadd.f32 %v4390_v50, %v4123_v20  ;;  %v14521_v17 = vsub.f32 %v13900_v26, %v14457_v38  ;;  %v18284_v20 = vld [vmem:[#allocation150_spill] sm:$0xff]  ;;  %v18316_v16 = vld [vmem:[#allocation197_spill] sm:$0xff] }
 0x5f6   : > { %v4343_v53 = vadd.f32 %v4342_v29, %v4341_v46  ;;  %18277 = vst [vmem:[#allocation77_spill] sm:$0xff] %v14501_v42  ;;  %18278 = vst [vmem:[#allocation198_spill] sm:$0xff] %v14505_v36  ;;  %v14525_v10 = vsub.f32 %v18281_v21, %v14457_v38  ;;  %v4092_v35 = vmul.f32 %v14486_v7, %v14486_v7  ;;  %v3835_v46 = vrot.slane %v3834_v62, 2  ;;  %v5456_v29 = vld [vmem:[%s7409_s16 + $0xa0] sm:$0xff] }
 0x5f7   : > { %18279 = vst [vmem:[#allocation199_spill] sm:$0xff] %v14509_v51  ;;  %18280 = vst [vmem:[#allocation81_spill] sm:$0xff] %v14515_v32  ;;  %v4097_v55 = vmul.f32 %v14490_v8, %v14490_v8  ;;  %v14533_v23 = vsub.f32 %v18233_v61, %v14366_v47  ;;  %v4133_v26 = vmul.f32 %v14474_v40, %v14474_v40  ;;  %v5943_v61 = vpop.permute.xlu1 %5942  ;;  %v14544_v47 = vpop.permute.xlu0 %5952 }
 0x5f8   : > { %v4449_v59 = vmul.f32 0.0078125, %v4343_v53  ;;  %v4392_v4 = vadd.f32 %v4391_v60, %v4128_v37  ;;  %v4138_v0 = vmul.f32 %v14480_v41, %v14480_v41  ;;  %v4143_v19 = vmul.f32 %v14494_v1, %v14494_v1  ;;  %v5457_v37 = vld [vmem:[%s7409_s16 + $0xa8] sm:$0xff]  ;;  %v18311_v41 = vld [vmem:[#allocation241_spill] sm:$0xff] }
 0x5f9   : > { %18282 = vst [vmem:[#allocation191_spill] sm:$0xff] %v14533_v23  ;;  %v4148_v6 = vmul.f32 %v14501_v42, %v14501_v42  ;;  %v14548_v63 = vsub.f32 %v18283_v58, %v14457_v38  ;;  %v14552_v50 = vsub.f32 %v18284_v20, %v14457_v38  ;;  %v4102_v53 = vmul.f32 %v14521_v17, %v14521_v17 }
 0x5fa   : > { %v4459_v13 = vadd.f32 1e-05, %v4449_v59  ;;  %v4393_v34 = vadd.f32 %v4392_v4, %v4133_v26  ;;  %v4107_v60 = vmul.f32 %v14525_v10, %v14525_v10  ;;  %v4365_v59 = vadd.f32 %v4097_v55, %v4092_v35  ;;  %v5458_v26 = vld [vmem:[%s7409_s16 + $0xb0] sm:$0xff]  ;;  %v5459_v4 = vld [vmem:[%s7409_s16 + $0xb8] sm:$0xff]  ;;  %v5460_v55 = vld [vmem:[%s7409_s16 + $0xc0] sm:$0xff] }
 0x5fb   : > { %v6227_v21 = vsel %vm6206_vm3, %v14425_v48, %v5939_v24  ;;  %v6228_v20 = vsel %vm6206_vm3, %v5939_v24, %v14449_v31  ;;  %v3836_v5 = vadd.f32 %v3835_v46, %v3834_v62  ;;  %v6230_v35 = vsel %vm6206_vm3, %v5943_v61, %v5945_v18  ;;  %v5947_v42 = vpop.permute.xlu1 %5946  ;;  %v14569_v48 = vpop.permute.xlu0 %5956 }
 0x5fc   : > { %6936 = vrsqrt.f32 %v4459_v13  ;;  %v4394_v58 = vadd.f32 %v4393_v34, %v4138_v0  ;;  %v6483_v14 = vadd.f32 %v6227_v21, %v5456_v29  ;;  %v4366_v30 = vadd.f32 %v4365_v59, %v4102_v53  ;;  %v5461_v53 = vld [vmem:[%s7409_s16 + $0xc8] sm:$0xff]  ;;  %v18286_v59 = vld [vmem:[#allocation13_spill] sm:$0xff] }
 0x5fd   : > { %v6484_v9 = vadd.f32 %v6228_v20, %v5457_v37  ;;  %v6229_v13 = vsel %vm6206_vm3, %v14449_v31, %v5943_v61  ;;  %v3837_v24 = vrot.slane %v3836_v5, 1  ;;  %v6486_v46 = vadd.f32 %v6230_v35, %v5459_v4  ;;  %v5462_v37 = vld [vmem:[%s7409_s16 + $0xd0] sm:$0xff] }
 0x5fe   : > { %v4395_v0 = vadd.f32 %v4394_v58, %v4143_v19  ;;  %6611 = vst [vmem:[%s13693_s20 + $0xa0] sm:$0xff] %v6483_v14  ;;  %v6485_v62 = vadd.f32 %v6229_v13, %v5458_v26  ;;  %v14574_v29 = vsub.f32 %v13977_v57, %v14457_v38  ;;  %v4112_v31 = vmul.f32 %v14548_v63, %v14548_v63 }
 0x5ff   : > { %v4367_v18 = vadd.f32 %v4366_v30, %v4107_v60  ;;  %6612 = vst [vmem:[%s13693_s20 + $0xa8] sm:$0xff] %v6484_v9  ;;  %v6231_v61 = vsel %vm6206_vm3, %v5947_v42, %v14511_v33  ;;  %v4153_v19 = vmul.f32 %v14505_v36, %v14505_v36  ;;  %v4158_v14 = vmul.f32 %v14509_v51, %v14509_v51  ;;  %v18288_v9 = vld [vmem:[#allocation82_spill] sm:$0xff]  ;;  %v5951_v26 = vpop.permute.xlu1 %5950  ;;  %v14599_v4 = vpop.permute.xlu0 %5960 }
 0x600   : > { %18285 = vst [vmem:[#allocation72_spill] sm:$0xff] %v14574_v29  ;;  %v4396_v34 = vadd.f32 %v4395_v0, %v4148_v6  ;;  %6613 = vst [vmem:[%s13693_s20 + $0xb0] sm:$0xff] %v6485_v62  ;;  %v6487_v57 = vadd.f32 %v6231_v61, %v5460_v55  ;;  %v14591_v30 = vsub.f32 %v18286_v59, %v14457_v38 }
 0x601   : > { %6614 = vst [vmem:[%s13693_s20 + $0xb8] sm:$0xff] %v6486_v46  ;;  %v14595_v42 = vsub.f32 %v18288_v9, %v14457_v38  ;;  %v4117_v60 = vmul.f32 %v14552_v50, %v14552_v50  ;;  %v4368_v21 = vadd.f32 %v4367_v18, %v4112_v31  ;;  %v3838_v58 = vadd.f32 %v3837_v24, %v3836_v5  ;;  %v18290_v5 = vld [vmem:[#allocation98_spill] sm:$0xff]  ;;  %v18293_v9 = vld [vmem:[#allocation89_spill] sm:$0xff] }
 0x602   : > { %18287 = vst [vmem:[#allocation94_spill] sm:$0xff] %v14591_v30  ;;  %v4397_v6 = vadd.f32 %v4396_v34, %v4153_v19  ;;  %6615 = vst [vmem:[%s13693_s20 + $0xc0] sm:$0xff] %v6487_v57  ;;  %v6232_v20 = vsel %vm6206_vm3, %v14511_v33, %v5951_v26  ;;  %v6233_v13 = vsel %vm6206_vm3, %v5951_v26, %v14544_v47  ;;  %v18292_v57 = vld [vmem:[#allocation36_spill] sm:$0xff] }
 0x603   : > { %18289 = vst [vmem:[#allocation186_spill] sm:$0xff] %v14595_v42  ;;  %v4122_v35 = vmul.f32 %v14574_v29, %v14574_v29  ;;  %v4369_v55 = vadd.f32 %v4368_v21, %v4117_v60  ;;  %v6488_v0 = vadd.f32 %v6232_v20, %v5461_v53  ;;  %v6489_v62 = vadd.f32 %v6233_v13, %v5462_v37  ;;  %v14620_v19 = vpop.permute.xlu1 %5954  ;;  %v14622_v34 = vpop.permute.xlu0 %5964  ;;  %v18295_v13 = vld [vmem:[#allocation213_spill] sm:$0xff] }
 0x604   : > { %v4163_v46 = vmul.f32 %v14515_v32, %v14515_v32  ;;  %v4398_v31 = vadd.f32 %v4397_v6, %v4158_v14  ;;  %v14614_v24 = vsub.f32 %v18290_v5, %v14457_v38  ;;  %v4127_v33 = vmul.f32 %v14591_v30, %v14591_v30  ;;  %v18297_v5 = vld [vmem:[#allocation62_spill] sm:$0xff]  ;;  %v18317_v30 = vld [vmem:[#allocation95_spill] sm:$0xff] }
 0x605   : > { %v4370_v61 = vadd.f32 %v4369_v55, %v4122_v35  ;;  %6616 = vst [vmem:[%s13693_s20 + $0xc8] sm:$0xff] %v6488_v0  ;;  %6617 = vst [vmem:[%s13693_s20 + $0xd0] sm:$0xff] %v6489_v62  ;;  %v4168_v14 = vmul.f32 %v14533_v23, %v14533_v23  ;;  %v14628_v59 = vmul.f32 0.0078125, %v3838_v58  ;;  %v14632_v60 = vsub.f32 %v18293_v9, %v14457_v38 }
 0x606   : > { %v14610_v18 = vpop.eup %6936  ;;  %18291 = vst [vmem:[#allocation14_spill] sm:$0xff] %v14614_v24  ;;  %v4399_v37 = vadd.f32 %v4398_v31, %v4163_v46  ;;  %v4132_v21 = vmul.f32 %v14595_v42, %v14595_v42  ;;  %v14639_v35 = vsub.f32 %v18295_v13, %v14457_v38  ;;  %v4137_v55 = vmul.f32 %v14614_v24, %v14614_v24 }
 0x607   : > { %v4554_v53 = vmul.f32 %v14610_v18, %v18292_v57  ;;  %18294 = vst [vmem:[#allocation196_spill] sm:$0xff] %v14632_v60  ;;  %v4371_v26 = vadd.f32 %v4370_v61, %v4127_v33  ;;  %v14643_v0 = vpop.permute.xlu1 %5958  ;;  %v14645_v62 = vpop.permute.xlu0 %5968  ;;  %v14650_v33 = vsub.f32 %v18297_v5, %v14628_v59  ;;  %v18298_v61 = vld [vmem:[#allocation105_spill] sm:$0xff]  ;;  %v4559_v24 = vmul.f32 %v14610_v18, %v18311_v41 }
 0x608   : > { %v4400_v20 = vadd.f32 %v4399_v37, %v4168_v14  ;;  %18296 = vst [vmem:[#allocation69_spill] sm:$0xff] %v14639_v35  ;;  %v14654_v57 = vsub.f32 %v18298_v61, %v14457_v38  ;;  %v18300_v37 = vld [vmem:[#allocation85_spill] sm:$0xff]  ;;  %v4147_v5 = vmul.f32 %v14639_v35, %v14639_v35  ;;  %v14693_v35 = vsub.f32 %v18250_v3, %v14457_v38 }
 0x609   : > { %v4794_v6 = vmul.f32 %v18259_v39, %v4554_v53  ;;  %v4372_v58 = vadd.f32 %v4371_v26, %v4132_v21  ;;  %v4142_v53 = vmul.f32 %v14632_v60, %v14632_v60  ;;  %v14660_v9 = vsub.f32 %v18300_v37, %v14628_v59  ;;  %v18303_v61 = vld [vmem:[#allocation73_spill] sm:$0xff]  ;;  %v18304_v37 = vld [vmem:[#allocation119_spill] sm:$0xff] }
 0x60a   : > { %v4401_v31 = vrot.slane %v4400_v20, 4  ;;  %18299 = vst [vmem:[#allocation75_spill] sm:$0xff] %v14654_v57  ;;  %v14670_v32 = vsub.f32 %v18303_v61, %v14628_v59  ;;  %v14676_v36 = vsub.f32 %v18304_v37, %v14457_v38  ;;  %18307 = vst [vmem:[#allocation104_spill] sm:$0xff] %v14693_v35 }
 0x60b   : > { %v5034_v46 = vadd.f32 %v18261_v2, %v4794_v6  ;;  %v4373_v14 = vadd.f32 %v4372_v58, %v4137_v55  ;;  %v18301_v6 = vld [vmem:[#allocation116_spill] sm:$0xff]  ;;  %v14672_v51 = vpop.permute.xlu1 %5962 }
 0x60c   : > { %v4402_v26 = vadd.f32 %v4401_v31, %v4400_v20  ;;  %v14664_v13 = vsub.f32 %v18301_v6, %v14457_v38  ;;  %18305 = vst [vmem:[#allocation216_spill] sm:$0xff] %v14676_v36  ;;  %v4094_v20 = vmul.f32 %v14650_v33, %v14650_v33  ;;  %v14680_v31 = vpop.permute.xlu0 %5972  ;;  %v18306_v6 = vld [vmem:[#allocation203_spill] sm:$0xff]  ;;  %v4162_v3 = vmul.f32 %v14676_v36, %v14676_v36 }
 0x60d   : > { %v5194_v21 = vmul.f32 0.01, %v5034_v46  ;;  %v4374_v23 = vadd.f32 %v4373_v14, %v4142_v53  ;;  %v4152_v53 = vmul.f32 %v14654_v57, %v14654_v57  ;;  %v14686_v61 = vsub.f32 %v18306_v6, %v14628_v59 }
 0x60e   : > { %18302 = vst [vmem:[#allocation214_spill] sm:$0xff] %v14664_v13  ;;  %v4403_v58 = vrot.slane %v4402_v26, 2  ;;  %v4157_v60 = vmul.f32 %v14664_v13, %v14664_v13  ;;  %v4104_v6 = vmul.f32 %v14670_v32, %v14670_v32  ;;  %v4407_v38 = vsel %vm2907_vm1, %v4094_v20, 0.0 }
 0x60f   : > { %v5354_v55 = vmax.f32 %v5034_v46, %v5194_v21  ;;  %v4375_v14 = vadd.f32 %v4374_v23, %v4147_v5  ;;  %v4099_v46 = vmul.f32 %v14660_v9, %v14660_v9  ;;  %v18308_v23 = vld [vmem:[#allocation179_spill] sm:$0xff]  ;;  %v14703_v57 = vpop.permute.xlu1 %5966 }
 0x610   : > { %v4404_v37 = vadd.f32 %v4403_v58, %v4402_v26  ;;  %v14699_v5 = vsub.f32 %v18308_v23, %v14628_v59  ;;  %v18309_v58 = vld [vmem:[#allocation23_spill] sm:$0xff]  ;;  %v14720_v42 = vpop.permute.xlu0 %5976 }
 0x611   : > { %v5646_v21 = vmul.f32 %v12858_v56, %v5354_v55  ;;  %v4376_v1 = vadd.f32 %v4375_v14, %v4152_v53  ;;  %v14711_v53 = vsub.f32 %v18309_v58, %v14628_v59  ;;  %v4109_v14 = vmul.f32 %v14686_v61, %v14686_v61 }
 0x612   : > { %v4405_v26 = vrot.slane %v4404_v37, 1  ;;  %v4408_v23 = vsel %vm2907_vm1, %v4099_v46, 0.0  ;;  %v4114_v58 = vmul.f32 %v14699_v5, %v14699_v5  ;;  %v4410_v46 = vsel %vm2907_vm1, %v4104_v6, 0.0 }
 0x613   : > { %6046 = vrot.lane.b32.xlu1 %v5646_v21, %s7249_s18  ;;  %v4377_v55 = vadd.f32 %v4376_v1, %v4157_v60  ;;  %18310 = vst [vmem:[#allocation165_spill] sm:$0xff] %v14711_v53  ;;  %v4167_v21 = vmul.f32 %v14693_v35, %v14693_v35  ;;  %v4409_v36 = vadd.f32 %v4408_v23, %v4407_v38  ;;  %v18312_v60 = vld [vmem:[#allocation160_spill] sm:$0xff]  ;;  %v18314_v35 = vld [vmem:[#allocation162_spill] sm:$0xff]  ;;  %v4412_v6 = vsel %vm2907_vm1, %v4109_v14, 0.0 }
 0x614   : > { %v4406_v13 = vadd.f32 %v4405_v26, %v4404_v37  ;;  %v14724_v20 = vsub.f32 %v18312_v60, %v14628_v59  ;;  %v14729_v37 = vpop.permute.xlu1 %5970  ;;  %v14733_v41 = vsub.f32 %v18314_v35, %v14628_v59  ;;  %v4119_v60 = vmul.f32 %v14711_v53, %v14711_v53  ;;  %v14767_v28 = vpop.permute.xlu0 %5980  ;;  %v5467_v53 = vld [vmem:[%s7409_s16 + $0xf8] sm:$0xff] }
 0x615   : > { %v4378_v1 = vadd.f32 %v4377_v55, %v4162_v3  ;;  %v4411_v38 = vadd.f32 %v4410_v46, %v4409_v36  ;;  %v18315_v55 = vld [vmem:[#allocation87_spill] sm:$0xff]  ;;  %v14747_v35 = vsub.f32 %v18317_v30, %v14628_v59  ;;  %v18318_v46 = vld [vmem:[#allocation194_spill] sm:$0xff]  ;;  %v4414_v14 = vsel %vm2907_vm1, %v4114_v58, 0.0 }
 0x616   : > { %18313 = vst [vmem:[#allocation200_spill] sm:$0xff] %v14724_v20  ;;  %v4452_v26 = vmul.f32 0.0078125, %v4406_v13  ;;  %v14737_v23 = vsub.f32 %v18315_v55, %v14628_v59  ;;  %v14743_v13 = vmul.f32 %v18316_v16, %v4559_v24  ;;  %v14752_v55 = vsub.f32 %v18318_v46, %v14628_v59 }
 0x617   : > { %v4379_v3 = vadd.f32 %v4378_v1, %v4167_v21  ;;  %v4413_v36 = vadd.f32 %v4412_v6, %v4411_v38  ;;  %v5463_v21 = vld [vmem:[%s7409_s16 + $0xd8] sm:$0xff]  ;;  %v4124_v29 = vmul.f32 %v14724_v20, %v14724_v20  ;;  %v6234_v38 = vsel %vm6206_vm3, %v14544_v47, %v14620_v19  ;;  %v5465_v6 = vld [vmem:[%s7409_s16 + $0xe8] sm:$0xff] }
 0x618   : > { %v4462_v40 = vadd.f32 1e-05, %v4452_v26  ;;  %v5464_v26 = vld [vmem:[%s7409_s16 + $0xe0] sm:$0xff]  ;;  %v14758_v24 = vpop.permute.xlu1 %5974  ;;  %v6235_v46 = vsel %vm6206_vm3, %v14569_v48, %v14643_v0  ;;  %v4129_v58 = vmul.f32 %v14733_v41, %v14733_v41  ;;  %v4416_v15 = vsel %vm2907_vm1, %v4119_v60, 0.0 }
 0x619   : > { %v4380_v1 = vrot.slane %v4379_v3, 4  ;;  %v4415_v30 = vadd.f32 %v4414_v14, %v4413_v36  ;;  %v5466_v36 = vld [vmem:[%s7409_s16 + $0xf0] sm:$0xff]  ;;  %v4134_v47 = vmul.f32 %v14737_v23, %v14737_v23  ;;  %v6236_v48 = vsel %vm6206_vm3, %v14643_v0, %v14599_v4 }
 0x61a   : > { %6938 = vrsqrt.f32 %v4462_v40  ;;  %v6490_v40 = vadd.f32 %v6234_v38, %v5463_v21  ;;  %v6491_v14 = vadd.f32 %v6235_v46, %v5464_v26  ;;  %v6492_v60 = vadd.f32 %v6236_v48, %v5465_v6 }
 0x61b   : > { %v4381_v20 = vadd.f32 %v4380_v1, %v4379_v3  ;;  %v4417_v19 = vadd.f32 %v4416_v15, %v4415_v30  ;;  %v4418_v1 = vsel %vm2907_vm1, %v4124_v29, 0.0  ;;  %v6237_v21 = vsel %vm6206_vm3, %v14599_v4, %v14672_v51  ;;  %v5468_v30 = vld [vmem:[%s7409_s16 + $0x100] sm:$0xff] }
 0x61c   : > { %6618 = vst [vmem:[%s13693_s20 + $0xd8] sm:$0xff] %v6490_v40  ;;  %v14784_v38 = vpop.permute.xlu1 %5978  ;;  %v14788_v15 = vsub.f32 %v18247_v22, %v14628_v59  ;;  %6619 = vst [vmem:[%s13693_s20 + $0xe0] sm:$0xff] %v6491_v14  ;;  %v6238_v29 = vsel %vm6206_vm3, %v14672_v51, %v14622_v34  ;;  %v6493_v26 = vadd.f32 %v6237_v21, %v5466_v36  ;;  %v4420_v46 = vsel %vm2907_vm1, %v4129_v58, 0.0  ;;  %v5469_v22 = vld [vmem:[%s7409_s16 + $0x108] sm:$0xff]  ;;  %v5470_v34 = vld [vmem:[%s7409_s16 + $0x110] sm:$0xff]  ;;  %v14812_v58 = vpop.permute.xlu0 %5984 }
 0x61d   : > { %v4382_v3 = vrot.slane %v4381_v20, 2  ;;  %v4419_v0 = vadd.f32 %v4418_v1, %v4417_v19  ;;  %v4139_v4 = vmul.f32 %v14747_v35, %v14747_v35  ;;  %6620 = vst [vmem:[%s13693_s20 + $0xe8] sm:$0xff] %v6492_v60  ;;  %v6494_v40 = vadd.f32 %v6238_v29, %v5467_v53 }
 0x61e   : > { %v14802_v19 = vsub.f32 %v18254_v54, %v14628_v59  ;;  %6621 = vst [vmem:[%s13693_s20 + $0xf0] sm:$0xff] %v6493_v26  ;;  %v6239_v51 = vsel %vm6206_vm3, %v14703_v57, %v14645_v62  ;;  %v4144_v36 = vmul.f32 %v14752_v55, %v14752_v55  ;;  %v4422_v54 = vsel %vm2907_vm1, %v4134_v47, 0.0 }
 0x61f   : > { %v4383_v6 = vadd.f32 %v4382_v3, %v4381_v20  ;;  %v4421_v48 = vadd.f32 %v4420_v46, %v4419_v0  ;;  %v6240_v20 = vsel %vm6206_vm3, %v14645_v62, %v14729_v37  ;;  %6622 = vst [vmem:[%s13693_s20 + $0xf8] sm:$0xff] %v6494_v40  ;;  %v6495_v14 = vadd.f32 %v6239_v51, %v5468_v30 }
 0x620   : > { %v14818_v3 = vpop.permute.xlu1 %5982  ;;  %v14822_v57 = vsub.f32 %v18258_v11, %v14628_v59  ;;  %v6241_v62 = vsel %vm6206_vm3, %v14729_v37, %v14680_v31  ;;  %v6496_v60 = vadd.f32 %v6240_v20, %v5469_v22  ;;  %v4149_v47 = vmul.f32 %v14788_v15, %v14788_v15  ;;  %v18319_v22 = vld [vmem:[#allocation157_spill] sm:$0xff] }
 0x621   : > { %v4384_v53 = vrot.slane %v4383_v6, 1  ;;  %v4423_v1 = vadd.f32 %v4422_v54, %v4421_v48  ;;  %v4424_v0 = vsel %vm2907_vm1, %v4139_v4, 0.0  ;;  %6623 = vst [vmem:[%s13693_s20 + $0x100] sm:$0xff] %v6495_v14  ;;  %v6497_v29 = vadd.f32 %v6241_v62, %v5470_v34  ;;  %v14852_v34 = vpop.permute.xlu0 %5988  ;;  %v5471_v62 = vld [vmem:[%s7409_s16 + $0x118] sm:$0xff] }
 0x622   : > { %v14835_v11 = vsub.f32 %v18262_v27, %v14628_v59  ;;  %6624 = vst [vmem:[%s13693_s20 + $0x108] sm:$0xff] %v6496_v60  ;;  %v4426_v40 = vsel %vm2907_vm1, %v4144_v36, 0.0  ;;  %v5039_v48 = vadd.f32 %v18319_v22, %v14743_v13  ;;  %v14850_v27 = vsub.f32 %v18267_v44, %v14628_v59 }
 0x623   : > { %v4385_v21 = vadd.f32 %v4384_v53, %v4383_v6  ;;  %v4425_v30 = vadd.f32 %v4424_v0, %v4423_v1  ;;  %v4154_v6 = vmul.f32 %v14802_v19, %v14802_v19  ;;  %6625 = vst [vmem:[%s13693_s20 + $0x110] sm:$0xff] %v6497_v29  ;;  %v4159_v53 = vmul.f32 %v14822_v57, %v14822_v57 }
 0x624   : > { %v14831_v26 = vpop.eup %6938  ;;  %v14844_v4 = vpop.permute.xlu1 %5986  ;;  %v4428_v36 = vsel %vm2907_vm1, %v4149_v47, 0.0  ;;  %v4164_v13 = vmul.f32 %v14835_v11, %v14835_v11  ;;  %v5199_v59 = vmul.f32 0.01, %v5039_v48  ;;  %v4169_v47 = vmul.f32 %v14850_v27, %v14850_v27 }
 0x625   : > { %v4557_v37 = vmul.f32 %v14831_v26, %v14390_v45  ;;  %v4451_v46 = vmul.f32 0.0078125, %v4385_v21  ;;  %v4427_v51 = vadd.f32 %v4426_v40, %v4425_v30  ;;  %v4430_v44 = vsel %vm2907_vm1, %v4154_v6, 0.0 }
 0x626   : > { %v4432_v0 = vsel %vm2907_vm1, %v4159_v53, 0.0  ;;  %v6242_v29 = vsel %vm6206_vm3, %v14680_v31, %v14758_v24  ;;  %v4434_v6 = vsel %vm2907_vm1, %v4164_v13, 0.0  ;;  %v4436_v53 = vsel %vm2907_vm1, %v4169_v47, 0.0  ;;  %v5474_v24 = vld [vmem:[%s7409_s16 + $0x130] sm:$0xff] }
 0x627   : > { %v4797_v45 = vmul.f32 %v18259_v39, %v4557_v37  ;;  %v4461_v20 = vadd.f32 1e-05, %v4451_v46  ;;  %v4429_v54 = vadd.f32 %v4428_v36, %v4427_v51  ;;  %v14871_v37 = vpop.permute.xlu0 %5992  ;;  %v6498_v40 = vadd.f32 %v6242_v29, %v5471_v62 }
 0x628   : > { %v14863_v60 = vpop.permute.xlu1 %5990  ;;  %v5359_v36 = vmax.f32 %v5039_v48, %v5199_v59  ;;  %v6243_v31 = vsel %vm6206_vm3, %v14720_v42, %v14784_v38  ;;  %v6244_v48 = vsel %vm6206_vm3, %v14784_v38, %v14767_v28  ;;  %v6246_v42 = vsel %vm6206_vm3, %v14818_v3, %v14812_v58 }
 0x629   : > { %v5037_v14 = vadd.f32 %v18261_v2, %v4797_v45  ;;  %6940 = vrsqrt.f32 %v4461_v20  ;;  %v4431_v1 = vadd.f32 %v4430_v44, %v4429_v54  ;;  %v5472_v45 = vld [vmem:[%s7409_s16 + $0x120] sm:$0xff]  ;;  %6626 = vst [vmem:[%s13693_s20 + $0x118] sm:$0xff] %v6498_v40  ;;  %v5473_v54 = vld [vmem:[%s7409_s16 + $0x128] sm:$0xff] }
 0x62a   : > { %v6499_v13 = vadd.f32 %v6243_v31, %v5472_v45  ;;  %v6500_v62 = vadd.f32 %v6244_v48, %v5473_v54  ;;  %v5651_v29 = vmul.f32 %v12858_v56, %v5359_v36 }
 0x62b   : > { %v5197_v21 = vmul.f32 0.01, %v5037_v14  ;;  %v4433_v30 = vadd.f32 %v4432_v0, %v4431_v1  ;;  %v5997_v47 = vpop.permute.xlu0 %5996 }
 0x62c   : > { %v5995_v1 = vpop.permute.xlu1 %5994  ;;  %6627 = vst [vmem:[%s13693_s20 + $0x120] sm:$0xff] %v6499_v13  ;;  %6628 = vst [vmem:[%s13693_s20 + $0x128] sm:$0xff] %v6500_v62  ;;  %v5476_v62 = vld [vmem:[%s7409_s16 + $0x140] sm:$0xff] }
 0x62d   : > { %v5357_v46 = vmax.f32 %v5037_v14, %v5197_v21  ;;  %v4435_v51 = vadd.f32 %v4434_v6, %v4433_v30  ;;  %v5475_v14 = vld [vmem:[%s7409_s16 + $0x138] sm:$0xff]  ;;  %v6245_v21 = vsel %vm6206_vm3, %v14767_v28, %v14818_v3 }
 0x62e   : > { %v6501_v38 = vadd.f32 %v6245_v21, %v5474_v24  ;;  %v6502_v30 = vadd.f32 %v6246_v42, %v5475_v14  ;;  %v5477_v42 = vld [vmem:[%s7409_s16 + $0x148] sm:$0xff] }
 0x62f   : > { %v5649_v20 = vmul.f32 %v12858_v56, %v5357_v46  ;;  %v4437_v44 = vadd.f32 %v4436_v53, %v4435_v51  ;;  %v6001_v36 = vpop.permute.xlu0 %6000 }
 0x630   : > { %6629 = vst [vmem:[%s13693_s20 + $0x130] sm:$0xff] %v6501_v38  ;;  %6630 = vst [vmem:[%s13693_s20 + $0x138] sm:$0xff] %v6502_v30  ;;  %v5999_v51 = vpop.permute.xlu1 %5998  ;;  %v6247_v38 = vsel %vm6206_vm3, %v14844_v4, %v14852_v34  ;;  %v5478_v30 = vld [vmem:[%s7409_s16 + $0x150] sm:$0xff]  ;;  %v18320_v4 = vld [vmem:[#allocation279_spill] sm:$0xff] }
 0x631   : > { %6052 = vrot.lane.b32.xlu0 %v5649_v20, %s7249_s18  ;;  %v4438_v59 = vrot.slane %v4437_v44, 4 }
 0x633   : > { %v14894_v0 = vpop.eup %6940  ;;  %v4439_v6 = vadd.f32 %v4438_v59, %v4437_v44  ;;  %v6005_v21 = vpop.permute.xlu0 %6004 }
 0x634   : > { %v4556_v46 = vmul.f32 %v14894_v0, %v14486_v7  ;;  %v4561_v40 = vmul.f32 %v14894_v0, %v14490_v8  ;;  %v6003_v14 = vpop.permute.xlu1 %6002 }
 0x635   : > { %6056 = vrot.lane.b32.xlu0 %v5651_v29, %s7249_s18  ;;  %v4440_v58 = vrot.slane %v4439_v6, 2 }
 0x636   : > { %v4796_v28 = vmul.f32 %v18259_v39, %v4556_v46  ;;  %v4801_v3 = vmul.f32 %v18316_v16, %v4561_v40  ;;  %v6503_v46 = vadd.f32 %v6247_v38, %v5476_v62  ;;  %v6249_v40 = vsel %vm6206_vm3, %v14863_v60, %v14871_v37  ;;  %v5483_v38 = vld [vmem:[%s7409_s16 + $0x178] sm:$0xff] }
 0x637   : > { %v4441_v7 = vadd.f32 %v4440_v58, %v4439_v6  ;;  %v6248_v6 = vsel %vm6206_vm3, %v14852_v34, %v14863_v60  ;;  %v5479_v58 = vld [vmem:[%s7409_s16 + $0x158] sm:$0xff]  ;;  %v6250_v34 = vsel %vm6206_vm3, %v14871_v37, %v5995_v1  ;;  %v14937_v60 = vpop.permute.xlu0 %6008  ;;  %v4562_v1 = vmul.f32 %v14831_v26, %v14394_v52  ;;  %v18323_v52 = vld [vmem:[#allocation238_spill] sm:$0xff] }
 0x638   : > { %v5036_v45 = vadd.f32 %v18261_v2, %v4796_v28  ;;  %v5041_v20 = vadd.f32 %v18319_v22, %v4801_v3  ;;  %v6504_v28 = vadd.f32 %v6248_v6, %v5477_v42  ;;  %6631 = vst [vmem:[%s13693_s20 + $0x140] sm:$0xff] %v6503_v46  ;;  %v6254_v6 = vsel %vm6206_vm3, %v6003_v14, %v6005_v21 }
 0x639   : > { %v4442_v53 = vrot.slane %v4441_v7, 1  ;;  %v14927_v3 = vpop.permute.xlu1 %6006 }
 0x63a   : > { %v5196_v8 = vmul.f32 0.01, %v5036_v45  ;;  %v5201_v54 = vmul.f32 0.01, %v5041_v20  ;;  %6632 = vst [vmem:[%s13693_s20 + $0x148] sm:$0xff] %v6504_v28 }
 0x63b   : > { %v4443_v31 = vadd.f32 %v4442_v53, %v4441_v7  ;;  %v6505_v7 = vadd.f32 %v6249_v40, %v5478_v30  ;;  %v6506_v53 = vadd.f32 %v6250_v34, %v5479_v58  ;;  %v6253_v30 = vsel %vm6206_vm3, %v6001_v36, %v6003_v14  ;;  %v18324_v58 = vld [vmem:[#allocation70_spill] sm:$0xff] }
 0x63c   : > { %v5356_v44 = vmax.f32 %v5036_v45, %v5196_v8  ;;  %v5361_v24 = vmax.f32 %v5041_v20, %v5201_v54  ;;  %v4560_v45 = vmul.f32 %v14315_v49, %v18320_v4  ;;  %v18321_v20 = vld [vmem:[#allocation235_spill] sm:$0xff]  ;;  %v5480_v54 = vld [vmem:[%s7409_s16 + $0x160] sm:$0xff]  ;;  %v4564_v4 = vmul.f32 %v14610_v18, %v18324_v58 }
 0x63d   : > { %v4453_v13 = vmul.f32 0.0078125, %v4443_v31  ;;  %v4565_v8 = vmul.f32 %v14315_v49, %v18321_v20  ;;  %6633 = vst [vmem:[%s13693_s20 + $0x150] sm:$0xff] %v6505_v7  ;;  %v6251_v31 = vsel %vm6206_vm3, %v5997_v47, %v5999_v51  ;;  %6634 = vst [vmem:[%s13693_s20 + $0x158] sm:$0xff] %v6506_v53  ;;  %v14947_v37 = vpop.permute.xlu1 %6010  ;;  %v4567_v47 = vmul.f32 %v14831_v26, %v14416_v12 }
 0x63e   : > { %v5648_v48 = vmul.f32 %v12858_v56, %v5356_v44  ;;  %v5653_v59 = vmul.f32 %v12858_v56, %v5361_v24  ;;  %v5481_v44 = vld [vmem:[%s7409_s16 + $0x168] sm:$0xff]  ;;  %v4800_v24 = vmul.f32 %v18316_v16, %v4560_v45  ;;  %v6507_v62 = vadd.f32 %v6251_v31, %v5480_v54 }
 0x63f   : > { %v4463_v29 = vadd.f32 1e-05, %v4453_v13  ;;  %v18322_v13 = vld [vmem:[#allocation189_spill] sm:$0xff]  ;;  %v6510_v45 = vadd.f32 %v6254_v6, %v5483_v38  ;;  %v4802_v20 = vmul.f32 %v18316_v16, %v4562_v1  ;;  %v18327_v6 = vld [vmem:[#allocation19_spill] sm:$0xff] }
 0x640   : > { %6050 = vrot.lane.b32.xlu1 %v5648_v48, %s7249_s18  ;;  %6060 = vrot.lane.b32.xlu0 %v5653_v59, %s7249_s18  ;;  %v6252_v48 = vsel %vm6206_vm3, %v5999_v51, %v6001_v36  ;;  %v4805_v59 = vmul.f32 %v18322_v13, %v4565_v8  ;;  %6635 = vst [vmem:[%s13693_s20 + $0x160] sm:$0xff] %v6507_v62  ;;  %v14957_v51 = vpop.permute.xlu0 %6012  ;;  %v18325_v8 = vld [vmem:[#allocation53_spill] sm:$0xff] }
 0x641   : > { %6942 = vrsqrt.f32 %v4463_v29  ;;  %v6508_v42 = vadd.f32 %v6252_v48, %v5481_v44  ;;  %v5482_v29 = vld [vmem:[%s7409_s16 + $0x170] sm:$0xff]  ;;  %v5040_v46 = vadd.f32 %v18319_v22, %v4800_v24  ;;  %v4569_v14 = vmul.f32 %v14610_v18, %v18325_v8  ;;  %6638 = vst [vmem:[%s13693_s20 + $0x178] sm:$0xff] %v6510_v45  ;;  %v14977_v34 = vpop.permute.xlu1 %6014  ;;  %v18326_v62 = vld [vmem:[#allocation121_spill] sm:$0xff] }
 0x642   : > { %v5045_v28 = vadd.f32 %v18323_v52, %v4805_v59  ;;  %v6509_v12 = vadd.f32 %v6253_v30, %v5482_v29  ;;  %v4807_v21 = vmul.f32 %v18322_v13, %v4567_v47  ;;  %v4804_v31 = vmul.f32 %v18322_v13, %v4564_v4 }
 0x643   : > { %6636 = vst [vmem:[%s13693_s20 + $0x168] sm:$0xff] %v6508_v42  ;;  %v5200_v44 = vmul.f32 0.01, %v5040_v46  ;;  %v5042_v59 = vadd.f32 %v18319_v22, %v4802_v20  ;;  %v4809_v1 = vmul.f32 %v18326_v62, %v4569_v14 }
 0x644   : > { %6637 = vst [vmem:[%s13693_s20 + $0x170] sm:$0xff] %v6509_v12  ;;  %v5047_v42 = vadd.f32 %v18323_v52, %v4807_v21 }
 0x645   : > { %v5360_v47 = vmax.f32 %v5040_v46, %v5200_v44  ;;  %v14998_v58 = vpop.permute.xlu1 %6018  ;;  %v5202_v45 = vmul.f32 0.01, %v5042_v59  ;;  %v18329_v44 = vld [vmem:[#allocation273_spill] sm:$0xff] }
 0x64b   : > { %v14962_v40 = vpop.eup %6942 }
 0x64c   : > { %v4558_v36 = vmul.f32 %v14962_v40, %v14650_v33  ;;  %v4563_v7 = vmul.f32 %v14962_v40, %v14660_v9  ;;  %v5205_v33 = vmul.f32 0.01, %v5045_v28  ;;  %v14982_v9 = vpop.permute.xlu0 %6016  ;;  %v4568_v14 = vmul.f32 %v14962_v40, %v14670_v32 }
 0x64d   : > { %v4573_v21 = vmul.f32 %v14962_v40, %v14686_v61  ;;  %v5362_v32 = vmax.f32 %v5042_v59, %v5202_v45 }
 0x64e   : > { %v4798_v53 = vmul.f32 %v18259_v39, %v4558_v36  ;;  %v4803_v54 = vmul.f32 %v18316_v16, %v4563_v7  ;;  %v4566_v39 = vmul.f32 %v14894_v0, %v14521_v17  ;;  %v4571_v16 = vmul.f32 %v14894_v0, %v14525_v10  ;;  %v18328_v17 = vld [vmem:[#allocation43_spill] sm:$0xff] }
 0x64f   : > { %v5365_v30 = vmax.f32 %v5045_v28, %v5205_v33  ;;  %v15001_v36 = vadd.f32 %v18328_v17, %v4809_v1  ;;  %v5207_v10 = vmul.f32 0.01, %v5047_v42  ;;  %v4575_v33 = vmul.f32 %v14315_v49, %v18329_v44 }
 0x650   : > { %v5038_v24 = vadd.f32 %v18261_v2, %v4798_v53  ;;  %v5043_v48 = vadd.f32 %v18319_v22, %v4803_v54  ;;  %v14994_v2 = vadd.f32 %v18323_v52, %v4804_v31  ;;  %v4570_v22 = vmul.f32 %v14315_v49, %v18327_v6  ;;  %v15005_v28 = vpop.permute.xlu0 %6020  ;;  %v5484_v31 = vld [vmem:[%s7409_s16 + $0x180] sm:$0xff]  ;;  %v15034_v6 = vpop.permute.xlu1 %6022 }
 0x651   : > { %v4806_v7 = vmul.f32 %v18322_v13, %v4566_v39  ;;  %v4811_v46 = vmul.f32 %v18326_v62, %v4571_v16  ;;  %v5209_v61 = vmul.f32 0.01, %v15001_v36  ;;  %v5367_v1 = vmax.f32 %v5047_v42, %v5207_v10 }
 0x652   : > { %v5198_v29 = vmul.f32 0.01, %v5038_v24  ;;  %v5203_v38 = vmul.f32 0.01, %v5043_v48  ;;  %v5204_v53 = vmul.f32 0.01, %v14994_v2  ;;  %v4810_v54 = vmul.f32 %v18326_v62, %v4570_v22 }
 0x653   : > { %v15024_v39 = vadd.f32 %v18323_v52, %v4806_v7  ;;  %v15027_v16 = vadd.f32 %v18328_v17, %v4811_v46  ;;  %v4808_v59 = vmul.f32 %v18322_v13, %v4568_v14  ;;  %v4813_v42 = vmul.f32 %v18326_v62, %v4573_v21  ;;  %v5487_v7 = vld [vmem:[%s7409_s16 + $0x198] sm:$0xff] }
 0x654   : > { %v5358_v4 = vmax.f32 %v5038_v24, %v5198_v29  ;;  %v5363_v12 = vmax.f32 %v5043_v48, %v5203_v38  ;;  %v5652_v24 = vmul.f32 %v12858_v56, %v5360_v47  ;;  %v5657_v48 = vmul.f32 %v12858_v56, %v5365_v30  ;;  %v5485_v38 = vld [vmem:[%s7409_s16 + $0x188] sm:$0xff]  ;;  %v5486_v47 = vld [vmem:[%s7409_s16 + $0x190] sm:$0xff]  ;;  %v15048_v13 = vpop.permute.xlu0 %6024 }
 0x655   : > { %v6255_v29 = vsel %vm6206_vm3, %v14927_v3, %v14937_v60  ;;  %v6256_v22 = vsel %vm6206_vm3, %v14937_v60, %v14947_v37  ;;  %v4572_v3 = vmul.f32 %v14831_v26, %v14433_v25  ;;  %v6257_v10 = vsel %vm6206_vm3, %v14947_v37, %v14957_v51 }
 0x656   : > { %v5650_v20 = vmul.f32 %v12858_v56, %v5358_v4  ;;  %v5655_v8 = vmul.f32 %v12858_v56, %v5363_v12  ;;  %v6511_v30 = vadd.f32 %v6255_v29, %v5484_v31  ;;  %v5364_v4 = vmax.f32 %v14994_v2, %v5204_v53  ;;  %v18330_v12 = vld [vmem:[#allocation138_spill] sm:$0xff] }
 0x657   : > { %v4815_v45 = vmul.f32 %v18330_v12, %v4575_v33  ;;  %v4577_v60 = vmul.f32 %v14831_v26, %v14440_v43  ;;  %v6512_v2 = vadd.f32 %v6256_v22, %v5485_v38  ;;  %v6513_v25 = vadd.f32 %v6257_v10, %v5486_v47  ;;  %v5488_v29 = vld [vmem:[%s7409_s16 + $0x1a0] sm:$0xff] }
 0x658   : > { %6054 = vrot.lane.b32.xlu1 %v5650_v20, %s7249_s18  ;;  %6064 = vrot.lane.b32.xlu0 %v5655_v8, %s7249_s18  ;;  %6639 = vst [vmem:[%s13693_s20 + $0x180] sm:$0xff] %v6511_v30  ;;  %v5654_v46 = vmul.f32 %v12858_v56, %v5362_v32  ;;  %v5659_v20 = vmul.f32 %v12858_v56, %v5367_v1  ;;  %v5206_v37 = vmul.f32 0.01, %v15024_v39  ;;  %v5211_v21 = vmul.f32 0.01, %v15027_v16  ;;  %v18332_v32 = vld [vmem:[#allocation17_spill] sm:$0xff]  ;;  %v15091_v38 = vpop.permute.xlu0 %6028 }
 0x659   : > { %v5369_v8 = vmax.f32 %v15001_v36, %v5209_v61  ;;  %v15061_v14 = vadd.f32 %v18323_v52, %v4808_v59  ;;  %v15065_v53 = vadd.f32 %v18328_v17, %v4813_v42  ;;  %6640 = vst [vmem:[%s13693_s20 + $0x188] sm:$0xff] %v6512_v2  ;;  %6641 = vst [vmem:[%s13693_s20 + $0x190] sm:$0xff] %v6513_v25  ;;  %v18331_v52 = vld [vmem:[#allocation243_spill] sm:$0xff]  ;;  %v18333_v61 = vld [vmem:[#allocation78_spill] sm:$0xff] }
 0x65a   : > { %v6258_v43 = vsel %vm6206_vm3, %v14957_v51, %v14977_v34  ;;  %v15073_v44 = vadd.f32 %v18328_v17, %v4810_v54  ;;  %v4812_v36 = vmul.f32 %v18326_v62, %v4572_v3  ;;  %v4574_v33 = vmul.f32 %v14610_v18, %v18331_v52  ;;  %v5489_v30 = vld [vmem:[%s7409_s16 + $0x1a8] sm:$0xff] }
 0x65b   : > { %v6514_v31 = vadd.f32 %v6258_v43, %v5487_v7  ;;  %v4817_v51 = vmul.f32 %v18330_v12, %v4577_v60  ;;  %v5656_v34 = vmul.f32 %v12858_v56, %v5364_v4  ;;  %v5366_v54 = vmax.f32 %v15024_v39, %v5206_v37 }
 0x65c   : > { %6058 = vrot.lane.b32.xlu1 %v5652_v24, %s7249_s18  ;;  %6068 = vrot.lane.b32.xlu0 %v5657_v48, %s7249_s18  ;;  %v6027_v24 = vpop.permute.xlu1 %6026  ;;  %v15081_v48 = vadd.f32 %v18332_v32, %v4815_v45  ;;  %v5661_v62 = vmul.f32 %v12858_v56, %v5369_v8  ;;  %v4579_v1 = vmul.f32 %v14610_v18, %v18333_v61  ;;  %v5208_v47 = vmul.f32 0.01, %v15061_v14 }
 0x65d   : > { %6642 = vst [vmem:[%s13693_s20 + $0x198] sm:$0xff] %v6514_v31  ;;  %v5371_v59 = vmax.f32 %v15027_v16, %v5211_v21  ;;  %v5213_v42 = vmul.f32 0.01, %v15065_v53  ;;  %v6259_v39 = vsel %vm6206_vm3, %v14982_v9, %v14998_v58  ;;  %v5210_v22 = vmul.f32 0.01, %v15073_v44 }
 0x65e   : > { %v15102_v4 = vadd.f32 %v18328_v17, %v4812_v36  ;;  %v4814_v3 = vmul.f32 %v18330_v12, %v4574_v33  ;;  %v4576_v45 = vmul.f32 %v14894_v0, %v14548_v63  ;;  %v5215_v16 = vmul.f32 0.01, %v15081_v48  ;;  %v18334_v63 = vld [vmem:[#allocation20_spill] sm:$0xff] }
 0x65f   : > { %v15111_v9 = vadd.f32 %v18332_v32, %v4817_v51  ;;  %v6260_v17 = vsel %vm6206_vm3, %v14998_v58, %v15005_v28  ;;  %v6515_v10 = vadd.f32 %v6259_v39, %v5488_v29  ;;  %v5658_v60 = vmul.f32 %v12858_v56, %v5366_v54  ;;  %v5491_v58 = vld [vmem:[%s7409_s16 + $0x1b8] sm:$0xff]  ;;  %v5492_v51 = vld [vmem:[%s7409_s16 + $0x1c0] sm:$0xff] }
 0x660   : > { %6062 = vrot.lane.b32.xlu1 %v5654_v46, %s7249_s18  ;;  %6072 = vrot.lane.b32.xlu0 %v5659_v20, %s7249_s18  ;;  %v4819_v2 = vmul.f32 %v18334_v63, %v4579_v1  ;;  %v4581_v25 = vmul.f32 %v14894_v0, %v14552_v50  ;;  %v6516_v7 = vadd.f32 %v6260_v17, %v5489_v30  ;;  %v5490_v46 = vld [vmem:[%s7409_s16 + $0x1b0] sm:$0xff]  ;;  %v6031_v20 = vpop.permute.xlu1 %6030 }
 0x661   : > { %v5368_v37 = vmax.f32 %v15061_v14, %v5208_v47  ;;  %v5663_v8 = vmul.f32 %v12858_v56, %v5371_v59  ;;  %v5373_v21 = vmax.f32 %v15065_v53, %v5213_v42  ;;  %6643 = vst [vmem:[%s13693_s20 + $0x1a0] sm:$0xff] %v6515_v10  ;;  %v6261_v43 = vsel %vm6206_vm3, %v15005_v28, %v15034_v6  ;;  %v6033_v53 = vpop.permute.xlu0 %6032 }
 0x662   : > { %v5370_v36 = vmax.f32 %v15073_v44, %v5210_v22  ;;  %v15131_v50 = vadd.f32 %v18332_v32, %v4814_v3  ;;  %v4816_v52 = vmul.f32 %v18330_v12, %v4576_v45  ;;  %6644 = vst [vmem:[%s13693_s20 + $0x1a8] sm:$0xff] %v6516_v7  ;;  %v6262_v14 = vsel %vm6206_vm3, %v15034_v6, %v15048_v13  ;;  %v18337_v3 = vld [vmem:[#allocation27_spill] sm:$0xff] }
 0x663   : > { %v5212_v28 = vmul.f32 0.01, %v15102_v4  ;;  %v5375_v44 = vmax.f32 %v15081_v48, %v5215_v16  ;;  %v5217_v33 = vmul.f32 0.01, %v15111_v9  ;;  %v6517_v31 = vadd.f32 %v6261_v43, %v5490_v46  ;;  %v18336_v48 = vld [vmem:[#allocation165_spill] sm:$0xff]  ;;  %v5493_v16 = vld [vmem:[%s7409_s16 + $0x1c8] sm:$0xff] }
 0x664   : > { %6066 = vrot.lane.b32.xlu1 %v5656_v34, %s7249_s18  ;;  %6076 = vrot.lane.b32.xlu0 %v5661_v62, %s7249_s18  ;;  %v18335_v34 = vld [vmem:[#allocation164_spill] sm:$0xff]  ;;  %v4578_v6 = vmul.f32 %v14962_v40, %v14699_v5  ;;  %v4821_v13 = vmul.f32 %v18334_v63, %v4581_v25  ;;  %v6518_v62 = vadd.f32 %v6262_v14, %v5491_v58  ;;  %v5214_v5 = vmul.f32 0.01, %v15131_v50  ;;  %v6035_v39 = vpop.permute.xlu1 %6034 }
 0x665   : > { %v15145_v54 = vadd.f32 %v18335_v34, %v4819_v2  ;;  %v5660_v61 = vmul.f32 %v12858_v56, %v5368_v37  ;;  %v5665_v1 = vmul.f32 %v12858_v56, %v5373_v21  ;;  %v4583_v29 = vmul.f32 %v14962_v40, %v18336_v48  ;;  %6645 = vst [vmem:[%s13693_s20 + $0x1b0] sm:$0xff] %v6517_v31  ;;  %v5494_v25 = vld [vmem:[%s7409_s16 + $0x1d0] sm:$0xff] }
 0x666   : > { %v6263_v47 = vsel %vm6206_vm3, %v6027_v24, %v15091_v38  ;;  %v5662_v59 = vmul.f32 %v12858_v56, %v5370_v36  ;;  %v15160_v42 = vadd.f32 %v18332_v32, %v4816_v52  ;;  %6646 = vst [vmem:[%s13693_s20 + $0x1b8] sm:$0xff] %v6518_v62  ;;  %v5372_v22 = vmax.f32 %v15102_v4, %v5212_v28  ;;  %v6037_v4 = vpop.permute.xlu0 %6036  ;;  %v18339_v36 = vld [vmem:[#allocation22_spill] sm:$0xff] }
 0x667   : > { %v6519_v30 = vadd.f32 %v6263_v47, %v5492_v51  ;;  %v5667_v24 = vmul.f32 %v12858_v56, %v5375_v44  ;;  %v4580_v45 = vmul.f32 %v14315_v49, %v18337_v3  ;;  %v5219_v17 = vmul.f32 0.01, %v15145_v54  ;;  %v5495_v51 = vld [vmem:[%s7409_s16 + $0x1d8] sm:$0xff]  ;;  %v18342_v47 = vld [vmem:[#allocation71_spill] sm:$0xff] }
 0x668   : > { %6070 = vrot.lane.b32.xlu1 %v5658_v60, %s7249_s18  ;;  %6080 = vrot.lane.b32.xlu0 %v5663_v8, %s7249_s18  ;;  %v15172_v10 = vadd.f32 %v18335_v34, %v4821_v13  ;;  %v18338_v60 = vld [vmem:[#allocation40_spill] sm:$0xff]  ;;  %v6264_v7 = vsel %vm6206_vm3, %v15091_v38, %v6031_v20  ;;  %v5377_v46 = vmax.f32 %v15111_v9, %v5217_v33  ;;  %v5216_v43 = vmul.f32 0.01, %v15160_v42  ;;  %v18340_v38 = vld [vmem:[#allocation202_spill] sm:$0xff]  ;;  %v18341_v33 = vld [vmem:[#allocation15_spill] sm:$0xff] }
 0x669   : > { %v4585_v2 = vmul.f32 %v14315_v49, %v18338_v60  ;;  %6647 = vst [vmem:[%s13693_s20 + $0x1c0] sm:$0xff] %v6519_v30  ;;  %v4818_v37 = vmul.f32 %v18330_v12, %v4578_v6  ;;  %v4823_v8 = vmul.f32 %v18334_v63, %v4583_v29  ;;  %v6265_v21 = vsel %vm6206_vm3, %v6031_v20, %v6033_v53  ;;  %v6039_v6 = vpop.permute.xlu1 %6038 }
 0x66a   : > { %v5374_v58 = vmax.f32 %v15131_v50, %v5214_v5  ;;  %v4582_v52 = vmul.f32 %v14831_v26, %v18339_v36  ;;  %v6520_v14 = vadd.f32 %v6264_v7, %v5493_v16  ;;  %v4820_v12 = vmul.f32 %v18334_v63, %v4580_v45  ;;  %v6041_v5 = vpop.permute.xlu0 %6040  ;;  %v5496_v45 = vld [vmem:[%s7409_s16 + $0x1e0] sm:$0xff]  ;;  %v5497_v16 = vld [vmem:[%s7409_s16 + $0x1e8] sm:$0xff] }
 0x66b   : > { %v4587_v9 = vmul.f32 %v14831_v26, %v18340_v38  ;;  %v6521_v28 = vadd.f32 %v6265_v21, %v5494_v25  ;;  %v5664_v20 = vmul.f32 %v12858_v56, %v5372_v22  ;;  %v5379_v50 = vmax.f32 %v15145_v54, %v5219_v17  ;;  %v18347_v38 = vld [vmem:[#allocation94_spill] sm:$0xff] }
 0x66c   : > { %6074 = vrot.lane.b32.xlu1 %v5660_v61, %s7249_s18  ;;  %6084 = vrot.lane.b32.xlu0 %v5665_v1, %s7249_s18  ;;  %v5221_v44 = vmul.f32 0.01, %v15172_v10  ;;  %v4825_v31 = vmul.f32 %v18341_v33, %v4585_v2  ;;  %6648 = vst [vmem:[%s13693_s20 + $0x1c8] sm:$0xff] %v6520_v14  ;;  %v5669_v13 = vmul.f32 %v12858_v56, %v5377_v46  ;;  %v18346_v14 = vld [vmem:[#allocation144_spill] sm:$0xff] }
 0x66d   : > { %v5058_v62 = vadd.f32 %v18332_v32, %v4818_v37  ;;  %v5063_v61 = vadd.f32 %v18335_v34, %v4823_v8  ;;  %6649 = vst [vmem:[%s13693_s20 + $0x1d0] sm:$0xff] %v6521_v28  ;;  %v6266_v1 = vsel %vm6206_vm3, %v6033_v53, %v6035_v39  ;;  %v5666_v54 = vmul.f32 %v12858_v56, %v5374_v58  ;;  %v18345_v37 = vld [vmem:[#allocation72_spill] sm:$0xff]  ;;  %v6043_v21 = vpop.permute.xlu1 %6042 }
 0x66e   : > { %v5376_v48 = vmax.f32 %v15160_v42, %v5216_v43  ;;  %v4822_v29 = vmul.f32 %v18334_v63, %v4582_v52  ;;  %v15212_v32 = vadd.f32 %v18335_v34, %v4820_v12  ;;  %v4827_v53 = vmul.f32 %v18341_v33, %v4587_v9  ;;  %v18343_v63 = vld [vmem:[#allocation267_spill] sm:$0xff]  ;;  %v6045_v28 = vpop.permute.xlu0 %6044 }
 0x66f   : > { %v6522_v30 = vadd.f32 %v6266_v1, %v5495_v51  ;;  %v5671_v39 = vmul.f32 %v12858_v56, %v5379_v50  ;;  %v5381_v42 = vmax.f32 %v15172_v10, %v5221_v44  ;;  %v5065_v22 = vadd.f32 %v18343_v63, %v4825_v31  ;;  %v5499_v50 = vld [vmem:[%s7409_s16 + $0x1f8] sm:$0xff] }
 0x670   : > { %6078 = vrot.lane.b32.xlu1 %v5662_v59, %s7249_s18  ;;  %6088 = vrot.lane.b32.xlu0 %v5667_v24, %s7249_s18  ;;  %v4584_v59 = vmul.f32 %v14610_v18, %v18342_v47  ;;  %v18344_v24 = vld [vmem:[#allocation281_spill] sm:$0xff]  ;;  %v5218_v17 = vmul.f32 0.01, %v5058_v62  ;;  %v5223_v60 = vmul.f32 0.01, %v5063_v61  ;;  %v6267_v2 = vsel %vm6206_vm3, %v6037_v4, %v6039_v6 }
 0x671   : > { %v4589_v3 = vmul.f32 %v14610_v18, %v18344_v24  ;;  %6650 = vst [vmem:[%s13693_s20 + $0x1d8] sm:$0xff] %v6522_v30  ;;  %v6268_v25 = vsel %vm6206_vm3, %v6039_v6, %v6041_v5  ;;  %v5668_v7 = vmul.f32 %v12858_v56, %v5376_v48  ;;  %v5062_v46 = vadd.f32 %v18335_v34, %v4822_v29 }
 0x672   : > { %v4824_v10 = vmul.f32 %v18341_v33, %v4584_v59  ;;  %v4586_v8 = vmul.f32 %v14894_v0, %v18345_v37  ;;  %v5220_v4 = vmul.f32 0.01, %v15212_v32  ;;  %v5067_v58 = vadd.f32 %v18343_v63, %v4827_v53  ;;  %v18348_v59 = vld [vmem:[#allocation161_spill] sm:$0xff]  ;;  %v18349_v53 = vld [vmem:[#allocation200_spill] sm:$0xff]  ;;  %v18351_v37 = vld [vmem:[#allocation103_spill] sm:$0xff] }
 0x673   : > { %v6523_v43 = vadd.f32 %v6267_v2, %v5496_v45  ;;  %v6524_v36 = vadd.f32 %v6268_v25, %v5497_v16  ;;  %v5673_v34 = vmul.f32 %v12858_v56, %v5381_v42  ;;  %v5225_v52 = vmul.f32 0.01, %v5065_v22  ;;  %v18350_v25 = vld [vmem:[#allocation207_spill] sm:$0xff] }
 0x674   : > { %6082 = vrot.lane.b32.xlu1 %v5664_v20, %s7249_s18  ;;  %6092 = vrot.lane.b32.xlu0 %v5669_v13, %s7249_s18  ;;  %v4829_v12 = vmul.f32 %v18346_v14, %v4589_v3  ;;  %v4591_v9 = vmul.f32 %v14894_v0, %v18347_v38  ;;  %v5498_v20 = vld [vmem:[%s7409_s16 + $0x1f0] sm:$0xff]  ;;  %v5378_v44 = vmax.f32 %v5058_v62, %v5218_v17  ;;  %v5222_v13 = vmul.f32 0.01, %v5062_v46 }
 0x675   : > { %v5383_v31 = vmax.f32 %v5063_v61, %v5223_v60  ;;  %6651 = vst [vmem:[%s13693_s20 + $0x1e0] sm:$0xff] %v6523_v43  ;;  %6652 = vst [vmem:[%s13693_s20 + $0x1e8] sm:$0xff] %v6524_v36  ;;  %v6269_v51 = vsel %vm6206_vm3, %v6041_v5, %v6043_v21  ;;  %v6270_v6 = vsel %vm6206_vm3, %v6043_v21, %v6045_v28  ;;  %v5227_v48 = vmul.f32 0.01, %v5067_v58  ;;  %v5500_v21 = vld [vmem:[%s7409_s16 + $0x200] sm:$0xff]  ;;  %v15273_v36 = vpop.permute.xlu0 %6048 }
 0x676   : > { %v5064_v1 = vadd.f32 %v18343_v63, %v4824_v10  ;;  %v6525_v62 = vadd.f32 %v6269_v51, %v5498_v20  ;;  %v6526_v61 = vadd.f32 %v6270_v6, %v5499_v50  ;;  %v5380_v29 = vmax.f32 %v15212_v32, %v5220_v4  ;;  %v18353_v20 = vld [vmem:[#allocation76_spill] sm:$0xff] }
 0x677   : > { %v5385_v47 = vmax.f32 %v5065_v22, %v5225_v52  ;;  %v5069_v5 = vadd.f32 %v18348_v59, %v4829_v12  ;;  %v4588_v30 = vmul.f32 %v14962_v40, %v18349_v53  ;;  %v5675_v42 = vmul.f32 %v12858_v56, %v5383_v31  ;;  %v18352_v52 = vld [vmem:[#allocation284_spill] sm:$0xff]  ;;  %v18356_v53 = vld [vmem:[#allocation282_spill] sm:$0xff] }
 0x678   : > { %6086 = vrot.lane.b32.xlu1 %v5666_v54, %s7249_s18  ;;  %6096 = vrot.lane.b32.xlu0 %v5671_v39, %s7249_s18  ;;  %v4826_v54 = vmul.f32 %v18341_v33, %v4586_v8  ;;  %v5670_v39 = vmul.f32 %v12858_v56, %v5378_v44  ;;  %v4831_v24 = vmul.f32 %v18346_v14, %v4591_v9  ;;  %v5224_v32 = vmul.f32 0.01, %v5064_v1 }
 0x679   : > { %v4593_v3 = vmul.f32 %v14962_v40, %v14733_v41  ;;  %6653 = vst [vmem:[%s13693_s20 + $0x1f0] sm:$0xff] %v6525_v62  ;;  %6654 = vst [vmem:[%s13693_s20 + $0x1f8] sm:$0xff] %v6526_v61  ;;  %v5382_v45 = vmax.f32 %v5062_v46, %v5222_v13  ;;  %v5387_v16 = vmax.f32 %v5067_v58, %v5227_v48  ;;  %v18354_v13 = vld [vmem:[#allocation212_spill] sm:$0xff]  ;;  %v18355_v62 = vld [vmem:[#allocation65_spill] sm:$0xff] }
 0x67a   : > { %v5066_v22 = vadd.f32 %v18343_v63, %v4826_v54  ;;  %v5672_v17 = vmul.f32 %v12858_v56, %v5380_v29  ;;  %v5677_v60 = vmul.f32 %v12858_v56, %v5385_v47  ;;  %v4828_v2 = vmul.f32 %v18341_v33, %v4588_v30 }
 0x67b   : > { %v4590_v41 = vmul.f32 %v14315_v49, %v18350_v25  ;;  %v5071_v46 = vadd.f32 %v18348_v59, %v4831_v24  ;;  %v4833_v10 = vmul.f32 %v18346_v14, %v4593_v3  ;;  %v4595_v8 = vmul.f32 %v14315_v49, %v18351_v37  ;;  %v18357_v3 = vld [vmem:[#allocation45_spill] sm:$0xff] }
 0x67c   : > { %6090 = vrot.lane.b32.xlu1 %v5668_v7, %s7249_s18  ;;  %6100 = vrot.lane.b32.xlu0 %v5673_v34, %s7249_s18  ;;  %v5229_v7 = vmul.f32 0.01, %v5069_v5  ;;  %v5674_v4 = vmul.f32 %v12858_v56, %v5382_v45  ;;  %v5384_v58 = vmax.f32 %v5064_v1, %v5224_v32  ;;  %v5226_v43 = vmul.f32 0.01, %v5066_v22 }
 0x67d   : > { %v5679_v34 = vmul.f32 %v12858_v56, %v5387_v16  ;;  %v4592_v12 = vmul.f32 %v14831_v26, %v18352_v52  ;;  %v5068_v9 = vadd.f32 %v18343_v63, %v4828_v2  ;;  %v4830_v28 = vmul.f32 %v18346_v14, %v4590_v41  ;;  %v18358_v16 = vld [vmem:[#allocation186_spill] sm:$0xff]  ;;  %v18359_v41 = vld [vmem:[#allocation61_spill] sm:$0xff] }
 0x67e   : > { %v4597_v50 = vmul.f32 %v14831_v26, %v18353_v20  ;;  %v5389_v31 = vmax.f32 %v5069_v5, %v5229_v7  ;;  %v5231_v51 = vmul.f32 0.01, %v5071_v46  ;;  %v5073_v6 = vadd.f32 %v18348_v59, %v4833_v10 }
 0x67f   : > { %v4835_v1 = vmul.f32 %v18354_v13, %v4595_v8  ;;  %v5386_v54 = vmax.f32 %v5066_v22, %v5226_v43  ;;  %v5676_v48 = vmul.f32 %v12858_v56, %v5384_v58  ;;  %v4832_v63 = vmul.f32 %v18346_v14, %v4592_v12  ;;  %v18360_v8 = vld [vmem:[#allocation14_spill] sm:$0xff] }
 0x680   : > { %6094 = vrot.lane.b32.xlu1 %v5670_v39, %s7249_s18  ;;  %6104 = vrot.lane.b32.xlu0 %v5675_v42, %s7249_s18  ;;  %v4594_v61 = vmul.f32 %v14610_v18, %v18355_v62  ;;  %v5228_v29 = vmul.f32 0.01, %v5068_v9  ;;  %v5070_v47 = vadd.f32 %v18348_v59, %v4830_v28  ;;  %v4837_v5 = vmul.f32 %v18354_v13, %v4597_v50  ;;  %v18361_v12 = vld [vmem:[#allocation142_spill] sm:$0xff] }
 0x681   : > { %v4599_v30 = vmul.f32 %v14610_v18, %v18356_v53  ;;  %v5681_v39 = vmul.f32 %v12858_v56, %v5389_v31  ;;  %v5391_v42 = vmax.f32 %v5071_v46, %v5231_v51  ;;  %v5233_v24 = vmul.f32 0.01, %v5073_v6 }
 0x682   : > { %v5075_v45 = vadd.f32 %v18357_v3, %v4835_v1  ;;  %v5678_v32 = vmul.f32 %v12858_v56, %v5386_v54  ;;  %v5072_v14 = vadd.f32 %v18348_v59, %v4832_v63  ;;  %v4834_v22 = vmul.f32 %v18354_v13, %v4594_v61 }
 0x683   : > { %v5230_v2 = vmul.f32 0.01, %v5070_v47  ;;  %v5077_v25 = vadd.f32 %v18357_v3, %v4837_v5  ;;  %v4839_v7 = vmul.f32 %v18359_v41, %v4599_v30  ;;  %v5683_v46 = vmul.f32 %v12858_v56, %v5391_v42 }
 0x684   : > { %6098 = vrot.lane.b32.xlu1 %v5672_v17, %s7249_s18  ;;  %6108 = vrot.lane.b32.xlu0 %v5677_v60, %s7249_s18  ;;  %v4596_v17 = vmul.f32 %v14894_v0, %v18358_v16  ;;  %v5388_v60 = vmax.f32 %v5068_v9, %v5228_v29  ;;  %v5393_v10 = vmax.f32 %v5073_v6, %v5233_v24  ;;  %v5235_v37 = vmul.f32 0.01, %v5075_v45  ;;  %v18363_v29 = vld [vmem:[#allocation231_spill] sm:$0xff]  ;;  %v18365_v16 = vld [vmem:[#allocation220_spill] sm:$0xff] }
 0x685   : > { %v6047_v33 = vpop.permute.xlu1 %6046  ;;  %v5232_v59 = vmul.f32 0.01, %v5072_v14  ;;  %v4598_v43 = vmul.f32 %v14962_v40, %v14737_v23  ;;  %v5237_v52 = vmul.f32 0.01, %v5077_v25  ;;  %v4603_v50 = vmul.f32 %v14962_v40, %v14747_v35 }
 0x686   : > { %v6271_v38 = vsel %vm6206_vm3, %v6047_v33, %v15273_v36  ;;  %v4836_v58 = vmul.f32 %v18354_v13, %v4596_v17  ;;  %v5680_v33 = vmul.f32 %v12858_v56, %v5388_v60  ;;  %v5685_v9 = vmul.f32 %v12858_v56, %v5393_v10  ;;  %v18366_v60 = vld [vmem:[#allocation50_spill] sm:$0xff] }
 0x687   : > { %v6527_v44 = vadd.f32 %v6271_v38, %v5500_v21  ;;  %v4601_v21 = vmul.f32 %v14894_v0, %v18360_v8  ;;  %v5079_v38 = vadd.f32 %v18361_v12, %v4839_v7  ;;  %v5395_v28 = vmax.f32 %v5075_v45, %v5235_v37  ;;  %v18364_v45 = vld [vmem:[#allocation66_spill] sm:$0xff] }
 0x688   : > { %6102 = vrot.lane.b32.xlu1 %v5674_v4, %s7249_s18  ;;  %6112 = vrot.lane.b32.xlu0 %v5679_v34, %s7249_s18  ;;  %v5074_v4 = vadd.f32 %v18357_v3, %v4834_v22  ;;  %v5390_v34 = vmax.f32 %v5070_v47, %v5230_v2  ;;  %v5076_v31 = vadd.f32 %v18357_v3, %v4836_v58 }
 0x689   : > { %6655 = vst [vmem:[%s13693_s20 + $0x200] sm:$0xff] %v6527_v44  ;;  %v4841_v20 = vmul.f32 %v18359_v41, %v4601_v21  ;;  %v5392_v44 = vmax.f32 %v5072_v14, %v5232_v59  ;;  %v4838_v51 = vmul.f32 %v18354_v13, %v4598_v43  ;;  %v5397_v1 = vmax.f32 %v5077_v25, %v5237_v52  ;;  %v18367_v25 = vld [vmem:[#allocation55_spill] sm:$0xff]  ;;  %v18368_v59 = vld [vmem:[#allocation49_spill] sm:$0xff] }
 0x68a   : > { %v5234_v23 = vmul.f32 0.01, %v5074_v4  ;;  %v5682_v6 = vmul.f32 %v12858_v56, %v5390_v34  ;;  %v5239_v54 = vmul.f32 0.01, %v5079_v38  ;;  %v5687_v62 = vmul.f32 %v12858_v56, %v5395_v28 }
 0x68b   : > { %v5081_v35 = vadd.f32 %v18361_v12, %v4841_v20  ;;  %v4843_v61 = vmul.f32 %v18359_v41, %v4603_v50  ;;  %v4605_v47 = vmul.f32 %v14315_v49, %v18363_v29  ;;  %v5684_v13 = vmul.f32 %v12858_v56, %v5392_v44 }
 0x68c   : > { %6106 = vrot.lane.b32.xlu1 %v5676_v48, %s7249_s18  ;;  %6116 = vrot.lane.b32.xlu0 %v5681_v39, %s7249_s18  ;;  %v18362_v48 = vld [vmem:[#allocation195_spill] sm:$0xff]  ;;  %v5394_v5 = vmax.f32 %v5074_v4, %v5234_v23  ;;  %v5236_v53 = vmul.f32 0.01, %v5076_v31  ;;  %v5078_v30 = vadd.f32 %v18357_v3, %v4838_v51  ;;  %v5689_v39 = vmul.f32 %v12858_v56, %v5397_v1  ;;  %v18371_v23 = vld [vmem:[#allocation154_spill] sm:$0xff]  ;;  %v18372_v51 = vld [vmem:[#allocation69_spill] sm:$0xff] }
 0x68d   : > { %v4600_v63 = vmul.f32 %v14315_v49, %v18362_v48  ;;  %v5399_v42 = vmax.f32 %v5079_v38, %v5239_v54  ;;  %v5241_v14 = vmul.f32 0.01, %v5081_v35  ;;  %v5083_v22 = vadd.f32 %v18361_v12, %v4843_v61 }
 0x68e   : > { %v4845_v17 = vmul.f32 %v18365_v16, %v4605_v47  ;;  %v4607_v2 = vmul.f32 %v14831_v26, %v18366_v60  ;;  %v4604_v7 = vmul.f32 %v14610_v18, %v18367_v25  ;;  %v5686_v3 = vmul.f32 %v12858_v56, %v5394_v5  ;;  %v18373_v47 = vld [vmem:[#allocation44_spill] sm:$0xff] }
 0x68f   : > { %v4840_v24 = vmul.f32 %v18359_v41, %v4600_v63  ;;  %v5238_v10 = vmul.f32 0.01, %v5078_v30  ;;  %v5691_v37 = vmul.f32 %v12858_v56, %v5399_v42  ;;  %v4609_v4 = vmul.f32 %v14610_v18, %v18368_v59  ;;  %v18376_v59 = vld [vmem:[#allocation77_spill] sm:$0xff] }
 0x690   : > { %6110 = vrot.lane.b32.xlu1 %v5678_v32, %s7249_s18  ;;  %6120 = vrot.lane.b32.xlu0 %v5683_v46, %s7249_s18  ;;  %v4602_v32 = vmul.f32 %v14831_v26, %v18364_v45  ;;  %v5396_v46 = vmax.f32 %v5076_v31, %v5236_v53  ;;  %v5401_v58 = vmax.f32 %v5081_v35, %v5241_v14  ;;  %v5243_v43 = vmul.f32 0.01, %v5083_v22  ;;  %v18374_v14 = vld [vmem:[#allocation35_spill] sm:$0xff] }
 0x691   : > { %v5080_v8 = vadd.f32 %v18361_v12, %v4840_v24  ;;  %v4847_v52 = vmul.f32 %v18365_v16, %v4607_v2  ;;  %v4844_v38 = vmul.f32 %v18365_v16, %v4604_v7  ;;  %v4849_v31 = vmul.f32 %v18371_v23, %v4609_v4  ;;  %v18375_v2 = vld [vmem:[#allocation106_spill] sm:$0xff] }
 0x692   : > { %v4842_v21 = vmul.f32 %v18359_v41, %v4602_v32  ;;  %v5688_v20 = vmul.f32 %v12858_v56, %v5396_v46  ;;  %v5398_v41 = vmax.f32 %v5078_v30, %v5238_v10  ;;  %v5693_v1 = vmul.f32 %v12858_v56, %v5401_v58 }
 0x693   : > { %v5240_v50 = vmul.f32 0.01, %v5080_v8  ;;  %v5403_v54 = vmax.f32 %v5083_v22, %v5243_v43  ;;  %v4613_v53 = vmul.f32 %v14962_v40, %v14788_v15  ;;  %v4610_v22 = vmul.f32 %v14315_v49, %v18374_v14 }
 0x694   : > { %6114 = vrot.lane.b32.xlu1 %v5680_v33, %s7249_s18  ;;  %6124 = vrot.lane.b32.xlu0 %v5685_v9, %s7249_s18  ;;  %v18369_v33 = vld [vmem:[#allocation135_spill] sm:$0xff]  ;;  %v18370_v9 = vld [vmem:[#allocation196_spill] sm:$0xff]  ;;  %v5082_v44 = vadd.f32 %v18361_v12, %v4842_v21  ;;  %v5690_v61 = vmul.f32 %v12858_v56, %v5398_v41  ;;  %v4608_v12 = vmul.f32 %v14962_v40, %v14752_v55 }
 0x695   : > { %v5085_v34 = vadd.f32 %v18369_v33, %v4845_v17  ;;  %v4606_v28 = vmul.f32 %v14894_v0, %v18370_v9  ;;  %v5087_v63 = vadd.f32 %v18369_v33, %v4847_v52  ;;  %v5400_v29 = vmax.f32 %v5080_v8, %v5240_v50  ;;  %v18377_v52 = vld [vmem:[#allocation48_spill] sm:$0xff] }
 0x696   : > { %v5695_v30 = vmul.f32 %v12858_v56, %v5403_v54  ;;  %v4848_v55 = vmul.f32 %v18365_v16, %v4608_v12  ;;  %v4853_v60 = vmul.f32 %v18371_v23, %v4613_v53  ;;  %v4615_v25 = vmul.f32 %v14315_v49, %v18375_v2  ;;  %v18379_v54 = vld [vmem:[#allocation52_spill] sm:$0xff] }
 0x697   : > { %v5245_v48 = vmul.f32 0.01, %v5085_v34  ;;  %v4846_v35 = vmul.f32 %v18365_v16, %v4606_v28  ;;  %v5247_v24 = vmul.f32 0.01, %v5087_v63  ;;  %v5692_v7 = vmul.f32 %v12858_v56, %v5400_v29  ;;  %v18380_v29 = vld [vmem:[#allocation239_spill] sm:$0xff] }
 0x698   : > { %6118 = vrot.lane.b32.xlu1 %v5682_v6, %s7249_s18  ;;  %6128 = vrot.lane.b32.xlu0 %v5687_v62, %s7249_s18  ;;  %v4611_v6 = vmul.f32 %v14894_v0, %v18372_v51  ;;  %v5084_v62 = vadd.f32 %v18369_v33, %v4844_v38  ;;  %v5088_v16 = vadd.f32 %v18369_v33, %v4848_v55 }
 0x699   : > { %v5405_v42 = vmax.f32 %v5085_v34, %v5245_v48  ;;  %v5086_v32 = vadd.f32 %v18369_v33, %v4846_v35  ;;  %v5407_v10 = vmax.f32 %v5087_v63, %v5247_v24  ;;  %v4850_v21 = vmul.f32 %v18371_v23, %v4610_v22 }
 0x69a   : > { %v4851_v5 = vmul.f32 %v18371_v23, %v4611_v6  ;;  %v5244_v45 = vmul.f32 0.01, %v5084_v62  ;;  %v4612_v4 = vmul.f32 %v14831_v26, %v18376_v59  ;;  %v5093_v34 = vadd.f32 %v18373_v47, %v4853_v60  ;;  %v5501_v6 = vld [vmem:[%s7409_s16 + $0x208] sm:$0xff]  ;;  %v18383_v60 = vld [vmem:[#allocation214_spill] sm:$0xff] }
 0x69b   : > { %v5697_v46 = vmul.f32 %v12858_v56, %v5405_v42  ;;  %v5246_v8 = vmul.f32 0.01, %v5086_v32  ;;  %v4855_v38 = vmul.f32 %v18377_v52, %v4615_v25  ;;  %v5699_v28 = vmul.f32 %v12858_v56, %v5407_v10 }
 0x69c   : > { %6122 = vrot.lane.b32.xlu1 %v5684_v13, %s7249_s18  ;;  %6132 = vrot.lane.b32.xlu0 %v5689_v39, %s7249_s18  ;;  %v5089_v13 = vadd.f32 %v18373_v47, %v4849_v31  ;;  %v5242_v39 = vmul.f32 0.01, %v5082_v44  ;;  %v5091_v15 = vadd.f32 %v18373_v47, %v4851_v5  ;;  %v5090_v31 = vadd.f32 %v18373_v47, %v4850_v21 }
 0x69d   : > { %v5406_v50 = vmax.f32 %v5086_v32, %v5246_v8  ;;  %v4852_v51 = vmul.f32 %v18371_v23, %v4612_v4  ;;  %v4614_v48 = vmul.f32 %v14610_v18, %v18379_v54  ;;  %v5253_v35 = vmul.f32 0.01, %v5093_v34 }
 0x69e   : > { %v5249_v17 = vmul.f32 0.01, %v5089_v13  ;;  %v5251_v43 = vmul.f32 0.01, %v5091_v15  ;;  %v5250_v55 = vmul.f32 0.01, %v5090_v31  ;;  %v4621_v2 = vmul.f32 %v14894_v0, %v18383_v60 }
 0x69f   : > { %v4854_v22 = vmul.f32 %v18377_v52, %v4614_v48 }
 0x6a0   : > { %6126 = vrot.lane.b32.xlu1 %v5686_v3, %s7249_s18  ;;  %6136 = vrot.lane.b32.xlu0 %v5691_v37, %s7249_s18  ;;  %v5402_v3 = vmax.f32 %v5082_v44, %v5242_v39  ;;  %v5404_v37 = vmax.f32 %v5084_v62, %v5244_v45  ;;  %v5409_v58 = vmax.f32 %v5089_v13, %v5249_v17  ;;  %v5248_v44 = vmul.f32 0.01, %v5088_v16  ;;  %v18382_v17 = vld [vmem:[#allocation75_spill] sm:$0xff] }
 0x6a1   : > { %v5411_v62 = vmax.f32 %v5091_v15, %v5251_v43  ;;  %v5095_v13 = vadd.f32 %v18380_v29, %v4855_v38  ;;  %v5698_v45 = vmul.f32 %v12858_v56, %v5406_v50  ;;  %v4616_v15 = vmul.f32 %v14894_v0, %v18382_v17 }
 0x6a2   : > { %v5694_v9 = vmul.f32 %v12858_v56, %v5402_v3  ;;  %v5696_v41 = vmul.f32 %v12858_v56, %v5404_v37  ;;  %v5701_v63 = vmul.f32 %v12858_v56, %v5409_v58  ;;  %v5408_v32 = vmax.f32 %v5088_v16, %v5248_v44 }
 0x6a3   : > { %v5255_v14 = vmul.f32 0.01, %v5095_v13  ;;  %v5703_v25 = vmul.f32 %v12858_v56, %v5411_v62  ;;  %v5410_v37 = vmax.f32 %v5090_v31, %v5250_v55  ;;  %v4618_v16 = vmul.f32 %v14962_v40, %v14802_v19  ;;  %v18390_v55 = vld [vmem:[#allocation81_spill] sm:$0xff] }
 0x6a4   : > { %6130 = vrot.lane.b32.xlu1 %v5688_v20, %s7249_s18  ;;  %6140 = vrot.lane.b32.xlu0 %v5693_v1, %s7249_s18  ;;  %v18378_v20 = vld [vmem:[#allocation198_spill] sm:$0xff]  ;;  %v5502_v1 = vld [vmem:[%s7409_s16 + $0x210] sm:$0xff]  ;;  %v5094_v21 = vadd.f32 %v18380_v29, %v4854_v22  ;;  %v4856_v59 = vmul.f32 %v18377_v52, %v4616_v15  ;;  %v4623_v58 = vmul.f32 %v14962_v40, %v14822_v57  ;;  %v18391_v15 = vld [vmem:[#allocation79_spill] sm:$0xff] }
 0x6a5   : > { %v4617_v33 = vmul.f32 %v14831_v26, %v18378_v20  ;;  %v18386_v20 = vld [vmem:[#allocation63_spill] sm:$0xff]  ;;  %v5702_v19 = vmul.f32 %v12858_v56, %v5410_v37  ;;  %v4858_v50 = vmul.f32 %v18377_v52, %v4618_v16  ;;  %v4624_v60 = vmul.f32 %v14610_v18, %v18391_v15  ;;  %v18393_v37 = vld [vmem:[#allocation272_spill] sm:$0xff] }
 0x6a6   : > { %v5254_v44 = vmul.f32 0.01, %v5094_v21  ;;  %v5096_v57 = vadd.f32 %v18380_v29, %v4856_v59 }
 0x6a7   : > { %v4857_v53 = vmul.f32 %v18377_v52, %v4617_v33  ;;  %v4620_v33 = vmul.f32 %v14315_v49, %v18386_v20  ;;  %v18395_v20 = vld [vmem:[#allocation229_spill] sm:$0xff] }
 0x6a8   : > { %6134 = vrot.lane.b32.xlu1 %v5690_v61, %s7249_s18  ;;  %6144 = vrot.lane.b32.xlu0 %v5695_v30, %s7249_s18  ;;  %v15419_v61 = vpop.permute.xlu0 %6052  ;;  %v18381_v30 = vld [vmem:[#allocation74_spill] sm:$0xff] }
 0x6a9   : > { %v4619_v39 = vmul.f32 %v14610_v18, %v18381_v30  ;;  %v5097_v3 = vadd.f32 %v18380_v29, %v4857_v53  ;;  %v5256_v53 = vmul.f32 0.01, %v5096_v57 }
 0x6ab   : > { %v5257_v38 = vmul.f32 0.01, %v5097_v3 }
 0x6ac   : > { %6138 = vrot.lane.b32.xlu1 %v5692_v7, %s7249_s18  ;;  %6148 = vrot.lane.b32.xlu0 %v5697_v46, %s7249_s18  ;;  %v5413_v7 = vmax.f32 %v5093_v34, %v5253_v35  ;;  %v18384_v46 = vld [vmem:[#allocation130_spill] sm:$0xff]  ;;  %v5415_v34 = vmax.f32 %v5095_v13, %v5255_v14 }
 0x6ad   : > { %v4859_v10 = vmul.f32 %v18384_v46, %v4619_v39  ;;  %v4861_v4 = vmul.f32 %v18384_v46, %v4621_v2  ;;  %v5417_v54 = vmax.f32 %v5097_v3, %v5257_v38  ;;  %v4860_v35 = vmul.f32 %v18384_v46, %v4620_v33  ;;  %v18392_v3 = vld [vmem:[#allocation127_spill] sm:$0xff]  ;;  %v18394_v38 = vld [vmem:[#allocation216_spill] sm:$0xff] }
 0x6ae   : > { %v5705_v43 = vmul.f32 %v12858_v56, %v5413_v7 }
 0x6b0   : > { %6142 = vrot.lane.b32.xlu1 %v5694_v9, %s7249_s18  ;;  %6152 = vrot.lane.b32.xlu0 %v5699_v28, %s7249_s18  ;;  %v18385_v9 = vld [vmem:[#allocation228_spill] sm:$0xff] }
 0x6b1   : > { %v5099_v28 = vadd.f32 %v18385_v9, %v4859_v10  ;;  %v5101_v31 = vadd.f32 %v18385_v9, %v4861_v4  ;;  %v5100_v14 = vadd.f32 %v18385_v9, %v4860_v35  ;;  %v4629_v10 = vmul.f32 %v14610_v18, %v18392_v3  ;;  %v5504_v35 = vld [vmem:[%s7409_s16 + $0x220] sm:$0xff] }
 0x6b2   : > { %v6051_v12 = vpop.permute.xlu1 %6050 }
 0x6b3   : > { %v6272_v5 = vsel %vm6206_vm3, %v15273_v36, %v6051_v12  ;;  %v6273_v23 = vsel %vm6206_vm3, %v6051_v12, %v15419_v61  ;;  %v5092_v36 = vadd.f32 %v18373_v47, %v4852_v51  ;;  %v5700_v47 = vmul.f32 %v12858_v56, %v5408_v32  ;;  %v18388_v12 = vld [vmem:[#allocation199_spill] sm:$0xff] }
 0x6b4   : > { %v6528_v42 = vadd.f32 %v6272_v5, %v5501_v6  ;;  %v6529_v24 = vadd.f32 %v6273_v23, %v5502_v1  ;;  %6146 = vrot.lane.b32.xlu1 %v5696_v41, %s7249_s18  ;;  %6156 = vrot.lane.b32.xlu0 %v5701_v63, %s7249_s18  ;;  %v4863_v51 = vmul.f32 %v18384_v46, %v4623_v58  ;;  %v15465_v1 = vpop.permute.xlu0 %6056  ;;  %v5259_v48 = vmul.f32 0.01, %v5099_v28  ;;  %v18387_v63 = vld [vmem:[#allocation59_spill] sm:$0xff] }
 0x6b5   : > { %v5252_v8 = vmul.f32 0.01, %v5092_v36  ;;  %v5707_v6 = vmul.f32 %v12858_v56, %v5415_v34  ;;  %v4625_v62 = vmul.f32 %v14315_v49, %v18387_v63  ;;  %v4622_v52 = vmul.f32 %v14831_v26, %v18388_v12  ;;  %v5505_v12 = vld [vmem:[%s7409_s16 + $0x228] sm:$0xff] }
 0x6b6   : > { %6656 = vst [vmem:[%s13693_s20 + $0x208] sm:$0xff] %v6528_v42  ;;  %6657 = vst [vmem:[%s13693_s20 + $0x210] sm:$0xff] %v6529_v24  ;;  %v5098_v5 = vadd.f32 %v18380_v29, %v4858_v50  ;;  %v5414_v23 = vmax.f32 %v5094_v21, %v5254_v44  ;;  %v5261_v30 = vmul.f32 0.01, %v5101_v31  ;;  %v5103_v39 = vadd.f32 %v18385_v9, %v4863_v51 }
 0x6b7   : > { %v5412_v41 = vmax.f32 %v5092_v36, %v5252_v8  ;;  %v5709_v42 = vmul.f32 %v12858_v56, %v5417_v54  ;;  %v5419_v24 = vmax.f32 %v5099_v28, %v5259_v48  ;;  %v4627_v36 = vmul.f32 %v14831_v26, %v18390_v55 }
 0x6b8   : > { %6150 = vrot.lane.b32.xlu1 %v5698_v45, %s7249_s18  ;;  %6160 = vrot.lane.b32.xlu0 %v5703_v25, %s7249_s18  ;;  %v18389_v45 = vld [vmem:[#allocation222_spill] sm:$0xff]  ;;  %v4862_v22 = vmul.f32 %v18384_v46, %v4622_v52  ;;  %v15485_v29 = vpop.permute.xlu0 %6060  ;;  %v5258_v17 = vmul.f32 0.01, %v5098_v5  ;;  %v5706_v2 = vmul.f32 %v12858_v56, %v5414_v23  ;;  %v5416_v25 = vmax.f32 %v5096_v57, %v5256_v53  ;;  %v18396_v57 = vld [vmem:[#allocation104_spill] sm:$0xff] }
 0x6b9   : > { %v5704_v13 = vmul.f32 %v12858_v56, %v5412_v41  ;;  %v4865_v32 = vmul.f32 %v18389_v45, %v4625_v62  ;;  %v5263_v7 = vmul.f32 0.01, %v5103_v39  ;;  %v5711_v46 = vmul.f32 %v12858_v56, %v5419_v24 }
 0x6ba   : > { %v4867_v16 = vmul.f32 %v18389_v45, %v4627_v36  ;;  %v5260_v21 = vmul.f32 0.01, %v5100_v14  ;;  %v15496_v59 = vadd.f32 %v18385_v9, %v4862_v22  ;;  %v5418_v4 = vmax.f32 %v5098_v5, %v5258_v17  ;;  %v5507_v17 = vld [vmem:[%s7409_s16 + $0x238] sm:$0xff] }
 0x6bb   : > { %v5105_v8 = vadd.f32 %v18393_v37, %v4865_v32  ;;  %v4864_v58 = vmul.f32 %v18389_v45, %v4624_v60  ;;  %v5708_v18 = vmul.f32 %v12858_v56, %v5416_v25  ;;  %v5423_v34 = vmax.f32 %v5103_v39, %v5263_v7 }
 0x6bc   : > { %6154 = vrot.lane.b32.xlu1 %v5700_v47, %s7249_s18  ;;  %6164 = vrot.lane.b32.xlu0 %v5705_v43, %s7249_s18  ;;  %v5421_v47 = vmax.f32 %v5101_v31, %v5261_v30  ;;  %v5503_v43 = vld [vmem:[%s7409_s16 + $0x218] sm:$0xff]  ;;  %v4626_v28 = vmul.f32 %v14894_v0, %v18394_v38  ;;  %v4869_v33 = vmul.f32 %v18395_v20, %v4629_v10  ;;  %v5262_v54 = vmul.f32 0.01, %v15496_v59 }
 0x6bd   : > { %v5265_v50 = vmul.f32 0.01, %v5105_v8  ;;  %v15508_v44 = vadd.f32 %v18393_v37, %v4867_v16  ;;  %v4631_v31 = vmul.f32 %v14894_v0, %v18396_v57  ;;  %v5710_v63 = vmul.f32 %v12858_v56, %v5418_v4 }
 0x6be   : > { %v5713_v41 = vmul.f32 %v12858_v56, %v5421_v47  ;;  %v15519_v62 = vadd.f32 %v18393_v37, %v4864_v58  ;;  %v5715_v0 = vmul.f32 %v12858_v56, %v5423_v34  ;;  %v4866_v52 = vmul.f32 %v18389_v45, %v4626_v28  ;;  %v5508_v58 = vld [vmem:[%s7409_s16 + $0x240] sm:$0xff] }
 0x6bf   : > { %v4628_v5 = vmul.f32 %v14962_v40, %v14835_v11  ;;  %v5425_v30 = vmax.f32 %v5105_v8, %v5265_v50  ;;  %v5267_v39 = vmul.f32 0.01, %v15508_v44  ;;  %v4633_v24 = vmul.f32 %v14962_v40, %v14850_v27  ;;  %v5506_v40 = vld [vmem:[%s7409_s16 + $0x230] sm:$0xff] }
 0x6c0   : > { %6158 = vrot.lane.b32.xlu1 %v5702_v19, %s7249_s18  ;;  %6168 = vrot.lane.b32.xlu0 %v5707_v6, %s7249_s18  ;;  %v5420_v6 = vmax.f32 %v5100_v14, %v5260_v21  ;;  %v5422_v55 = vmax.f32 %v15496_v59, %v5262_v54  ;;  %v5264_v27 = vmul.f32 0.01, %v15519_v62 }
 0x6c1   : > { %v4868_v60 = vmul.f32 %v18389_v45, %v4628_v5  ;;  %v5717_v10 = vmul.f32 %v12858_v56, %v5425_v30  ;;  %v4873_v8 = vmul.f32 %v18395_v20, %v4633_v24  ;;  %v5511_v30 = vld [vmem:[%s7409_s16 + $0x258] sm:$0xff] }
 0x6c2   : > { %v5712_v22 = vmul.f32 %v12858_v56, %v5420_v6  ;;  %v5714_v16 = vmul.f32 %v12858_v56, %v5422_v55  ;;  %v5424_v4 = vmax.f32 %v15519_v62, %v5264_v27  ;;  %v5513_v27 = vld [vmem:[%s7409_s16 + $0x268] sm:$0xff] }
 0x6c3   : > { %v5108_v34 = vadd.f32 %v18393_v37, %v4868_v60 }
 0x6c4   : > { %6162 = vrot.lane.b32.xlu1 %v5704_v13, %s7249_s18  ;;  %6172 = vrot.lane.b32.xlu0 %v5709_v42, %s7249_s18  ;;  %v4871_v42 = vmul.f32 %v18395_v20, %v4631_v31  ;;  %v5510_v31 = vld [vmem:[%s7409_s16 + $0x250] sm:$0xff] }
 0x6c8   : > { %6166 = vrot.lane.b32.xlu1 %v5706_v2, %s7249_s18  ;;  %6176 = vrot.lane.b32.xlu0 %v5711_v46, %s7249_s18  ;;  %v18398_v2 = vld [vmem:[#allocation234_spill] sm:$0xff]  ;;  %v5427_v46 = vmax.f32 %v15508_v44, %v5267_v39 }
 0x6c9   : > { %v4630_v25 = vmul.f32 %v14315_v49, %v18398_v2 }
 0x6ca   : > { %v6055_v9 = vpop.permute.xlu1 %6054  ;;  %v6065_v19 = vpop.permute.xlu0 %6064 }
 0x6cb   : > { %v6274_v51 = vsel %vm6206_vm3, %v15419_v61, %v6055_v9  ;;  %v18397_v61 = vld [vmem:[#allocation41_spill] sm:$0xff] }
 0x6cc   : > { %v6530_v48 = vadd.f32 %v6274_v51, %v5503_v43  ;;  %6170 = vrot.lane.b32.xlu1 %v5708_v18, %s7249_s18  ;;  %6180 = vrot.lane.b32.xlu0 %v5713_v41, %s7249_s18  ;;  %v5109_v13 = vadd.f32 %v18397_v61, %v4869_v33  ;;  %v5111_v47 = vadd.f32 %v18397_v61, %v4871_v42  ;;  %v18399_v41 = vld [vmem:[#allocation191_spill] sm:$0xff] }
 0x6cd   : > { %v5719_v33 = vmul.f32 %v12858_v56, %v5427_v46  ;;  %v4632_v50 = vmul.f32 %v14831_v26, %v18399_v41  ;;  %v5716_v51 = vmul.f32 %v12858_v56, %v5424_v4  ;;  %v5515_v46 = vld [vmem:[%s7409_s16 + $0x278] sm:$0xff] }
 0x6ce   : > { %6658 = vst [vmem:[%s13693_s20 + $0x218] sm:$0xff] %v6530_v48  ;;  %v6059_v23 = vpop.permute.xlu1 %6058  ;;  %v15529_v53 = vpop.permute.xlu0 %6068  ;;  %v5269_v15 = vmul.f32 0.01, %v5109_v13  ;;  %v5271_v9 = vmul.f32 0.01, %v5111_v47 }
 0x6cf   : > { %v6275_v32 = vsel %vm6206_vm3, %v15465_v1, %v6059_v23  ;;  %v6276_v11 = vsel %vm6206_vm3, %v6059_v23, %v15485_v29  ;;  %v5106_v1 = vadd.f32 %v18393_v37, %v4866_v52  ;;  %v5509_v37 = vld [vmem:[%s7409_s16 + $0x248] sm:$0xff]  ;;  %v5268_v48 = vmul.f32 0.01, %v5108_v34 }
 0x6d0   : > { %v6531_v36 = vadd.f32 %v6275_v32, %v5504_v35  ;;  %v6532_v14 = vadd.f32 %v6276_v11, %v5505_v12  ;;  %6174 = vrot.lane.b32.xlu1 %v5710_v63, %s7249_s18  ;;  %6184 = vrot.lane.b32.xlu0 %v5715_v0, %s7249_s18  ;;  %v5429_v18 = vmax.f32 %v5109_v13, %v5269_v15 }
 0x6d1   : > { %v5266_v43 = vmul.f32 0.01, %v5106_v1  ;;  %v5431_v62 = vmax.f32 %v5111_v47, %v5271_v9  ;;  %v4872_v0 = vmul.f32 %v18395_v20, %v4632_v50  ;;  %v5428_v42 = vmax.f32 %v5108_v34, %v5268_v48  ;;  %v5521_v48 = vld [vmem:[%s7409_s16 + $0x2a8] sm:$0xff] }
 0x6d2   : > { %6659 = vst [vmem:[%s13693_s20 + $0x220] sm:$0xff] %v6531_v36  ;;  %6660 = vst [vmem:[%s13693_s20 + $0x228] sm:$0xff] %v6532_v14  ;;  %v6063_v7 = vpop.permute.xlu1 %6062  ;;  %v6073_v3 = vpop.permute.xlu0 %6072  ;;  %v5721_v54 = vmul.f32 %v12858_v56, %v5429_v18 }
 0x6d3   : > { %v6277_v45 = vsel %vm6206_vm3, %v15485_v29, %v6063_v7  ;;  %v6278_v49 = vsel %vm6206_vm3, %v6063_v7, %v6065_v19  ;;  %v4870_v29 = vmul.f32 %v18395_v20, %v4630_v25  ;;  %v5113_v19 = vadd.f32 %v18397_v61, %v4873_v8 }
 0x6d4   : > { %v6533_v21 = vadd.f32 %v6277_v45, %v5506_v40  ;;  %v6534_v59 = vadd.f32 %v6278_v49, %v5507_v17  ;;  %6178 = vrot.lane.b32.xlu1 %v5712_v22, %s7249_s18  ;;  %6188 = vrot.lane.b32.xlu0 %v5717_v10, %s7249_s18  ;;  %v5426_v6 = vmax.f32 %v5106_v1, %v5266_v43  ;;  %v5512_v22 = vld [vmem:[%s7409_s16 + $0x260] sm:$0xff]  ;;  %v5514_v10 = vld [vmem:[%s7409_s16 + $0x270] sm:$0xff] }
 0x6d5   : > { %v5110_v35 = vadd.f32 %v18397_v61, %v4870_v29  ;;  %v5273_v12 = vmul.f32 0.01, %v5113_v19  ;;  %v5112_v55 = vadd.f32 %v18397_v61, %v4872_v0  ;;  %v5720_v17 = vmul.f32 %v12858_v56, %v5428_v42 }
 0x6d6   : > { %6661 = vst [vmem:[%s13693_s20 + $0x230] sm:$0xff] %v6533_v21  ;;  %6662 = vst [vmem:[%s13693_s20 + $0x238] sm:$0xff] %v6534_v59  ;;  %v6067_v38 = vpop.permute.xlu1 %6066  ;;  %v6077_v28 = vpop.permute.xlu0 %6076  ;;  %v5718_v39 = vmul.f32 %v12858_v56, %v5426_v6 }
 0x6d7   : > { %v6279_v44 = vsel %vm6206_vm3, %v6067_v38, %v15529_v53  ;;  %v5270_v32 = vmul.f32 0.01, %v5110_v35  ;;  %v5433_v11 = vmax.f32 %v5113_v19, %v5273_v12  ;;  %v5272_v60 = vmul.f32 0.01, %v5112_v55 }
 0x6d8   : > { %v6535_v57 = vadd.f32 %v6279_v44, %v5508_v58  ;;  %6182 = vrot.lane.b32.xlu1 %v5714_v16, %s7249_s18  ;;  %6192 = vrot.lane.b32.xlu0 %v5719_v33, %s7249_s18  ;;  %v5516_v58 = vld [vmem:[%s7409_s16 + $0x280] sm:$0xff]  ;;  %v5518_v33 = vld [vmem:[%s7409_s16 + $0x290] sm:$0xff] }
 0x6d9   : > { %v5430_v1 = vmax.f32 %v5110_v35, %v5270_v32  ;;  %v5725_v61 = vmul.f32 %v12858_v56, %v5433_v11  ;;  %v5432_v45 = vmax.f32 %v5112_v55, %v5272_v60 }
 0x6da   : > { %6663 = vst [vmem:[%s13693_s20 + $0x240] sm:$0xff] %v6535_v57  ;;  %v6071_v26 = vpop.permute.xlu1 %6070  ;;  %v6081_v63 = vpop.permute.xlu0 %6080  ;;  %v5519_v57 = vld [vmem:[%s7409_s16 + $0x298] sm:$0xff] }
 0x6db   : > { %v6280_v52 = vsel %vm6206_vm3, %v15529_v53, %v6071_v26  ;;  %v6281_v13 = vsel %vm6206_vm3, %v6071_v26, %v6073_v3  ;;  %v5723_v53 = vmul.f32 %v12858_v56, %v5431_v62  ;;  %v5722_v8 = vmul.f32 %v12858_v56, %v5430_v1 }
 0x6dc   : > { %v6536_v5 = vadd.f32 %v6280_v52, %v5509_v37  ;;  %v6537_v23 = vadd.f32 %v6281_v13, %v5510_v31  ;;  %6186 = vrot.lane.b32.xlu1 %v5716_v51, %s7249_s18  ;;  %6196 = vrot.lane.b32.xlu0 %v5721_v54, %s7249_s18  ;;  %v5724_v18 = vmul.f32 %v12858_v56, %v5432_v45  ;;  %v5520_v54 = vld [vmem:[%s7409_s16 + $0x2a0] sm:$0xff]  ;;  %v5522_v52 = vld [vmem:[%s7409_s16 + $0x2b0] sm:$0xff] }
 0x6dd   : > { %v5523_v13 = vld [vmem:[%s7409_s16 + $0x2b8] sm:$0xff] }
 0x6de   : > { %6664 = vst [vmem:[%s13693_s20 + $0x248] sm:$0xff] %v6536_v5  ;;  %6665 = vst [vmem:[%s13693_s20 + $0x250] sm:$0xff] %v6537_v23  ;;  %v6075_v20 = vpop.permute.xlu1 %6074  ;;  %v6085_v24 = vpop.permute.xlu0 %6084 }
 0x6df   : > { %v6282_v36 = vsel %vm6206_vm3, %v6073_v3, %v6075_v20 }
 0x6e0   : > { %v6538_v14 = vadd.f32 %v6282_v36, %v5511_v30  ;;  %6190 = vrot.lane.b32.xlu1 %v5718_v39, %s7249_s18  ;;  %6200 = vrot.lane.b32.xlu0 %v5723_v53, %s7249_s18  ;;  %v5525_v36 = vld [vmem:[%s7409_s16 + $0x2c8] sm:$0xff] }
 0x6e2   : > { %6666 = vst [vmem:[%s13693_s20 + $0x258] sm:$0xff] %v6538_v14  ;;  %v6079_v40 = vpop.permute.xlu1 %6078  ;;  %v6089_v15 = vpop.permute.xlu0 %6088  ;;  %v5526_v14 = vld [vmem:[%s7409_s16 + $0x2d0] sm:$0xff] }
 0x6e3   : > { %v6283_v2 = vsel %vm6206_vm3, %v6077_v28, %v6079_v40  ;;  %v6284_v25 = vsel %vm6206_vm3, %v6079_v40, %v6081_v63  ;;  %v5517_v28 = vld [vmem:[%s7409_s16 + $0x288] sm:$0xff] }
 0x6e4   : > { %v6539_v7 = vadd.f32 %v6283_v2, %v5512_v22  ;;  %v6540_v3 = vadd.f32 %v6284_v25, %v5513_v27  ;;  %6194 = vrot.lane.b32.xlu1 %v5720_v17, %s7249_s18  ;;  %6204 = vrot.lane.b32.xlu0 %v5725_v61, %s7249_s18  ;;  %v5527_v61 = vld [vmem:[%s7409_s16 + $0x2d8] sm:$0xff] }
 0x6e6   : > { %6667 = vst [vmem:[%s13693_s20 + $0x260] sm:$0xff] %v6539_v7  ;;  %6668 = vst [vmem:[%s13693_s20 + $0x268] sm:$0xff] %v6540_v3  ;;  %v6083_v47 = vpop.permute.xlu1 %6082  ;;  %v6093_v49 = vpop.permute.xlu0 %6092  ;;  %v5528_v3 = vld [vmem:[%s7409_s16 + $0x2e0] sm:$0xff] }
 0x6e7   : > { %v6285_v16 = vsel %vm6206_vm3, %v6081_v63, %v6083_v47  ;;  %v6286_v21 = vsel %vm6206_vm3, %v6083_v47, %v6085_v24  ;;  %v5524_v24 = vld [vmem:[%s7409_s16 + $0x2c0] sm:$0xff] }
 0x6e8   : > { %v6541_v59 = vadd.f32 %v6285_v16, %v5514_v10  ;;  %v6542_v4 = vadd.f32 %v6286_v21, %v5515_v46  ;;  %6198 = vrot.lane.b32.xlu1 %v5722_v8, %s7249_s18  ;;  %v5529_v10 = vld [vmem:[%s7409_s16 + $0x2e8] sm:$0xff]  ;;  %v5530_v21 = vld [vmem:[%s7409_s16 + $0x2f0] sm:$0xff] }
 0x6ea   : > { %6669 = vst [vmem:[%s13693_s20 + $0x270] sm:$0xff] %v6541_v59  ;;  %6670 = vst [vmem:[%s13693_s20 + $0x278] sm:$0xff] %v6542_v4  ;;  %v6087_v43 = vpop.permute.xlu1 %6086  ;;  %v6097_v34 = vpop.permute.xlu0 %6096  ;;  %v5531_v59 = vld [vmem:[%s7409_s16 + $0x2f8] sm:$0xff] }
 0x6eb   : > { %v6287_v29 = vsel %vm6206_vm3, %v6087_v43, %v6089_v15 }
 0x6ec   : > { %v6543_v38 = vadd.f32 %v6287_v29, %v5516_v58  ;;  %6202 = vrot.lane.b32.xlu1 %v5724_v18, %s7249_s18 }
 0x6ee   : > { %6671 = vst [vmem:[%s13693_s20 + $0x280] sm:$0xff] %v6543_v38  ;;  %v6091_v9 = vpop.permute.xlu1 %6090  ;;  %v6101_v19 = vpop.permute.xlu0 %6100  ;;  %v5532_v38 = vld [vmem:[%s7409_s16 + $0x300] sm:$0xff] }
 0x6ef   : > { %v6288_v41 = vsel %vm6206_vm3, %v6089_v15, %v6091_v9  ;;  %v6289_v50 = vsel %vm6206_vm3, %v6091_v9, %v6093_v49 }
 0x6f0   : > { %v6544_v56 = vadd.f32 %v6288_v41, %v5517_v28  ;;  %v6545_v44 = vadd.f32 %v6289_v50, %v5518_v33  ;;  %v5533_v41 = vld [vmem:[%s7409_s16 + $0x308] sm:$0xff]  ;;  %v5534_v50 = vld [vmem:[%s7409_s16 + $0x310] sm:$0xff] }
 0x6f2   : > { %6672 = vst [vmem:[%s13693_s20 + $0x288] sm:$0xff] %v6544_v56  ;;  %6673 = vst [vmem:[%s13693_s20 + $0x290] sm:$0xff] %v6545_v44  ;;  %v6095_v37 = vpop.permute.xlu1 %6094  ;;  %v6105_v31 = vpop.permute.xlu0 %6104 }
 0x6f3   : > { %v6290_v51 = vsel %vm6206_vm3, %v6093_v49, %v6095_v37 }
 0x6f4   : > { %v6546_v6 = vadd.f32 %v6290_v51, %v5519_v57 }
 0x6f6   : > { %6674 = vst [vmem:[%s13693_s20 + $0x298] sm:$0xff] %v6546_v6  ;;  %v6099_v26 = vpop.permute.xlu1 %6098  ;;  %v6109_v63 = vpop.permute.xlu0 %6108  ;;  %v5535_v6 = vld [vmem:[%s7409_s16 + $0x318] sm:$0xff] }
 0x6f7   : > { %v6291_v62 = vsel %vm6206_vm3, %v6097_v34, %v6099_v26  ;;  %v6292_v35 = vsel %vm6206_vm3, %v6099_v26, %v6101_v19 }
 0x6f8   : > { %v6547_v12 = vadd.f32 %v6291_v62, %v5520_v54  ;;  %v6548_v0 = vadd.f32 %v6292_v35, %v5521_v48  ;;  %v5536_v62 = vld [vmem:[%s7409_s16 + $0x320] sm:$0xff]  ;;  %v5537_v35 = vld [vmem:[%s7409_s16 + $0x328] sm:$0xff] }
 0x6fa   : > { %6675 = vst [vmem:[%s13693_s20 + $0x2a0] sm:$0xff] %v6547_v12  ;;  %6676 = vst [vmem:[%s13693_s20 + $0x2a8] sm:$0xff] %v6548_v0  ;;  %v6103_v5 = vpop.permute.xlu1 %6102  ;;  %v6113_v23 = vpop.permute.xlu0 %6112 }
 0x6fb   : > { %v6293_v30 = vsel %vm6206_vm3, %v6101_v19, %v6103_v5  ;;  %v6294_v39 = vsel %vm6206_vm3, %v6103_v5, %v6105_v31 }
 0x6fc   : > { %v6549_v42 = vadd.f32 %v6293_v30, %v5522_v52  ;;  %v6550_v20 = vadd.f32 %v6294_v39, %v5523_v13  ;;  %v5538_v30 = vld [vmem:[%s7409_s16 + $0x330] sm:$0xff]  ;;  %v5539_v39 = vld [vmem:[%s7409_s16 + $0x338] sm:$0xff] }
 0x6fe   : > { %6677 = vst [vmem:[%s13693_s20 + $0x2b0] sm:$0xff] %v6549_v42  ;;  %6678 = vst [vmem:[%s13693_s20 + $0x2b8] sm:$0xff] %v6550_v20  ;;  %v6107_v53 = vpop.permute.xlu1 %6106  ;;  %v6117_v32 = vpop.permute.xlu0 %6116 }
 0x6ff   : > { %v6295_v11 = vsel %vm6206_vm3, %v6107_v53, %v6109_v63 }
 0x700   : > { %v6551_v55 = vadd.f32 %v6295_v11, %v5524_v24 }
 0x702   : > { %6679 = vst [vmem:[%s13693_s20 + $0x2c0] sm:$0xff] %v6551_v55  ;;  %v6111_v22 = vpop.permute.xlu1 %6110  ;;  %v6121_v27 = vpop.permute.xlu0 %6120  ;;  %v5540_v55 = vld [vmem:[%s7409_s16 + $0x340] sm:$0xff] }
 0x703   : > { %v6296_v40 = vsel %vm6206_vm3, %v6109_v63, %v6111_v22  ;;  %v6297_v17 = vsel %vm6206_vm3, %v6111_v22, %v6113_v23 }
 0x704   : > { %v6552_v1 = vadd.f32 %v6296_v40, %v5525_v36  ;;  %v6553_v15 = vadd.f32 %v6297_v17, %v5526_v14  ;;  %v5541_v40 = vld [vmem:[%s7409_s16 + $0x348] sm:$0xff]  ;;  %v5542_v17 = vld [vmem:[%s7409_s16 + $0x350] sm:$0xff] }
 0x706   : > { %6680 = vst [vmem:[%s13693_s20 + $0x2c8] sm:$0xff] %v6552_v1  ;;  %6681 = vst [vmem:[%s13693_s20 + $0x2d0] sm:$0xff] %v6553_v15  ;;  %v6115_v60 = vpop.permute.xlu1 %6114  ;;  %v6125_v2 = vpop.permute.xlu0 %6124 }
 0x707   : > { %v6298_v25 = vsel %vm6206_vm3, %v6113_v23, %v6115_v60 }
 0x708   : > { %v6554_v7 = vadd.f32 %v6298_v25, %v5527_v61 }
 0x70a   : > { %6682 = vst [vmem:[%s13693_s20 + $0x2d8] sm:$0xff] %v6554_v7  ;;  %v6119_v46 = vpop.permute.xlu1 %6118  ;;  %v6129_v47 = vpop.permute.xlu0 %6128  ;;  %v5543_v7 = vld [vmem:[%s7409_s16 + $0x358] sm:$0xff] }
 0x70b   : > { %v6299_v8 = vsel %vm6206_vm3, %v6117_v32, %v6119_v46  ;;  %v6300_v45 = vsel %vm6206_vm3, %v6119_v46, %v6121_v27 }
 0x70c   : > { %v6555_v49 = vadd.f32 %v6299_v8, %v5528_v3  ;;  %v6556_v16 = vadd.f32 %v6300_v45, %v5529_v10  ;;  %v5544_v8 = vld [vmem:[%s7409_s16 + $0x360] sm:$0xff]  ;;  %v5545_v45 = vld [vmem:[%s7409_s16 + $0x368] sm:$0xff] }
 0x70e   : > { %6683 = vst [vmem:[%s13693_s20 + $0x2e0] sm:$0xff] %v6555_v49  ;;  %6684 = vst [vmem:[%s13693_s20 + $0x2e8] sm:$0xff] %v6556_v16  ;;  %v6123_v4 = vpop.permute.xlu1 %6122  ;;  %v6133_v58 = vpop.permute.xlu0 %6132 }
 0x70f   : > { %v6301_v43 = vsel %vm6206_vm3, %v6121_v27, %v6123_v4  ;;  %v6302_v18 = vsel %vm6206_vm3, %v6123_v4, %v6125_v2 }
 0x710   : > { %v6557_v34 = vadd.f32 %v6301_v43, %v5530_v21  ;;  %v6558_v29 = vadd.f32 %v6302_v18, %v5531_v59  ;;  %v5546_v43 = vld [vmem:[%s7409_s16 + $0x370] sm:$0xff]  ;;  %v5547_v18 = vld [vmem:[%s7409_s16 + $0x378] sm:$0xff] }
 0x712   : > { %6685 = vst [vmem:[%s13693_s20 + $0x2f0] sm:$0xff] %v6557_v34  ;;  %6686 = vst [vmem:[%s13693_s20 + $0x2f8] sm:$0xff] %v6558_v29  ;;  %v6127_v28 = vpop.permute.xlu1 %6126  ;;  %v6137_v33 = vpop.permute.xlu0 %6136 }
 0x713   : > { %v6303_v9 = vsel %vm6206_vm3, %v6127_v28, %v6129_v47 }
 0x714   : > { %v6559_v19 = vadd.f32 %v6303_v9, %v5532_v38 }
 0x716   : > { %6687 = vst [vmem:[%s13693_s20 + $0x300] sm:$0xff] %v6559_v19  ;;  %v6131_v56 = vpop.permute.xlu1 %6130  ;;  %v6141_v44 = vpop.permute.xlu0 %6140  ;;  %v5548_v19 = vld [vmem:[%s7409_s16 + $0x380] sm:$0xff] }
 0x717   : > { %v6304_v57 = vsel %vm6206_vm3, %v6129_v47, %v6131_v56  ;;  %v6305_v37 = vsel %vm6206_vm3, %v6131_v56, %v6133_v58 }
 0x718   : > { %v6560_v31 = vadd.f32 %v6304_v57, %v5533_v41  ;;  %v6561_v51 = vadd.f32 %v6305_v37, %v5534_v50  ;;  %v5549_v57 = vld [vmem:[%s7409_s16 + $0x388] sm:$0xff]  ;;  %v5550_v37 = vld [vmem:[%s7409_s16 + $0x390] sm:$0xff] }
 0x71a   : > { %6688 = vst [vmem:[%s13693_s20 + $0x308] sm:$0xff] %v6560_v31  ;;  %6689 = vst [vmem:[%s13693_s20 + $0x310] sm:$0xff] %v6561_v51  ;;  %v6135_v54 = vpop.permute.xlu1 %6134  ;;  %v6145_v48 = vpop.permute.xlu0 %6144 }
 0x71b   : > { %v6306_v26 = vsel %vm6206_vm3, %v6133_v58, %v6135_v54 }
 0x71c   : > { %v6562_v63 = vadd.f32 %v6306_v26, %v5535_v6 }
 0x71e   : > { %6690 = vst [vmem:[%s13693_s20 + $0x318] sm:$0xff] %v6562_v63  ;;  %v6139_v12 = vpop.permute.xlu1 %6138  ;;  %v6149_v0 = vpop.permute.xlu0 %6148  ;;  %v5551_v63 = vld [vmem:[%s7409_s16 + $0x398] sm:$0xff] }
 0x71f   : > { %v6307_v52 = vsel %vm6206_vm3, %v6137_v33, %v6139_v12  ;;  %v6308_v13 = vsel %vm6206_vm3, %v6139_v12, %v6141_v44 }
 0x720   : > { %v6563_v5 = vadd.f32 %v6307_v52, %v5536_v62  ;;  %v6564_v23 = vadd.f32 %v6308_v13, %v5537_v35  ;;  %v5552_v52 = vld [vmem:[%s7409_s16 + $0x3a0] sm:$0xff]  ;;  %v5553_v13 = vld [vmem:[%s7409_s16 + $0x3a8] sm:$0xff] }
 0x722   : > { %6691 = vst [vmem:[%s13693_s20 + $0x320] sm:$0xff] %v6563_v5  ;;  %6692 = vst [vmem:[%s13693_s20 + $0x328] sm:$0xff] %v6564_v23  ;;  %v6143_v42 = vpop.permute.xlu1 %6142  ;;  %v6153_v20 = vpop.permute.xlu0 %6152 }
 0x723   : > { %v6309_v24 = vsel %vm6206_vm3, %v6141_v44, %v6143_v42  ;;  %v6310_v53 = vsel %vm6206_vm3, %v6143_v42, %v6145_v48 }
 0x724   : > { %v6565_v32 = vadd.f32 %v6309_v24, %v5538_v30  ;;  %v6566_v11 = vadd.f32 %v6310_v53, %v5539_v39  ;;  %v5554_v24 = vld [vmem:[%s7409_s16 + $0x3b0] sm:$0xff]  ;;  %v5555_v53 = vld [vmem:[%s7409_s16 + $0x3b8] sm:$0xff] }
 0x726   : > { %6693 = vst [vmem:[%s13693_s20 + $0x330] sm:$0xff] %v6565_v32  ;;  %6694 = vst [vmem:[%s13693_s20 + $0x338] sm:$0xff] %v6566_v11  ;;  %v6147_v36 = vpop.permute.xlu1 %6146  ;;  %v6157_v14 = vpop.permute.xlu0 %6156 }
 0x727   : > { %v6311_v22 = vsel %vm6206_vm3, %v6147_v36, %v6149_v0 }
 0x728   : > { %v6567_v27 = vadd.f32 %v6311_v22, %v5540_v55 }
 0x72a   : > { %6695 = vst [vmem:[%s13693_s20 + $0x340] sm:$0xff] %v6567_v27  ;;  %v6151_v1 = vpop.permute.xlu1 %6150  ;;  %v6161_v15 = vpop.permute.xlu0 %6160  ;;  %v5556_v27 = vld [vmem:[%s7409_s16 + $0x3c0] sm:$0xff] }
 0x72b   : > { %v6312_v61 = vsel %vm6206_vm3, %v6149_v0, %v6151_v1  ;;  %v6313_v60 = vsel %vm6206_vm3, %v6151_v1, %v6153_v20 }
 0x72c   : > { %v6568_v2 = vadd.f32 %v6312_v61, %v5541_v40  ;;  %v6569_v25 = vadd.f32 %v6313_v60, %v5542_v17  ;;  %v5558_v61 = vld [vmem:[%s7409_s16 + $0x3d0] sm:$0xff] }
 0x72e   : > { %6696 = vst [vmem:[%s13693_s20 + $0x348] sm:$0xff] %v6568_v2  ;;  %6697 = vst [vmem:[%s13693_s20 + $0x350] sm:$0xff] %v6569_v25  ;;  %v6155_v3 = vpop.permute.xlu1 %6154  ;;  %v6165_v10 = vpop.permute.xlu0 %6164 }
 0x72f   : > { %v6314_v46 = vsel %vm6206_vm3, %v6153_v20, %v6155_v3 }
 0x730   : > { %v6570_v47 = vadd.f32 %v6314_v46, %v5543_v7  ;;  %v5559_v46 = vld [vmem:[%s7409_s16 + $0x3d8] sm:$0xff] }
 0x732   : > { %6698 = vst [vmem:[%s13693_s20 + $0x358] sm:$0xff] %v6570_v47  ;;  %v6159_v49 = vpop.permute.xlu1 %6158  ;;  %v6169_v16 = vpop.permute.xlu0 %6168 }
 0x733   : > { %v6315_v21 = vsel %vm6206_vm3, %v6157_v14, %v6159_v49  ;;  %v6316_v59 = vsel %vm6206_vm3, %v6159_v49, %v6161_v15 }
 0x734   : > { %v6571_v4 = vadd.f32 %v6315_v21, %v5544_v8  ;;  %v6572_v58 = vadd.f32 %v6316_v59, %v5545_v45  ;;  %v5561_v21 = vld [vmem:[%s7409_s16 + $0x3e8] sm:$0xff] }
 0x736   : > { %6699 = vst [vmem:[%s13693_s20 + $0x360] sm:$0xff] %v6571_v4  ;;  %6700 = vst [vmem:[%s13693_s20 + $0x368] sm:$0xff] %v6572_v58  ;;  %v6163_v34 = vpop.permute.xlu1 %6162  ;;  %v6173_v29 = vpop.permute.xlu0 %6172 }
 0x737   : > { %v6317_v38 = vsel %vm6206_vm3, %v6161_v15, %v6163_v34  ;;  %v6318_v28 = vsel %vm6206_vm3, %v6163_v34, %v6165_v10  ;;  %v5557_v15 = vld [vmem:[%s7409_s16 + $0x3c8] sm:$0xff]  ;;  %v5562_v34 = vld [vmem:[%s7409_s16 + $0x3f0] sm:$0xff] }
 0x738   : > { %v6573_v33 = vadd.f32 %v6317_v38, %v5546_v43  ;;  %v6574_v9 = vadd.f32 %v6318_v28, %v5547_v18 }
 0x73a   : > { %6701 = vst [vmem:[%s13693_s20 + $0x370] sm:$0xff] %v6573_v33  ;;  %6702 = vst [vmem:[%s13693_s20 + $0x378] sm:$0xff] %v6574_v9  ;;  %v6167_v41 = vpop.permute.xlu1 %6166  ;;  %v6177_v50 = vpop.permute.xlu0 %6176 }
 0x73b   : > { %v6319_v56 = vsel %vm6206_vm3, %v6167_v41, %v6169_v16 }
 0x73c   : > { %v6575_v44 = vadd.f32 %v6319_v56, %v5548_v19 }
 0x73e   : > { %6703 = vst [vmem:[%s13693_s20 + $0x380] sm:$0xff] %v6575_v44  ;;  %v6171_v31 = vpop.permute.xlu1 %6170  ;;  %v6181_v51 = vpop.permute.xlu0 %6180 }
 0x73f   : > { %v6320_v6 = vsel %vm6206_vm3, %v6169_v16, %v6171_v31  ;;  %v6321_v54 = vsel %vm6206_vm3, %v6171_v31, %v6173_v29  ;;  %v5560_v16 = vld [vmem:[%s7409_s16 + $0x3e0] sm:$0xff] }
 0x740   : > { %v6576_v48 = vadd.f32 %v6320_v6, %v5549_v57  ;;  %v6577_v26 = vadd.f32 %v6321_v54, %v5550_v37 }
 0x742   : > { %6704 = vst [vmem:[%s13693_s20 + $0x388] sm:$0xff] %v6576_v48  ;;  %6705 = vst [vmem:[%s13693_s20 + $0x390] sm:$0xff] %v6577_v26  ;;  %v6175_v62 = vpop.permute.xlu1 %6174  ;;  %v6185_v35 = vpop.permute.xlu0 %6184 }
 0x743   : > { %v6322_v12 = vsel %vm6206_vm3, %v6173_v29, %v6175_v62  ;;  %v5563_v29 = vld [vmem:[%s7409_s16 + $0x3f8] sm:$0xff]  ;;  %s7157_s16 = scalar_lea.vmem %s15767_s29, 16384 }
 0x744   : > { %v6578_v0 = vadd.f32 %v6322_v12, %v5551_v63  ;;  %p7158_p8 = scmp.ne.s32.totalorder %s15767_s29, %s7157_s16  ;;  %p7165_p13 = scmp.lt.s32.totalorder %s7163_s0, %s7157_s16 }
 0x746   : > { %6706 = vst [vmem:[%s13693_s20 + $0x398] sm:$0xff] %v6578_v0  ;;  %v6179_v5 = vpop.permute.xlu1 %6178  ;;  %v6189_v23 = vpop.permute.xlu0 %6188  ;;  %p7159_p11 = pnand %p7158_p8, %p18400_p9  ;;  %p7166_p2 = por %p7165_p13, %p7164_p6 }
 0x747   : > { %v6323_v30 = vsel %vm6206_vm3, %v6177_v50, %v6179_v5  ;;  %v6324_v39 = vsel %vm6206_vm3, %v6179_v5, %v6181_v51 }
 0x748   : > { %v6579_v42 = vadd.f32 %v6323_v30, %v5552_v52  ;;  %v6580_v20 = vadd.f32 %v6324_v39, %v5553_v13  ;;  %p7160_p0 = pneg %p7159_p11 }
 0x74a   : > { %6707 = vst [vmem:[%s13693_s20 + $0x3a0] sm:$0xff] %v6579_v42  ;;  %6708 = vst [vmem:[%s13693_s20 + $0x3a8] sm:$0xff] %v6580_v20  ;;  %v6183_v32 = vpop.permute.xlu1 %6182  ;;  %v6193_v22 = vpop.permute.xlu0 %6192  ;;  %p7167_p5 = pnand %p7166_p2, %p7160_p0 }
 0x74b   : > { %v6325_v11 = vsel %vm6206_vm3, %v6181_v51, %v6183_v32  ;;  %v6326_v55 = vsel %vm6206_vm3, %v6183_v32, %v6185_v35 }
 0x74c   : > { %v6581_v36 = vadd.f32 %v6325_v11, %v5554_v24  ;;  %v6582_v14 = vadd.f32 %v6326_v55, %v5555_v53 }
 0x74e   : > { %6709 = vst [vmem:[%s13693_s20 + $0x3b0] sm:$0xff] %v6581_v36  ;;  %6710 = vst [vmem:[%s13693_s20 + $0x3b8] sm:$0xff] %v6582_v14  ;;  %v6187_v40 = vpop.permute.xlu1 %6186  ;;  %v6197_v2 = vpop.permute.xlu0 %6196 }
 0x74f   : > { %v6327_v17 = vsel %vm6206_vm3, %v6187_v40, %v6189_v23 }
 0x750   : > { %v6583_v1 = vadd.f32 %v6327_v17, %v5556_v27 }
 0x752   : > { %6711 = vst [vmem:[%s13693_s20 + $0x3c0] sm:$0xff] %v6583_v1  ;;  %v6191_v60 = vpop.permute.xlu1 %6190  ;;  %v6201_v49 = vpop.permute.xlu0 %6200 }
 0x753   : > { %v6328_v25 = vsel %vm6206_vm3, %v6189_v23, %v6191_v60  ;;  %v6329_v7 = vsel %vm6206_vm3, %v6191_v60, %v6193_v22 }
 0x754   : > { %v6584_v3 = vadd.f32 %v6328_v25, %v5557_v15  ;;  %v6585_v10 = vadd.f32 %v6329_v7, %v5558_v61 }
 0x756   : > { %6712 = vst [vmem:[%s13693_s20 + $0x3c8] sm:$0xff] %v6584_v3  ;;  %6713 = vst [vmem:[%s13693_s20 + $0x3d0] sm:$0xff] %v6585_v10  ;;  %v6195_v47 = vpop.permute.xlu1 %6194  ;;  %v6205_v38 = vpop.permute.xlu0 %6204 }
 0x757   : > { %v6330_v8 = vsel %vm6206_vm3, %v6193_v22, %v6195_v47 }
 0x758   : > { %v6586_v45 = vadd.f32 %v6330_v8, %v5559_v46 }
 0x75a   : > { %6714 = vst [vmem:[%s13693_s20 + $0x3d8] sm:$0xff] %v6586_v45  ;;  %v6199_v59 = vpop.permute.xlu1 %6198 }
 0x75b   : > { %v6331_v4 = vsel %vm6206_vm3, %v6197_v2, %v6199_v59  ;;  %v6332_v58 = vsel %vm6206_vm3, %v6199_v59, %v6201_v49 }
 0x75c   : > { %v6587_v43 = vadd.f32 %v6331_v4, %v5560_v16  ;;  %v6588_v18 = vadd.f32 %v6332_v58, %v5561_v21 }
 0x75e   : > { %6715 = vst [vmem:[%s13693_s20 + $0x3e0] sm:$0xff] %v6587_v43  ;;  %6716 = vst [vmem:[%s13693_s20 + $0x3e8] sm:$0xff] %v6588_v18  ;;  %v6203_v28 = vpop.permute.xlu1 %6202 }
 0x75f   : > { %v6333_v33 = vsel %vm6206_vm3, %v6201_v49, %v6203_v28  ;;  %v6334_v9 = vsel %vm6206_vm3, %v6203_v28, %v6205_v38 }
 0x760   : > { %v6589_v19 = vadd.f32 %v6333_v33, %v5562_v34  ;;  %v6590_v41 = vadd.f32 %v6334_v9, %v5563_v29 }
 0x762   : > { %6717 = vst [vmem:[%s13693_s20 + $0x3f0] sm:$0xff] %v6589_v19  ;;  %6718 = vst [vmem:[%s13693_s20 + $0x3f8] sm:$0xff] %v6590_v41 }
 0x763   : > { %7170 = shalt.err (!%p7167_p5)
}
 0x764   : > { %s7171_s14 = scalar_lea.hbm %s15765_s19, 16384  ;;  %s7175_s18 = scalar_lea.hbm %s15824_s6, 32768 }
 0x765   : > { %p7172_p4 = scmp.ne.s32.totalorder %s15765_s19, %s7171_s14  ;;  %p7176_p12 = scmp.lt.u32.totalorder %s15765_s19, %s15824_s6 }
 0x766   : > { %p7177_p1 = scmp.lt.u32.totalorder %s7175_s18, %s7171_s14  ;;  %p7179_p8 = scmp.lt.u32.totalorder %s7171_s14, %s15765_s19 }
 0x767   : > { %p7173_p7 = pnand %p7172_p4, %p18400_p9 }
 0x768   : > { %p7178_p3 = por %p7177_p1, %p7176_p12 }
 0x769   : > { %p7174_p10 = pneg %p7173_p7 }
 0x76a   : > { %p7180_p11 = por %p7179_p8, %p7178_p3 }
 0x76c   : > { %p7181_p0 = pnand %p7180_p11, %p7174_p10 }
 0x76e   : > { %7184 = shalt.err (!%p7181_p0)
}
 0x76f   : > { %s7251_s7 = smov 512   ;;  %s7252_s15 = smov 32  }
 0x770   : > { %6847 = dma.vmem_to_hbm [thread:$0]  (%p18400_p9), %s15767_s29, 16384, %s15765_s19, %s6720_s26, %s7251_s7, %s7251_s7, %s7252_s15  }
 0x771 PF: > { %s6751_s16 = sand.u32 1, %s7219_s23   ;;  %p18401_p6 = scmp.ne.s32.totalorder %s16455_s13, 0 }
 0x772   : > { %p18402_p13 = scmp.ge.s32.totalorder %s7239_s28, 2  ;;  %s6752_s21 = scalar_lea.sflag [#allocation6], %s6751_s16 }
 0x774   : > { %p6854_p2 = pnand %p18402_p13, %p18401_p6 }
 0x776   : > { %7214 = dma.done.wait (!%p6854_p2), %s6752_s21, 16384  }
 0x777   : > { %7216 = vsyncadd (!%p6854_p2), %s6752_s21, 4294950912  ;;  %s23_s28 = sadd.s32 1, %s7239_s28   ;;  %s18403_s23 = smov %s7223_s24 }
 0x778   : > { %p20_p5 = scmp.ge.s32.totalorder %s23_s28, 4   ;;  %s18404_s24 = smov %s7227_s25 }
 0x779   : > { %s18405_s25 = smov %s7347_s12  ;;  %s18406_s26 = smov %s7235_s27 }
 0x77a   : > { %s18407_s27 = smov %s18409_s30  ;;  %22 = sbr.rel (!%p20_p5) target bundleno = 8 (0x8), region = 95 }
 0x781   :  { %6757 = vsyncpa [#allocation5], 1 }
 0x782   :  { %6759 = vsyncpa [#allocation5 + $0x1], 1 }
 0x783   :  { %6760 = vsyncpa [#allocation6], 1 }
 0x784   :  { %6762 = vsyncpa [#allocation6 + $0x1], 1 }

</bundles_post_ra>
